<compile_context>
chip_gen: v7x
topology: tpu7x:2x2x1
jax: 0.10.0
libtpu: 0.0.40
codegen_flags: <defaults>
</compile_context>

<pallas_src>
import functools

import jax
import jax.numpy as jnp
import numpy as np
from jax.experimental import pallas as pl
from jax.experimental.pallas import tpu as pltpu

INPUT_DIM = 64
HIDDEN_DIM = 128
OUTPUT_DIM = 1
NUM_LAYERS = 4
LN_EPS = 1e-5


def gnn_forward_kernel(x_ref, ipw_ref, ipb_ref,
                       cw_ref, cb_ref, lg_ref, lb_ref,
                       aw_ref, ab_ref,
                       w1t_ref, b1c_ref, w2t_ref, b2c_ref, w3c_ref, b3_ref,
                       out_ref):
    cd = ipw_ref.dtype  # MXU operand dtype (bf16 in production, f32 for check)

    # Input projection: (T, 64) @ (64, 128) + b, f32 accumulation.
    h = jnp.dot(x_ref[...].astype(cd), ipw_ref[...],
                preferred_element_type=jnp.float32) + ipb_ref[...]

    # 4 x (conv -> ReLU -> LayerNorm -> seq-len-1 attention (+residual)).
    # Statically unrolled: only 4 layers, gives the LLO scheduler full
    # visibility (switch to lax.fori_loop only if bundle dumps show spills).
    for i in range(NUM_LAYERS):
        h_res = h
        h = jnp.dot(h.astype(cd), cw_ref[i],
                    preferred_element_type=jnp.float32) + cb_ref[i]
        h = jnp.maximum(h, 0.0)
        # LayerNorm over features (lane axis), biased variance, eps=1e-5.
        # var = E[h^2] - mu^2: the two lane reductions are independent and can
        # overlap on the XLU units.
        mu = jnp.mean(h, axis=-1, keepdims=True)
        ms = jnp.mean(h * h, axis=-1, keepdims=True)
        h = (h - mu) * jax.lax.rsqrt(ms - mu * mu + LN_EPS)
        h = h * lg_ref[i] + lb_ref[i]
        # Length-1-sequence attention == out_proj(v_proj(h)); v/o pre-fused.
        h = (jnp.dot(h.astype(cd), aw_ref[i],
                     preferred_element_type=jnp.float32)
             + ab_ref[i] + h_res)

    # Output MLP 128 -> 64 -> 32 -> 1, computed in transposed (feature, node)
    # orientation so every intermediate and the final store are lane-dense.
    # Weights are zero-padded to 128 rows/cols (exact: padded rows stay 0).
    ht = h.T                                                   # (128, T) f32
    y = jnp.dot(w1t_ref[...], ht.astype(cd),
                preferred_element_type=jnp.float32) + b1c_ref[...]
    y = jnp.maximum(y, 0.0)                                    # rows >= 64 are 0
    y = jnp.dot(w2t_ref[...], y.astype(cd),
                preferred_element_type=jnp.float32) + b2c_ref[...]
    y = jnp.maximum(y, 0.0)                                    # rows >= 32 are 0
    # 32 -> 1 projection as a VPU multiply + sublane reduction -> (1, T).
    out = jnp.sum(y * w3c_ref[...], axis=0, keepdims=True) + b3_ref[...]
    out_ref[...] = out[None]                                   # (1, 1, T) block


def _resident_spec(arr):
    """Full-array block whose index_map always returns zeros: the array is
    DMA'd into VMEM once and stays resident across the node-axis grid."""
    nd = arr.ndim
    return pl.BlockSpec(arr.shape, lambda i, _nd=nd: (0,) * _nd)


def _nbytes(a):
    return int(a.size) * a.dtype.itemsize


def _round_up(a, b):
    return (a + b - 1) // b * b


def _auto_tile_n(n):
    """Large tiles amortize the ~0.35us/grid-step overhead; keeping >= 2 grid
    steps lets the "parallel" node axis split across v7x's two TensorCores."""
    half = -(-max(int(n), 1) // 2)           # cdiv(n, 2)
    return int(max(128, min(1024, _round_up(half, 128))))


def prepare_gnn_weights(params, compute_dtype=jnp.bfloat16):
    """One-time weight prep (do NOT redo per forward call): fuse the
    seq-len-1 attention v/o projections, cast MXU operands, and zero-pad the
    output head to 128 lanes in transposed (out_feat, in_feat) orientation."""
    cd = compute_dtype
    f32 = jnp.float32
    H, H2, H4 = HIDDEN_DIM, HIDDEN_DIM // 2, HIDDEN_DIM // 4

    # attn(h,h,h) with seq_len == 1: softmax over one key == 1, so
    # attn_out = out_proj(v_proj(h)).  Pre-fuse: W = Vw @ Ow, b = vb @ Ow + ob.
    attn_w = jnp.einsum("lij,ljk->lik", params["v_w"].astype(f32),
                        params["o_w"].astype(f32))
    attn_b = jnp.einsum("lrj,ljk->lrk", params["v_b"].astype(f32),
                        params["o_w"].astype(f32)) + params["o_b"]

    # Output head, transposed and zero-padded so all intermediates are
    # 128-wide; padded rows/cols are zero -> results are exact.
    w1t = jnp.zeros((H, H), f32).at[:H2, :].set(params["w1"].astype(f32).T)
    b1c = jnp.zeros((H, 1), f32).at[:H2, :].set(
        params["b1"].astype(f32).reshape(H2, 1))
    w2t = jnp.zeros((H, H), f32).at[:H4, :H2].set(params["w2"].astype(f32).T)
    b2c = jnp.zeros((H, 1), f32).at[:H4, :].set(
        params["b2"].astype(f32).reshape(H4, 1))
    w3c = jnp.zeros((H, 1), f32).at[:H4, :].set(params["w3"].astype(f32))
    b3 = params["b3"].astype(f32).reshape(1, 1)

    return dict(
        ip_w=params["ip_w"].astype(cd),                 # (64, 128)
        ip_b=params["ip_b"].astype(f32).reshape(1, H),  # (1, 128)
        conv_w=params["conv_w"].astype(cd),             # (L, 128, 128)
        conv_b=params["conv_b"].astype(f32),            # (L, 1, 128)
        ln_g=params["ln_g"].astype(f32),                # (L, 1, 128)
        ln_b=params["ln_b"].astype(f32),                # (L, 1, 128)
        attn_w=attn_w.astype(cd),                       # (L, 128, 128)
        attn_b=attn_b.astype(f32),                      # (L, 1, 128)
        w1t=w1t.astype(cd), b1c=b1c,                    # (128,128), (128,1)
        w2t=w2t.astype(cd), b2c=b2c,                    # (128,128), (128,1)
        w3c=w3c, b3=b3,                                 # (128,1), (1,1)
    )


def advanced_gnn_forward(x, edge_index, weights, *, tile_n=None):
    """Tiled, pipelined forward. Node axis is gridded; weights stay resident.
    `weights` must come from prepare_gnn_weights()."""
    del edge_index  # unused by the PyTorch forward as well
    n = x.shape[0]
    if tile_n is None:
        tile_n = _auto_tile_n(n)
    n_pad = _round_up(max(n, 1), tile_n)
    if n_pad != x.shape[0]:
        x = jnp.pad(x, ((0, n_pad - x.shape[0]), (0, 0)))
    grid_n = n_pad // tile_n

    w = weights
    args = (x,
            w["ip_w"], w["ip_b"],
            w["conv_w"], w["conv_b"], w["ln_g"], w["ln_b"],
            w["attn_w"], w["attn_b"],
            w["w1t"], w["b1c"], w["w2t"], w["b2c"], w["w3c"], w["b3"])

    in_specs = [pl.BlockSpec((tile_n, INPUT_DIM), lambda i: (i, 0))]
    in_specs += [_resident_spec(a) for a in args[1:]]
    # Lane-dense output: one (1, tile_n) row per grid step (3-D so the block's
    # second-minor dim equals the full array dim).
    out_spec = pl.BlockSpec((1, 1, tile_n), lambda i: (i, 0, 0))

    # VMEM budget from actual need: double-buffered x/out tiles, 2x resident
    # weights (default double-buffering), ~8 live (tile_n, 128) f32 activation
    # temporaries; 2x margin for compiler scratch, capped at 48 MiB (v7x has
    # 64 MiB/TC) and floored at 16 MiB (v5e's default scoped limit).
    weight_bytes = sum(_nbytes(a) for a in args[1:])
    need = (2 * tile_n * INPUT_DIM * 4 + 2 * tile_n * 4
            + 2 * weight_bytes + 8 * tile_n * HIDDEN_DIM * 4)
    vmem_limit = int(min(48 * 2**20, max(2 * need, 16 * 2**20)))

    # Advisory cost estimate (matmul FLOPs dominate).
    flops_per_node = 2 * (INPUT_DIM * HIDDEN_DIM
                          + NUM_LAYERS * 2 * HIDDEN_DIM * HIDDEN_DIM
                          + 2 * HIDDEN_DIM * HIDDEN_DIM)
    cost = pl.CostEstimate(
        flops=n_pad * flops_per_node,
        transcendentals=n_pad * NUM_LAYERS,
        bytes_accessed=_nbytes(x) + n_pad * 4 + weight_bytes)

    out = pl.pallas_call(
        gnn_forward_kernel,
        out_shape=jax.ShapeDtypeStruct((grid_n, 1, tile_n), jnp.float32),
        grid=(grid_n,),
        in_specs=in_specs,
        out_specs=out_spec,
        compiler_params=pltpu.CompilerParams(
            # "parallel" lets the node axis shard across both TensorCores on
            # v7x; it is a no-op on single-TC v5e/v6e.
            dimension_semantics=("parallel",),
            vmem_limit_bytes=vmem_limit),
        cost_estimate=cost,
    )(*args)
    return out.reshape(n_pad, OUTPUT_DIM)[:n]


def _xavier(key, fan_in, fan_out):
    limit = float(np.sqrt(6.0 / (fan_in + fan_out)))
    return jax.random.uniform(key, (fan_in, fan_out), jnp.float32, -limit, limit)


def init_params(key):
    """Deterministic init matching the module's shapes: Xavier-uniform weights
    (stored pre-transposed as (in, out)), zero biases, LayerNorm gamma=1/beta=0."""
    ks = list(jax.random.split(key, 1 + 3 * NUM_LAYERS + 3))
    it = iter(ks)
    p = {}
    p["ip_w"] = _xavier(next(it), INPUT_DIM, HIDDEN_DIM)
    p["ip_b"] = jnp.zeros((1, HIDDEN_DIM), jnp.float32)
    p["conv_w"] = jnp.stack([_xavier(next(it), HIDDEN_DIM, HIDDEN_DIM)
                             for _ in range(NUM_LAYERS)])
    p["conv_b"] = jnp.zeros((NUM_LAYERS, 1, HIDDEN_DIM), jnp.float32)
    p["ln_g"] = jnp.ones((NUM_LAYERS, 1, HIDDEN_DIM), jnp.float32)
    p["ln_b"] = jnp.zeros((NUM_LAYERS, 1, HIDDEN_DIM), jnp.float32)
    p["v_w"] = jnp.stack([_xavier(next(it), HIDDEN_DIM, HIDDEN_DIM)
                          for _ in range(NUM_LAYERS)])
    p["v_b"] = jnp.zeros((NUM_LAYERS, 1, HIDDEN_DIM), jnp.float32)
    p["o_w"] = jnp.stack([_xavier(next(it), HIDDEN_DIM, HIDDEN_DIM)
                          for _ in range(NUM_LAYERS)])
    p["o_b"] = jnp.zeros((NUM_LAYERS, 1, HIDDEN_DIM), jnp.float32)
    p["w1"] = _xavier(next(it), HIDDEN_DIM, HIDDEN_DIM // 2)
    p["b1"] = jnp.zeros((1, HIDDEN_DIM // 2), jnp.float32)
    p["w2"] = _xavier(next(it), HIDDEN_DIM // 2, HIDDEN_DIM // 4)
    p["b2"] = jnp.zeros((1, HIDDEN_DIM // 4), jnp.float32)
    p["w3"] = _xavier(next(it), HIDDEN_DIM // 4, OUTPUT_DIM)
    p["b3"] = jnp.zeros((1, OUTPUT_DIM), jnp.float32)
    return p


def reference_forward(x, params):
    """Pure-JAX f32 reference mirroring the PyTorch forward (eval mode),
    with the v/o projections kept separate (unfused) and the standard
    mean-of-squared-deviations LayerNorm variance."""
    h = x @ params["ip_w"] + params["ip_b"]
    for i in range(NUM_LAYERS):
        h_res = h
        h = jnp.maximum(h @ params["conv_w"][i] + params["conv_b"][i], 0.0)
        mu = jnp.mean(h, axis=-1, keepdims=True)
        var = jnp.mean(jnp.square(h - mu), axis=-1, keepdims=True)
        h = (h - mu) * jax.lax.rsqrt(var + LN_EPS)
        h = h * params["ln_g"][i] + params["ln_b"][i]
        v = h @ params["v_w"][i] + params["v_b"][i]
        h = v @ params["o_w"][i] + params["o_b"][i] + h_res
    y = jnp.maximum(h @ params["w1"] + params["b1"], 0.0)
    y = jnp.maximum(y @ params["w2"] + params["b2"], 0.0)
    return y @ params["w3"] + params["b3"]


if __name__ == "__main__":
    key = jax.random.PRNGKey(0)
    k_x, k_p = jax.random.split(key)

    N = 300  # number of graph nodes (non-multiple of the tile to test padding)
    x = jax.random.normal(k_x, (N, INPUT_DIM), jnp.float32)
    edge_index = jnp.zeros((2, 16), jnp.int32)  # unused by forward (API parity)
    params = init_params(k_p)

    ref = reference_forward(x, params)

    fwd = jax.jit(advanced_gnn_forward, static_argnames=("tile_n",))

    # f32 MXU operands: tight numerical check (same math up to fusion and
    # summation reassociation).
    w_f32 = prepare_gnn_weights(params, compute_dtype=jnp.float32)
    out_f32 = jax.block_until_ready(fwd(x, edge_index, w_f32))
    np.testing.assert_allclose(np.asarray(out_f32), np.asarray(ref),
                               rtol=1e-3, atol=1e-3)

    # Production path: bf16 MXU operands, f32 accumulate/VPU math (looser
    # sanity check for bf16 rounding).
    w_bf16 = prepare_gnn_weights(params, compute_dtype=jnp.bfloat16)
    out = jax.block_until_ready(fwd(x, edge_index, w_bf16))
    np.testing.assert_allclose(np.asarray(out), np.asarray(ref),
                               rtol=1e-1, atol=1e-1)

    assert out.shape == (N, OUTPUT_DIM)
    print("KERNEL_OK")
</pallas_src>

<mosaic_0001>
module attributes {stable_mosaic.version = 11 : i64} {
  func.func @gnn_forward_kernel(%arg0: i32, %arg1: memref<256x64xf32, #tpu.memory_space<vmem>>, %arg2: memref<64x128xf32, #tpu.memory_space<vmem>>, %arg3: memref<1x128xf32, #tpu.memory_space<vmem>>, %arg4: memref<4x128x128xf32, #tpu.memory_space<vmem>>, %arg5: memref<4x1x128xf32, #tpu.memory_space<vmem>>, %arg6: memref<4x1x128xf32, #tpu.memory_space<vmem>>, %arg7: memref<4x1x128xf32, #tpu.memory_space<vmem>>, %arg8: memref<4x128x128xf32, #tpu.memory_space<vmem>>, %arg9: memref<4x1x128xf32, #tpu.memory_space<vmem>>, %arg10: memref<128x128xf32, #tpu.memory_space<vmem>>, %arg11: memref<128x1xf32, #tpu.memory_space<vmem>>, %arg12: memref<128x128xf32, #tpu.memory_space<vmem>>, %arg13: memref<128x1xf32, #tpu.memory_space<vmem>>, %arg14: memref<128x1xf32, #tpu.memory_space<vmem>>, %arg15: memref<1x1xf32, #tpu.memory_space<vmem>>, %arg16: memref<1x1x256xf32, #tpu.memory_space<vmem>>) attributes {dimension_semantics = [#tpu.dimension_semantics<parallel>], iteration_bounds = array<i64: 2>, scalar_prefetch = 0 : i64, scratch_operands = 0 : i64, tpu.core_type = #tpu.core_type<tc>, window_params = [{transform_indices = @transform_0, window_bounds = array<i64: 256, 64>}, {pipeline_mode = #tpu.pipeline_mode<synchronous>, transform_indices = @transform_1, window_bounds = array<i64: 64, 128>}, {pipeline_mode = #tpu.pipeline_mode<synchronous>, transform_indices = @transform_2, window_bounds = array<i64: 1, 128>}, {pipeline_mode = #tpu.pipeline_mode<synchronous>, transform_indices = @transform_3, window_bounds = array<i64: 4, 128, 128>}, {pipeline_mode = #tpu.pipeline_mode<synchronous>, transform_indices = @transform_4, window_bounds = array<i64: 4, 1, 128>}, {pipeline_mode = #tpu.pipeline_mode<synchronous>, transform_indices = @transform_5, window_bounds = array<i64: 4, 1, 128>}, {pipeline_mode = #tpu.pipeline_mode<synchronous>, transform_indices = @transform_6, window_bounds = array<i64: 4, 1, 128>}, {pipeline_mode = #tpu.pipeline_mode<synchronous>, transform_indices = @transform_7, window_bounds = array<i64: 4, 128, 128>}, {pipeline_mode = #tpu.pipeline_mode<synchronous>, transform_indices = @transform_8, window_bounds = array<i64: 4, 1, 128>}, {pipeline_mode = #tpu.pipeline_mode<synchronous>, transform_indices = @transform_9, window_bounds = array<i64: 128, 128>}, {pipeline_mode = #tpu.pipeline_mode<synchronous>, transform_indices = @transform_10, window_bounds = array<i64: 128, 1>}, {pipeline_mode = #tpu.pipeline_mode<synchronous>, transform_indices = @transform_11, window_bounds = array<i64: 128, 128>}, {pipeline_mode = #tpu.pipeline_mode<synchronous>, transform_indices = @transform_12, window_bounds = array<i64: 128, 1>}, {pipeline_mode = #tpu.pipeline_mode<synchronous>, transform_indices = @transform_13, window_bounds = array<i64: 128, 1>}, {pipeline_mode = #tpu.pipeline_mode<synchronous>, transform_indices = @transform_14, window_bounds = array<i64: 1, 1>}, {transform_indices = @transform_15, window_bounds = array<i64: 1, 1, 256>}]} {
    %c0 = arith.constant 0 : index
    %c0_0 = arith.constant 0 : index
    %0 = vector.load %arg1[%c0, %c0_0] : memref<256x64xf32, #tpu.memory_space<vmem>>, vector<256x64xf32>
    %c0_1 = arith.constant 0 : index
    %c0_2 = arith.constant 0 : index
    %1 = vector.load %arg2[%c0_1, %c0_2] : memref<64x128xf32, #tpu.memory_space<vmem>>, vector<64x128xf32>
    %cst = arith.constant dense<0.000000e+00> : vector<256x128xf32>
    %2 = tpu.matmul %0, %1, %cst {dimension_numbers = #tpu.dot_dimension_numbers<[1], [0], [0], [1], [0, 0, 1, 1], [], []>} : vector<256x64xf32>, vector<64x128xf32>, vector<256x128xf32> -> vector<256x128xf32>
    %c0_3 = arith.constant 0 : index
    %c0_4 = arith.constant 0 : index
    %3 = vector.load %arg3[%c0_3, %c0_4] : memref<1x128xf32, #tpu.memory_space<vmem>>, vector<1x128xf32>
    %4 = vector.broadcast %3 : vector<1x128xf32> to vector<256x128xf32>
    %5 = arith.addf %2, %4 : vector<256x128xf32>
    %c0_5 = arith.constant 0 : index
    %c0_6 = arith.constant 0 : index
    %c0_7 = arith.constant 0 : index
    %6 = vector.load %arg4[%c0_5, %c0_6, %c0_7] : memref<4x128x128xf32, #tpu.memory_space<vmem>>, vector<1x128x128xf32>
    %7 = vector.shape_cast %6 : vector<1x128x128xf32> to vector<128x128xf32>
    %cst_8 = arith.constant dense<0.000000e+00> : vector<256x128xf32>
    %8 = tpu.matmul %5, %7, %cst_8 {dimension_numbers = #tpu.dot_dimension_numbers<[1], [0], [0], [1], [0, 0, 1, 1], [], []>} : vector<256x128xf32>, vector<128x128xf32>, vector<256x128xf32> -> vector<256x128xf32>
    %c0_9 = arith.constant 0 : index
    %c0_10 = arith.constant 0 : index
    %c0_11 = arith.constant 0 : index
    %9 = vector.load %arg5[%c0_9, %c0_10, %c0_11] : memref<4x1x128xf32, #tpu.memory_space<vmem>>, vector<1x1x128xf32>
    %10 = vector.shape_cast %9 : vector<1x1x128xf32> to vector<1x128xf32>
    %11 = vector.broadcast %10 : vector<1x128xf32> to vector<256x128xf32>
    %12 = arith.addf %8, %11 : vector<256x128xf32>
    %cst_12 = arith.constant 0.000000e+00 : f32
    %13 = vector.broadcast %cst_12 : f32 to vector<256x128xf32>
    %14 = arith.maximumf %12, %13 : vector<256x128xf32>
    %cst_13 = arith.constant dense<0.000000e+00> : vector<256xf32>
    %15 = vector.multi_reduction <add>, %14, %cst_13 [1] : vector<256x128xf32> to vector<256xf32>
    %16 = vector.shape_cast %15 : vector<256xf32> to vector<256x1xf32>
    %cst_14 = arith.constant 1.280000e+02 : f32
    %17 = vector.broadcast %cst_14 : f32 to vector<256x1xf32>
    %18 = arith.divf %16, %17 : vector<256x1xf32>
    %19 = arith.mulf %14, %14 : vector<256x128xf32>
    %cst_15 = arith.constant dense<0.000000e+00> : vector<256xf32>
    %20 = vector.multi_reduction <add>, %19, %cst_15 [1] : vector<256x128xf32> to vector<256xf32>
    %21 = vector.shape_cast %20 : vector<256xf32> to vector<256x1xf32>
    %cst_16 = arith.constant 1.280000e+02 : f32
    %22 = vector.broadcast %cst_16 : f32 to vector<256x1xf32>
    %23 = arith.divf %21, %22 : vector<256x1xf32>
    %24 = vector.broadcast %18 : vector<256x1xf32> to vector<256x128xf32>
    %25 = arith.subf %14, %24 : vector<256x128xf32>
    %26 = arith.mulf %18, %18 : vector<256x1xf32>
    %27 = arith.subf %23, %26 : vector<256x1xf32>
    %cst_17 = arith.constant 9.99999974E-6 : f32
    %28 = vector.broadcast %cst_17 : f32 to vector<256x1xf32>
    %29 = arith.addf %27, %28 : vector<256x1xf32>
    %30 = math.rsqrt %29 : vector<256x1xf32>
    %31 = vector.broadcast %30 : vector<256x1xf32> to vector<256x128xf32>
    %32 = arith.mulf %25, %31 : vector<256x128xf32>
    %c0_18 = arith.constant 0 : index
    %c0_19 = arith.constant 0 : index
    %c0_20 = arith.constant 0 : index
    %33 = vector.load %arg6[%c0_18, %c0_19, %c0_20] : memref<4x1x128xf32, #tpu.memory_space<vmem>>, vector<1x1x128xf32>
    %34 = vector.shape_cast %33 : vector<1x1x128xf32> to vector<1x128xf32>
    %35 = vector.broadcast %34 : vector<1x128xf32> to vector<256x128xf32>
    %36 = arith.mulf %32, %35 : vector<256x128xf32>
    %c0_21 = arith.constant 0 : index
    %c0_22 = arith.constant 0 : index
    %c0_23 = arith.constant 0 : index
    %37 = vector.load %arg7[%c0_21, %c0_22, %c0_23] : memref<4x1x128xf32, #tpu.memory_space<vmem>>, vector<1x1x128xf32>
    %38 = vector.shape_cast %37 : vector<1x1x128xf32> to vector<1x128xf32>
    %39 = vector.broadcast %38 : vector<1x128xf32> to vector<256x128xf32>
    %40 = arith.addf %36, %39 : vector<256x128xf32>
    %c0_24 = arith.constant 0 : index
    %c0_25 = arith.constant 0 : index
    %c0_26 = arith.constant 0 : index
    %41 = vector.load %arg8[%c0_24, %c0_25, %c0_26] : memref<4x128x128xf32, #tpu.memory_space<vmem>>, vector<1x128x128xf32>
    %42 = vector.shape_cast %41 : vector<1x128x128xf32> to vector<128x128xf32>
    %cst_27 = arith.constant dense<0.000000e+00> : vector<256x128xf32>
    %43 = tpu.matmul %40, %42, %cst_27 {dimension_numbers = #tpu.dot_dimension_numbers<[1], [0], [0], [1], [0, 0, 1, 1], [], []>} : vector<256x128xf32>, vector<128x128xf32>, vector<256x128xf32> -> vector<256x128xf32>
    %c0_28 = arith.constant 0 : index
    %c0_29 = arith.constant 0 : index
    %c0_30 = arith.constant 0 : index
    %44 = vector.load %arg9[%c0_28, %c0_29, %c0_30] : memref<4x1x128xf32, #tpu.memory_space<vmem>>, vector<1x1x128xf32>
    %45 = vector.shape_cast %44 : vector<1x1x128xf32> to vector<1x128xf32>
    %46 = vector.broadcast %45 : vector<1x128xf32> to vector<256x128xf32>
    %47 = arith.addf %43, %46 : vector<256x128xf32>
    %48 = arith.addf %47, %5 : vector<256x128xf32>
    %c1 = arith.constant 1 : index
    %c0_31 = arith.constant 0 : index
    %c0_32 = arith.constant 0 : index
    %49 = vector.load %arg4[%c1, %c0_31, %c0_32] : memref<4x128x128xf32, #tpu.memory_space<vmem>>, vector<1x128x128xf32>
    %50 = vector.shape_cast %49 : vector<1x128x128xf32> to vector<128x128xf32>
    %cst_33 = arith.constant dense<0.000000e+00> : vector<256x128xf32>
    %51 = tpu.matmul %48, %50, %cst_33 {dimension_numbers = #tpu.dot_dimension_numbers<[1], [0], [0], [1], [0, 0, 1, 1], [], []>} : vector<256x128xf32>, vector<128x128xf32>, vector<256x128xf32> -> vector<256x128xf32>
    %c1_34 = arith.constant 1 : index
    %c0_35 = arith.constant 0 : index
    %c0_36 = arith.constant 0 : index
    %52 = vector.load %arg5[%c1_34, %c0_35, %c0_36] : memref<4x1x128xf32, #tpu.memory_space<vmem>>, vector<1x1x128xf32>
    %53 = vector.shape_cast %52 : vector<1x1x128xf32> to vector<1x128xf32>
    %54 = vector.broadcast %53 : vector<1x128xf32> to vector<256x128xf32>
    %55 = arith.addf %51, %54 : vector<256x128xf32>
    %cst_37 = arith.constant 0.000000e+00 : f32
    %56 = vector.broadcast %cst_37 : f32 to vector<256x128xf32>
    %57 = arith.maximumf %55, %56 : vector<256x128xf32>
    %cst_38 = arith.constant dense<0.000000e+00> : vector<256xf32>
    %58 = vector.multi_reduction <add>, %57, %cst_38 [1] : vector<256x128xf32> to vector<256xf32>
    %59 = vector.shape_cast %58 : vector<256xf32> to vector<256x1xf32>
    %cst_39 = arith.constant 1.280000e+02 : f32
    %60 = vector.broadcast %cst_39 : f32 to vector<256x1xf32>
    %61 = arith.divf %59, %60 : vector<256x1xf32>
    %62 = arith.mulf %57, %57 : vector<256x128xf32>
    %cst_40 = arith.constant dense<0.000000e+00> : vector<256xf32>
    %63 = vector.multi_reduction <add>, %62, %cst_40 [1] : vector<256x128xf32> to vector<256xf32>
    %64 = vector.shape_cast %63 : vector<256xf32> to vector<256x1xf32>
    %cst_41 = arith.constant 1.280000e+02 : f32
    %65 = vector.broadcast %cst_41 : f32 to vector<256x1xf32>
    %66 = arith.divf %64, %65 : vector<256x1xf32>
    %67 = vector.broadcast %61 : vector<256x1xf32> to vector<256x128xf32>
    %68 = arith.subf %57, %67 : vector<256x128xf32>
    %69 = arith.mulf %61, %61 : vector<256x1xf32>
    %70 = arith.subf %66, %69 : vector<256x1xf32>
    %cst_42 = arith.constant 9.99999974E-6 : f32
    %71 = vector.broadcast %cst_42 : f32 to vector<256x1xf32>
    %72 = arith.addf %70, %71 : vector<256x1xf32>
    %73 = math.rsqrt %72 : vector<256x1xf32>
    %74 = vector.broadcast %73 : vector<256x1xf32> to vector<256x128xf32>
    %75 = arith.mulf %68, %74 : vector<256x128xf32>
    %c1_43 = arith.constant 1 : index
    %c0_44 = arith.constant 0 : index
    %c0_45 = arith.constant 0 : index
    %76 = vector.load %arg6[%c1_43, %c0_44, %c0_45] : memref<4x1x128xf32, #tpu.memory_space<vmem>>, vector<1x1x128xf32>
    %77 = vector.shape_cast %76 : vector<1x1x128xf32> to vector<1x128xf32>
    %78 = vector.broadcast %77 : vector<1x128xf32> to vector<256x128xf32>
    %79 = arith.mulf %75, %78 : vector<256x128xf32>
    %c1_46 = arith.constant 1 : index
    %c0_47 = arith.constant 0 : index
    %c0_48 = arith.constant 0 : index
    %80 = vector.load %arg7[%c1_46, %c0_47, %c0_48] : memref<4x1x128xf32, #tpu.memory_space<vmem>>, vector<1x1x128xf32>
    %81 = vector.shape_cast %80 : vector<1x1x128xf32> to vector<1x128xf32>
    %82 = vector.broadcast %81 : vector<1x128xf32> to vector<256x128xf32>
    %83 = arith.addf %79, %82 : vector<256x128xf32>
    %c1_49 = arith.constant 1 : index
    %c0_50 = arith.constant 0 : index
    %c0_51 = arith.constant 0 : index
    %84 = vector.load %arg8[%c1_49, %c0_50, %c0_51] : memref<4x128x128xf32, #tpu.memory_space<vmem>>, vector<1x128x128xf32>
    %85 = vector.shape_cast %84 : vector<1x128x128xf32> to vector<128x128xf32>
    %cst_52 = arith.constant dense<0.000000e+00> : vector<256x128xf32>
    %86 = tpu.matmul %83, %85, %cst_52 {dimension_numbers = #tpu.dot_dimension_numbers<[1], [0], [0], [1], [0, 0, 1, 1], [], []>} : vector<256x128xf32>, vector<128x128xf32>, vector<256x128xf32> -> vector<256x128xf32>
    %c1_53 = arith.constant 1 : index
    %c0_54 = arith.constant 0 : index
    %c0_55 = arith.constant 0 : index
    %87 = vector.load %arg9[%c1_53, %c0_54, %c0_55] : memref<4x1x128xf32, #tpu.memory_space<vmem>>, vector<1x1x128xf32>
    %88 = vector.shape_cast %87 : vector<1x1x128xf32> to vector<1x128xf32>
    %89 = vector.broadcast %88 : vector<1x128xf32> to vector<256x128xf32>
    %90 = arith.addf %86, %89 : vector<256x128xf32>
    %91 = arith.addf %90, %48 : vector<256x128xf32>
    %c2 = arith.constant 2 : index
    %c0_56 = arith.constant 0 : index
    %c0_57 = arith.constant 0 : index
    %92 = vector.load %arg4[%c2, %c0_56, %c0_57] : memref<4x128x128xf32, #tpu.memory_space<vmem>>, vector<1x128x128xf32>
    %93 = vector.shape_cast %92 : vector<1x128x128xf32> to vector<128x128xf32>
    %cst_58 = arith.constant dense<0.000000e+00> : vector<256x128xf32>
    %94 = tpu.matmul %91, %93, %cst_58 {dimension_numbers = #tpu.dot_dimension_numbers<[1], [0], [0], [1], [0, 0, 1, 1], [], []>} : vector<256x128xf32>, vector<128x128xf32>, vector<256x128xf32> -> vector<256x128xf32>
    %c2_59 = arith.constant 2 : index
    %c0_60 = arith.constant 0 : index
    %c0_61 = arith.constant 0 : index
    %95 = vector.load %arg5[%c2_59, %c0_60, %c0_61] : memref<4x1x128xf32, #tpu.memory_space<vmem>>, vector<1x1x128xf32>
    %96 = vector.shape_cast %95 : vector<1x1x128xf32> to vector<1x128xf32>
    %97 = vector.broadcast %96 : vector<1x128xf32> to vector<256x128xf32>
    %98 = arith.addf %94, %97 : vector<256x128xf32>
    %cst_62 = arith.constant 0.000000e+00 : f32
    %99 = vector.broadcast %cst_62 : f32 to vector<256x128xf32>
    %100 = arith.maximumf %98, %99 : vector<256x128xf32>
    %cst_63 = arith.constant dense<0.000000e+00> : vector<256xf32>
    %101 = vector.multi_reduction <add>, %100, %cst_63 [1] : vector<256x128xf32> to vector<256xf32>
    %102 = vector.shape_cast %101 : vector<256xf32> to vector<256x1xf32>
    %cst_64 = arith.constant 1.280000e+02 : f32
    %103 = vector.broadcast %cst_64 : f32 to vector<256x1xf32>
    %104 = arith.divf %102, %103 : vector<256x1xf32>
    %105 = arith.mulf %100, %100 : vector<256x128xf32>
    %cst_65 = arith.constant dense<0.000000e+00> : vector<256xf32>
    %106 = vector.multi_reduction <add>, %105, %cst_65 [1] : vector<256x128xf32> to vector<256xf32>
    %107 = vector.shape_cast %106 : vector<256xf32> to vector<256x1xf32>
    %cst_66 = arith.constant 1.280000e+02 : f32
    %108 = vector.broadcast %cst_66 : f32 to vector<256x1xf32>
    %109 = arith.divf %107, %108 : vector<256x1xf32>
    %110 = vector.broadcast %104 : vector<256x1xf32> to vector<256x128xf32>
    %111 = arith.subf %100, %110 : vector<256x128xf32>
    %112 = arith.mulf %104, %104 : vector<256x1xf32>
    %113 = arith.subf %109, %112 : vector<256x1xf32>
    %cst_67 = arith.constant 9.99999974E-6 : f32
    %114 = vector.broadcast %cst_67 : f32 to vector<256x1xf32>
    %115 = arith.addf %113, %114 : vector<256x1xf32>
    %116 = math.rsqrt %115 : vector<256x1xf32>
    %117 = vector.broadcast %116 : vector<256x1xf32> to vector<256x128xf32>
    %118 = arith.mulf %111, %117 : vector<256x128xf32>
    %c2_68 = arith.constant 2 : index
    %c0_69 = arith.constant 0 : index
    %c0_70 = arith.constant 0 : index
    %119 = vector.load %arg6[%c2_68, %c0_69, %c0_70] : memref<4x1x128xf32, #tpu.memory_space<vmem>>, vector<1x1x128xf32>
    %120 = vector.shape_cast %119 : vector<1x1x128xf32> to vector<1x128xf32>
    %121 = vector.broadcast %120 : vector<1x128xf32> to vector<256x128xf32>
    %122 = arith.mulf %118, %121 : vector<256x128xf32>
    %c2_71 = arith.constant 2 : index
    %c0_72 = arith.constant 0 : index
    %c0_73 = arith.constant 0 : index
    %123 = vector.load %arg7[%c2_71, %c0_72, %c0_73] : memref<4x1x128xf32, #tpu.memory_space<vmem>>, vector<1x1x128xf32>
    %124 = vector.shape_cast %123 : vector<1x1x128xf32> to vector<1x128xf32>
    %125 = vector.broadcast %124 : vector<1x128xf32> to vector<256x128xf32>
    %126 = arith.addf %122, %125 : vector<256x128xf32>
    %c2_74 = arith.constant 2 : index
    %c0_75 = arith.constant 0 : index
    %c0_76 = arith.constant 0 : index
    %127 = vector.load %arg8[%c2_74, %c0_75, %c0_76] : memref<4x128x128xf32, #tpu.memory_space<vmem>>, vector<1x128x128xf32>
    %128 = vector.shape_cast %127 : vector<1x128x128xf32> to vector<128x128xf32>
    %cst_77 = arith.constant dense<0.000000e+00> : vector<256x128xf32>
    %129 = tpu.matmul %126, %128, %cst_77 {dimension_numbers = #tpu.dot_dimension_numbers<[1], [0], [0], [1], [0, 0, 1, 1], [], []>} : vector<256x128xf32>, vector<128x128xf32>, vector<256x128xf32> -> vector<256x128xf32>
    %c2_78 = arith.constant 2 : index
    %c0_79 = arith.constant 0 : index
    %c0_80 = arith.constant 0 : index
    %130 = vector.load %arg9[%c2_78, %c0_79, %c0_80] : memref<4x1x128xf32, #tpu.memory_space<vmem>>, vector<1x1x128xf32>
    %131 = vector.shape_cast %130 : vector<1x1x128xf32> to vector<1x128xf32>
    %132 = vector.broadcast %131 : vector<1x128xf32> to vector<256x128xf32>
    %133 = arith.addf %129, %132 : vector<256x128xf32>
    %134 = arith.addf %133, %91 : vector<256x128xf32>
    %c3 = arith.constant 3 : index
    %c0_81 = arith.constant 0 : index
    %c0_82 = arith.constant 0 : index
    %135 = vector.load %arg4[%c3, %c0_81, %c0_82] : memref<4x128x128xf32, #tpu.memory_space<vmem>>, vector<1x128x128xf32>
    %136 = vector.shape_cast %135 : vector<1x128x128xf32> to vector<128x128xf32>
    %cst_83 = arith.constant dense<0.000000e+00> : vector<256x128xf32>
    %137 = tpu.matmul %134, %136, %cst_83 {dimension_numbers = #tpu.dot_dimension_numbers<[1], [0], [0], [1], [0, 0, 1, 1], [], []>} : vector<256x128xf32>, vector<128x128xf32>, vector<256x128xf32> -> vector<256x128xf32>
    %c3_84 = arith.constant 3 : index
    %c0_85 = arith.constant 0 : index
    %c0_86 = arith.constant 0 : index
    %138 = vector.load %arg5[%c3_84, %c0_85, %c0_86] : memref<4x1x128xf32, #tpu.memory_space<vmem>>, vector<1x1x128xf32>
    %139 = vector.shape_cast %138 : vector<1x1x128xf32> to vector<1x128xf32>
    %140 = vector.broadcast %139 : vector<1x128xf32> to vector<256x128xf32>
    %141 = arith.addf %137, %140 : vector<256x128xf32>
    %cst_87 = arith.constant 0.000000e+00 : f32
    %142 = vector.broadcast %cst_87 : f32 to vector<256x128xf32>
    %143 = arith.maximumf %141, %142 : vector<256x128xf32>
    %cst_88 = arith.constant dense<0.000000e+00> : vector<256xf32>
    %144 = vector.multi_reduction <add>, %143, %cst_88 [1] : vector<256x128xf32> to vector<256xf32>
    %145 = vector.shape_cast %144 : vector<256xf32> to vector<256x1xf32>
    %cst_89 = arith.constant 1.280000e+02 : f32
    %146 = vector.broadcast %cst_89 : f32 to vector<256x1xf32>
    %147 = arith.divf %145, %146 : vector<256x1xf32>
    %148 = arith.mulf %143, %143 : vector<256x128xf32>
    %cst_90 = arith.constant dense<0.000000e+00> : vector<256xf32>
    %149 = vector.multi_reduction <add>, %148, %cst_90 [1] : vector<256x128xf32> to vector<256xf32>
    %150 = vector.shape_cast %149 : vector<256xf32> to vector<256x1xf32>
    %cst_91 = arith.constant 1.280000e+02 : f32
    %151 = vector.broadcast %cst_91 : f32 to vector<256x1xf32>
    %152 = arith.divf %150, %151 : vector<256x1xf32>
    %153 = vector.broadcast %147 : vector<256x1xf32> to vector<256x128xf32>
    %154 = arith.subf %143, %153 : vector<256x128xf32>
    %155 = arith.mulf %147, %147 : vector<256x1xf32>
    %156 = arith.subf %152, %155 : vector<256x1xf32>
    %cst_92 = arith.constant 9.99999974E-6 : f32
    %157 = vector.broadcast %cst_92 : f32 to vector<256x1xf32>
    %158 = arith.addf %156, %157 : vector<256x1xf32>
    %159 = math.rsqrt %158 : vector<256x1xf32>
    %160 = vector.broadcast %159 : vector<256x1xf32> to vector<256x128xf32>
    %161 = arith.mulf %154, %160 : vector<256x128xf32>
    %c3_93 = arith.constant 3 : index
    %c0_94 = arith.constant 0 : index
    %c0_95 = arith.constant 0 : index
    %162 = vector.load %arg6[%c3_93, %c0_94, %c0_95] : memref<4x1x128xf32, #tpu.memory_space<vmem>>, vector<1x1x128xf32>
    %163 = vector.shape_cast %162 : vector<1x1x128xf32> to vector<1x128xf32>
    %164 = vector.broadcast %163 : vector<1x128xf32> to vector<256x128xf32>
    %165 = arith.mulf %161, %164 : vector<256x128xf32>
    %c3_96 = arith.constant 3 : index
    %c0_97 = arith.constant 0 : index
    %c0_98 = arith.constant 0 : index
    %166 = vector.load %arg7[%c3_96, %c0_97, %c0_98] : memref<4x1x128xf32, #tpu.memory_space<vmem>>, vector<1x1x128xf32>
    %167 = vector.shape_cast %166 : vector<1x1x128xf32> to vector<1x128xf32>
    %168 = vector.broadcast %167 : vector<1x128xf32> to vector<256x128xf32>
    %169 = arith.addf %165, %168 : vector<256x128xf32>
    %c3_99 = arith.constant 3 : index
    %c0_100 = arith.constant 0 : index
    %c0_101 = arith.constant 0 : index
    %170 = vector.load %arg8[%c3_99, %c0_100, %c0_101] : memref<4x128x128xf32, #tpu.memory_space<vmem>>, vector<1x128x128xf32>
    %171 = vector.shape_cast %170 : vector<1x128x128xf32> to vector<128x128xf32>
    %cst_102 = arith.constant dense<0.000000e+00> : vector<256x128xf32>
    %172 = tpu.matmul %169, %171, %cst_102 {dimension_numbers = #tpu.dot_dimension_numbers<[1], [0], [0], [1], [0, 0, 1, 1], [], []>} : vector<256x128xf32>, vector<128x128xf32>, vector<256x128xf32> -> vector<256x128xf32>
    %c3_103 = arith.constant 3 : index
    %c0_104 = arith.constant 0 : index
    %c0_105 = arith.constant 0 : index
    %173 = vector.load %arg9[%c3_103, %c0_104, %c0_105] : memref<4x1x128xf32, #tpu.memory_space<vmem>>, vector<1x1x128xf32>
    %174 = vector.shape_cast %173 : vector<1x1x128xf32> to vector<1x128xf32>
    %175 = vector.broadcast %174 : vector<1x128xf32> to vector<256x128xf32>
    %176 = arith.addf %172, %175 : vector<256x128xf32>
    %177 = arith.addf %176, %134 : vector<256x128xf32>
    %178 = tpu.transpose %177, [1, 0] : vector<256x128xf32> -> vector<128x256xf32>
    %c0_106 = arith.constant 0 : index
    %c0_107 = arith.constant 0 : index
    %179 = vector.load %arg10[%c0_106, %c0_107] : memref<128x128xf32, #tpu.memory_space<vmem>>, vector<128x128xf32>
    %cst_108 = arith.constant dense<0.000000e+00> : vector<128x256xf32>
    %180 = tpu.matmul %179, %178, %cst_108 {dimension_numbers = #tpu.dot_dimension_numbers<[1], [0], [0], [1], [0, 0, 1, 1], [], []>} : vector<128x128xf32>, vector<128x256xf32>, vector<128x256xf32> -> vector<128x256xf32>
    %c0_109 = arith.constant 0 : index
    %c0_110 = arith.constant 0 : index
    %181 = vector.load %arg11[%c0_109, %c0_110] : memref<128x1xf32, #tpu.memory_space<vmem>>, vector<128x1xf32>
    %182 = vector.broadcast %181 : vector<128x1xf32> to vector<128x256xf32>
    %183 = arith.addf %180, %182 : vector<128x256xf32>
    %cst_111 = arith.constant 0.000000e+00 : f32
    %184 = vector.broadcast %cst_111 : f32 to vector<128x256xf32>
    %185 = arith.maximumf %183, %184 : vector<128x256xf32>
    %c0_112 = arith.constant 0 : index
    %c0_113 = arith.constant 0 : index
    %186 = vector.load %arg12[%c0_112, %c0_113] : memref<128x128xf32, #tpu.memory_space<vmem>>, vector<128x128xf32>
    %cst_114 = arith.constant dense<0.000000e+00> : vector<128x256xf32>
    %187 = tpu.matmul %186, %185, %cst_114 {dimension_numbers = #tpu.dot_dimension_numbers<[1], [0], [0], [1], [0, 0, 1, 1], [], []>} : vector<128x128xf32>, vector<128x256xf32>, vector<128x256xf32> -> vector<128x256xf32>
    %c0_115 = arith.constant 0 : index
    %c0_116 = arith.constant 0 : index
    %188 = vector.load %arg13[%c0_115, %c0_116] : memref<128x1xf32, #tpu.memory_space<vmem>>, vector<128x1xf32>
    %189 = vector.broadcast %188 : vector<128x1xf32> to vector<128x256xf32>
    %190 = arith.addf %187, %189 : vector<128x256xf32>
    %cst_117 = arith.constant 0.000000e+00 : f32
    %191 = vector.broadcast %cst_117 : f32 to vector<128x256xf32>
    %192 = arith.maximumf %190, %191 : vector<128x256xf32>
    %c0_118 = arith.constant 0 : index
    %c0_119 = arith.constant 0 : index
    %193 = vector.load %arg14[%c0_118, %c0_119] : memref<128x1xf32, #tpu.memory_space<vmem>>, vector<128x1xf32>
    %194 = vector.broadcast %193 : vector<128x1xf32> to vector<128x256xf32>
    %195 = arith.mulf %192, %194 : vector<128x256xf32>
    %cst_120 = arith.constant dense<0.000000e+00> : vector<256xf32>
    %196 = vector.multi_reduction <add>, %195, %cst_120 [0] : vector<128x256xf32> to vector<256xf32>
    %197 = vector.shape_cast %196 : vector<256xf32> to vector<1x256xf32>
    %c0_121 = arith.constant 0 : index
    %c0_122 = arith.constant 0 : index
    %198 = vector.load %arg15[%c0_121, %c0_122] : memref<1x1xf32, #tpu.memory_space<vmem>>, vector<1x1xf32>
    %199 = vector.broadcast %198 : vector<1x1xf32> to vector<1x256xf32>
    %200 = arith.addf %197, %199 : vector<1x256xf32>
    %201 = vector.shape_cast %200 : vector<1x256xf32> to vector<1x1x256xf32>
    %c0_123 = arith.constant 0 : index
    %c0_124 = arith.constant 0 : index
    %c0_125 = arith.constant 0 : index
    %202 = vector.load %arg16[%c0_123, %c0_124, %c0_125] : memref<1x1x256xf32, #tpu.memory_space<vmem>>, vector<1x1x256xf32>
    tpu.vector_store %arg16[%c0_123, %c0_124, %c0_125], %201 {strides = array<i32>} : memref<1x1x256xf32, #tpu.memory_space<vmem>>, vector<1x1x256xf32>,
    return
  }
  func.func @transform_0(%arg0: i32) -> (i32, i32) {
    %c0_i32 = arith.constant 0 : i32
    %c0_i32_0 = arith.constant 0 : i32
    return %arg0, %c0_i32 : i32, i32
  }
  func.func @transform_1(%arg0: i32) -> (i32, i32) {
    %c0_i32 = arith.constant 0 : i32
    %c0_i32_0 = arith.constant 0 : i32
    %c0_i32_1 = arith.constant 0 : i32
    return %c0_i32, %c0_i32_0 : i32, i32
  }
  func.func @transform_2(%arg0: i32) -> (i32, i32) {
    %c0_i32 = arith.constant 0 : i32
    %c0_i32_0 = arith.constant 0 : i32
    %c0_i32_1 = arith.constant 0 : i32
    return %c0_i32, %c0_i32_0 : i32, i32
  }
  func.func @transform_3(%arg0: i32) -> (i32, i32, i32) {
    %c0_i32 = arith.constant 0 : i32
    %c0_i32_0 = arith.constant 0 : i32
    %c0_i32_1 = arith.constant 0 : i32
    %c0_i32_2 = arith.constant 0 : i32
    return %c0_i32, %c0_i32_0, %c0_i32_1 : i32, i32, i32
  }
  func.func @transform_4(%arg0: i32) -> (i32, i32, i32) {
    %c0_i32 = arith.constant 0 : i32
    %c0_i32_0 = arith.constant 0 : i32
    %c0_i32_1 = arith.constant 0 : i32
    %c0_i32_2 = arith.constant 0 : i32
    return %c0_i32, %c0_i32_0, %c0_i32_1 : i32, i32, i32
  }
  func.func @transform_5(%arg0: i32) -> (i32, i32, i32) {
    %c0_i32 = arith.constant 0 : i32
    %c0_i32_0 = arith.constant 0 : i32
    %c0_i32_1 = arith.constant 0 : i32
    %c0_i32_2 = arith.constant 0 : i32
    return %c0_i32, %c0_i32_0, %c0_i32_1 : i32, i32, i32
  }
  func.func @transform_6(%arg0: i32) -> (i32, i32, i32) {
    %c0_i32 = arith.constant 0 : i32
    %c0_i32_0 = arith.constant 0 : i32
    %c0_i32_1 = arith.constant 0 : i32
    %c0_i32_2 = arith.constant 0 : i32
    return %c0_i32, %c0_i32_0, %c0_i32_1 : i32, i32, i32
  }
  func.func @transform_7(%arg0: i32) -> (i32, i32, i32) {
    %c0_i32 = arith.constant 0 : i32
    %c0_i32_0 = arith.constant 0 : i32
    %c0_i32_1 = arith.constant 0 : i32
    %c0_i32_2 = arith.constant 0 : i32
    return %c0_i32, %c0_i32_0, %c0_i32_1 : i32, i32, i32
  }
  func.func @transform_8(%arg0: i32) -> (i32, i32, i32) {
    %c0_i32 = arith.constant 0 : i32
    %c0_i32_0 = arith.constant 0 : i32
    %c0_i32_1 = arith.constant 0 : i32
    %c0_i32_2 = arith.constant 0 : i32
    return %c0_i32, %c0_i32_0, %c0_i32_1 : i32, i32, i32
  }
  func.func @transform_9(%arg0: i32) -> (i32, i32) {
    %c0_i32 = arith.constant 0 : i32
    %c0_i32_0 = arith.constant 0 : i32
    %c0_i32_1 = arith.constant 0 : i32
    return %c0_i32, %c0_i32_0 : i32, i32
  }
  func.func @transform_10(%arg0: i32) -> (i32, i32) {
    %c0_i32 = arith.constant 0 : i32
    %c0_i32_0 = arith.constant 0 : i32
    %c0_i32_1 = arith.constant 0 : i32
    return %c0_i32, %c0_i32_0 : i32, i32
  }
  func.func @transform_11(%arg0: i32) -> (i32, i32) {
    %c0_i32 = arith.constant 0 : i32
    %c0_i32_0 = arith.constant 0 : i32
    %c0_i32_1 = arith.constant 0 : i32
    return %c0_i32, %c0_i32_0 : i32, i32
  }
  func.func @transform_12(%arg0: i32) -> (i32, i32) {
    %c0_i32 = arith.constant 0 : i32
    %c0_i32_0 = arith.constant 0 : i32
    %c0_i32_1 = arith.constant 0 : i32
    return %c0_i32, %c0_i32_0 : i32, i32
  }
  func.func @transform_13(%arg0: i32) -> (i32, i32) {
    %c0_i32 = arith.constant 0 : i32
    %c0_i32_0 = arith.constant 0 : i32
    %c0_i32_1 = arith.constant 0 : i32
    return %c0_i32, %c0_i32_0 : i32, i32
  }
  func.func @transform_14(%arg0: i32) -> (i32, i32) {
    %c0_i32 = arith.constant 0 : i32
    %c0_i32_0 = arith.constant 0 : i32
    %c0_i32_1 = arith.constant 0 : i32
    return %c0_i32, %c0_i32_0 : i32, i32
  }
  func.func @transform_15(%arg0: i32) -> (i32, i32, i32) {
    %c0_i32 = arith.constant 0 : i32
    %c0_i32_0 = arith.constant 0 : i32
    %c0_i32_1 = arith.constant 0 : i32
    return %arg0, %c0_i32, %c0_i32_0 : i32, i32, i32
  }
}

</mosaic_0001>

<bundles_post_ra>
// kernel: advanced_gnn_forward.1
= control target key start
LH: loop header
LB: loop body
LE: loop exit
PB: predicated region body
PF: predicated region fallthrough
CT: control target
= control target key end

     0   :  { %s8035_s20 = smov 0   ;;  %s11393_s0 = inlined_call_operand.vmem [shape: f32[512,64], index: 0, kind: input, shape index: {}]   ;;  %s11394_s1 = inlined_call_operand.vmem [shape: f32[64,128], index: 1, kind: input, shape index: {}]   ;;  %s11395_s2 = inlined_call_operand.vmem [shape: f32[1,128], index: 2, kind: input, shape index: {}]   ;;  %s11396_s3 = inlined_call_operand.vmem [shape: f32[4,128,128], index: 3, kind: input, shape index: {}]   ;;  %s11397_s4 = inlined_call_operand.vmem [shape: f32[4,1,128], index: 4, kind: input, shape index: {}]   ;;  %s11398_s5 = inlined_call_operand.vmem [shape: f32[4,1,128], index: 5, kind: input, shape index: {}]   ;;  %s11399_s6 = inlined_call_operand.vmem [shape: f32[4,1,128], index: 6, kind: input, shape index: {}]   ;;  %s11400_s7 = inlined_call_operand.vmem [shape: f32[4,128,128], index: 7, kind: input, shape index: {}]   ;;  %s11401_s8 = inlined_call_operand.vmem [shape: f32[4,1,128], index: 8, kind: input, shape index: {}]   ;;  %s11402_s9 = inlined_call_operand.vmem [shape: f32[128,128], index: 9, kind: input, shape index: {}]   ;;  %s11403_s10 = inlined_call_operand.vmem [shape: f32[128,1], index: 10, kind: input, shape index: {}]   ;;  %s11404_s11 = inlined_call_operand.vmem [shape: f32[128,128], index: 11, kind: input, shape index: {}]   ;;  %s11405_s12 = inlined_call_operand.vmem [shape: f32[128,1], index: 12, kind: input, shape index: {}]   ;;  %s11406_s13 = inlined_call_operand.vmem [shape: f32[128,1], index: 13, kind: input, shape index: {}]   ;;  %s11407_s14 = inlined_call_operand.<no memory space> [shape: f32[1,1], index: 14, kind: input, shape index: {}]   ;;  %s11408_s15 = inlined_call_operand.vmem [shape: f32[2,1,256], index: 15, kind: output, shape index: {}]  }
   0x1   :  { %v20_v0 = vstv %s11407_s14 }
   0x2   :  { %21 = vst [vmem:[#allocation2] sm:$0x1] %v20_v0 }
   0x3 LB: > { %s8041_s21 = sadd.s32 4294967295, %s7947_s20   ;;  %p5973_p0 = scmp.ge.s32.totalorder %s7947_s20, 1  ;;  %s7947_s20 = sphi %s8035_s20, %s27_s20  }
   0x4   : > { %p440_p1 = scmp.lt.s32.totalorder %s7947_s20, 3 }
   0x6   : > { %p441_p2 = pnand %p5973_p0, %p440_p1 }
   0x8   : > { %444 = sbr.rel (%p441_p2) target bundleno = 3385 (0xd39), region = 80 }
   0xf   : > { %v529_v1 = vld [vmem:[%s11394_s1] sm:$0xff]  ;;  %v530_v2 = vld [vmem:[%s11394_s1 + $0x8] sm:$0xff]  ;;  %v531_v3 = vld [vmem:[%s11394_s1 + $0x10] sm:$0xff]  ;;  %s5974_s27 = sshll.u32 %s8041_s21, 5  ;;  %vm544_vm0 = vcmask 523264   ;;  %p493_p4 = scmp.lt.s32.totalorder %s8041_s21, 1 }
  0x10   : > { %v7328_v4 = vpack.c.bf16 %v530_v2, %v529_v1  ;;  %v532_v5 = vld [vmem:[%s11394_s1 + $0x18] sm:$0xff]  ;;  %p488_p3 = scmp.lt.s32.totalorder %s5974_s27, 63  ;;  %v533_v7 = vld [vmem:[%s11394_s1 + $0x20] sm:$0xff]  ;;  %v534_v8 = vld [vmem:[%s11394_s1 + $0x28] sm:$0xff] }
  0x11   : > { %v7332_v6 = vpack.c.bf16 %v532_v5, %v531_v3  ;;  %v7336_v9 = vpack.c.bf16 %v534_v8, %v533_v7  ;;  %v535_v10 = vld [vmem:[%s11394_s1 + $0x30] sm:$0xff]  ;;  %v536_v11 = vld [vmem:[%s11394_s1 + $0x38] sm:$0xff]  ;;  %v866_v14 = vld [vmem:[%s11396_s3] sm:$0xff]  ;;  %s11709_s21 = smov (!%p493_p4, %s8041_s21), 1 }
  0x12   : > { %7329 = vmatprep.subr.bf16.mxu0 %v7328_v4  ;;  %s11707_s27 = smov (!%p488_p3, %s5974_s27), 63  ;;  %7664 = vmatprep.subr.bf16.mxu1 %v7328_v4  ;;  %v7340_v13 = vpack.c.bf16 %v536_v11, %v535_v10  ;;  %v867_v15 = vld [vmem:[%s11396_s3 + $0x8] sm:$0xff]  ;;  %v868_v18 = vld [vmem:[%s11396_s3 + $0x10] sm:$0xff]  ;;  %v869_v19 = vld [vmem:[%s11396_s3 + $0x18] sm:$0xff]  ;;  %s5976_s17 = sshll.u32 %s11709_s21, 1 }
  0x13   : > { %7331 = vmatpush3.bf16.msra.mxu0 %v7328_v4  ;;  %7668 = vmatpush3.bf16.msra.mxu1 %v7328_v4  ;;  %s5975_s19 = sshll.u32 %s11707_s27, 3  ;;  %v7344_v17 = vpack.c.bf16 %v867_v15, %v866_v14  ;;  %v7348_v24 = vpack.c.bf16 %v869_v19, %v868_v18  ;;  %v870_v25 = vld [vmem:[%s11396_s3 + $0x20] sm:$0xff]  ;;  %v871_v26 = vld [vmem:[%s11396_s3 + $0x28] sm:$0xff]  ;;  %v872_v32 = vld [vmem:[%s11396_s3 + $0x30] sm:$0xff]  ;;  %s496_s22 = scalar_lea.vmem %s11408_s15, %s5976_s17 }
  0x14   : > { %7333 = vmatprep.subr.bf16.mxu0 %v7332_v6  ;;  %7665 = vmatprep.subr.bf16.mxu1 %v7332_v6  ;;  %s8073_s28 = scalar_lea.vmem %s11393_s0, %s5975_s19  ;;  %v7352_v31 = vpack.c.bf16 %v871_v26, %v870_v25  ;;  %v873_v33 = vld [vmem:[%s11396_s3 + $0x38] sm:$0xff]  ;;  %v874_v39 = vld [vmem:[%s11396_s3 + $0x40] sm:$0xff]  ;;  %v875_v40 = vld [vmem:[%s11396_s3 + $0x48] sm:$0xff] }
  0x15   : > { %v497_v12 = vld [vmem:[%s8073_s28] sm:$0xff]  ;;  %v498_v20 = vld [vmem:[%s8073_s28 + $0x8] sm:$0xff]  ;;  %v499_v21 = vld [vmem:[%s8073_s28 + $0x10] sm:$0xff]  ;;  %v7356_v38 = vpack.c.bf16 %v873_v33, %v872_v32  ;;  %v7360_v45 = vpack.c.bf16 %v875_v40, %v874_v39 }
  0x16   : > { %6640 = vmatprep.mubr.msk.f32.mxu0 %vm544_vm0, %v497_v12  ;;  %v513_v16 = vld [vmem:[%s8073_s28 + $0x80] sm:$0xff]  ;;  %v514_v22 = vld [vmem:[%s8073_s28 + $0x88] sm:$0xff]  ;;  %v515_v23 = vld [vmem:[%s8073_s28 + $0x90] sm:$0xff] }
  0x17   : > { %7335 = vmatpush3.bf16.msra.mxu0 %v7332_v6  ;;  %7669 = vmatpush3.bf16.msra.mxu1 %v7332_v6  ;;  %v500_v27 = vld [vmem:[%s8073_s28 + $0x18] sm:$0xff]  ;;  %v501_v28 = vld [vmem:[%s8073_s28 + $0x20] sm:$0xff]  ;;  %v502_v34 = vld [vmem:[%s8073_s28 + $0x28] sm:$0xff] }
  0x18   : > { %7337 = vmatprep.subr.bf16.mxu0 %v7336_v9  ;;  %7666 = vmatprep.subr.bf16.mxu1 %v7336_v9  ;;  %v516_v29 = vld [vmem:[%s8073_s28 + $0x98] sm:$0xff]  ;;  %v517_v30 = vld [vmem:[%s8073_s28 + $0xa0] sm:$0xff]  ;;  %v503_v35 = vld [vmem:[%s8073_s28 + $0x30] sm:$0xff] }
  0x19   : > { %6664 = vmatprep.mubr.msk.f32.mxu1 %vm544_vm0, %v513_v16  ;;  %v518_v36 = vld [vmem:[%s8073_s28 + $0xa8] sm:$0xff]  ;;  %v519_v37 = vld [vmem:[%s8073_s28 + $0xb0] sm:$0xff]  ;;  %v504_v41 = vld [vmem:[%s8073_s28 + $0x38] sm:$0xff] }
  0x1a   : > { %v505_v42 = vld [vmem:[%s8073_s28 + $0x40] sm:$0xff]  ;;  %v520_v43 = vld [vmem:[%s8073_s28 + $0xb8] sm:$0xff]  ;;  %v876_v46 = vld [vmem:[%s11396_s3 + $0x50] sm:$0xff] }
  0x1b   : > { %7339 = vmatpush3.bf16.msra.mxu0 %v7336_v9  ;;  %7670 = vmatpush3.bf16.msra.mxu1 %v7336_v9  ;;  %v521_v44 = vld [vmem:[%s8073_s28 + $0xc0] sm:$0xff]  ;;  %v877_v47 = vld [vmem:[%s11396_s3 + $0x58] sm:$0xff]  ;;  %v506_v48 = vld [vmem:[%s8073_s28 + $0x48] sm:$0xff] }
  0x1c   : > { %7341 = vmatprep.subr.bf16.mxu0 %v7340_v13  ;;  %7667 = vmatprep.subr.bf16.mxu1 %v7340_v13  ;;  %v507_v49 = vld [vmem:[%s8073_s28 + $0x50] sm:$0xff]  ;;  %v522_v50 = vld [vmem:[%s8073_s28 + $0xc8] sm:$0xff]  ;;  %v7364_v52 = vpack.c.bf16 %v877_v47, %v876_v46  ;;  %v878_v53 = vld [vmem:[%s11396_s3 + $0x60] sm:$0xff] }
  0x1d   : > { %v523_v51 = vld [vmem:[%s8073_s28 + $0xd0] sm:$0xff]  ;;  %v879_v54 = vld [vmem:[%s11396_s3 + $0x68] sm:$0xff]  ;;  %v508_v55 = vld [vmem:[%s8073_s28 + $0x58] sm:$0xff] }
  0x1e   : > { %v509_v56 = vld [vmem:[%s8073_s28 + $0x60] sm:$0xff]  ;;  %v524_v57 = vld [vmem:[%s8073_s28 + $0xd8] sm:$0xff]  ;;  %v7368_v59 = vpack.c.bf16 %v879_v54, %v878_v53  ;;  %v510_v60 = vld [vmem:[%s8073_s28 + $0x68] sm:$0xff] }
  0x1f   : > { %7343 = vmatpush3.bf16.msra.mxu0 %v7340_v13  ;;  %7671 = vmatpush3.bf16.msra.mxu1 %v7340_v13  ;;  %v525_v58 = vld [vmem:[%s8073_s28 + $0xe0] sm:$0xff]  ;;  %v511_v61 = vld [vmem:[%s8073_s28 + $0x70] sm:$0xff]  ;;  %v526_v62 = vld [vmem:[%s8073_s28 + $0xe8] sm:$0xff] }
  0x20   : > { %7345 = vmatprep.subr.bf16.mxu1 %v7344_v17  ;;  %v527_v63 = vld [vmem:[%s8073_s28 + $0xf0] sm:$0xff]  ;;  %v512_v0 = vld [vmem:[%s8073_s28 + $0x78] sm:$0xff]  ;;  %v8190_v5 = vld [vmem:[%s11395_s2] ss:$0 sm:$0xff] }
  0x21   : > { %v528_v1 = vld [vmem:[%s8073_s28 + $0xf8] sm:$0xff]  ;;  %v880_v2 = vld [vmem:[%s11396_s3 + $0x70] sm:$0xff] }
  0x22   : > { %6641 = vmatmul.mubr.msk.f32.vlgmr.msra.gmra.mrb[0].mxu0 %vm544_vm0, %v498_v20  ;;  %6665 = vmatmul.mubr.msk.f32.vlgmr.msra.gmra.mrb[0].mxu1 %vm544_vm0, %v514_v22  ;;  %v881_v3 = vld [vmem:[%s11396_s3 + $0x78] sm:$0xff] }
  0x23   : > { %6643 = vmatprep.mubr.msk.f32.mxu0 %vm544_vm0, %v499_v21  ;;  %6667 = vmatprep.mubr.msk.f32.mxu1 %vm544_vm0, %v515_v23  ;;  %v7372_v4 = vpack.c.bf16 %v881_v3, %v880_v2 }
  0x24   : > { %7347 = vmatpush3.bf16.msra.mxu1 %v7344_v17 }
  0x25   : > { %7349 = vmatprep.subr.bf16.mxu1 %v7348_v24 }
  0x26   : > { %6644 = vmatmul.mubr.msk.f32.gmra.mrb[2].mxu0 %vm544_vm0, %v500_v27  ;;  %6668 = vmatmul.mubr.msk.f32.gmra.mrb[2].mxu1 %vm544_vm0, %v516_v29 }
  0x27   : > { %6646 = vmatprep.mubr.msk.f32.mxu0 %vm544_vm0, %v501_v28  ;;  %6670 = vmatprep.mubr.msk.f32.mxu1 %vm544_vm0, %v517_v30 }
  0x28   : > { %7351 = vmatpush3.bf16.msra.mxu1 %v7348_v24 }
  0x29   : > { %7353 = vmatprep.subr.bf16.mxu1 %v7352_v31 }
  0x2a   : > { %6647 = vmatmul.mubr.msk.f32.gmra.mrb[4].mxu0 %vm544_vm0, %v502_v34  ;;  %6671 = vmatmul.mubr.msk.f32.gmra.mrb[4].mxu1 %vm544_vm0, %v518_v36 }
  0x2b   : > { %6649 = vmatprep.mubr.msk.f32.mxu0 %vm544_vm0, %v503_v35  ;;  %6673 = vmatprep.mubr.msk.f32.mxu1 %vm544_vm0, %v519_v37 }
  0x2c   : > { %7355 = vmatpush3.bf16.msra.mxu1 %v7352_v31 }
  0x2d   : > { %7357 = vmatprep.subr.bf16.mxu1 %v7356_v38 }
  0x2e   : > { %6650 = vmatmul.mubr.msk.f32.gmra.mrb[6].mxu0 %vm544_vm0, %v504_v41  ;;  %6674 = vmatmul.mubr.msk.f32.gmra.mrb[6].mxu1 %vm544_vm0, %v520_v43 }
  0x2f   : > { %6652 = vmatprep.mubr.msk.f32.mxu0 %vm544_vm0, %v505_v42  ;;  %6676 = vmatprep.mubr.msk.f32.mxu1 %vm544_vm0, %v521_v44 }
  0x30   : > { %7359 = vmatpush3.bf16.msra.mxu1 %v7356_v38 }
  0x31   : > { %7361 = vmatprep.subr.bf16.mxu1 %v7360_v45 }
  0x32   : > { %6653 = vmatmul.mubr.msk.f32.gmra.mrb[8].mxu0 %vm544_vm0, %v506_v48  ;;  %6677 = vmatmul.mubr.msk.f32.gmra.mrb[8].mxu1 %vm544_vm0, %v522_v50 }
  0x33   : > { %6655 = vmatprep.mubr.msk.f32.mxu0 %vm544_vm0, %v507_v49  ;;  %6679 = vmatprep.mubr.msk.f32.mxu1 %vm544_vm0, %v523_v51 }
  0x34   : > { %7363 = vmatpush3.bf16.msra.mxu1 %v7360_v45 }
  0x35   : > { %7365 = vmatprep.subr.bf16.mxu1 %v7364_v52 }
  0x36   : > { %6656 = vmatmul.mubr.msk.f32.gmra.mrb[10].mxu0 %vm544_vm0, %v508_v55  ;;  %6680 = vmatmul.mubr.msk.f32.gmra.mrb[10].mxu1 %vm544_vm0, %v524_v57 }
  0x37   : > { %6658 = vmatprep.mubr.msk.f32.mxu0 %vm544_vm0, %v509_v56  ;;  %6682 = vmatprep.mubr.msk.f32.mxu1 %vm544_vm0, %v525_v58 }
  0x38   : > { %7367 = vmatpush3.bf16.msra.mxu1 %v7364_v52 }
  0x39   : > { %7369 = vmatprep.subr.bf16.mxu1 %v7368_v59 }
  0x3a   : > { %6659 = vmatmul.mubr.msk.f32.gmra.mrb[12].mxu0 %vm544_vm0, %v510_v60  ;;  %6683 = vmatmul.mubr.msk.f32.gmra.mrb[12].mxu1 %vm544_vm0, %v526_v62 }
  0x3b   : > { %6661 = vmatprep.mubr.msk.f32.mxu0 %vm544_vm0, %v511_v61  ;;  %6685 = vmatprep.mubr.msk.f32.mxu1 %vm544_vm0, %v527_v63 }
  0x3c   : > { %7371 = vmatpush3.bf16.msra.mxu1 %v7368_v59 }
  0x3d   : > { %7373 = vmatprep.subr.bf16.mxu1 %v7372_v4 }
  0x3e   : > { %6662 = vmatmul.mubr.msk.f32.gmra.mrb[14].mxu0 %vm544_vm0, %v512_v0  ;;  %6686 = vmatmul.mubr.msk.f32.gmra.mrb[14].mxu1 %vm544_vm0, %v528_v1 }
  0x40   : > { %7375 = vmatpush3.bf16.msra.mxu1 %v7372_v4 }
  0xf5   : > { %v6642_v6 = vpop.f32.mrb[0].mxu0  ;;  %v8192_v8 = vpop.f32.mrb[0].mxu1 }
  0xf6   : > { %v707_v7 = vpop.f32.mrb[1].mxu0  ;;  %v787_v10 = vpop.f32.mrb[1].mxu1  ;;  %v8198_v11 = vadd.f32 %v6642_v6, %v8190_v5  ;;  %v8263_v55 = vadd.f32 %v8192_v8, %v8190_v5 }
  0xf7   : > { %v8195_v9 = vadd.f32 %v8190_v5, %v707_v7  ;;  %v8257_v53 = vadd.f32 %v8190_v5, %v787_v10  ;;  %v8326_v7 = vld [vmem:[%s11397_s4] ss:$0 sm:$0xff] }
  0xf8   : > { %11518 = vst [vmem:[#allocation13_spill] sm:$0xff] %v8263_v55 }
  0xf9   : > { %6720 = vmatprep.mubr.f32.mxu1 %v8195_v9  ;;  %v6645_v12 = vpop.f32.mrb[2].mxu0  ;;  %v6669_v15 = vpop.f32.mrb[2].mxu1  ;;  %11517 = vst [vmem:[#allocation12_spill] sm:$0xff] %v8257_v53 }
  0xfa   : > { %6721 = vmatmul.mubr.f32.vlgmr.msra.gmra.mrb[16].mxu1 %v8198_v11  ;;  %v8203_v13 = vadd.f32 %v6645_v12, %v8190_v5  ;;  %v717_v14 = vpop.f32.mrb[3].mxu0  ;;  %v797_v17 = vpop.f32.mrb[3].mxu1  ;;  %v8271_v57 = vadd.f32 %v6669_v15, %v8190_v5 }
  0xfb   : > { %v8206_v16 = vadd.f32 %v8190_v5, %v717_v14  ;;  %v8267_v56 = vadd.f32 %v8190_v5, %v797_v17  ;;  %v1642_v17 = vld [vmem:[%s11400_s7 + $0x8] sm:$0xff] }
  0xfc   : > { %11520 = vst [vmem:[#allocation15_spill] sm:$0xff] %v8271_v57 }
  0xfd   : > { %6723 = vmatprep.mubr.f32.mxu1 %v8206_v16  ;;  %v6648_v18 = vpop.f32.mrb[4].mxu0  ;;  %v6672_v21 = vpop.f32.mrb[4].mxu1  ;;  %11519 = vst [vmem:[#allocation14_spill] sm:$0xff] %v8267_v56 }
  0xfe   : > { %6724 = vmatmul.mubr.f32.gmra.mrb[18].mxu1 %v8203_v13  ;;  %v8211_v19 = vadd.f32 %v6648_v18, %v8190_v5  ;;  %v727_v20 = vpop.f32.mrb[5].mxu0  ;;  %v807_v23 = vpop.f32.mrb[5].mxu1  ;;  %v8279_v59 = vadd.f32 %v6672_v21, %v8190_v5 }
  0xff   : > { %v8214_v22 = vadd.f32 %v8190_v5, %v727_v20  ;;  %v8275_v58 = vadd.f32 %v8190_v5, %v807_v23 }
 0x100   : > { %11522 = vst [vmem:[#allocation17_spill] sm:$0xff] %v8279_v59 }
 0x101   : > { %6726 = vmatprep.mubr.f32.mxu1 %v8214_v22  ;;  %v6651_v24 = vpop.f32.mrb[6].mxu0  ;;  %v6675_v27 = vpop.f32.mrb[6].mxu1  ;;  %11521 = vst [vmem:[#allocation16_spill] sm:$0xff] %v8275_v58 }
 0x102   : > { %6727 = vmatmul.mubr.f32.gmra.mrb[20].mxu1 %v8211_v19  ;;  %v8219_v25 = vadd.f32 %v6651_v24, %v8190_v5  ;;  %v737_v26 = vpop.f32.mrb[7].mxu0  ;;  %v817_v29 = vpop.f32.mrb[7].mxu1  ;;  %v8287_v61 = vadd.f32 %v6675_v27, %v8190_v5 }
 0x103   : > { %v8222_v28 = vadd.f32 %v8190_v5, %v737_v26  ;;  %v8283_v60 = vadd.f32 %v8190_v5, %v817_v29 }
 0x104   : > { %11508 = vst [vmem:[#allocation3_spill] sm:$0xff] %v8219_v25  ;;  %11524 = vst [vmem:[#allocation19_spill] sm:$0xff] %v8287_v61 }
 0x105   : > { %6729 = vmatprep.mubr.f32.mxu1 %v8222_v28  ;;  %v6654_v30 = vpop.f32.mrb[8].mxu0  ;;  %v6678_v33 = vpop.f32.mrb[8].mxu1  ;;  %11523 = vst [vmem:[#allocation18_spill] sm:$0xff] %v8283_v60 }
 0x106   : > { %6730 = vmatmul.mubr.f32.gmra.mrb[22].mxu1 %v8219_v25  ;;  %v8227_v31 = vadd.f32 %v6654_v30, %v8190_v5  ;;  %v747_v32 = vpop.f32.mrb[9].mxu0  ;;  %v827_v35 = vpop.f32.mrb[9].mxu1  ;;  %v8295_v63 = vadd.f32 %v6678_v33, %v8190_v5 }
 0x107   : > { %v8230_v34 = vadd.f32 %v8190_v5, %v747_v32  ;;  %v8291_v62 = vadd.f32 %v8190_v5, %v827_v35 }
 0x108   : > { %11509 = vst [vmem:[#allocation4_spill] sm:$0xff] %v8227_v31  ;;  %11526 = vst [vmem:[#allocation21_spill] sm:$0xff] %v8295_v63 }
 0x109   : > { %11510 = vst [vmem:[#allocation5_spill] sm:$0xff] %v8230_v34  ;;  %6732 = vmatprep.mubr.f32.mxu1 %v8230_v34  ;;  %v6657_v36 = vpop.f32.mrb[10].mxu0  ;;  %v6681_v39 = vpop.f32.mrb[10].mxu1  ;;  %11525 = vst [vmem:[#allocation20_spill] sm:$0xff] %v8291_v62 }
 0x10a   : > { %6733 = vmatmul.mubr.f32.gmra.mrb[24].mxu1 %v8227_v31  ;;  %v8235_v37 = vadd.f32 %v6657_v36, %v8190_v5  ;;  %v757_v38 = vpop.f32.mrb[11].mxu0  ;;  %v837_v41 = vpop.f32.mrb[11].mxu1  ;;  %v8303_v1 = vadd.f32 %v6681_v39, %v8190_v5 }
 0x10b   : > { %v8238_v40 = vadd.f32 %v8190_v5, %v757_v38  ;;  %v8299_v0 = vadd.f32 %v8190_v5, %v837_v41 }
 0x10c   : > { %11511 = vst [vmem:[#allocation6_spill] sm:$0xff] %v8235_v37  ;;  %11528 = vst [vmem:[#allocation23_spill] sm:$0xff] %v8303_v1 }
 0x10d   : > { %11512 = vst [vmem:[#allocation7_spill] sm:$0xff] %v8238_v40  ;;  %6735 = vmatprep.mubr.f32.mxu1 %v8238_v40  ;;  %v6660_v42 = vpop.f32.mrb[12].mxu0  ;;  %v6684_v45 = vpop.f32.mrb[12].mxu1  ;;  %11527 = vst [vmem:[#allocation22_spill] sm:$0xff] %v8299_v0  ;;  %v6019_v40 = vld [vmem:[%s11396_s3 + $0xa8] sm:$0xff] }
 0x10e   : > { %6736 = vmatmul.mubr.f32.gmra.mrb[26].mxu1 %v8235_v37  ;;  %v8243_v43 = vadd.f32 %v6660_v42, %v8190_v5  ;;  %v767_v44 = vpop.f32.mrb[13].mxu0  ;;  %v847_v47 = vpop.f32.mrb[13].mxu1  ;;  %v8311_v3 = vadd.f32 %v6684_v45, %v8190_v5 }
 0x10f   : > { %v8246_v46 = vadd.f32 %v8190_v5, %v767_v44  ;;  %v8307_v2 = vadd.f32 %v8190_v5, %v847_v47 }
 0x110   : > { %11513 = vst [vmem:[#allocation8_spill] sm:$0xff] %v8243_v43  ;;  %11530 = vst [vmem:[#allocation25_spill] sm:$0xff] %v8311_v3 }
 0x111   : > { %11514 = vst [vmem:[#allocation9_spill] sm:$0xff] %v8246_v46  ;;  %6738 = vmatprep.mubr.f32.mxu1 %v8246_v46  ;;  %v6663_v48 = vpop.f32.mrb[14].mxu0  ;;  %v6687_v51 = vpop.f32.mrb[14].mxu1  ;;  %11529 = vst [vmem:[#allocation24_spill] sm:$0xff] %v8307_v2 }
 0x112   : > { %6739 = vmatmul.mubr.f32.gmra.mrb[28].mxu1 %v8243_v43  ;;  %v8251_v49 = vadd.f32 %v6663_v48, %v8190_v5  ;;  %v777_v50 = vpop.f32.mrb[15].mxu0  ;;  %v857_v54 = vpop.f32.mrb[15].mxu1  ;;  %v8319_v6 = vadd.f32 %v6687_v51, %v8190_v5  ;;  %v1644_v51 = vld [vmem:[%s11400_s7 + $0x18] sm:$0xff] }
 0x113   : > { %v8254_v52 = vadd.f32 %v8190_v5, %v777_v50  ;;  %v8315_v4 = vadd.f32 %v8190_v5, %v857_v54  ;;  %v1641_v5 = vld [vmem:[%s11400_s7] sm:$0xff]  ;;  %v1643_v50 = vld [vmem:[%s11400_s7 + $0x10] sm:$0xff] }
 0x114   : > { %11515 = vst [vmem:[#allocation10_spill] sm:$0xff] %v8251_v49  ;;  %11532 = vst [vmem:[#allocation27_spill] sm:$0xff] %v8319_v6  ;;  %v7376_v20 = vpack.c.bf16 %v1642_v17, %v1641_v5  ;;  %v7380_v54 = vpack.c.bf16 %v1644_v51, %v1643_v50  ;;  %v1645_v5 = vld [vmem:[%s11400_s7 + $0x20] sm:$0xff]  ;;  %v1646_v17 = vld [vmem:[%s11400_s7 + $0x28] sm:$0xff] }
 0x115   : > { %11516 = vst [vmem:[#allocation11_spill] sm:$0xff] %v8254_v52  ;;  %6741 = vmatprep.mubr.f32.mxu1 %v8254_v52  ;;  %11531 = vst [vmem:[#allocation26_spill] sm:$0xff] %v8315_v4  ;;  %v1650_v50 = vld [vmem:[%s11400_s7 + $0x48] sm:$0xff] }
 0x116   : > { %6742 = vmatmul.mubr.f32.gmra.mrb[30].mxu1 %v8251_v49  ;;  %7377 = vmatprep.subr.bf16.mxu0 %v7376_v20 }
 0x117   : > { %6744 = vmatprep.mubr.f32.mxu1 %v8257_v53  ;;  %7379 = vmatpush3.bf16.msra.mxu0 %v7376_v20  ;;  %v7384_v20 = vpack.c.bf16 %v1646_v17, %v1645_v5 }
 0x118   : > { %7381 = vmatprep.subr.bf16.mxu0 %v7380_v54 }
 0x11a   : > { %6745 = vmatmul.mubr.f32.gmra.mrb[32].mxu1 %v8263_v55 }
 0x11b   : > { %6747 = vmatprep.mubr.f32.mxu1 %v8267_v56  ;;  %7383 = vmatpush3.bf16.msra.mxu0 %v7380_v54 }
 0x11c   : > { %7385 = vmatprep.subr.bf16.mxu0 %v7384_v20 }
 0x11e   : > { %6748 = vmatmul.mubr.f32.gmra.mrb[34].mxu1 %v8271_v57 }
 0x11f   : > { %6750 = vmatprep.mubr.f32.mxu1 %v8275_v58  ;;  %7387 = vmatpush3.bf16.msra.mxu0 %v7384_v20 }
 0x122   : > { %6751 = vmatmul.mubr.f32.gmra.mrb[36].mxu1 %v8279_v59 }
 0x123   : > { %6753 = vmatprep.mubr.f32.mxu1 %v8283_v60 }
 0x126   : > { %6754 = vmatmul.mubr.f32.gmra.mrb[38].mxu1 %v8287_v61 }
 0x127   : > { %6756 = vmatprep.mubr.f32.mxu1 %v8291_v62 }
 0x12a   : > { %6757 = vmatmul.mubr.f32.gmra.mrb[40].mxu1 %v8295_v63 }
 0x12b   : > { %6759 = vmatprep.mubr.f32.mxu1 %v8299_v0 }
 0x12e   : > { %6760 = vmatmul.mubr.f32.gmra.mrb[42].mxu1 %v8303_v1 }
 0x12f   : > { %6762 = vmatprep.mubr.f32.mxu1 %v8307_v2 }
 0x132   : > { %6763 = vmatmul.mubr.f32.gmra.mrb[44].mxu1 %v8311_v3 }
 0x133   : > { %6765 = vmatprep.mubr.f32.mxu1 %v8315_v4 }
 0x136   : > { %6766 = vmatmul.mubr.f32.gmra.mrb[46].mxu1 %v8319_v6 }
 0x1cd   : > { %v6722_v8 = vpop.f32.mrb[16].mxu1 }
 0x1ce   : > { %v961_v10 = vadd.f32 %v6722_v8, %v8326_v7  ;;  %v955_v12 = vpop.f32.mrb[17].mxu1 }
 0x1cf   : > { %v956_v14 = vadd.f32 %v8326_v7, %v955_v12 }
 0x1d0   : > { %v8330_v15 = vmax.f32 %v961_v10, 0.0 }
 0x1d1   : > { %v6725_v18 = vpop.f32.mrb[18].mxu1  ;;  %v8338_v21 = vmax.f32 %v956_v14, 0.0 }
 0x1d2   : > { %1148 = vadd.xlane.f32.xlu0 %v8330_v15  ;;  %v1244_v23 = vmul.f32 %v8330_v15, %v8330_v15  ;;  %v965_v24 = vpop.f32.mrb[19].mxu1  ;;  %v971_v29 = vadd.f32 %v6725_v18, %v8326_v7 }
 0x1d3   : > { %v966_v26 = vadd.f32 %v8326_v7, %v965_v24  ;;  %v1243_v32 = vmul.f32 %v8338_v21, %v8338_v21 }
 0x1d4   : > { %1277 = vadd.xlane.f32.xlu1 %v1244_v23  ;;  %v8350_v36 = vmax.f32 %v971_v29, 0.0 }
 0x1d5   : > { %v6728_v27 = vpop.f32.mrb[20].mxu1  ;;  %v8345_v30 = vmax.f32 %v966_v26, 0.0 }
 0x1d6   : > { %1146 = vadd.xlane.f32.xlu0 %v8338_v21  ;;  %v975_v33 = vpop.f32.mrb[21].mxu1  ;;  %v981_v44 = vadd.f32 %v6728_v27, %v8326_v7  ;;  %v1246_v47 = vmul.f32 %v8350_v36, %v8350_v36 }
 0x1d7   : > { %v976_v38 = vadd.f32 %v8326_v7, %v975_v33  ;;  %v1245_v41 = vmul.f32 %v8345_v30, %v8345_v30  ;;  %v1648_v33 = vld [vmem:[%s11400_s7 + $0x38] sm:$0xff] }
 0x1d8   : > { %1275 = vadd.xlane.f32.xlu1 %v1243_v32  ;;  %v8370_v10 = vmax.f32 %v981_v44, 0.0  ;;  %v1647_v32 = vld [vmem:[%s11400_s7 + $0x30] sm:$0xff] }
 0x1d9   : > { %v6731_v35 = vpop.f32.mrb[22].mxu1  ;;  %v8358_v45 = vmax.f32 %v976_v38, 0.0 }
 0x1da   : > { %1150 = vadd.xlane.f32.xlu0 %v8345_v30  ;;  %v985_v39 = vpop.f32.mrb[23].mxu1  ;;  %v991_v24 = vadd.f32 %v6731_v35, %v8326_v7  ;;  %v1248_v27 = vmul.f32 %v8370_v10, %v8370_v10  ;;  %v7388_v35 = vpack.c.bf16 %v1648_v33, %v1647_v32 }
 0x1db   : > { %v986_v12 = vadd.f32 %v8326_v7, %v985_v39  ;;  %v1247_v18 = vmul.f32 %v8358_v45, %v8358_v45 }
 0x1dc   : > { %1152 = vadd.xlane.f32.xlu1 %v8350_v36  ;;  %v8400_v39 = vmax.f32 %v991_v24, 0.0  ;;  %7389 = vmatprep.subr.bf16.mxu0 %v7388_v35 }
 0x1dd   : > { %v6734_v42 = vpop.f32.mrb[24].mxu1  ;;  %v8386_v26 = vmax.f32 %v986_v12, 0.0  ;;  %7391 = vmatpush3.bf16.msra.mxu0 %v7388_v35 }
 0x1de   : > { %1279 = vadd.xlane.f32.xlu0 %v1245_v41  ;;  %v995_v48 = vpop.f32.mrb[25].mxu1  ;;  %v1250_v17 = vmul.f32 %v8400_v39, %v8400_v39 }
 0x1df   : > { %v996_v41 = vadd.f32 %v8326_v7, %v995_v48  ;;  %v1249_v51 = vmul.f32 %v8386_v26, %v8386_v26  ;;  %v1001_v48 = vadd.f32 %v6734_v42, %v8326_v7  ;;  %v1651_v42 = vld [vmem:[%s11400_s7 + $0x50] sm:$0xff] }
 0x1e0   : > { %1281 = vadd.xlane.f32.xlu1 %v1246_v47  ;;  %v1649_v47 = vld [vmem:[%s11400_s7 + $0x40] sm:$0xff] }
 0x1e1   : > { %v8368_v8 = vpop.f32.mrb[26].mxu1  ;;  %v7392_v54 = vpack.c.bf16 %v1650_v50, %v1649_v47  ;;  %v8416_v5 = vmax.f32 %v996_v41, 0.0  ;;  %v8432_v35 = vmax.f32 %v1001_v48, 0.0 }
 0x1e2   : > { %1154 = vadd.xlane.f32.xlu0 %v8358_v45  ;;  %v1005_v14 = vpop.f32.mrb[27].mxu1 }
 0x1e3   : > { %7393 = vmatprep.subr.bf16.mxu0 %v7392_v54  ;;  %v1006_v41 = vadd.f32 %v8326_v7, %v1005_v14  ;;  %v1654_v14 = vld [vmem:[%s11400_s7 + $0x68] sm:$0xff] }
 0x1e4   : > { %1156 = vadd.xlane.f32.xlu1 %v8370_v10  ;;  %7395 = vmatpush3.bf16.msra.mxu0 %v7392_v54  ;;  %v1251_v54 = vmul.f32 %v8416_v5, %v8416_v5 }
 0x1e5   : > { %v8383_v23 = vpop.f32.mrb[28].mxu1 }
 0x1e6   : > { %1283 = vadd.xlane.f32.xlu0 %v1247_v18  ;;  %v8390_v29 = vpop.f32.mrb[29].mxu1 }
 0x1e8   : > { %1285 = vadd.xlane.f32.xlu1 %v1248_v27  ;;  %v1652_v27 = vld [vmem:[%s11400_s7 + $0x58] sm:$0xff] }
 0x1e9   : > { %v8398_v38 = vpop.f32.mrb[30].mxu1  ;;  %v7396_v33 = vpack.c.bf16 %v1652_v27, %v1651_v42  ;;  %v8453_v42 = vmax.f32 %v1006_v41, 0.0  ;;  %v1252_v27 = vmul.f32 %v8432_v35, %v8432_v35  ;;  %v1656_v41 = vld [vmem:[%s11400_s7 + $0x78] sm:$0xff] }
 0x1ea   : > { %1158 = vadd.xlane.f32.xlu0 %v8386_v26  ;;  %v8404_v44 = vpop.f32.mrb[31].mxu1 }
 0x1eb   : > { %7397 = vmatprep.subr.bf16.mxu0 %v7396_v33 }
 0x1ec   : > { %1160 = vadd.xlane.f32.xlu1 %v8400_v39  ;;  %7399 = vmatpush3.bf16.msra.mxu0 %v7396_v33 }
 0x1ed   : > { %v6746_v12 = vpop.f32.mrb[32].mxu1 }
 0x1ee   : > { %1287 = vadd.xlane.f32.xlu0 %v1249_v51  ;;  %v8421_v18 = vadd.f32 %v6746_v12, %v8326_v7  ;;  %v1035_v20 = vpop.f32.mrb[33].mxu1  ;;  %v1653_v12 = vld [vmem:[%s11400_s7 + $0x60] sm:$0xff] }
 0x1ef   : > { %v8424_v24 = vadd.f32 %v8326_v7, %v1035_v20  ;;  %v1011_v20 = vadd.f32 %v8368_v8, %v8326_v7  ;;  %v1655_v8 = vld [vmem:[%s11400_s7 + $0x70] sm:$0xff] }
 0x1f0   : > { %1289 = vadd.xlane.f32.xlu1 %v1250_v17  ;;  %v7400_v17 = vpack.c.bf16 %v1654_v14, %v1653_v12  ;;  %v7404_v12 = vpack.c.bf16 %v1656_v41, %v1655_v8  ;;  %v1253_v8 = vmul.f32 %v8453_v42, %v8453_v42  ;;  %v1021_v41 = vadd.f32 %v8383_v23, %v8326_v7 }
 0x1f1   : > { %v6749_v32 = vpop.f32.mrb[34].mxu1  ;;  %v8469_v14 = vmax.f32 %v1011_v20, 0.0  ;;  %v1026_v23 = vadd.f32 %v8326_v7, %v8404_v44  ;;  %v8526_v62 = vmax.f32 %v8424_v24, 0.0 }
 0x1f2   : > { %1162 = vadd.xlane.f32.xlu0 %v8416_v5  ;;  %v8437_v47 = vadd.f32 %v6749_v32, %v8326_v7  ;;  %v1045_v50 = vpop.f32.mrb[35].mxu1  ;;  %7401 = vmatprep.subr.bf16.mxu0 %v7400_v17  ;;  %v8493_v2 = vmax.f32 %v1021_v41, 0.0  ;;  %v1031_v41 = vadd.f32 %v8398_v38, %v8326_v7 }
 0x1f3   : > { %v8440_v51 = vadd.f32 %v8326_v7, %v1045_v50  ;;  %7403 = vmatpush3.bf16.msra.mxu0 %v7400_v17 }
 0x1f4   : > { %1164 = vadd.xlane.f32.xlu1 %v8432_v35  ;;  %7405 = vmatprep.subr.bf16.mxu0 %v7404_v12  ;;  %v1256_v44 = vmul.f32 %v8493_v2, %v8493_v2  ;;  %v8515_v63 = vmax.f32 %v1031_v41, 0.0  ;;  %v8531_v41 = vmax.f32 %v8421_v18, 0.0 }
 0x1f5   : > { %v6752_v48 = vpop.f32.mrb[36].mxu1 }
 0x1f6   : > { %1291 = vadd.xlane.f32.xlu0 %v1251_v54  ;;  %v8458_v32 = vadd.f32 %v6752_v48, %v8326_v7  ;;  %v1055_v33 = vpop.f32.mrb[37].mxu1  ;;  %v1016_v48 = vadd.f32 %v8326_v7, %v8390_v29  ;;  %v1254_v29 = vmul.f32 %v8469_v14, %v8469_v14  ;;  %v1260_v24 = vmul.f32 %v8531_v41, %v8531_v41 }
 0x1f7   : > { %v8461_v50 = vadd.f32 %v8326_v7, %v1055_v33  ;;  %7407 = vmatpush3.bf16.msra.mxu0 %v7404_v12 }
 0x1f8   : > { %1293 = vadd.xlane.f32.xlu1 %v1252_v27  ;;  %v8485_v6 = vmax.f32 %v1016_v48, 0.0 }
 0x1f9   : > { %v6755_v54 = vpop.f32.mrb[38].mxu1 }
 0x1fa   : > { %1166 = vadd.xlane.f32.xlu0 %v8453_v42  ;;  %v8475_v27 = vadd.f32 %v6755_v54, %v8326_v7  ;;  %v1065_v17 = vpop.f32.mrb[39].mxu1 }
 0x1fb   : > { %v8478_v33 = vadd.f32 %v8326_v7, %v1065_v17 }
 0x1fc   : > { %1168 = vadd.xlane.f32.xlu1 %v8469_v14 }
 0x1fd   : > { %v6758_v20 = vpop.f32.mrb[40].mxu1 }
 0x1fe   : > { %1295 = vadd.xlane.f32.xlu0 %v1253_v8  ;;  %v8490_v54 = vadd.f32 %v6758_v20, %v8326_v7  ;;  %v1075_v17 = vpop.f32.mrb[41].mxu1  ;;  %v1255_v20 = vmul.f32 %v8485_v6, %v8485_v6 }
 0x1ff   : > { %v1076_v4 = vadd.f32 %v8326_v7, %v1075_v17  ;;  %v8507_v17 = vmax.f32 %v1026_v23, 0.0 }
 0x200   : > { %1297 = vadd.xlane.f32.xlu1 %v1254_v29 }
 0x201   : > { %v6761_v3 = vpop.f32.mrb[42].mxu1 }
 0x202   : > { %1170 = vadd.xlane.f32.xlu0 %v8485_v6  ;;  %v8499_v12 = vadd.f32 %v6761_v3, %v8326_v7  ;;  %v1085_v48 = vpop.f32.mrb[43].mxu1 }
 0x203   : > { %v1086_v8 = vadd.f32 %v8326_v7, %v1085_v48 }
 0x204   : > { %1172 = vadd.xlane.f32.xlu1 %v8493_v2 }
 0x205   : > { %v6764_v29 = vpop.f32.mrb[44].mxu1 }
 0x206   : > { %1299 = vadd.xlane.f32.xlu0 %v1255_v20  ;;  %v8512_v3 = vadd.f32 %v6764_v29, %v8326_v7  ;;  %v1095_v1 = vpop.f32.mrb[45].mxu1  ;;  %v1257_v29 = vmul.f32 %v8507_v17, %v8507_v17 }
 0x207   : > { %v1096_v48 = vadd.f32 %v8326_v7, %v1095_v1  ;;  %v1258_v1 = vmul.f32 %v8515_v63, %v8515_v63 }
 0x208   : > { %1301 = vadd.xlane.f32.xlu1 %v1256_v44  ;;  %v8543_v44 = vmax.f32 %v8437_v47, 0.0 }
 0x209   : > { %v6767_v0 = vpop.f32.mrb[46].mxu1 }
 0x20a   : > { %1174 = vadd.xlane.f32.xlu0 %v8507_v17  ;;  %v8519_v38 = vadd.f32 %v6767_v0, %v8326_v7  ;;  %v1105_v23 = vpop.f32.mrb[47].mxu1  ;;  %v1259_v0 = vmul.f32 %v8526_v62, %v8526_v62 }
 0x20b   : > { %v1106_v20 = vadd.f32 %v8326_v7, %v1105_v23  ;;  %v8538_v7 = vmax.f32 %v8440_v51, 0.0  ;;  %v8550_v23 = vmax.f32 %v8461_v50, 0.0  ;;  %v1262_v51 = vmul.f32 %v8543_v44, %v8543_v44 }
 0x20c   : > { %1176 = vadd.xlane.f32.xlu1 %v8515_v63 }
 0x20d   : > { %v1261_v18 = vmul.f32 %v8538_v7, %v8538_v7  ;;  %v1263_v47 = vmul.f32 %v8550_v23, %v8550_v23 }
 0x20e   : > { %1303 = vadd.xlane.f32.xlu0 %v1257_v29  ;;  %v8555_v29 = vmax.f32 %v8458_v32, 0.0 }
 0x210   : > { %1305 = vadd.xlane.f32.xlu1 %v1258_v1  ;;  %v8562_v1 = vmax.f32 %v8478_v33, 0.0  ;;  %v1264_v50 = vmul.f32 %v8555_v29, %v8555_v29 }
 0x212   : > { %1178 = vadd.xlane.f32.xlu0 %v8526_v62  ;;  %v1265_v32 = vmul.f32 %v8562_v1, %v8562_v1 }
 0x214   : > { %1180 = vadd.xlane.f32.xlu1 %v8531_v41 }
 0x216   : > { %1307 = vadd.xlane.f32.xlu0 %v1259_v0  ;;  %v8567_v0 = vmax.f32 %v8475_v27, 0.0 }
 0x218   : > { %1309 = vadd.xlane.f32.xlu1 %v1260_v24  ;;  %v8573_v24 = vmax.f32 %v1076_v4, 0.0  ;;  %v1266_v33 = vmul.f32 %v8567_v0, %v8567_v0 }
 0x21a   : > { %1182 = vadd.xlane.f32.xlu0 %v8538_v7  ;;  %v1267_v27 = vmul.f32 %v8573_v24, %v8573_v24 }
 0x21c   : > { %1184 = vadd.xlane.f32.xlu1 %v8543_v44 }
 0x21e   : > { %1311 = vadd.xlane.f32.xlu0 %v1261_v18  ;;  %v8578_v18 = vmax.f32 %v8490_v54, 0.0 }
 0x220   : > { %1313 = vadd.xlane.f32.xlu1 %v1262_v51  ;;  %v8584_v51 = vmax.f32 %v1086_v8, 0.0  ;;  %v1268_v4 = vmul.f32 %v8578_v18, %v8578_v18 }
 0x222   : > { %1186 = vadd.xlane.f32.xlu0 %v8550_v23  ;;  %v1269_v54 = vmul.f32 %v8584_v51, %v8584_v51 }
 0x224   : > { %1188 = vadd.xlane.f32.xlu1 %v8555_v29 }
 0x226   : > { %1315 = vadd.xlane.f32.xlu0 %v1263_v47  ;;  %v8589_v47 = vmax.f32 %v8499_v12, 0.0 }
 0x228   : > { %1317 = vadd.xlane.f32.xlu1 %v1264_v50  ;;  %v8595_v50 = vmax.f32 %v1096_v48, 0.0  ;;  %v1270_v8 = vmul.f32 %v8589_v47, %v8589_v47 }
 0x22a   : > { %1190 = vadd.xlane.f32.xlu0 %v8562_v1  ;;  %v1271_v12 = vmul.f32 %v8595_v50, %v8595_v50 }
 0x22c   : > { %1192 = vadd.xlane.f32.xlu1 %v8567_v0 }
 0x22e   : > { %1319 = vadd.xlane.f32.xlu0 %v1265_v32  ;;  %v8600_v32 = vmax.f32 %v8512_v3, 0.0 }
 0x230   : > { %1321 = vadd.xlane.f32.xlu1 %v1266_v33  ;;  %v8606_v33 = vmax.f32 %v1106_v20, 0.0  ;;  %v1272_v48 = vmul.f32 %v8600_v32, %v8600_v32 }
 0x232   : > { %1194 = vadd.xlane.f32.xlu0 %v8573_v24  ;;  %v1273_v3 = vmul.f32 %v8606_v33, %v8606_v33 }
 0x234   : > { %1196 = vadd.xlane.f32.xlu1 %v8578_v18 }
 0x236   : > { %1323 = vadd.xlane.f32.xlu0 %v1267_v27  ;;  %v8611_v27 = vmax.f32 %v8519_v38, 0.0 }
 0x238   : > { %1325 = vadd.xlane.f32.xlu1 %v1268_v4  ;;  %v1274_v20 = vmul.f32 %v8611_v27, %v8611_v27 }
 0x23a   : > { %1198 = vadd.xlane.f32.xlu0 %v8584_v51 }
 0x23c   : > { %1200 = vadd.xlane.f32.xlu1 %v8589_v47 }
 0x23e   : > { %1327 = vadd.xlane.f32.xlu0 %v1269_v54 }
 0x240   : > { %1329 = vadd.xlane.f32.xlu1 %v1270_v8 }
 0x242   : > { %1202 = vadd.xlane.f32.xlu0 %v8595_v50 }
 0x244   : > { %1204 = vadd.xlane.f32.xlu1 %v8600_v32 }
 0x246   : > { %1331 = vadd.xlane.f32.xlu0 %v1271_v12 }
 0x248   : > { %1333 = vadd.xlane.f32.xlu1 %v1272_v48 }
 0x24a   : > { %1206 = vadd.xlane.f32.xlu0 %v8606_v33 }
 0x24c   : > { %1208 = vadd.xlane.f32.xlu1 %v8611_v27 }
 0x24e   : > { %1335 = vadd.xlane.f32.xlu0 %v1273_v3 }
 0x250   : > { %1337 = vadd.xlane.f32.xlu1 %v1274_v20 }
 0x25f   : > { %v1149_v4 = vpop.xlane.xlu0 %1148 }
 0x260   : > { %v1212_v54 = vmul.f32 0.0078125, %v1149_v4 }
 0x261   : > { %v1278_v8 = vpop.xlane.xlu1 %1277 }
 0x262   : > { %v1404_v12 = vmul.f32 %v1212_v54, %v1212_v54  ;;  %v1340_v48 = vmul.f32 0.0078125, %v1278_v8  ;;  %v1372_v43 = vsub.f32 %v8330_v15, %v1212_v54  ;;  %v6014_v15 = vld [vmem:[%s11396_s3 + $0x80] sm:$0xff]  ;;  %v6016_v54 = vld [vmem:[%s11396_s3 + $0x90] sm:$0xff] }
 0x263   : > { %v1147_v61 = vpop.xlane.xlu0 %1146 }
 0x264   : > { %v1436_v38 = vsub.f32 %v1340_v48, %v1404_v12  ;;  %v1211_v60 = vmul.f32 0.0078125, %v1147_v61 }
 0x265   : > { %v1276_v59 = vpop.xlane.xlu1 %1275 }
 0x266   : > { %v1468_v58 = vadd.f32 1e-05, %v1436_v38  ;;  %v1403_v57 = vmul.f32 %v1211_v60, %v1211_v60  ;;  %v1339_v56 = vmul.f32 0.0078125, %v1276_v59 }
 0x267   : > { %v1151_v55 = vpop.xlane.xlu0 %1150 }
 0x268   : > { %7685 = vrsqrt.f32 %v1468_v58  ;;  %v1435_v53 = vsub.f32 %v1339_v56, %v1403_v57  ;;  %v8619_v3 = vmul.f32 0.0078125, %v1151_v55 }
 0x269   : > { %v1153_v49 = vpop.xlane.xlu1 %1152 }
 0x26a   : > { %v1467_v52 = vadd.f32 1e-05, %v1435_v53  ;;  %v8621_v20 = vmul.f32 0.0078125, %v1153_v49  ;;  %v1405_v8 = vmul.f32 %v8619_v3, %v8619_v3 }
 0x26b   : > { %v1280_v4 = vpop.xlane.xlu0 %1279 }
 0x26c   : > { %7687 = vrsqrt.f32 %v1467_v52  ;;  %v1341_v12 = vmul.f32 0.0078125, %v1280_v4  ;;  %v1406_v48 = vmul.f32 %v8621_v20, %v8621_v20 }
 0x26d   : > { %v1282_v61 = vpop.xlane.xlu1 %1281 }
 0x26e   : > { %v1437_v59 = vsub.f32 %v1341_v12, %v1405_v8  ;;  %v1342_v38 = vmul.f32 0.0078125, %v1282_v61  ;;  %v8637_v61 = vld [vmem:[%s11398_s5] ss:$0 sm:$0xff] }
 0x26f   : > { %v1155_v58 = vpop.xlane.xlu0 %1154 }
 0x270   : > { %v1469_v56 = vadd.f32 1e-05, %v1437_v59  ;;  %v1438_v55 = vsub.f32 %v1342_v38, %v1406_v48  ;;  %v8627_v57 = vmul.f32 0.0078125, %v1155_v58  ;;  %v1371_v48 = vsub.f32 %v8338_v21, %v1211_v60  ;;  %v6017_v21 = vld [vmem:[%s11396_s3 + $0x98] sm:$0xff] }
 0x271   : > { %v1157_v53 = vpop.xlane.xlu1 %1156 }
 0x272   : > { %v7686_v49 = vpop.eup %7685  ;;  %7689 = vrsqrt.f32 %v1469_v56  ;;  %v1470_v52 = vadd.f32 1e-05, %v1438_v55  ;;  %v8630_v46 = vmul.f32 0.0078125, %v1157_v53  ;;  %v1407_v8 = vmul.f32 %v8627_v57, %v8627_v57 }
 0x273   : > { %v1284_v4 = vpop.xlane.xlu0 %1283  ;;  %v1532_v37 = vmul.f32 %v7686_v49, %v1372_v43  ;;  %v6015_v43 = vld [vmem:[%s11396_s3 + $0x88] sm:$0xff] }
 0x274   : > { %7691 = vrsqrt.f32 %v1470_v52  ;;  %v1343_v12 = vmul.f32 0.0078125, %v1284_v4  ;;  %v1408_v58 = vmul.f32 %v8630_v46, %v8630_v46  ;;  %v7408_v60 = vpack.c.bf16 %v6015_v43, %v6014_v15  ;;  %v6018_v4 = vld [vmem:[%s11396_s3 + $0xa0] sm:$0xff] }
 0x275   : > { %v1286_v59 = vpop.xlane.xlu1 %1285  ;;  %v7412_v52 = vpack.c.bf16 %v6017_v21, %v6016_v54  ;;  %v7416_v54 = vpack.c.bf16 %v6019_v40, %v6018_v4 }
 0x276   : > { %v7688_v38 = vpop.eup %7687  ;;  %v1439_v56 = vsub.f32 %v1343_v12, %v1407_v8  ;;  %v1344_v55 = vmul.f32 0.0078125, %v1286_v59  ;;  %v1571_v12 = vmul.f32 %v8637_v61, %v1532_v37  ;;  %7409 = vmatprep.subr.bf16.mxu1 %v7408_v60 }
 0x277   : > { %v1159_v53 = vpop.xlane.xlu0 %1158  ;;  %v1531_v49 = vmul.f32 %v7688_v38, %v1371_v48  ;;  %v8667_v48 = vld [vmem:[%s11399_s6] ss:$0 sm:$0xff]  ;;  %7411 = vmatpush3.bf16.msra.mxu1 %v7408_v60  ;;  %v1373_v38 = vsub.f32 %v8345_v30, %v8619_v3  ;;  %v6021_v60 = vld [vmem:[%s11396_s3 + $0xb8] sm:$0xff]  ;;  %v1374_v3 = vsub.f32 %v8350_v36, %v8621_v20  ;;  %v6023_v20 = vld [vmem:[%s11396_s3 + $0xc8] sm:$0xff] }
 0x278   : > { %v1471_v31 = vadd.f32 1e-05, %v1439_v56  ;;  %v1440_v34 = vsub.f32 %v1344_v55, %v1408_v58  ;;  %v8660_v8 = vmul.f32 0.0078125, %v1159_v53  ;;  %7413 = vmatprep.subr.bf16.mxu1 %v7412_v52  ;;  %v6020_v55 = vld [vmem:[%s11396_s3 + $0xb0] sm:$0xff]  ;;  %v1610_v30 = vadd.f32 %v8667_v48, %v1571_v12  ;;  %v6022_v36 = vld [vmem:[%s11396_s3 + $0xc0] sm:$0xff] }
 0x279   : > { %v1161_v59 = vpop.xlane.xlu1 %1160  ;;  %v1570_v15 = vmul.f32 %v8637_v61, %v1531_v49 }
 0x27a   : > { %7693 = vrsqrt.f32 %v1471_v31  ;;  %v1472_v43 = vadd.f32 1e-05, %v1440_v34  ;;  %v8671_v58 = vmul.f32 0.0078125, %v1161_v59  ;;  %v1409_v34 = vmul.f32 %v8660_v8, %v8660_v8 }
 0x27b   : > { %v1288_v37 = vpop.xlane.xlu0 %1287  ;;  %v1609_v56 = vadd.f32 %v8667_v48, %v1570_v15  ;;  %7415 = vmatpush3.bf16.msra.mxu1 %v7412_v52 }
 0x27c   : > { %v7690_v31 = vpop.eup %7689  ;;  %7695 = vrsqrt.f32 %v1472_v43  ;;  %v1345_v40 = vmul.f32 0.0078125, %v1288_v37  ;;  %v1410_v4 = vmul.f32 %v8671_v58, %v8671_v58  ;;  %7417 = vmatprep.subr.bf16.mxu1 %v7416_v54  ;;  %v7420_v43 = vpack.c.bf16 %v6021_v60, %v6020_v55 }
 0x27d   : > { %6800 = vmatprep.mubr.f32.mxu0 %v1609_v56  ;;  %v1290_v21 = vpop.xlane.xlu1 %1289  ;;  %v1533_v53 = vmul.f32 %v7690_v31, %v1373_v38 }
 0x27e   : > { %v7692_v49 = vpop.eup %7691  ;;  %v1441_v59 = vsub.f32 %v1345_v40, %v1409_v34  ;;  %v1346_v15 = vmul.f32 0.0078125, %v1290_v21  ;;  %6801 = vmatmul.mubr.f32.vlgmr.msra.gmra.mrb[16].mxu0 %v1610_v30  ;;  %v7424_v40 = vpack.c.bf16 %v6023_v20, %v6022_v36  ;;  %v1375_v30 = vsub.f32 %v8358_v45, %v8627_v57 }
 0x27f   : > { %v1163_v25 = vpop.xlane.xlu0 %1162  ;;  %v1572_v37 = vmul.f32 %v8637_v61, %v1533_v53  ;;  %v1534_v12 = vmul.f32 %v7692_v49, %v1374_v3  ;;  %7419 = vmatpush3.bf16.msra.mxu1 %v7416_v54  ;;  %v6024_v53 = vld [vmem:[%s11396_s3 + $0xd0] sm:$0xff]  ;;  %v6025_v54 = vld [vmem:[%s11396_s3 + $0xd8] sm:$0xff]  ;;  %v1376_v57 = vsub.f32 %v8370_v10, %v8630_v46  ;;  %v6026_v46 = vld [vmem:[%s11396_s3 + $0xe0] sm:$0xff] }
 0x280   : > { %v1473_v52 = vadd.f32 1e-05, %v1441_v59  ;;  %v1442_v38 = vsub.f32 %v1346_v15, %v1410_v4  ;;  %v8694_v56 = vmul.f32 0.0078125, %v1163_v25  ;;  %7421 = vmatprep.subr.bf16.mxu1 %v7420_v43  ;;  %v6027_v10 = vld [vmem:[%s11396_s3 + $0xe8] sm:$0xff] }
 0x281   : > { %v1165_v31 = vpop.xlane.xlu1 %1164  ;;  %v1611_v34 = vadd.f32 %v8667_v48, %v1572_v37  ;;  %v1573_v55 = vmul.f32 %v8637_v61, %v1534_v12 }
 0x282   : > { %7697 = vrsqrt.f32 %v1473_v52  ;;  %v1474_v60 = vadd.f32 1e-05, %v1442_v38  ;;  %v8700_v3 = vmul.f32 0.0078125, %v1165_v31  ;;  %v1411_v4 = vmul.f32 %v8694_v56, %v8694_v56 }
 0x283   : > { %v1292_v21 = vpop.xlane.xlu0 %1291  ;;  %6803 = vmatprep.mubr.f32.mxu0 %v1611_v34  ;;  %v1612_v25 = vadd.f32 %v8667_v48, %v1573_v55  ;;  %7423 = vmatpush3.bf16.msra.mxu1 %v7420_v43  ;;  %v7428_v52 = vpack.c.bf16 %v6025_v54, %v6024_v53  ;;  %v7432_v54 = vpack.c.bf16 %v6027_v10, %v6026_v46 }
 0x284   : > { %v7694_v49 = vpop.eup %7693  ;;  %7699 = vrsqrt.f32 %v1474_v60  ;;  %v1347_v45 = vmul.f32 0.0078125, %v1292_v21  ;;  %v1412_v12 = vmul.f32 %v8700_v3, %v8700_v3  ;;  %7425 = vmatprep.subr.bf16.mxu1 %v7424_v40 }
 0x285   : > { %6804 = vmatmul.mubr.f32.gmra.mrb[18].mxu0 %v1612_v25  ;;  %v1294_v59 = vpop.xlane.xlu1 %1293  ;;  %v1535_v15 = vmul.f32 %v7694_v49, %v1375_v30  ;;  %v1377_v49 = vsub.f32 %v8386_v26, %v8660_v8 }
 0x286   : > { %v7696_v37 = vpop.eup %7695  ;;  %v1443_v36 = vsub.f32 %v1347_v45, %v1411_v4  ;;  %v1348_v20 = vmul.f32 0.0078125, %v1294_v59 }
 0x287   : > { %v1167_v38 = vpop.xlane.xlu0 %1166  ;;  %v1574_v31 = vmul.f32 %v8637_v61, %v1535_v15  ;;  %v1536_v34 = vmul.f32 %v7696_v37, %v1376_v57  ;;  %7427 = vmatpush3.bf16.msra.mxu1 %v7424_v40  ;;  %v1378_v40 = vsub.f32 %v8400_v39, %v8671_v58 }
 0x288   : > { %v1475_v43 = vadd.f32 1e-05, %v1443_v36  ;;  %v1444_v55 = vsub.f32 %v1348_v20, %v1412_v12  ;;  %v8722_v60 = vmul.f32 0.0078125, %v1167_v38  ;;  %7429 = vmatprep.subr.bf16.mxu1 %v7428_v52 }
 0x289   : > { %v1169_v30 = vpop.xlane.xlu1 %1168  ;;  %v1613_v21 = vadd.f32 %v8667_v48, %v1574_v31  ;;  %v1575_v25 = vmul.f32 %v8637_v61, %v1536_v34 }
 0x28a   : > { %7701 = vrsqrt.f32 %v1475_v43  ;;  %v1476_v53 = vadd.f32 1e-05, %v1444_v55  ;;  %v8728_v4 = vmul.f32 0.0078125, %v1169_v30  ;;  %v1413_v15 = vmul.f32 %v8722_v60, %v8722_v60 }
 0x28b   : > { %v1296_v45 = vpop.xlane.xlu0 %1295  ;;  %6806 = vmatprep.mubr.f32.mxu0 %v1613_v21  ;;  %v1614_v57 = vadd.f32 %v8667_v48, %v1575_v25  ;;  %7431 = vmatpush3.bf16.msra.mxu1 %v7428_v52  ;;  %v1379_v21 = vsub.f32 %v8416_v5, %v8694_v56 }
 0x28c   : > { %v7698_v59 = vpop.eup %7697  ;;  %7703 = vrsqrt.f32 %v1476_v53  ;;  %v1349_v37 = vmul.f32 0.0078125, %v1296_v45  ;;  %v1414_v8 = vmul.f32 %v8728_v4, %v8728_v4  ;;  %7433 = vmatprep.subr.bf16.mxu1 %v7432_v54 }
 0x28d   : > { %6807 = vmatmul.mubr.f32.gmra.mrb[20].mxu0 %v1614_v57  ;;  %v1298_v12 = vpop.xlane.xlu1 %1297  ;;  %v1537_v36 = vmul.f32 %v7698_v59, %v1377_v49 }
 0x28e   : > { %v7700_v26 = vpop.eup %7699  ;;  %v1445_v20 = vsub.f32 %v1349_v37, %v1413_v15  ;;  %v1350_v38 = vmul.f32 0.0078125, %v1298_v12 }
 0x28f   : > { %v1171_v31 = vpop.xlane.xlu0 %1170  ;;  %v1576_v34 = vmul.f32 %v8637_v61, %v1537_v36  ;;  %v1538_v46 = vmul.f32 %v7700_v26, %v1378_v40  ;;  %7435 = vmatpush3.bf16.msra.mxu1 %v7432_v54  ;;  %v1380_v54 = vsub.f32 %v8432_v35, %v8700_v3 }
 0x290   : > { %v1477_v10 = vadd.f32 1e-05, %v1445_v20  ;;  %v1446_v43 = vsub.f32 %v1350_v38, %v1414_v8  ;;  %v8738_v55 = vmul.f32 0.0078125, %v1171_v31 }
 0x291   : > { %v1173_v39 = vpop.xlane.xlu1 %1172  ;;  %v1615_v58 = vadd.f32 %v8667_v48, %v1576_v34  ;;  %v1577_v52 = vmul.f32 %v8637_v61, %v1538_v46 }
 0x292   : > { %7705 = vrsqrt.f32 %v1477_v10  ;;  %v1478_v30 = vadd.f32 1e-05, %v1446_v43  ;;  %v8744_v25 = vmul.f32 0.0078125, %v1173_v39  ;;  %v1415_v57 = vmul.f32 %v8738_v55, %v8738_v55 }
 0x293   : > { %v1300_v53 = vpop.xlane.xlu0 %1299  ;;  %6809 = vmatprep.mubr.f32.mxu0 %v1615_v58  ;;  %v1616_v49 = vadd.f32 %v8667_v48, %v1577_v52  ;;  %v1381_v10 = vsub.f32 %v8453_v42, %v8722_v60 }
 0x294   : > { %v7702_v45 = vpop.eup %7701  ;;  %7707 = vrsqrt.f32 %v1478_v30  ;;  %v1351_v59 = vmul.f32 0.0078125, %v1300_v53  ;;  %v1416_v5 = vmul.f32 %v8744_v25, %v8744_v25  ;;  %v1382_v53 = vsub.f32 %v8469_v14, %v8728_v4 }
 0x295   : > { %6810 = vmatmul.mubr.f32.gmra.mrb[22].mxu0 %v1616_v49  ;;  %v1302_v15 = vpop.xlane.xlu1 %1301  ;;  %v1539_v37 = vmul.f32 %v7702_v45, %v1379_v21 }
 0x296   : > { %v7704_v40 = vpop.eup %7703  ;;  %v1447_v56 = vsub.f32 %v1351_v59, %v1415_v57  ;;  %v1352_v12 = vmul.f32 0.0078125, %v1302_v15 }
 0x297   : > { %v1175_v36 = vpop.xlane.xlu0 %1174  ;;  %v1578_v26 = vmul.f32 %v8637_v61, %v1539_v37  ;;  %v1540_v8 = vmul.f32 %v7704_v40, %v1380_v54 }
 0x298   : > { %v1479_v20 = vadd.f32 1e-05, %v1447_v56  ;;  %v1448_v38 = vsub.f32 %v1352_v12, %v1416_v5  ;;  %v8754_v31 = vmul.f32 0.0078125, %v1175_v36 }
 0x299   : > { %v1177_v34 = vpop.xlane.xlu1 %1176  ;;  %v1617_v35 = vadd.f32 %v8667_v48, %v1578_v26  ;;  %v1579_v3 = vmul.f32 %v8637_v61, %v1540_v8  ;;  %v1383_v26 = vsub.f32 %v8485_v6, %v8738_v55 }
 0x29a   : > { %7709 = vrsqrt.f32 %v1479_v20  ;;  %v1480_v46 = vadd.f32 1e-05, %v1448_v38  ;;  %v8760_v43 = vmul.f32 0.0078125, %v1177_v34  ;;  %v1417_v30 = vmul.f32 %v8754_v31, %v8754_v31 }
 0x29b   : > { %v1304_v39 = vpop.xlane.xlu0 %1303  ;;  %6812 = vmatprep.mubr.f32.mxu0 %v1617_v35  ;;  %v1618_v58 = vadd.f32 %v8667_v48, %v1579_v3 }
 0x29c   : > { %v7706_v52 = vpop.eup %7705  ;;  %7711 = vrsqrt.f32 %v1480_v46  ;;  %v1353_v21 = vmul.f32 0.0078125, %v1304_v39  ;;  %v1418_v42 = vmul.f32 %v8760_v43, %v8760_v43  ;;  %v1384_v46 = vsub.f32 %v8493_v2, %v8744_v25 }
 0x29d   : > { %6813 = vmatmul.mubr.f32.gmra.mrb[24].mxu0 %v1618_v58  ;;  %v1306_v49 = vpop.xlane.xlu1 %1305  ;;  %v1541_v45 = vmul.f32 %v7706_v52, %v1381_v10 }
 0x29e   : > { %v7708_v57 = vpop.eup %7707  ;;  %v1449_v60 = vsub.f32 %v1353_v21, %v1417_v30  ;;  %v1354_v59 = vmul.f32 0.0078125, %v1306_v49 }
 0x29f   : > { %v1179_v54 = vpop.xlane.xlu0 %1178  ;;  %v1580_v15 = vmul.f32 %v8637_v61, %v1541_v45  ;;  %v1542_v37 = vmul.f32 %v7708_v57, %v1382_v53 }
 0x2a0   : > { %v1481_v40 = vadd.f32 1e-05, %v1449_v60  ;;  %v1450_v5 = vsub.f32 %v1354_v59, %v1418_v42  ;;  %v8770_v56 = vmul.f32 0.0078125, %v1179_v54  ;;  %v1385_v59 = vsub.f32 %v8507_v17, %v8754_v31 }
 0x2a1   : > { %v1181_v12 = vpop.xlane.xlu1 %1180  ;;  %v1619_v14 = vadd.f32 %v8667_v48, %v1580_v15  ;;  %v1581_v4 = vmul.f32 %v8637_v61, %v1542_v37 }
 0x2a2   : > { %7713 = vrsqrt.f32 %v1481_v40  ;;  %v1482_v36 = vadd.f32 1e-05, %v1450_v5  ;;  %v8776_v8 = vmul.f32 0.0078125, %v1181_v12  ;;  %v1419_v35 = vmul.f32 %v8770_v56, %v8770_v56 }
 0x2a3   : > { %v1308_v20 = vpop.xlane.xlu0 %1307  ;;  %6815 = vmatprep.mubr.f32.mxu0 %v1619_v14  ;;  %v1620_v38 = vadd.f32 %v8667_v48, %v1581_v4  ;;  %v1386_v14 = vsub.f32 %v8515_v63, %v8760_v43 }
 0x2a4   : > { %v7710_v34 = vpop.eup %7709  ;;  %7715 = vrsqrt.f32 %v1482_v36  ;;  %v1355_v3 = vmul.f32 0.0078125, %v1308_v20  ;;  %v1420_v6 = vmul.f32 %v8776_v8, %v8776_v8 }
 0x2a5   : > { %6816 = vmatmul.mubr.f32.gmra.mrb[26].mxu0 %v1620_v38  ;;  %v1310_v10 = vpop.xlane.xlu1 %1309  ;;  %v1543_v39 = vmul.f32 %v7710_v34, %v1383_v26 }
 0x2a6   : > { %v7712_v58 = vpop.eup %7711  ;;  %v1451_v55 = vsub.f32 %v1355_v3, %v1419_v35  ;;  %v1356_v52 = vmul.f32 0.0078125, %v1310_v10 }
 0x2a7   : > { %v1183_v30 = vpop.xlane.xlu0 %1182  ;;  %v1582_v21 = vmul.f32 %v8637_v61, %v1543_v39  ;;  %v1544_v53 = vmul.f32 %v7712_v58, %v1384_v46 }
 0x2a8   : > { %v1483_v49 = vadd.f32 1e-05, %v1451_v55  ;;  %v1452_v45 = vsub.f32 %v1356_v52, %v1420_v6  ;;  %v8786_v57 = vmul.f32 0.0078125, %v1183_v30  ;;  %v1387_v6 = vsub.f32 %v8526_v62, %v8770_v56 }
 0x2a9   : > { %v1185_v42 = vpop.xlane.xlu1 %1184  ;;  %v1621_v2 = vadd.f32 %v8667_v48, %v1582_v21  ;;  %v1583_v25 = vmul.f32 %v8637_v61, %v1544_v53 }
 0x2aa   : > { %7717 = vrsqrt.f32 %v1483_v49  ;;  %v1484_v60 = vadd.f32 1e-05, %v1452_v45  ;;  %v8792_v54 = vmul.f32 0.0078125, %v1185_v42  ;;  %v1421_v5 = vmul.f32 %v8786_v57, %v8786_v57 }
 0x2ab   : > { %v1312_v15 = vpop.xlane.xlu0 %1311  ;;  %6818 = vmatprep.mubr.f32.mxu0 %v1621_v2  ;;  %v1622_v37 = vadd.f32 %v8667_v48, %v1583_v25  ;;  %v1388_v45 = vsub.f32 %v8531_v41, %v8776_v8 }
 0x2ac   : > { %v7714_v40 = vpop.eup %7713  ;;  %7719 = vrsqrt.f32 %v1484_v60  ;;  %v1357_v12 = vmul.f32 0.0078125, %v1312_v15  ;;  %v1422_v17 = vmul.f32 %v8792_v54, %v8792_v54 }
 0x2ad   : > { %6819 = vmatmul.mubr.f32.gmra.mrb[28].mxu0 %v1622_v37  ;;  %v1314_v4 = vpop.xlane.xlu1 %1313  ;;  %v1545_v36 = vmul.f32 %v7714_v40, %v1385_v59 }
 0x2ae   : > { %v7716_v26 = vpop.eup %7715  ;;  %v1453_v31 = vsub.f32 %v1357_v12, %v1421_v5  ;;  %v1358_v20 = vmul.f32 0.0078125, %v1314_v4 }
 0x2af   : > { %v1187_v38 = vpop.xlane.xlu0 %1186  ;;  %v1584_v34 = vmul.f32 %v8637_v61, %v1545_v36  ;;  %v1546_v35 = vmul.f32 %v7716_v26, %v1386_v14  ;;  %v1389_v36 = vsub.f32 %v8538_v7, %v8786_v57 }
 0x2b0   : > { %v1485_v3 = vadd.f32 1e-05, %v1453_v31  ;;  %v1454_v46 = vsub.f32 %v1358_v20, %v1422_v17  ;;  %v8802_v10 = vmul.f32 0.0078125, %v1187_v38 }
 0x2b1   : > { %v1189_v39 = vpop.xlane.xlu1 %1188  ;;  %v1623_v63 = vadd.f32 %v8667_v48, %v1584_v34  ;;  %v1585_v43 = vmul.f32 %v8637_v61, %v1546_v35  ;;  %v1390_v35 = vsub.f32 %v8543_v44, %v8792_v54 }
 0x2b2   : > { %7721 = vrsqrt.f32 %v1485_v3  ;;  %v1486_v58 = vadd.f32 1e-05, %v1454_v46  ;;  %v8808_v55 = vmul.f32 0.0078125, %v1189_v39  ;;  %v1423_v53 = vmul.f32 %v8802_v10, %v8802_v10 }
 0x2b3   : > { %v1316_v52 = vpop.xlane.xlu0 %1315  ;;  %6821 = vmatprep.mubr.f32.mxu0 %v1623_v63  ;;  %v1624_v30 = vadd.f32 %v8667_v48, %v1585_v43 }
 0x2b4   : > { %v7718_v21 = vpop.eup %7717  ;;  %7723 = vrsqrt.f32 %v1486_v58  ;;  %v1359_v49 = vmul.f32 0.0078125, %v1316_v52  ;;  %v1424_v62 = vmul.f32 %v8808_v55, %v8808_v55 }
 0x2b5   : > { %6822 = vmatmul.mubr.f32.gmra.mrb[30].mxu0 %v1624_v30  ;;  %v1318_v42 = vpop.xlane.xlu1 %1317  ;;  %v1547_v2 = vmul.f32 %v7718_v21, %v1387_v6 }
 0x2b6   : > { %v7720_v25 = vpop.eup %7719  ;;  %v1455_v56 = vsub.f32 %v1359_v49, %v1423_v53  ;;  %v1360_v60 = vmul.f32 0.0078125, %v1318_v42 }
 0x2b7   : > { %v1191_v59 = vpop.xlane.xlu0 %1190  ;;  %v1586_v15 = vmul.f32 %v8637_v61, %v1547_v2  ;;  %v1548_v37 = vmul.f32 %v7720_v25, %v1388_v45  ;;  %v1391_v45 = vsub.f32 %v8550_v23, %v8802_v10 }
 0x2b8   : > { %v1487_v40 = vadd.f32 1e-05, %v1455_v56  ;;  %v1456_v5 = vsub.f32 %v1360_v60, %v1424_v62  ;;  %v8818_v12 = vmul.f32 0.0078125, %v1191_v59  ;;  %v1392_v59 = vsub.f32 %v8555_v29, %v8808_v55 }
 0x2b9   : > { %v1193_v14 = vpop.xlane.xlu1 %1192  ;;  %v1625_v41 = vadd.f32 %v8667_v48, %v1586_v15  ;;  %v1587_v8 = vmul.f32 %v8637_v61, %v1548_v37 }
 0x2ba   : > { %7725 = vrsqrt.f32 %v1487_v40  ;;  %v1488_v4 = vadd.f32 1e-05, %v1456_v5  ;;  %v8824_v26 = vmul.f32 0.0078125, %v1193_v14  ;;  %v1425_v38 = vmul.f32 %v8818_v12, %v8818_v12 }
 0x2bb   : > { %v1320_v17 = vpop.xlane.xlu0 %1319  ;;  %6824 = vmatprep.mubr.f32.mxu0 %v1625_v41  ;;  %v1626_v31 = vadd.f32 %v8667_v48, %v1587_v8 }
 0x2bc   : > { %v7722_v20 = vpop.eup %7721  ;;  %7727 = vrsqrt.f32 %v1488_v4  ;;  %v1361_v34 = vmul.f32 0.0078125, %v1320_v17  ;;  %v1426_v7 = vmul.f32 %v8824_v26, %v8824_v26 }
 0x2bd   : > { %6825 = vmatmul.mubr.f32.gmra.mrb[32].mxu0 %v1626_v31  ;;  %v1322_v3 = vpop.xlane.xlu1 %1321  ;;  %v1549_v46 = vmul.f32 %v7722_v20, %v1389_v36 }
 0x2be   : > { %v7724_v39 = vpop.eup %7723  ;;  %v1457_v57 = vsub.f32 %v1361_v34, %v1425_v38  ;;  %v1362_v63 = vmul.f32 0.0078125, %v1322_v3  ;;  %v1393_v38 = vsub.f32 %v8562_v1, %v8818_v12 }
 0x2bf   : > { %v1195_v43 = vpop.xlane.xlu0 %1194  ;;  %v1588_v58 = vmul.f32 %v8637_v61, %v1549_v46  ;;  %v1550_v6 = vmul.f32 %v7724_v39, %v1390_v35 }
 0x2c0   : > { %v1489_v52 = vadd.f32 1e-05, %v1457_v57  ;;  %v1458_v30 = vsub.f32 %v1362_v63, %v1426_v7  ;;  %v8834_v21 = vmul.f32 0.0078125, %v1195_v43  ;;  %v1394_v57 = vsub.f32 %v8567_v0, %v8824_v26 }
 0x2c1   : > { %v1197_v53 = vpop.xlane.xlu1 %1196  ;;  %v1627_v44 = vadd.f32 %v8667_v48, %v1588_v58  ;;  %v1589_v54 = vmul.f32 %v8637_v61, %v1550_v6 }
 0x2c2   : > { %7729 = vrsqrt.f32 %v1489_v52  ;;  %v1490_v49 = vadd.f32 1e-05, %v1458_v30  ;;  %v8840_v42 = vmul.f32 0.0078125, %v1197_v53  ;;  %v1427_v56 = vmul.f32 %v8834_v21, %v8834_v21 }
 0x2c3   : > { %v1324_v2 = vpop.xlane.xlu0 %1323  ;;  %6827 = vmatprep.mubr.f32.mxu0 %v1627_v44  ;;  %v1628_v25 = vadd.f32 %v8667_v48, %v1589_v54 }
 0x2c4   : > { %v7726_v62 = vpop.eup %7725  ;;  %7731 = vrsqrt.f32 %v1490_v49  ;;  %v1363_v60 = vmul.f32 0.0078125, %v1324_v2  ;;  %v1428_v23 = vmul.f32 %v8840_v42, %v8840_v42 }
 0x2c5   : > { %6828 = vmatmul.mubr.f32.gmra.mrb[34].mxu0 %v1628_v25  ;;  %v1326_v15 = vpop.xlane.xlu1 %1325  ;;  %v1551_v37 = vmul.f32 %v7726_v62, %v1391_v45  ;;  %v6028_v25 = vld [vmem:[%s11396_s3 + $0xf0] sm:$0xff]  ;;  %v6029_v62 = vld [vmem:[%s11396_s3 + $0xf8] sm:$0xff] }
 0x2c6   : > { %v7728_v40 = vpop.eup %7727  ;;  %v1459_v10 = vsub.f32 %v1363_v60, %v1427_v56  ;;  %v1364_v5 = vmul.f32 0.0078125, %v1326_v15  ;;  %v1395_v56 = vsub.f32 %v8573_v24, %v8834_v21 }
 0x2c7   : > { %v1199_v14 = vpop.xlane.xlu0 %1198  ;;  %v1590_v41 = vmul.f32 %v8637_v61, %v1551_v37  ;;  %v1552_v8 = vmul.f32 %v7728_v40, %v1392_v59  ;;  %v7436_v37 = vpack.c.bf16 %v6029_v62, %v6028_v25 }
 0x2c8   : > { %v1491_v4 = vadd.f32 1e-05, %v1459_v10  ;;  %v1460_v36 = vsub.f32 %v1364_v5, %v1428_v23  ;;  %v8850_v17 = vmul.f32 0.0078125, %v1199_v14  ;;  %v1396_v5 = vsub.f32 %v8578_v18, %v8840_v42 }
 0x2c9   : > { %v1201_v31 = vpop.xlane.xlu1 %1200  ;;  %v1629_v29 = vadd.f32 %v8667_v48, %v1590_v41  ;;  %v1591_v55 = vmul.f32 %v8637_v61, %v1552_v8  ;;  %7437 = vmatprep.subr.bf16.mxu1 %v7436_v37 }
 0x2ca   : > { %7733 = vrsqrt.f32 %v1491_v4  ;;  %v1492_v20 = vadd.f32 1e-05, %v1460_v36  ;;  %v8856_v34 = vmul.f32 0.0078125, %v1201_v31  ;;  %v1429_v39 = vmul.f32 %v8850_v17, %v8850_v17  ;;  %7439 = vmatpush3.bf16.msra.mxu1 %v7436_v37 }
 0x2cb   : > { %v1328_v35 = vpop.xlane.xlu0 %1327  ;;  %6830 = vmatprep.mubr.f32.mxu0 %v1629_v29  ;;  %v1630_v3 = vadd.f32 %v8667_v48, %v1591_v55 }
 0x2cc   : > { %v7730_v46 = vpop.eup %7729  ;;  %7735 = vrsqrt.f32 %v1492_v20  ;;  %v1365_v7 = vmul.f32 0.0078125, %v1328_v35  ;;  %v1430_v1 = vmul.f32 %v8856_v34, %v8856_v34 }
 0x2cd   : > { %6831 = vmatmul.mubr.f32.gmra.mrb[36].mxu0 %v1630_v3  ;;  %v1330_v63 = vpop.xlane.xlu1 %1329  ;;  %v1553_v43 = vmul.f32 %v7730_v46, %v1393_v38  ;;  %v1397_v46 = vsub.f32 %v8584_v51, %v8850_v17 }
 0x2ce   : > { %v7732_v58 = vpop.eup %7731  ;;  %v1461_v12 = vsub.f32 %v1365_v7, %v1429_v39  ;;  %v1366_v6 = vmul.f32 0.0078125, %v1330_v63 }
 0x2cf   : > { %v1203_v52 = vpop.xlane.xlu0 %1202  ;;  %v1592_v30 = vmul.f32 %v8637_v61, %v1553_v43  ;;  %v1554_v53 = vmul.f32 %v7732_v58, %v1394_v57 }
 0x2d0   : > { %v1493_v44 = vadd.f32 1e-05, %v1461_v12  ;;  %v1462_v54 = vsub.f32 %v1366_v6, %v1430_v1  ;;  %v8866_v49 = vmul.f32 0.0078125, %v1203_v52  ;;  %v1398_v1 = vsub.f32 %v8589_v47, %v8856_v34 }
 0x2d1   : > { %v1205_v45 = vpop.xlane.xlu1 %1204  ;;  %v1631_v0 = vadd.f32 %v8667_v48, %v1592_v30  ;;  %v1593_v26 = vmul.f32 %v8637_v61, %v1554_v53 }
 0x2d2   : > { %7737 = vrsqrt.f32 %v1493_v44  ;;  %v1494_v2 = vadd.f32 1e-05, %v1462_v54  ;;  %v8878_v60 = vmul.f32 0.0078125, %v1205_v45  ;;  %v1431_v23 = vmul.f32 %v8866_v49, %v8866_v49 }
 0x2d3   : > { %v1332_v59 = vpop.xlane.xlu0 %1331  ;;  %6833 = vmatprep.mubr.f32.mxu0 %v1631_v0  ;;  %v1632_v15 = vadd.f32 %v8667_v48, %v1593_v26  ;;  %v1399_v47 = vsub.f32 %v8595_v50, %v8866_v49 }
 0x2d4   : > { %v7734_v40 = vpop.eup %7733  ;;  %7739 = vrsqrt.f32 %v1494_v2  ;;  %v1367_v10 = vmul.f32 0.0078125, %v1332_v59  ;;  %v1432_v21 = vmul.f32 %v8878_v60, %v8878_v60  ;;  %v1400_v62 = vsub.f32 %v8600_v32, %v8878_v60 }
 0x2d5   : > { %6834 = vmatmul.mubr.f32.gmra.mrb[38].mxu0 %v1632_v15  ;;  %v1334_v14 = vpop.xlane.xlu1 %1333  ;;  %v1555_v41 = vmul.f32 %v7734_v40, %v1395_v56 }
 0x2d6   : > { %v7736_v24 = vpop.eup %7735  ;;  %v1463_v8 = vsub.f32 %v1367_v10, %v1431_v23  ;;  %v1368_v4 = vmul.f32 0.0078125, %v1334_v14 }
 0x2d7   : > { %v1207_v36 = vpop.xlane.xlu0 %1206  ;;  %v1594_v31 = vmul.f32 %v8637_v61, %v1555_v41  ;;  %v1556_v29 = vmul.f32 %v7736_v24, %v1396_v5 }
 0x2d8   : > { %v1495_v55 = vadd.f32 1e-05, %v1463_v8  ;;  %v1464_v20 = vsub.f32 %v1368_v4, %v1432_v21  ;;  %v1241_v38 = vmul.f32 0.0078125, %v1207_v36 }
 0x2d9   : > { %v1209_v35 = vpop.xlane.xlu1 %1208  ;;  %v1633_v18 = vadd.f32 %v8667_v48, %v1594_v31  ;;  %v1595_v42 = vmul.f32 %v8637_v61, %v1556_v29 }
 0x2da   : > { %7741 = vrsqrt.f32 %v1495_v55  ;;  %v1496_v3 = vadd.f32 1e-05, %v1464_v20  ;;  %v1242_v39 = vmul.f32 0.0078125, %v1209_v35  ;;  %v1433_v43 = vmul.f32 %v1241_v38, %v1241_v38 }
 0x2db   : > { %v1336_v7 = vpop.xlane.xlu0 %1335  ;;  %6836 = vmatprep.mubr.f32.mxu0 %v1633_v18  ;;  %v1634_v57 = vadd.f32 %v8667_v48, %v1595_v42  ;;  %v1401_v50 = vsub.f32 %v8606_v33, %v1241_v38  ;;  %v8916_v33 = vld [vmem:[%s11401_s8] ss:$0 sm:$0xff] }
 0x2dc   : > { %v7738_v63 = vpop.eup %7737  ;;  %7743 = vrsqrt.f32 %v1496_v3  ;;  %v1369_v58 = vmul.f32 0.0078125, %v1336_v7  ;;  %v1434_v30 = vmul.f32 %v1242_v39, %v1242_v39  ;;  %v1402_v5 = vsub.f32 %v8611_v27, %v1242_v39 }
 0x2dd   : > { %6837 = vmatmul.mubr.f32.gmra.mrb[40].mxu0 %v1634_v57  ;;  %v1338_v12 = vpop.xlane.xlu1 %1337  ;;  %v1557_v6 = vmul.f32 %v7738_v63, %v1397_v46 }
 0x2de   : > { %v7740_v52 = vpop.eup %7739  ;;  %v1465_v53 = vsub.f32 %v1369_v58, %v1433_v43  ;;  %v1370_v44 = vmul.f32 0.0078125, %v1338_v12  ;;  %v11533_v43 = vld [vmem:[#allocation3_spill] sm:$0xff] }
 0x2df   : > { %v1596_v51 = vmul.f32 %v8637_v61, %v1557_v6  ;;  %v1558_v17 = vmul.f32 %v7740_v52, %v1398_v1  ;;  %v11535_v6 = vld [vmem:[#allocation5_spill] sm:$0xff] }
 0x2e0   : > { %v1497_v54 = vadd.f32 1e-05, %v1465_v53  ;;  %v1466_v45 = vsub.f32 %v1370_v44, %v1434_v30  ;;  %v11537_v30 = vld [vmem:[#allocation4_spill] sm:$0xff] }
 0x2e1   : > { %v1635_v0 = vadd.f32 %v8667_v48, %v1596_v51  ;;  %v1597_v26 = vmul.f32 %v8637_v61, %v1558_v17 }
 0x2e2   : > { %7745 = vrsqrt.f32 %v1497_v54  ;;  %v1498_v2 = vadd.f32 1e-05, %v1466_v45  ;;  %v11539_v54 = vld [vmem:[#allocation7_spill] sm:$0xff] }
 0x2e3   : > { %6839 = vmatprep.mubr.f32.mxu0 %v1635_v0  ;;  %v1636_v34 = vadd.f32 %v8667_v48, %v1597_v26  ;;  %v11541_v0 = vld [vmem:[#allocation6_spill] sm:$0xff] }
 0x2e4   : > { %v7742_v25 = vpop.eup %7741  ;;  %7747 = vrsqrt.f32 %v1498_v2 }
 0x2e5   : > { %6840 = vmatmul.mubr.f32.gmra.mrb[42].mxu0 %v1636_v34  ;;  %v1559_v56 = vmul.f32 %v7742_v25, %v1399_v47 }
 0x2e6   : > { %v7744_v59 = vpop.eup %7743 }
 0x2e7   : > { %v1598_v15 = vmul.f32 %v8637_v61, %v1559_v56  ;;  %v1560_v37 = vmul.f32 %v7744_v59, %v1400_v62  ;;  %v11543_v62 = vld [vmem:[#allocation9_spill] sm:$0xff]  ;;  %v11545_v59 = vld [vmem:[#allocation8_spill] sm:$0xff] }
 0x2e9   : > { %v1637_v40 = vadd.f32 %v8667_v48, %v1598_v15  ;;  %v1599_v23 = vmul.f32 %v8637_v61, %v1560_v37 }
 0x2eb   : > { %6842 = vmatprep.mubr.f32.mxu0 %v1637_v40  ;;  %v1638_v49 = vadd.f32 %v8667_v48, %v1599_v23 }
 0x2ec   : > { %v7746_v10 = vpop.eup %7745 }
 0x2ed   : > { %6843 = vmatmul.mubr.f32.gmra.mrb[44].mxu0 %v1638_v49  ;;  %v1561_v32 = vmul.f32 %v7746_v10, %v1401_v50  ;;  %v11547_v49 = vld [vmem:[#allocation11_spill] sm:$0xff] }
 0x2ee   : > { %v7748_v60 = vpop.eup %7747 }
 0x2ef   : > { %v1600_v14 = vmul.f32 %v8637_v61, %v1561_v32  ;;  %v1562_v41 = vmul.f32 %v7748_v60, %v1402_v5  ;;  %v11549_v5 = vld [vmem:[#allocation10_spill] sm:$0xff] }
 0x2f1   : > { %v1639_v24 = vadd.f32 %v8667_v48, %v1600_v14  ;;  %v1601_v21 = vmul.f32 %v8637_v61, %v1562_v41 }
 0x2f3   : > { %6845 = vmatprep.mubr.f32.mxu0 %v1639_v24  ;;  %v1640_v8 = vadd.f32 %v8667_v48, %v1601_v21  ;;  %v11551_v21 = vld [vmem:[#allocation12_spill] sm:$0xff] }
 0x2f5   : > { %6846 = vmatmul.mubr.f32.gmra.mrb[46].mxu0 %v1640_v8 }
 0x351   : > { %v6802_v27 = vpop.f32.mrb[16].mxu0 }
 0x352   : > { %v1736_v4 = vadd.f32 %v6802_v27, %v8916_v33  ;;  %v1730_v36 = vpop.f32.mrb[17].mxu0  ;;  %v11553_v27 = vld [vmem:[#allocation13_spill] sm:$0xff] }
 0x353   : > { %v1731_v31 = vadd.f32 %v8916_v33, %v1730_v36 }
 0x354   : > { %v8924_v61 = vadd.f32 %v1736_v4, %v8198_v11 }
 0x355   : > { %v8921_v29 = vadd.f32 %v1731_v31, %v8195_v9 }
 0x357   : > { %6880 = vmatprep.mubr.f32.mxu1 %v8921_v29 }
 0x358   : > { %v6805_v48 = vpop.f32.mrb[18].mxu0  ;;  %6881 = vmatmul.mubr.f32.vlgmr.msra.gmra.mrb[48].mxu1 %v8924_v61 }
 0x359   : > { %v1746_v55 = vadd.f32 %v6805_v48, %v8916_v33  ;;  %v1740_v20 = vpop.f32.mrb[19].mxu0 }
 0x35a   : > { %v1741_v38 = vadd.f32 %v8916_v33, %v1740_v20  ;;  %v11555_v20 = vld [vmem:[#allocation14_spill] sm:$0xff] }
 0x35b   : > { %v8934_v18 = vadd.f32 %v1746_v55, %v8203_v13 }
 0x35c   : > { %v8931_v35 = vadd.f32 %v1741_v38, %v8206_v16 }
 0x35e   : > { %6883 = vmatprep.mubr.f32.mxu1 %v8931_v35 }
 0x35f   : > { %6884 = vmatmul.mubr.f32.gmra.mrb[50].mxu1 %v8934_v18 }
 0x360   : > { %v6808_v9 = vpop.f32.mrb[20].mxu0 }
 0x361   : > { %v1756_v11 = vadd.f32 %v6808_v9, %v8916_v33  ;;  %v1750_v42 = vpop.f32.mrb[21].mxu0  ;;  %v11557_v9 = vld [vmem:[#allocation15_spill] sm:$0xff] }
 0x362   : > { %v1751_v3 = vadd.f32 %v8916_v33, %v1750_v42 }
 0x363   : > { %v8944_v39 = vadd.f32 %v1756_v11, %v8211_v19 }
 0x364   : > { %v8941_v46 = vadd.f32 %v1751_v3, %v8214_v22 }
 0x366   : > { %6886 = vmatprep.mubr.f32.mxu1 %v8941_v46 }
 0x367   : > { %6887 = vmatmul.mubr.f32.gmra.mrb[52].mxu1 %v8944_v39 }
 0x368   : > { %v6811_v13 = vpop.f32.mrb[22].mxu0 }
 0x369   : > { %v1766_v16 = vadd.f32 %v6811_v13, %v8916_v33  ;;  %v1760_v7 = vpop.f32.mrb[23].mxu0 }
 0x36a   : > { %v1761_v57 = vadd.f32 %v8916_v33, %v1760_v7  ;;  %v11559_v7 = vld [vmem:[#allocation16_spill] sm:$0xff] }
 0x36b   : > { %v8954_v58 = vadd.f32 %v1766_v16, %v11533_v43  ;;  %v11561_v43 = vld [vmem:[#allocation17_spill] sm:$0xff] }
 0x36c   : > { %v8951_v63 = vadd.f32 %v1761_v57, %v8222_v28 }
 0x36d   : > { %11534 = vst [vmem:[#allocation3_spill] sm:$0xff] %v8954_v58 }
 0x36e   : > { %6889 = vmatprep.mubr.f32.mxu1 %v8951_v63 }
 0x36f   : > { %6890 = vmatmul.mubr.f32.gmra.mrb[54].mxu1 %v8954_v58 }
 0x370   : > { %v6814_v19 = vpop.f32.mrb[24].mxu0 }
 0x371   : > { %v1776_v22 = vadd.f32 %v6814_v19, %v8916_v33  ;;  %v1770_v1 = vpop.f32.mrb[25].mxu0 }
 0x372   : > { %v1771_v12 = vadd.f32 %v8916_v33, %v1770_v1 }
 0x373   : > { %v8964_v53 = vadd.f32 %v1776_v22, %v11537_v30  ;;  %v11563_v30 = vld [vmem:[#allocation18_spill] sm:$0xff] }
 0x374   : > { %v8961_v52 = vadd.f32 %v1771_v12, %v11535_v6 }
 0x375   : > { %11538 = vst [vmem:[#allocation4_spill] sm:$0xff] %v8964_v53 }
 0x376   : > { %11536 = vst [vmem:[#allocation5_spill] sm:$0xff] %v8961_v52  ;;  %6892 = vmatprep.mubr.f32.mxu1 %v8961_v52 }
 0x377   : > { %6893 = vmatmul.mubr.f32.gmra.mrb[56].mxu1 %v8964_v53 }
 0x378   : > { %v6817_v28 = vpop.f32.mrb[26].mxu0 }
 0x379   : > { %v1786_v44 = vadd.f32 %v6817_v28, %v8916_v33  ;;  %v1780_v51 = vpop.f32.mrb[27].mxu0 }
 0x37a   : > { %v1781_v17 = vadd.f32 %v8916_v33, %v1780_v51 }
 0x37b   : > { %v8974_v26 = vadd.f32 %v1786_v44, %v11541_v0  ;;  %v11565_v44 = vld [vmem:[#allocation19_spill] sm:$0xff] }
 0x37c   : > { %v8971_v45 = vadd.f32 %v1781_v17, %v11539_v54 }
 0x37d   : > { %11542 = vst [vmem:[#allocation6_spill] sm:$0xff] %v8974_v26 }
 0x37e   : > { %11540 = vst [vmem:[#allocation7_spill] sm:$0xff] %v8971_v45  ;;  %6895 = vmatprep.mubr.f32.mxu1 %v8971_v45 }
 0x37f   : > { %6896 = vmatmul.mubr.f32.gmra.mrb[58].mxu1 %v8974_v26 }
 0x380   : > { %v6820_v2 = vpop.f32.mrb[28].mxu0 }
 0x381   : > { %v1796_v47 = vadd.f32 %v6820_v2, %v8916_v33  ;;  %v1790_v34 = vpop.f32.mrb[29].mxu0 }
 0x382   : > { %v1791_v25 = vadd.f32 %v8916_v33, %v1790_v34 }
 0x383   : > { %v8984_v15 = vadd.f32 %v1796_v47, %v11545_v59  ;;  %v11567_v47 = vld [vmem:[#allocation20_spill] sm:$0xff] }
 0x384   : > { %v8981_v56 = vadd.f32 %v1791_v25, %v11543_v62  ;;  %v11569_v25 = vld [vmem:[#allocation21_spill] sm:$0xff] }
 0x385   : > { %11546 = vst [vmem:[#allocation8_spill] sm:$0xff] %v8984_v15 }
 0x386   : > { %11544 = vst [vmem:[#allocation9_spill] sm:$0xff] %v8981_v56  ;;  %6898 = vmatprep.mubr.f32.mxu1 %v8981_v56 }
 0x387   : > { %6899 = vmatmul.mubr.f32.gmra.mrb[60].mxu1 %v8984_v15 }
 0x388   : > { %v6823_v37 = vpop.f32.mrb[30].mxu0 }
 0x389   : > { %v1806_v40 = vadd.f32 %v6823_v37, %v8916_v33  ;;  %v1800_v23 = vpop.f32.mrb[31].mxu0 }
 0x38a   : > { %v1801_v50 = vadd.f32 %v8916_v33, %v1800_v23 }
 0x38b   : > { %v8994_v32 = vadd.f32 %v1806_v40, %v11549_v5  ;;  %v11573_v5 = vld [vmem:[#allocation23_spill] sm:$0xff] }
 0x38c   : > { %v8991_v10 = vadd.f32 %v1801_v50, %v11547_v49  ;;  %v11571_v50 = vld [vmem:[#allocation22_spill] sm:$0xff] }
 0x38d   : > { %11550 = vst [vmem:[#allocation10_spill] sm:$0xff] %v8994_v32 }
 0x38e   : > { %11548 = vst [vmem:[#allocation11_spill] sm:$0xff] %v8991_v10  ;;  %6901 = vmatprep.mubr.f32.mxu1 %v8991_v10 }
 0x38f   : > { %6902 = vmatmul.mubr.f32.gmra.mrb[62].mxu1 %v8994_v32 }
 0x390   : > { %v6826_v60 = vpop.f32.mrb[32].mxu0 }
 0x391   : > { %v1816_v14 = vadd.f32 %v6826_v60, %v8916_v33  ;;  %v1810_v41 = vpop.f32.mrb[33].mxu0 }
 0x392   : > { %v1811_v24 = vadd.f32 %v8916_v33, %v1810_v41 }
 0x393   : > { %v9004_v4 = vadd.f32 %v1816_v14, %v11553_v27  ;;  %v11575_v27 = vld [vmem:[#allocation24_spill] sm:$0xff] }
 0x394   : > { %v9001_v8 = vadd.f32 %v1811_v24, %v11551_v21 }
 0x395   : > { %11554 = vst [vmem:[#allocation13_spill] sm:$0xff] %v9004_v4 }
 0x396   : > { %11552 = vst [vmem:[#allocation12_spill] sm:$0xff] %v9001_v8  ;;  %6904 = vmatprep.mubr.f32.mxu1 %v9001_v8 }
 0x397   : > { %6905 = vmatmul.mubr.f32.gmra.mrb[64].mxu1 %v9004_v4 }
 0x398   : > { %v6829_v36 = vpop.f32.mrb[34].mxu0 }
 0x399   : > { %v1826_v31 = vadd.f32 %v6829_v36, %v8916_v33  ;;  %v1820_v48 = vpop.f32.mrb[35].mxu0 }
 0x39a   : > { %v1821_v55 = vadd.f32 %v8916_v33, %v1820_v48 }
 0x39b   : > { %v9014_v11 = vadd.f32 %v1826_v31, %v11557_v9  ;;  %v11577_v31 = vld [vmem:[#allocation25_spill] sm:$0xff] }
 0x39c   : > { %v9011_v38 = vadd.f32 %v1821_v55, %v11555_v20 }
 0x39d   : > { %11558 = vst [vmem:[#allocation15_spill] sm:$0xff] %v9014_v11 }
 0x39e   : > { %11556 = vst [vmem:[#allocation14_spill] sm:$0xff] %v9011_v38  ;;  %6907 = vmatprep.mubr.f32.mxu1 %v9011_v38 }
 0x39f   : > { %6908 = vmatmul.mubr.f32.gmra.mrb[66].mxu1 %v9014_v11 }
 0x3a0   : > { %v6832_v42 = vpop.f32.mrb[36].mxu0 }
 0x3a1   : > { %v1836_v3 = vadd.f32 %v6832_v42, %v8916_v33  ;;  %v1830_v13 = vpop.f32.mrb[37].mxu0 }
 0x3a2   : > { %v1831_v16 = vadd.f32 %v8916_v33, %v1830_v13 }
 0x3a3   : > { %v9024_v19 = vadd.f32 %v1836_v3, %v11561_v43  ;;  %v11579_v3 = vld [vmem:[#allocation26_spill] sm:$0xff] }
 0x3a4   : > { %v9021_v57 = vadd.f32 %v1831_v16, %v11559_v7  ;;  %v11581_v16 = vld [vmem:[#allocation27_spill] sm:$0xff] }
 0x3a5   : > { %11562 = vst [vmem:[#allocation17_spill] sm:$0xff] %v9024_v19  ;;  %v6036_v43 = vld [vmem:[%s11400_s7 + $0x80] sm:$0xff] }
 0x3a6   : > { %11560 = vst [vmem:[#allocation16_spill] sm:$0xff] %v9021_v57  ;;  %6910 = vmatprep.mubr.f32.mxu1 %v9021_v57 }
 0x3a7   : > { %6911 = vmatmul.mubr.f32.gmra.mrb[68].mxu1 %v9024_v19 }
 0x3a8   : > { %v6835_v22 = vpop.f32.mrb[38].mxu0 }
 0x3a9   : > { %v1846_v1 = vadd.f32 %v6835_v22, %v8916_v33  ;;  %v1840_v12 = vpop.f32.mrb[39].mxu0  ;;  %v6037_v22 = vld [vmem:[%s11400_s7 + $0x88] sm:$0xff] }
 0x3aa   : > { %v1841_v6 = vadd.f32 %v8916_v33, %v1840_v12  ;;  %v6039_v12 = vld [vmem:[%s11400_s7 + $0x98] sm:$0xff] }
 0x3ab   : > { %v9034_v51 = vadd.f32 %v1846_v1, %v11565_v44  ;;  %v7440_v1 = vpack.c.bf16 %v6037_v22, %v6036_v43 }
 0x3ac   : > { %v9031_v28 = vadd.f32 %v1841_v6, %v11563_v30  ;;  %v9093_v30 = vld [vmem:[%s11397_s4 + $0x1] ss:$0 sm:$0xff] }
 0x3ad   : > { %11566 = vst [vmem:[#allocation19_spill] sm:$0xff] %v9034_v51  ;;  %7441 = vmatprep.subr.bf16.mxu0 %v7440_v1 }
 0x3ae   : > { %11564 = vst [vmem:[#allocation18_spill] sm:$0xff] %v9031_v28  ;;  %6913 = vmatprep.mubr.f32.mxu1 %v9031_v28  ;;  %7443 = vmatpush3.bf16.msra.mxu0 %v7440_v1 }
 0x3af   : > { %6914 = vmatmul.mubr.f32.gmra.mrb[70].mxu1 %v9034_v51 }
 0x3b0   : > { %v6838_v17 = vpop.f32.mrb[40].mxu0 }
 0x3b1   : > { %v1856_v54 = vadd.f32 %v6838_v17, %v8916_v33  ;;  %v1850_v0 = vpop.f32.mrb[41].mxu0 }
 0x3b2   : > { %v1851_v2 = vadd.f32 %v8916_v33, %v1850_v0 }
 0x3b3   : > { %v9044_v62 = vadd.f32 %v1856_v54, %v11569_v25  ;;  %v6042_v25 = vld [vmem:[%s11400_s7 + $0xb0] sm:$0xff] }
 0x3b4   : > { %v9041_v34 = vadd.f32 %v1851_v2, %v11567_v47  ;;  %v6040_v2 = vld [vmem:[%s11400_s7 + $0xa0] sm:$0xff]  ;;  %v6041_v47 = vld [vmem:[%s11400_s7 + $0xa8] sm:$0xff] }
 0x3b5   : > { %11570 = vst [vmem:[#allocation21_spill] sm:$0xff] %v9044_v62 }
 0x3b6   : > { %11568 = vst [vmem:[#allocation20_spill] sm:$0xff] %v9041_v34  ;;  %6916 = vmatprep.mubr.f32.mxu1 %v9041_v34 }
 0x3b7   : > { %6917 = vmatmul.mubr.f32.gmra.mrb[72].mxu1 %v9044_v62 }
 0x3b8   : > { %v6841_v59 = vpop.f32.mrb[42].mxu0 }
 0x3b9   : > { %v1866_v37 = vadd.f32 %v6841_v59, %v8916_v33  ;;  %v1860_v40 = vpop.f32.mrb[43].mxu0 }
 0x3ba   : > { %v1861_v23 = vadd.f32 %v8916_v33, %v1860_v40  ;;  %v6043_v40 = vld [vmem:[%s11400_s7 + $0xb8] sm:$0xff] }
 0x3bb   : > { %v9054_v60 = vadd.f32 %v1866_v37, %v11573_v5  ;;  %v7448_v37 = vpack.c.bf16 %v6041_v47, %v6040_v2 }
 0x3bc   : > { %v9051_v49 = vadd.f32 %v1861_v23, %v11571_v50  ;;  %v7452_v50 = vpack.c.bf16 %v6043_v40, %v6042_v25 }
 0x3bd   : > { %11574 = vst [vmem:[#allocation23_spill] sm:$0xff] %v9054_v60 }
 0x3be   : > { %11572 = vst [vmem:[#allocation22_spill] sm:$0xff] %v9051_v49  ;;  %6919 = vmatprep.mubr.f32.mxu1 %v9051_v49 }
 0x3bf   : > { %6920 = vmatmul.mubr.f32.gmra.mrb[74].mxu1 %v9054_v60 }
 0x3c0   : > { %v6844_v14 = vpop.f32.mrb[44].mxu0 }
 0x3c1   : > { %v1876_v41 = vadd.f32 %v6844_v14, %v8916_v33  ;;  %v1870_v24 = vpop.f32.mrb[45].mxu0 }
 0x3c2   : > { %v1871_v21 = vadd.f32 %v8916_v33, %v1870_v24 }
 0x3c3   : > { %v9064_v48 = vadd.f32 %v1876_v41, %v11577_v31 }
 0x3c4   : > { %v9061_v36 = vadd.f32 %v1871_v21, %v11575_v27 }
 0x3c5   : > { %11578 = vst [vmem:[#allocation25_spill] sm:$0xff] %v9064_v48 }
 0x3c6   : > { %11576 = vst [vmem:[#allocation24_spill] sm:$0xff] %v9061_v36  ;;  %6922 = vmatprep.mubr.f32.mxu1 %v9061_v36 }
 0x3c7   : > { %6923 = vmatmul.mubr.f32.gmra.mrb[76].mxu1 %v9064_v48 }
 0x3c8   : > { %v6847_v55 = vpop.f32.mrb[46].mxu0 }
 0x3c9   : > { %v1886_v20 = vadd.f32 %v6847_v55, %v8916_v33  ;;  %v1880_v9 = vpop.f32.mrb[47].mxu0 }
 0x3ca   : > { %v1881_v42 = vadd.f32 %v8916_v33, %v1880_v9  ;;  %v6038_v33 = vld [vmem:[%s11400_s7 + $0x90] sm:$0xff] }
 0x3cb   : > { %v9074_v7 = vadd.f32 %v1886_v20, %v11581_v16  ;;  %v7444_v6 = vpack.c.bf16 %v6039_v12, %v6038_v33  ;;  %v6044_v33 = vld [vmem:[%s11400_s7 + $0xc0] sm:$0xff]  ;;  %v6045_v12 = vld [vmem:[%s11400_s7 + $0xc8] sm:$0xff] }
 0x3cc   : > { %v9071_v13 = vadd.f32 %v1881_v42, %v11579_v3 }
 0x3cd   : > { %11582 = vst [vmem:[#allocation27_spill] sm:$0xff] %v9074_v7  ;;  %7445 = vmatprep.subr.bf16.mxu0 %v7444_v6 }
 0x3ce   : > { %11580 = vst [vmem:[#allocation26_spill] sm:$0xff] %v9071_v13  ;;  %6925 = vmatprep.mubr.f32.mxu1 %v9071_v13  ;;  %7447 = vmatpush3.bf16.msra.mxu0 %v7444_v6 }
 0x3cf   : > { %6926 = vmatmul.mubr.f32.gmra.mrb[78].mxu1 %v9074_v7  ;;  %7449 = vmatprep.subr.bf16.mxu0 %v7448_v37 }
 0x3d2   : > { %7451 = vmatpush3.bf16.msra.mxu0 %v7448_v37 }
 0x3d3   : > { %7453 = vmatprep.subr.bf16.mxu0 %v7452_v50 }
 0x3d6   : > { %7455 = vmatpush3.bf16.msra.mxu0 %v7452_v50 }
 0x42b   : > { %v6882_v44 = vpop.f32.mrb[48].mxu1 }
 0x42c   : > { %v2018_v17 = vadd.f32 %v6882_v44, %v9093_v30  ;;  %v2012_v54 = vpop.f32.mrb[49].mxu1 }
 0x42d   : > { %v2013_v0 = vadd.f32 %v9093_v30, %v2012_v54 }
 0x42e   : > { %v9106_v59 = vmax.f32 %v2018_v17, 0.0  ;;  %v7456_v17 = vpack.c.bf16 %v6045_v12, %v6044_v33 }
 0x42f   : > { %v9111_v23 = vmax.f32 %v2013_v0, 0.0 }
 0x430   : > { %2205 = vadd.xlane.f32.xlu1 %v9106_v59  ;;  %v2300_v14 = vmul.f32 %v9106_v59, %v9106_v59  ;;  %7457 = vmatprep.subr.bf16.mxu0 %v7456_v17 }
 0x431   : > { %2203 = vadd.xlane.f32.xlu0 %v9111_v23  ;;  %v2299_v21 = vmul.f32 %v9111_v23, %v9111_v23  ;;  %7459 = vmatpush3.bf16.msra.mxu0 %v7456_v17 }
 0x432   : > { %v6885_v5 = vpop.f32.mrb[50].mxu1 }
 0x433   : > { %v2028_v41 = vadd.f32 %v6885_v5, %v9093_v30  ;;  %v2022_v24 = vpop.f32.mrb[51].mxu1 }
 0x434   : > { %v2023_v27 = vadd.f32 %v9093_v30, %v2022_v24  ;;  %2333 = vadd.xlane.f32.xlu1 %v2300_v14 }
 0x435   : > { %v9121_v31 = vmax.f32 %v2028_v41, 0.0  ;;  %2331 = vadd.xlane.f32.xlu0 %v2299_v21 }
 0x436   : > { %v9123_v55 = vmax.f32 %v2023_v27, 0.0  ;;  %v6046_v27 = vld [vmem:[%s11400_s7 + $0xd0] sm:$0xff] }
 0x437   : > { %v2302_v9 = vmul.f32 %v9121_v31, %v9121_v31 }
 0x438   : > { %2209 = vadd.xlane.f32.xlu1 %v9121_v31  ;;  %v2301_v16 = vmul.f32 %v9123_v55, %v9123_v55 }
 0x439   : > { %2207 = vadd.xlane.f32.xlu0 %v9123_v55 }
 0x43a   : > { %v6888_v20 = vpop.f32.mrb[52].mxu1 }
 0x43b   : > { %v2038_v42 = vadd.f32 %v6888_v20, %v9093_v30  ;;  %v2032_v3 = vpop.f32.mrb[53].mxu1  ;;  %v6047_v20 = vld [vmem:[%s11400_s7 + $0xd8] sm:$0xff] }
 0x43c   : > { %v2033_v43 = vadd.f32 %v9093_v30, %v2032_v3  ;;  %2337 = vadd.xlane.f32.xlu1 %v2302_v9  ;;  %v6048_v3 = vld [vmem:[%s11400_s7 + $0xe0] sm:$0xff] }
 0x43d   : > { %v9133_v22 = vmax.f32 %v2038_v42, 0.0  ;;  %2335 = vadd.xlane.f32.xlu0 %v2301_v16  ;;  %v7460_v42 = vpack.c.bf16 %v6047_v20, %v6046_v27  ;;  %v6049_v16 = vld [vmem:[%s11400_s7 + $0xe8] sm:$0xff] }
 0x43e   : > { %v9135_v1 = vmax.f32 %v2033_v43, 0.0  ;;  %v7464_v12 = vpack.c.bf16 %v6049_v16, %v6048_v3 }
 0x43f   : > { %v2304_v44 = vmul.f32 %v9133_v22, %v9133_v22  ;;  %7461 = vmatprep.subr.bf16.mxu0 %v7460_v42 }
 0x440   : > { %2213 = vadd.xlane.f32.xlu1 %v9133_v22  ;;  %v2303_v2 = vmul.f32 %v9135_v1, %v9135_v1  ;;  %7463 = vmatpush3.bf16.msra.mxu0 %v7460_v42 }
 0x441   : > { %2211 = vadd.xlane.f32.xlu0 %v9135_v1  ;;  %7465 = vmatprep.subr.bf16.mxu0 %v7464_v12 }
 0x442   : > { %v6891_v6 = vpop.f32.mrb[54].mxu1 }
 0x443   : > { %v2048_v54 = vadd.f32 %v6891_v6, %v9093_v30  ;;  %v2042_v0 = vpop.f32.mrb[55].mxu1 }
 0x444   : > { %v2043_v47 = vadd.f32 %v9093_v30, %v2042_v0  ;;  %2341 = vadd.xlane.f32.xlu1 %v2304_v44  ;;  %7467 = vmatpush3.bf16.msra.mxu0 %v7464_v12 }
 0x445   : > { %v9151_v25 = vmax.f32 %v2048_v54, 0.0  ;;  %2339 = vadd.xlane.f32.xlu0 %v2303_v2  ;;  %v6050_v2 = vld [vmem:[%s11400_s7 + $0xf0] sm:$0xff] }
 0x446   : > { %v9153_v37 = vmax.f32 %v2043_v47, 0.0  ;;  %v6051_v47 = vld [vmem:[%s11400_s7 + $0xf8] sm:$0xff] }
 0x447   : > { %v2306_v50 = vmul.f32 %v9151_v25, %v9151_v25 }
 0x448   : > { %2217 = vadd.xlane.f32.xlu1 %v9151_v25  ;;  %v2305_v41 = vmul.f32 %v9153_v37, %v9153_v37 }
 0x449   : > { %2215 = vadd.xlane.f32.xlu0 %v9153_v37 }
 0x44a   : > { %v6894_v40 = vpop.f32.mrb[56].mxu1 }
 0x44b   : > { %v2058_v5 = vadd.f32 %v6894_v40, %v9093_v30  ;;  %v2052_v14 = vpop.f32.mrb[57].mxu1 }
 0x44c   : > { %v2053_v24 = vadd.f32 %v9093_v30, %v2052_v14  ;;  %2345 = vadd.xlane.f32.xlu1 %v2306_v50  ;;  %v7468_v50 = vpack.c.bf16 %v6051_v47, %v6050_v2 }
 0x44d   : > { %v9163_v21 = vmax.f32 %v2058_v5, 0.0  ;;  %2343 = vadd.xlane.f32.xlu0 %v2305_v41 }
 0x44e   : > { %v9171_v9 = vmax.f32 %v2053_v24, 0.0  ;;  %7469 = vmatprep.subr.bf16.mxu0 %v7468_v50 }
 0x44f   : > { %v2308_v33 = vmul.f32 %v9163_v21, %v9163_v21  ;;  %7471 = vmatpush3.bf16.msra.mxu0 %v7468_v50 }
 0x450   : > { %2221 = vadd.xlane.f32.xlu1 %v9163_v21  ;;  %v2307_v17 = vmul.f32 %v9171_v9, %v9171_v9 }
 0x451   : > { %2219 = vadd.xlane.f32.xlu0 %v9171_v9 }
 0x452   : > { %v6897_v43 = vpop.f32.mrb[58].mxu1 }
 0x453   : > { %v2068_v6 = vadd.f32 %v6897_v43, %v9093_v30  ;;  %v2062_v44 = vpop.f32.mrb[59].mxu1 }
 0x454   : > { %v2063_v54 = vadd.f32 %v9093_v30, %v2062_v44  ;;  %2349 = vadd.xlane.f32.xlu1 %v2308_v33 }
 0x455   : > { %v9187_v0 = vmax.f32 %v2068_v6, 0.0  ;;  %2347 = vadd.xlane.f32.xlu0 %v2307_v17 }
 0x456   : > { %v9195_v40 = vmax.f32 %v2063_v54, 0.0 }
 0x457   : > { %v2310_v14 = vmul.f32 %v9187_v0, %v9187_v0 }
 0x458   : > { %2225 = vadd.xlane.f32.xlu1 %v9187_v0  ;;  %v2309_v27 = vmul.f32 %v9195_v40, %v9195_v40 }
 0x459   : > { %2223 = vadd.xlane.f32.xlu0 %v9195_v40 }
 0x45a   : > { %v6900_v5 = vpop.f32.mrb[60].mxu1 }
 0x45b   : > { %v2078_v41 = vadd.f32 %v6900_v5, %v9093_v30  ;;  %v2072_v24 = vpop.f32.mrb[61].mxu1 }
 0x45c   : > { %v2073_v20 = vadd.f32 %v9093_v30, %v2072_v24  ;;  %2353 = vadd.xlane.f32.xlu1 %v2310_v14 }
 0x45d   : > { %v9205_v42 = vmax.f32 %v2078_v41, 0.0  ;;  %2351 = vadd.xlane.f32.xlu0 %v2309_v27 }
 0x45e   : > { %v9207_v3 = vmax.f32 %v2073_v20, 0.0 }
 0x45f   : > { %v2312_v43 = vmul.f32 %v9205_v42, %v9205_v42 }
 0x460   : > { %2229 = vadd.xlane.f32.xlu1 %v9205_v42  ;;  %v2311_v6 = vmul.f32 %v9207_v3, %v9207_v3 }
 0x461   : > { %2227 = vadd.xlane.f32.xlu0 %v9207_v3 }
 0x462   : > { %v6903_v16 = vpop.f32.mrb[62].mxu1 }
 0x463   : > { %v2088_v33 = vadd.f32 %v6903_v16, %v9093_v30  ;;  %v2082_v12 = vpop.f32.mrb[63].mxu1 }
 0x464   : > { %v2083_v44 = vadd.f32 %v9093_v30, %v2082_v12  ;;  %2357 = vadd.xlane.f32.xlu1 %v2312_v43 }
 0x465   : > { %v9217_v17 = vmax.f32 %v2088_v33, 0.0  ;;  %2355 = vadd.xlane.f32.xlu0 %v2311_v6 }
 0x466   : > { %v9219_v54 = vmax.f32 %v2083_v44, 0.0 }
 0x467   : > { %v2314_v47 = vmul.f32 %v9217_v17, %v9217_v17 }
 0x468   : > { %2233 = vadd.xlane.f32.xlu1 %v9217_v17  ;;  %v2313_v14 = vmul.f32 %v9219_v54, %v9219_v54 }
 0x469   : > { %2231 = vadd.xlane.f32.xlu0 %v9219_v54 }
 0x46a   : > { %v6906_v2 = vpop.f32.mrb[64].mxu1 }
 0x46b   : > { %v2098_v50 = vadd.f32 %v6906_v2, %v9093_v30  ;;  %v2092_v5 = vpop.f32.mrb[65].mxu1 }
 0x46c   : > { %v2093_v41 = vadd.f32 %v9093_v30, %v2092_v5  ;;  %2361 = vadd.xlane.f32.xlu1 %v2314_v47 }
 0x46d   : > { %v9229_v24 = vmax.f32 %v2098_v50, 0.0  ;;  %2359 = vadd.xlane.f32.xlu0 %v2313_v14 }
 0x46e   : > { %v9231_v27 = vmax.f32 %v2093_v41, 0.0 }
 0x46f   : > { %v2316_v16 = vmul.f32 %v9229_v24, %v9229_v24 }
 0x470   : > { %2237 = vadd.xlane.f32.xlu1 %v9229_v24  ;;  %v2315_v12 = vmul.f32 %v9231_v27, %v9231_v27 }
 0x471   : > { %2235 = vadd.xlane.f32.xlu0 %v9231_v27 }
 0x472   : > { %v6909_v20 = vpop.f32.mrb[66].mxu1 }
 0x473   : > { %v2108_v43 = vadd.f32 %v6909_v20, %v9093_v30  ;;  %v2102_v33 = vpop.f32.mrb[67].mxu1 }
 0x474   : > { %v2103_v6 = vadd.f32 %v9093_v30, %v2102_v33  ;;  %2365 = vadd.xlane.f32.xlu1 %v2316_v16 }
 0x475   : > { %v9241_v44 = vmax.f32 %v2108_v43, 0.0  ;;  %2363 = vadd.xlane.f32.xlu0 %v2315_v12 }
 0x476   : > { %v9243_v2 = vmax.f32 %v2103_v6, 0.0 }
 0x477   : > { %v2318_v50 = vmul.f32 %v9241_v44, %v9241_v44 }
 0x478   : > { %2241 = vadd.xlane.f32.xlu1 %v9241_v44  ;;  %v2317_v41 = vmul.f32 %v9243_v2, %v9243_v2 }
 0x479   : > { %2239 = vadd.xlane.f32.xlu0 %v9243_v2 }
 0x47a   : > { %v6912_v47 = vpop.f32.mrb[68].mxu1 }
 0x47b   : > { %v2118_v5 = vadd.f32 %v6912_v47, %v9093_v30  ;;  %v2112_v14 = vpop.f32.mrb[69].mxu1 }
 0x47c   : > { %v2113_v20 = vadd.f32 %v9093_v30, %v2112_v14  ;;  %2369 = vadd.xlane.f32.xlu1 %v2318_v50 }
 0x47d   : > { %v9253_v16 = vmax.f32 %v2118_v5, 0.0  ;;  %2367 = vadd.xlane.f32.xlu0 %v2317_v41 }
 0x47e   : > { %v9255_v43 = vmax.f32 %v2113_v20, 0.0 }
 0x47f   : > { %v2320_v12 = vmul.f32 %v9253_v16, %v9253_v16 }
 0x480   : > { %2245 = vadd.xlane.f32.xlu1 %v9253_v16  ;;  %v2319_v14 = vmul.f32 %v9255_v43, %v9255_v43 }
 0x481   : > { %2243 = vadd.xlane.f32.xlu0 %v9255_v43 }
 0x482   : > { %v6915_v33 = vpop.f32.mrb[70].mxu1 }
 0x483   : > { %v2128_v6 = vadd.f32 %v6915_v33, %v9093_v30  ;;  %v2122_v47 = vpop.f32.mrb[71].mxu1 }
 0x484   : > { %v2123_v50 = vadd.f32 %v9093_v30, %v2122_v47  ;;  %2373 = vadd.xlane.f32.xlu1 %v2320_v12 }
 0x485   : > { %v9265_v5 = vmax.f32 %v2128_v6, 0.0  ;;  %2371 = vadd.xlane.f32.xlu0 %v2319_v14 }
 0x486   : > { %v9267_v41 = vmax.f32 %v2123_v50, 0.0 }
 0x487   : > { %v2322_v33 = vmul.f32 %v9265_v5, %v9265_v5 }
 0x488   : > { %2249 = vadd.xlane.f32.xlu1 %v9265_v5  ;;  %v2321_v47 = vmul.f32 %v9267_v41, %v9267_v41 }
 0x489   : > { %2247 = vadd.xlane.f32.xlu0 %v9267_v41 }
 0x48a   : > { %v6918_v20 = vpop.f32.mrb[72].mxu1 }
 0x48b   : > { %v2138_v7 = vadd.f32 %v6918_v20, %v9093_v30  ;;  %v2132_v13 = vpop.f32.mrb[73].mxu1 }
 0x48c   : > { %v2133_v12 = vadd.f32 %v9093_v30, %v2132_v13  ;;  %2377 = vadd.xlane.f32.xlu1 %v2322_v33 }
 0x48d   : > { %v9277_v6 = vmax.f32 %v2138_v7, 0.0  ;;  %2375 = vadd.xlane.f32.xlu0 %v2321_v47 }
 0x48e   : > { %v9279_v14 = vmax.f32 %v2133_v12, 0.0 }
 0x48f   : > { %v2324_v20 = vmul.f32 %v9277_v6, %v9277_v6 }
 0x490   : > { %2253 = vadd.xlane.f32.xlu1 %v9277_v6  ;;  %v2323_v13 = vmul.f32 %v9279_v14, %v9279_v14 }
 0x491   : > { %2251 = vadd.xlane.f32.xlu0 %v9279_v14 }
 0x492   : > { %v6921_v50 = vpop.f32.mrb[74].mxu1 }
 0x493   : > { %v2148_v48 = vadd.f32 %v6921_v50, %v9093_v30  ;;  %v2142_v36 = vpop.f32.mrb[75].mxu1 }
 0x494   : > { %v2143_v7 = vadd.f32 %v9093_v30, %v2142_v36  ;;  %2381 = vadd.xlane.f32.xlu1 %v2324_v20 }
 0x495   : > { %v9289_v33 = vmax.f32 %v2148_v48, 0.0  ;;  %2379 = vadd.xlane.f32.xlu0 %v2323_v13 }
 0x496   : > { %v9291_v47 = vmax.f32 %v2143_v7, 0.0 }
 0x497   : > { %v2326_v50 = vmul.f32 %v9289_v33, %v9289_v33 }
 0x498   : > { %2257 = vadd.xlane.f32.xlu1 %v9289_v33  ;;  %v2325_v36 = vmul.f32 %v9291_v47, %v9291_v47 }
 0x499   : > { %2255 = vadd.xlane.f32.xlu0 %v9291_v47 }
 0x49a   : > { %v6924_v12 = vpop.f32.mrb[76].mxu1 }
 0x49b   : > { %v2158_v60 = vadd.f32 %v6924_v12, %v9093_v30  ;;  %v2152_v49 = vpop.f32.mrb[77].mxu1 }
 0x49c   : > { %v2153_v48 = vadd.f32 %v9093_v30, %v2152_v49  ;;  %2385 = vadd.xlane.f32.xlu1 %v2326_v50 }
 0x49d   : > { %v9301_v20 = vmax.f32 %v2158_v60, 0.0  ;;  %2383 = vadd.xlane.f32.xlu0 %v2325_v36 }
 0x49e   : > { %v9303_v13 = vmax.f32 %v2153_v48, 0.0 }
 0x49f   : > { %v2328_v12 = vmul.f32 %v9301_v20, %v9301_v20 }
 0x4a0   : > { %2261 = vadd.xlane.f32.xlu1 %v9301_v20  ;;  %v2327_v49 = vmul.f32 %v9303_v13, %v9303_v13 }
 0x4a1   : > { %2259 = vadd.xlane.f32.xlu0 %v9303_v13 }
 0x4a2   : > { %v6927_v7 = vpop.f32.mrb[78].mxu1 }
 0x4a3   : > { %v2168_v62 = vadd.f32 %v6927_v7, %v9093_v30  ;;  %v2162_v34 = vpop.f32.mrb[79].mxu1 }
 0x4a4   : > { %v2163_v60 = vadd.f32 %v9093_v30, %v2162_v34  ;;  %2389 = vadd.xlane.f32.xlu1 %v2328_v12 }
 0x4a5   : > { %v9313_v50 = vmax.f32 %v2168_v62, 0.0  ;;  %2387 = vadd.xlane.f32.xlu0 %v2327_v49 }
 0x4a6   : > { %v9315_v36 = vmax.f32 %v2163_v60, 0.0 }
 0x4a7   : > { %v2330_v48 = vmul.f32 %v9313_v50, %v9313_v50 }
 0x4a8   : > { %2265 = vadd.xlane.f32.xlu1 %v9313_v50  ;;  %v2329_v7 = vmul.f32 %v9315_v36, %v9315_v36 }
 0x4a9   : > { %2263 = vadd.xlane.f32.xlu0 %v9315_v36 }
 0x4ac   : > { %2393 = vadd.xlane.f32.xlu1 %v2330_v48 }
 0x4ad   : > { %2391 = vadd.xlane.f32.xlu0 %v2329_v7 }
 0x4bd   : > { %v2206_v51 = vpop.xlane.xlu1 %2205 }
 0x4be   : > { %v2268_v34 = vmul.f32 0.0078125, %v2206_v51  ;;  %v2204_v30 = vpop.xlane.xlu0 %2203 }
 0x4bf   : > { %v2267_v62 = vmul.f32 0.0078125, %v2204_v30 }
 0x4c0   : > { %v2460_v49 = vmul.f32 %v2268_v34, %v2268_v34 }
 0x4c1   : > { %v2334_v12 = vpop.xlane.xlu1 %2333  ;;  %v2459_v19 = vmul.f32 %v2267_v62, %v2267_v62  ;;  %v2427_v26 = vsub.f32 %v9111_v23, %v2267_v62  ;;  %v6054_v23 = vld [vmem:[%s11396_s3 + $0x100] sm:$0xff]  ;;  %v6055_v62 = vld [vmem:[%s11396_s3 + $0x108] sm:$0xff] }
 0x4c2   : > { %v2396_v60 = vmul.f32 0.0078125, %v2334_v12  ;;  %v2332_v28 = vpop.xlane.xlu0 %2331 }
 0x4c3   : > { %v2395_v57 = vmul.f32 0.0078125, %v2332_v28 }
 0x4c4   : > { %v2492_v11 = vsub.f32 %v2396_v60, %v2460_v49 }
 0x4c5   : > { %v2491_v38 = vsub.f32 %v2395_v57, %v2459_v19  ;;  %v2210_v4 = vpop.xlane.xlu1 %2209 }
 0x4c6   : > { %v2524_v8 = vadd.f32 1e-05, %v2492_v11  ;;  %v9323_v32 = vmul.f32 0.0078125, %v2210_v4  ;;  %v2208_v10 = vpop.xlane.xlu0 %2207 }
 0x4c7   : > { %v2523_v15 = vadd.f32 1e-05, %v2491_v38  ;;  %v9325_v48 = vmul.f32 0.0078125, %v2208_v10 }
 0x4c8   : > { %7749 = vrsqrt.f32 %v2524_v8  ;;  %v2462_v7 = vmul.f32 %v9323_v32, %v9323_v32 }
 0x4c9   : > { %7751 = vrsqrt.f32 %v2523_v15  ;;  %v2338_v51 = vpop.xlane.xlu1 %2337  ;;  %v2461_v28 = vmul.f32 %v9325_v48, %v9325_v48  ;;  %v2428_v15 = vsub.f32 %v9106_v59, %v2268_v34 }
 0x4ca   : > { %v2398_v30 = vmul.f32 0.0078125, %v2338_v51  ;;  %v2336_v12 = vpop.xlane.xlu0 %2335 }
 0x4cb   : > { %v2397_v57 = vmul.f32 0.0078125, %v2336_v12 }
 0x4cc   : > { %v2494_v19 = vsub.f32 %v2398_v30, %v2462_v7 }
 0x4cd   : > { %v2493_v11 = vsub.f32 %v2397_v57, %v2461_v28  ;;  %v2214_v4 = vpop.xlane.xlu1 %2213  ;;  %v9342_v28 = vld [vmem:[%s11398_s5 + $0x1] ss:$0 sm:$0xff] }
 0x4ce   : > { %v2526_v49 = vadd.f32 1e-05, %v2494_v19  ;;  %v9331_v60 = vmul.f32 0.0078125, %v2214_v4  ;;  %v2212_v10 = vpop.xlane.xlu0 %2211 }
 0x4cf   : > { %v2525_v38 = vadd.f32 1e-05, %v2493_v11  ;;  %v9333_v8 = vmul.f32 0.0078125, %v2212_v10  ;;  %v6056_v11 = vld [vmem:[%s11396_s3 + $0x110] sm:$0xff]  ;;  %v7472_v10 = vpack.c.bf16 %v6055_v62, %v6054_v23 }
 0x4d0   : > { %7753 = vrsqrt.f32 %v2526_v49  ;;  %v2464_v7 = vmul.f32 %v9331_v60, %v9331_v60 }
 0x4d1   : > { %7755 = vrsqrt.f32 %v2525_v38  ;;  %v2342_v51 = vpop.xlane.xlu1 %2341  ;;  %v2463_v59 = vmul.f32 %v9333_v8, %v9333_v8  ;;  %7473 = vmatprep.subr.bf16.mxu1 %v7472_v10 }
 0x4d2   : > { %v7750_v56 = vpop.eup %7749  ;;  %v2400_v30 = vmul.f32 0.0078125, %v2342_v51  ;;  %v2340_v12 = vpop.xlane.xlu0 %2339  ;;  %v9361_v51 = vld [vmem:[%s11399_s6 + $0x1] ss:$0 sm:$0xff]  ;;  %7475 = vmatpush3.bf16.msra.mxu1 %v7472_v10  ;;  %v6061_v10 = vld [vmem:[%s11396_s3 + $0x138] sm:$0xff] }
 0x4d3   : > { %v7752_v57 = vpop.eup %7751  ;;  %v2588_v19 = vmul.f32 %v7750_v56, %v2428_v15  ;;  %v2399_v34 = vmul.f32 0.0078125, %v2340_v12  ;;  %v6057_v56 = vld [vmem:[%s11396_s3 + $0x118] sm:$0xff] }
 0x4d4   : > { %v2496_v4 = vsub.f32 %v2400_v30, %v2464_v7  ;;  %v2587_v49 = vmul.f32 %v7752_v57, %v2427_v26  ;;  %v7476_v45 = vpack.c.bf16 %v6057_v56, %v6056_v11  ;;  %v6058_v7 = vld [vmem:[%s11396_s3 + $0x120] sm:$0xff]  ;;  %v6059_v26 = vld [vmem:[%s11396_s3 + $0x128] sm:$0xff]  ;;  %v2430_v56 = vsub.f32 %v9121_v31, %v9323_v32 }
 0x4d5   : > { %v2495_v38 = vsub.f32 %v2399_v34, %v2463_v59  ;;  %v2218_v15 = vpop.xlane.xlu1 %2217  ;;  %v2628_v12 = vmul.f32 %v9342_v28, %v2588_v19  ;;  %v7480_v11 = vpack.c.bf16 %v6059_v26, %v6058_v7 }
 0x4d6   : > { %v2528_v30 = vadd.f32 1e-05, %v2496_v4  ;;  %v9370_v57 = vmul.f32 0.0078125, %v2218_v15  ;;  %v2216_v59 = vpop.xlane.xlu0 %2215  ;;  %v2627_v34 = vmul.f32 %v9342_v28, %v2587_v49  ;;  %7477 = vmatprep.subr.bf16.mxu1 %v7476_v45  ;;  %v6060_v49 = vld [vmem:[%s11396_s3 + $0x130] sm:$0xff] }
 0x4d7   : > { %v2527_v23 = vadd.f32 1e-05, %v2495_v38  ;;  %v9373_v62 = vmul.f32 0.0078125, %v2216_v59  ;;  %v2668_v15 = vadd.f32 %v9361_v51, %v2628_v12  ;;  %7479 = vmatpush3.bf16.msra.mxu1 %v7476_v45  ;;  %v7484_v52 = vpack.c.bf16 %v6061_v10, %v6060_v49 }
 0x4d8   : > { %7757 = vrsqrt.f32 %v2528_v30  ;;  %v2667_v19 = vadd.f32 %v9361_v51, %v2627_v34  ;;  %v2429_v30 = vsub.f32 %v9123_v55, %v9325_v48  ;;  %v2466_v7 = vmul.f32 %v9370_v57, %v9370_v57  ;;  %7481 = vmatprep.subr.bf16.mxu1 %v7480_v11 }
 0x4d9   : > { %7759 = vrsqrt.f32 %v2527_v23  ;;  %v2346_v4 = vpop.xlane.xlu1 %2345  ;;  %v2465_v12 = vmul.f32 %v9373_v62, %v9373_v62 }
 0x4da   : > { %v7754_v38 = vpop.eup %7753  ;;  %v2402_v32 = vmul.f32 0.0078125, %v2346_v4  ;;  %v2344_v31 = vpop.xlane.xlu0 %2343  ;;  %6960 = vmatprep.mubr.f32.mxu0 %v2667_v19  ;;  %v6062_v19 = vld [vmem:[%s11396_s3 + $0x140] sm:$0xff]  ;;  %v6063_v4 = vld [vmem:[%s11396_s3 + $0x148] sm:$0xff] }
 0x4db   : > { %v7756_v26 = vpop.eup %7755  ;;  %v2401_v59 = vmul.f32 0.0078125, %v2344_v31  ;;  %6961 = vmatmul.mubr.f32.vlgmr.msra.gmra.mrb[48].mxu0 %v2668_v15  ;;  %v2590_v34 = vmul.f32 %v7754_v38, %v2430_v56  ;;  %7483 = vmatpush3.bf16.msra.mxu1 %v7480_v11 }
 0x4dc   : > { %v2498_v23 = vsub.f32 %v2402_v32, %v2466_v7  ;;  %v2589_v53 = vmul.f32 %v7756_v26, %v2429_v30  ;;  %7485 = vmatprep.subr.bf16.mxu1 %v7484_v52  ;;  %v7488_v30 = vpack.c.bf16 %v6063_v4, %v6062_v19  ;;  %v2432_v7 = vsub.f32 %v9133_v22, %v9331_v60 }
 0x4dd   : > { %v2497_v58 = vsub.f32 %v2401_v59, %v2465_v12  ;;  %v2222_v55 = vpop.xlane.xlu1 %2221  ;;  %v2630_v48 = vmul.f32 %v9342_v28, %v2590_v34  ;;  %v2431_v12 = vsub.f32 %v9135_v1, %v9333_v8 }
 0x4de   : > { %v2530_v31 = vadd.f32 1e-05, %v2498_v23  ;;  %v9398_v15 = vmul.f32 0.0078125, %v2222_v55  ;;  %v2220_v45 = vpop.xlane.xlu0 %2219  ;;  %v2629_v56 = vmul.f32 %v9342_v28, %v2589_v53  ;;  %v6064_v53 = vld [vmem:[%s11396_s3 + $0x150] sm:$0xff] }
 0x4df   : > { %v2529_v38 = vadd.f32 1e-05, %v2497_v58  ;;  %v9401_v49 = vmul.f32 0.0078125, %v2220_v45  ;;  %v2670_v26 = vadd.f32 %v9361_v51, %v2630_v48  ;;  %v6065_v58 = vld [vmem:[%s11396_s3 + $0x158] sm:$0xff]  ;;  %7487 = vmatpush3.bf16.msra.mxu1 %v7484_v52 }
 0x4e0   : > { %7761 = vrsqrt.f32 %v2530_v31  ;;  %v2669_v10 = vadd.f32 %v9361_v51, %v2629_v56  ;;  %v2468_v59 = vmul.f32 %v9398_v15, %v9398_v15  ;;  %7489 = vmatprep.subr.bf16.mxu1 %v7488_v30  ;;  %v7492_v31 = vpack.c.bf16 %v6065_v58, %v6064_v53  ;;  %v6066_v56 = vld [vmem:[%s11396_s3 + $0x160] sm:$0xff] }
 0x4e1   : > { %7763 = vrsqrt.f32 %v2529_v38  ;;  %v2350_v32 = vpop.xlane.xlu1 %2349  ;;  %v2467_v23 = vmul.f32 %v9401_v49, %v9401_v49  ;;  %v6067_v38 = vld [vmem:[%s11396_s3 + $0x168] sm:$0xff] }
 0x4e2   : > { %v7758_v11 = vpop.eup %7757  ;;  %v2404_v22 = vmul.f32 0.0078125, %v2350_v32  ;;  %v2348_v60 = vpop.xlane.xlu0 %2347  ;;  %6963 = vmatprep.mubr.f32.mxu0 %v2669_v10 }
 0x4e3   : > { %v7760_v34 = vpop.eup %7759  ;;  %v2403_v55 = vmul.f32 0.0078125, %v2348_v60  ;;  %6964 = vmatmul.mubr.f32.gmra.mrb[50].mxu0 %v2670_v26  ;;  %v2592_v48 = vmul.f32 %v7758_v11, %v2432_v7  ;;  %7491 = vmatpush3.bf16.msra.mxu1 %v7488_v30  ;;  %v7496_v11 = vpack.c.bf16 %v6067_v38, %v6066_v56 }
 0x4e4   : > { %v2500_v19 = vsub.f32 %v2404_v22, %v2468_v59  ;;  %v2591_v4 = vmul.f32 %v7760_v34, %v2431_v12  ;;  %7493 = vmatprep.subr.bf16.mxu1 %v7492_v31  ;;  %v2434_v12 = vsub.f32 %v9151_v25, %v9370_v57  ;;  %v2433_v34 = vsub.f32 %v9153_v37, %v9373_v62 }
 0x4e5   : > { %v2499_v45 = vsub.f32 %v2403_v55, %v2467_v23  ;;  %v2226_v1 = vpop.xlane.xlu1 %2225  ;;  %v2632_v8 = vmul.f32 %v9342_v28, %v2592_v48 }
 0x4e6   : > { %v2532_v10 = vadd.f32 1e-05, %v2500_v19  ;;  %v9426_v32 = vmul.f32 0.0078125, %v2226_v1  ;;  %v2224_v52 = vpop.xlane.xlu0 %2223  ;;  %v2631_v7 = vmul.f32 %v9342_v28, %v2591_v4 }
 0x4e7   : > { %v2531_v26 = vadd.f32 1e-05, %v2499_v45  ;;  %v9429_v53 = vmul.f32 0.0078125, %v2224_v52  ;;  %v2672_v22 = vadd.f32 %v9361_v51, %v2632_v8  ;;  %7495 = vmatpush3.bf16.msra.mxu1 %v7492_v31 }
 0x4e8   : > { %7765 = vrsqrt.f32 %v2532_v10  ;;  %v2671_v58 = vadd.f32 %v9361_v51, %v2631_v7  ;;  %v2470_v23 = vmul.f32 %v9426_v32, %v9426_v32  ;;  %7497 = vmatprep.subr.bf16.mxu1 %v7496_v11 }
 0x4e9   : > { %7767 = vrsqrt.f32 %v2531_v26  ;;  %v2354_v59 = vpop.xlane.xlu1 %2353  ;;  %v2469_v19 = vmul.f32 %v9429_v53, %v9429_v53  ;;  %v2436_v26 = vsub.f32 %v9163_v21, %v9398_v15 }
 0x4ea   : > { %v7762_v60 = vpop.eup %7761  ;;  %v2406_v30 = vmul.f32 0.0078125, %v2354_v59  ;;  %v2352_v55 = vpop.xlane.xlu0 %2351  ;;  %6966 = vmatprep.mubr.f32.mxu0 %v2671_v58 }
 0x4eb   : > { %v7764_v48 = vpop.eup %7763  ;;  %v2405_v4 = vmul.f32 0.0078125, %v2352_v55  ;;  %6967 = vmatmul.mubr.f32.gmra.mrb[52].mxu0 %v2672_v22  ;;  %v2594_v25 = vmul.f32 %v7762_v60, %v2434_v12  ;;  %7499 = vmatpush3.bf16.msra.mxu1 %v7496_v11  ;;  %v2435_v22 = vsub.f32 %v9171_v9, %v9401_v49 }
 0x4ec   : > { %v2502_v57 = vsub.f32 %v2406_v30, %v2470_v23  ;;  %v2593_v45 = vmul.f32 %v7764_v48, %v2433_v34 }
 0x4ed   : > { %v2501_v1 = vsub.f32 %v2405_v4, %v2469_v19  ;;  %v2230_v8 = vpop.xlane.xlu1 %2229  ;;  %v2634_v37 = vmul.f32 %v9342_v28, %v2594_v25 }
 0x4ee   : > { %v2534_v62 = vadd.f32 1e-05, %v2502_v57  ;;  %v9442_v56 = vmul.f32 0.0078125, %v2230_v8  ;;  %v2228_v38 = vpop.xlane.xlu0 %2227  ;;  %v2633_v10 = vmul.f32 %v9342_v28, %v2593_v45 }
 0x4ef   : > { %v2533_v52 = vadd.f32 1e-05, %v2501_v1  ;;  %v9445_v7 = vmul.f32 0.0078125, %v2228_v38  ;;  %v2674_v12 = vadd.f32 %v9361_v51, %v2634_v37 }
 0x4f0   : > { %7769 = vrsqrt.f32 %v2534_v62  ;;  %v2673_v31 = vadd.f32 %v9361_v51, %v2633_v10  ;;  %v2472_v60 = vmul.f32 %v9442_v56, %v9442_v56  ;;  %v2438_v62 = vsub.f32 %v9187_v0, %v9426_v32 }
 0x4f1   : > { %7771 = vrsqrt.f32 %v2533_v52  ;;  %v2358_v58 = vpop.xlane.xlu1 %2357  ;;  %v2471_v30 = vmul.f32 %v9445_v7, %v9445_v7 }
 0x4f2   : > { %v7766_v59 = vpop.eup %7765  ;;  %v2408_v34 = vmul.f32 0.0078125, %v2358_v58  ;;  %v2356_v23 = vpop.xlane.xlu0 %2355  ;;  %6969 = vmatprep.mubr.f32.mxu0 %v2673_v31  ;;  %v2437_v31 = vsub.f32 %v9195_v40, %v9429_v53 }
 0x4f3   : > { %v7768_v11 = vpop.eup %7767  ;;  %v2407_v55 = vmul.f32 0.0078125, %v2356_v23  ;;  %6970 = vmatmul.mubr.f32.gmra.mrb[54].mxu0 %v2674_v12  ;;  %v2596_v21 = vmul.f32 %v7766_v59, %v2436_v26 }
 0x4f4   : > { %v2504_v15 = vsub.f32 %v2408_v34, %v2472_v60  ;;  %v2595_v48 = vmul.f32 %v7768_v11, %v2435_v22 }
 0x4f5   : > { %v2503_v19 = vsub.f32 %v2407_v55, %v2471_v30  ;;  %v2234_v4 = vpop.xlane.xlu1 %2233  ;;  %v2636_v25 = vmul.f32 %v9342_v28, %v2596_v21 }
 0x4f6   : > { %v2536_v9 = vadd.f32 1e-05, %v2504_v15  ;;  %v9458_v49 = vmul.f32 0.0078125, %v2234_v4  ;;  %v2232_v57 = vpop.xlane.xlu0 %2231  ;;  %v2635_v45 = vmul.f32 %v9342_v28, %v2595_v48  ;;  %v2440_v4 = vsub.f32 %v9205_v42, %v9442_v56 }
 0x4f7   : > { %v2535_v1 = vadd.f32 1e-05, %v2503_v19  ;;  %v9461_v8 = vmul.f32 0.0078125, %v2232_v57  ;;  %v2676_v10 = vadd.f32 %v9361_v51, %v2636_v25 }
 0x4f8   : > { %7773 = vrsqrt.f32 %v2536_v9  ;;  %v2675_v37 = vadd.f32 %v9361_v51, %v2635_v45  ;;  %v2474_v26 = vmul.f32 %v9458_v49, %v9458_v49  ;;  %v2439_v45 = vsub.f32 %v9207_v3, %v9445_v7 }
 0x4f9   : > { %7775 = vrsqrt.f32 %v2535_v1  ;;  %v2362_v38 = vpop.xlane.xlu1 %2361  ;;  %v2473_v22 = vmul.f32 %v9461_v8, %v9461_v8 }
 0x4fa   : > { %v7770_v52 = vpop.eup %7769  ;;  %v2410_v58 = vmul.f32 0.0078125, %v2362_v38  ;;  %v2360_v12 = vpop.xlane.xlu0 %2359  ;;  %6972 = vmatprep.mubr.f32.mxu0 %v2675_v37 }
 0x4fb   : > { %v7772_v59 = vpop.eup %7771  ;;  %v2409_v60 = vmul.f32 0.0078125, %v2360_v12  ;;  %6973 = vmatmul.mubr.f32.gmra.mrb[56].mxu0 %v2676_v10  ;;  %v2598_v0 = vmul.f32 %v7770_v52, %v2438_v62 }
 0x4fc   : > { %v2506_v32 = vsub.f32 %v2410_v58, %v2474_v26  ;;  %v2597_v34 = vmul.f32 %v7772_v59, %v2437_v31 }
 0x4fd   : > { %v2505_v23 = vsub.f32 %v2409_v60, %v2473_v22  ;;  %v2238_v11 = vpop.xlane.xlu1 %2237  ;;  %v2638_v30 = vmul.f32 %v9342_v28, %v2598_v0 }
 0x4fe   : > { %v2538_v40 = vadd.f32 1e-05, %v2506_v32  ;;  %v9474_v53 = vmul.f32 0.0078125, %v2238_v11  ;;  %v2236_v55 = vpop.xlane.xlu0 %2235  ;;  %v2637_v21 = vmul.f32 %v9342_v28, %v2597_v34  ;;  %v2442_v34 = vsub.f32 %v9217_v17, %v9458_v49 }
 0x4ff   : > { %v2537_v15 = vadd.f32 1e-05, %v2505_v23  ;;  %v9477_v48 = vmul.f32 0.0078125, %v2236_v55  ;;  %v2678_v9 = vadd.f32 %v9361_v51, %v2638_v30 }
 0x500   : > { %7777 = vrsqrt.f32 %v2538_v40  ;;  %v2677_v19 = vadd.f32 %v9361_v51, %v2637_v21  ;;  %v2476_v1 = vmul.f32 %v9474_v53, %v9474_v53  ;;  %v2441_v40 = vsub.f32 %v9219_v54, %v9461_v8 }
 0x501   : > { %7779 = vrsqrt.f32 %v2537_v15  ;;  %v2366_v25 = vpop.xlane.xlu1 %2365  ;;  %v2475_v10 = vmul.f32 %v9477_v48, %v9477_v48 }
 0x502   : > { %v7774_v57 = vpop.eup %7773  ;;  %v2412_v37 = vmul.f32 0.0078125, %v2366_v25  ;;  %v2364_v62 = vpop.xlane.xlu0 %2363  ;;  %6975 = vmatprep.mubr.f32.mxu0 %v2677_v19 }
 0x503   : > { %v7776_v38 = vpop.eup %7775  ;;  %v2411_v52 = vmul.f32 0.0078125, %v2364_v62  ;;  %6976 = vmatmul.mubr.f32.gmra.mrb[58].mxu0 %v2678_v9  ;;  %v2600_v42 = vmul.f32 %v7774_v57, %v2440_v4 }
 0x504   : > { %v2508_v56 = vsub.f32 %v2412_v37, %v2476_v1  ;;  %v2599_v31 = vmul.f32 %v7776_v38, %v2439_v45 }
 0x505   : > { %v2507_v26 = vsub.f32 %v2411_v52, %v2475_v10  ;;  %v2242_v58 = vpop.xlane.xlu1 %2241  ;;  %v2640_v12 = vmul.f32 %v9342_v28, %v2600_v42  ;;  %v2444_v42 = vsub.f32 %v9229_v24, %v9474_v53 }
 0x506   : > { %v2540_v3 = vadd.f32 1e-05, %v2508_v56  ;;  %v9490_v7 = vmul.f32 0.0078125, %v2242_v58  ;;  %v2240_v59 = vpop.xlane.xlu0 %2239  ;;  %v2639_v22 = vmul.f32 %v9342_v28, %v2599_v31  ;;  %v2443_v58 = vsub.f32 %v9231_v27, %v9477_v48 }
 0x507   : > { %v2539_v60 = vadd.f32 1e-05, %v2507_v26  ;;  %v9493_v0 = vmul.f32 0.0078125, %v2240_v59  ;;  %v2680_v11 = vadd.f32 %v9361_v51, %v2640_v12 }
 0x508   : > { %7781 = vrsqrt.f32 %v2540_v3  ;;  %v2679_v32 = vadd.f32 %v9361_v51, %v2639_v22  ;;  %v2478_v55 = vmul.f32 %v9490_v7, %v9490_v7 }
 0x509   : > { %7783 = vrsqrt.f32 %v2539_v60  ;;  %v2370_v23 = vpop.xlane.xlu1 %2369  ;;  %v2477_v4 = vmul.f32 %v9493_v0, %v9493_v0 }
 0x50a   : > { %v7778_v30 = vpop.eup %7777  ;;  %v2414_v21 = vmul.f32 0.0078125, %v2370_v23  ;;  %v2368_v15 = vpop.xlane.xlu0 %2367  ;;  %6978 = vmatprep.mubr.f32.mxu0 %v2679_v32 }
 0x50b   : > { %v7780_v19 = vpop.eup %7779  ;;  %v2413_v25 = vmul.f32 0.0078125, %v2368_v15  ;;  %6979 = vmatmul.mubr.f32.gmra.mrb[60].mxu0 %v2680_v11  ;;  %v2602_v17 = vmul.f32 %v7778_v30, %v2442_v34 }
 0x50c   : > { %v2510_v49 = vsub.f32 %v2414_v21, %v2478_v55  ;;  %v2601_v9 = vmul.f32 %v7780_v19, %v2441_v40 }
 0x50d   : > { %v2509_v57 = vsub.f32 %v2413_v25, %v2477_v4  ;;  %v2246_v45 = vpop.xlane.xlu1 %2245  ;;  %v2642_v1 = vmul.f32 %v9342_v28, %v2602_v17  ;;  %v2446_v4 = vsub.f32 %v9241_v44, %v9490_v7 }
 0x50e   : > { %v2542_v54 = vadd.f32 1e-05, %v2510_v49  ;;  %v9506_v8 = vmul.f32 0.0078125, %v2246_v45  ;;  %v2244_v37 = vpop.xlane.xlu0 %2243  ;;  %v2641_v62 = vmul.f32 %v9342_v28, %v2601_v9  ;;  %v2445_v9 = vsub.f32 %v9243_v2, %v9493_v0 }
 0x50f   : > { %v2541_v38 = vadd.f32 1e-05, %v2509_v57  ;;  %v9509_v10 = vmul.f32 0.0078125, %v2244_v37  ;;  %v2682_v31 = vadd.f32 %v9361_v51, %v2642_v1 }
 0x510   : > { %7785 = vrsqrt.f32 %v2542_v54  ;;  %v2681_v52 = vadd.f32 %v9361_v51, %v2641_v62  ;;  %v2480_v12 = vmul.f32 %v9506_v8, %v9506_v8 }
 0x511   : > { %7787 = vrsqrt.f32 %v2541_v38  ;;  %v2374_v56 = vpop.xlane.xlu1 %2373  ;;  %v2479_v60 = vmul.f32 %v9509_v10, %v9509_v10 }
 0x512   : > { %v7782_v26 = vpop.eup %7781  ;;  %v2416_v3 = vmul.f32 0.0078125, %v2374_v56  ;;  %v2372_v59 = vpop.xlane.xlu0 %2371  ;;  %6981 = vmatprep.mubr.f32.mxu0 %v2681_v52 }
 0x513   : > { %v7784_v22 = vpop.eup %7783  ;;  %v2415_v32 = vmul.f32 0.0078125, %v2372_v59  ;;  %6982 = vmatmul.mubr.f32.gmra.mrb[62].mxu0 %v2682_v31  ;;  %v2604_v24 = vmul.f32 %v7782_v26, %v2444_v42  ;;  %v2448_v59 = vsub.f32 %v9253_v16, %v9506_v8 }
 0x514   : > { %v2512_v53 = vsub.f32 %v2416_v3, %v2480_v12  ;;  %v2603_v34 = vmul.f32 %v7784_v22, %v2443_v58 }
 0x515   : > { %v2511_v23 = vsub.f32 %v2415_v32, %v2479_v60  ;;  %v2250_v11 = vpop.xlane.xlu1 %2249  ;;  %v2644_v30 = vmul.f32 %v9342_v28, %v2604_v24  ;;  %v2447_v24 = vsub.f32 %v9255_v43, %v9509_v10 }
 0x516   : > { %v2544_v27 = vadd.f32 1e-05, %v2512_v53  ;;  %v9522_v48 = vmul.f32 0.0078125, %v2250_v11  ;;  %v2248_v40 = vpop.xlane.xlu0 %2247  ;;  %v2643_v55 = vmul.f32 %v9342_v28, %v2603_v34 }
 0x517   : > { %v2543_v21 = vadd.f32 1e-05, %v2511_v23  ;;  %v9525_v15 = vmul.f32 0.0078125, %v2248_v40  ;;  %v2684_v17 = vadd.f32 %v9361_v51, %v2644_v30 }
 0x518   : > { %7789 = vrsqrt.f32 %v2544_v27  ;;  %v2683_v19 = vadd.f32 %v9361_v51, %v2643_v55  ;;  %v2482_v57 = vmul.f32 %v9522_v48, %v9522_v48 }
 0x519   : > { %7791 = vrsqrt.f32 %v2543_v21  ;;  %v2378_v25 = vpop.xlane.xlu1 %2377  ;;  %v2481_v37 = vmul.f32 %v9525_v15, %v9525_v15 }
 0x51a   : > { %v7786_v49 = vpop.eup %7785  ;;  %v2418_v45 = vmul.f32 0.0078125, %v2378_v25  ;;  %v2376_v1 = vpop.xlane.xlu0 %2375  ;;  %6984 = vmatprep.mubr.f32.mxu0 %v2683_v19 }
 0x51b   : > { %v7788_v54 = vpop.eup %7787  ;;  %v2417_v62 = vmul.f32 0.0078125, %v2376_v1  ;;  %6985 = vmatmul.mubr.f32.gmra.mrb[64].mxu0 %v2684_v17  ;;  %v2606_v44 = vmul.f32 %v7786_v49, %v2446_v4 }
 0x51c   : > { %v2514_v7 = vsub.f32 %v2418_v45, %v2482_v57  ;;  %v2605_v38 = vmul.f32 %v7788_v54, %v2445_v9  ;;  %v2450_v57 = vsub.f32 %v9265_v5, %v9522_v48 }
 0x51d   : > { %v2513_v52 = vsub.f32 %v2417_v62, %v2481_v37  ;;  %v2254_v42 = vpop.xlane.xlu1 %2253  ;;  %v2646_v56 = vmul.f32 %v9342_v28, %v2606_v44  ;;  %v2449_v37 = vsub.f32 %v9267_v41, %v9525_v15 }
 0x51e   : > { %v2546_v2 = vadd.f32 1e-05, %v2514_v7  ;;  %v9538_v0 = vmul.f32 0.0078125, %v2254_v42  ;;  %v2252_v31 = vpop.xlane.xlu0 %2251  ;;  %v2645_v26 = vmul.f32 %v9342_v28, %v2605_v38 }
 0x51f   : > { %v2545_v58 = vadd.f32 1e-05, %v2513_v52  ;;  %v9541_v12 = vmul.f32 0.0078125, %v2252_v31  ;;  %v2686_v60 = vadd.f32 %v9361_v51, %v2646_v56 }
 0x520   : > { %7793 = vrsqrt.f32 %v2546_v2  ;;  %v2685_v3 = vadd.f32 %v9361_v51, %v2645_v26  ;;  %v2484_v53 = vmul.f32 %v9538_v0, %v9538_v0 }
 0x521   : > { %7795 = vrsqrt.f32 %v2545_v58  ;;  %v2382_v22 = vpop.xlane.xlu1 %2381  ;;  %v2483_v30 = vmul.f32 %v9541_v12, %v9541_v12 }
 0x522   : > { %v7790_v32 = vpop.eup %7789  ;;  %v2420_v34 = vmul.f32 0.0078125, %v2382_v22  ;;  %v2380_v23 = vpop.xlane.xlu0 %2379  ;;  %6987 = vmatprep.mubr.f32.mxu0 %v2685_v3 }
 0x523   : > { %v7792_v11 = vpop.eup %7791  ;;  %v2419_v27 = vmul.f32 0.0078125, %v2380_v23  ;;  %6988 = vmatmul.mubr.f32.gmra.mrb[66].mxu0 %v2686_v60  ;;  %v2608_v16 = vmul.f32 %v7790_v32, %v2448_v59  ;;  %v6068_v60 = vld [vmem:[%s11396_s3 + $0x170] sm:$0xff]  ;;  %v6069_v32 = vld [vmem:[%s11396_s3 + $0x178] sm:$0xff] }
 0x524   : > { %v2516_v8 = vsub.f32 %v2420_v34, %v2484_v53  ;;  %v2607_v40 = vmul.f32 %v7792_v11, %v2447_v24  ;;  %v2452_v53 = vsub.f32 %v9277_v6, %v9538_v0  ;;  %v7500_v11 = vpack.c.bf16 %v6069_v32, %v6068_v60 }
 0x525   : > { %v2515_v55 = vsub.f32 %v2419_v27, %v2483_v30  ;;  %v2258_v21 = vpop.xlane.xlu1 %2257  ;;  %v2648_v19 = vmul.f32 %v9342_v28, %v2608_v16  ;;  %v2451_v27 = vsub.f32 %v9279_v14, %v9541_v12 }
 0x526   : > { %v2548_v43 = vadd.f32 1e-05, %v2516_v8  ;;  %v9554_v10 = vmul.f32 0.0078125, %v2258_v21  ;;  %v2256_v4 = vpop.xlane.xlu0 %2255  ;;  %v2647_v25 = vmul.f32 %v9342_v28, %v2607_v40  ;;  %7501 = vmatprep.subr.bf16.mxu1 %v7500_v11 }
 0x527   : > { %v2547_v17 = vadd.f32 1e-05, %v2515_v55  ;;  %v9557_v49 = vmul.f32 0.0078125, %v2256_v4  ;;  %v2688_v1 = vadd.f32 %v9361_v51, %v2648_v19  ;;  %7503 = vmatpush3.bf16.msra.mxu1 %v7500_v11 }
 0x528   : > { %7797 = vrsqrt.f32 %v2548_v43  ;;  %v2687_v9 = vadd.f32 %v9361_v51, %v2647_v25  ;;  %v2486_v62 = vmul.f32 %v9554_v10, %v9554_v10 }
 0x529   : > { %7799 = vrsqrt.f32 %v2547_v17  ;;  %v2386_v45 = vpop.xlane.xlu1 %2385  ;;  %v2485_v52 = vmul.f32 %v9557_v49, %v9557_v49 }
 0x52a   : > { %v7794_v54 = vpop.eup %7793  ;;  %v2422_v44 = vmul.f32 0.0078125, %v2386_v45  ;;  %v2384_v7 = vpop.xlane.xlu0 %2383  ;;  %6990 = vmatprep.mubr.f32.mxu0 %v2687_v9 }
 0x52b   : > { %v7796_v38 = vpop.eup %7795  ;;  %v2421_v42 = vmul.f32 0.0078125, %v2384_v7  ;;  %6991 = vmatmul.mubr.f32.gmra.mrb[68].mxu0 %v2688_v1  ;;  %v2610_v5 = vmul.f32 %v7794_v54, %v2450_v57 }
 0x52c   : > { %v2518_v48 = vsub.f32 %v2422_v44, %v2486_v62  ;;  %v2609_v56 = vmul.f32 %v7796_v38, %v2449_v37  ;;  %v2454_v37 = vsub.f32 %v9289_v33, %v9554_v10  ;;  %v2453_v38 = vsub.f32 %v9291_v47, %v9557_v49 }
 0x52d   : > { %v2517_v2 = vsub.f32 %v2421_v42, %v2485_v52  ;;  %v2262_v31 = vpop.xlane.xlu1 %2261  ;;  %v2650_v26 = vmul.f32 %v9342_v28, %v2610_v5 }
 0x52e   : > { %v2550_v41 = vadd.f32 1e-05, %v2518_v48  ;;  %v9570_v15 = vmul.f32 0.0078125, %v2262_v31  ;;  %v2260_v58 = vpop.xlane.xlu0 %2259  ;;  %v2649_v3 = vmul.f32 %v9342_v28, %v2609_v56 }
 0x52f   : > { %v2549_v59 = vadd.f32 1e-05, %v2517_v2  ;;  %v9573_v22 = vmul.f32 0.0078125, %v2260_v58  ;;  %v2690_v23 = vadd.f32 %v9361_v51, %v2650_v26 }
 0x530   : > { %7801 = vrsqrt.f32 %v2550_v41  ;;  %v2689_v24 = vadd.f32 %v9361_v51, %v2649_v3  ;;  %v2488_v16 = vmul.f32 %v9570_v15, %v9570_v15  ;;  %v2456_v49 = vsub.f32 %v9301_v20, %v9570_v15 }
 0x531   : > { %7803 = vrsqrt.f32 %v2549_v59  ;;  %v2390_v34 = vpop.xlane.xlu1 %2389  ;;  %v2487_v21 = vmul.f32 %v9573_v22, %v9573_v22 }
 0x532   : > { %v7798_v30 = vpop.eup %7797  ;;  %v2424_v8 = vmul.f32 0.0078125, %v2390_v34  ;;  %v2388_v40 = vpop.xlane.xlu0 %2387  ;;  %6993 = vmatprep.mubr.f32.mxu0 %v2689_v24  ;;  %v2455_v24 = vsub.f32 %v9303_v13, %v9573_v22 }
 0x533   : > { %v7800_v55 = vpop.eup %7799  ;;  %v2423_v6 = vmul.f32 0.0078125, %v2388_v40  ;;  %6994 = vmatmul.mubr.f32.gmra.mrb[70].mxu0 %v2690_v23  ;;  %v2612_v0 = vmul.f32 %v7798_v30, %v2452_v53 }
 0x534   : > { %v2520_v19 = vsub.f32 %v2424_v8, %v2488_v16  ;;  %v2611_v43 = vmul.f32 %v7800_v55, %v2451_v27 }
 0x535   : > { %v2519_v4 = vsub.f32 %v2423_v6, %v2487_v21  ;;  %v2266_v25 = vpop.xlane.xlu1 %2265  ;;  %v2652_v14 = vmul.f32 %v9342_v28, %v2612_v0 }
 0x536   : > { %v2552_v12 = vadd.f32 1e-05, %v2520_v19  ;;  %v2298_v17 = vmul.f32 0.0078125, %v2266_v25  ;;  %v2264_v9 = vpop.xlane.xlu0 %2263  ;;  %v2651_v57 = vmul.f32 %v9342_v28, %v2611_v43 }
 0x537   : > { %v2551_v45 = vadd.f32 1e-05, %v2519_v4  ;;  %v2297_v1 = vmul.f32 0.0078125, %v2264_v9  ;;  %v2692_v44 = vadd.f32 %v9361_v51, %v2652_v14 }
 0x538   : > { %7805 = vrsqrt.f32 %v2552_v12  ;;  %v2691_v54 = vadd.f32 %v9361_v51, %v2651_v57  ;;  %v2490_v52 = vmul.f32 %v2298_v17, %v2298_v17  ;;  %v2458_v20 = vsub.f32 %v9313_v50, %v2298_v17  ;;  %v9620_v50 = vld [vmem:[%s11401_s8 + $0x1] ss:$0 sm:$0xff] }
 0x539   : > { %7807 = vrsqrt.f32 %v2551_v45  ;;  %v2394_v62 = vpop.xlane.xlu1 %2393  ;;  %v2489_v56 = vmul.f32 %v2297_v1, %v2297_v1  ;;  %v2457_v8 = vsub.f32 %v9315_v36, %v2297_v1 }
 0x53a   : > { %v7802_v7 = vpop.eup %7801  ;;  %v2426_v42 = vmul.f32 0.0078125, %v2394_v62  ;;  %v2392_v5 = vpop.xlane.xlu0 %2391  ;;  %6996 = vmatprep.mubr.f32.mxu0 %v2691_v54 }
 0x53b   : > { %v7804_v48 = vpop.eup %7803  ;;  %v2425_v2 = vmul.f32 0.0078125, %v2392_v5  ;;  %6997 = vmatmul.mubr.f32.gmra.mrb[72].mxu0 %v2692_v44  ;;  %v2614_v31 = vmul.f32 %v7802_v7, %v2454_v37 }
 0x53c   : > { %v2522_v26 = vsub.f32 %v2426_v42, %v2490_v52  ;;  %v2613_v41 = vmul.f32 %v7804_v48, %v2453_v38  ;;  %v11583_v38 = vld [vmem:[#allocation3_spill] sm:$0xff]  ;;  %v11585_v48 = vld [vmem:[#allocation5_spill] sm:$0xff] }
 0x53d   : > { %v2521_v33 = vsub.f32 %v2425_v2, %v2489_v56  ;;  %v2654_v10 = vmul.f32 %v9342_v28, %v2614_v31  ;;  %v11587_v2 = vld [vmem:[#allocation4_spill] sm:$0xff] }
 0x53e   : > { %v2554_v58 = vadd.f32 1e-05, %v2522_v26  ;;  %v2653_v3 = vmul.f32 %v9342_v28, %v2613_v41 }
 0x53f   : > { %v2553_v59 = vadd.f32 1e-05, %v2521_v33  ;;  %v2694_v60 = vadd.f32 %v9361_v51, %v2654_v10  ;;  %v11589_v10 = vld [vmem:[#allocation7_spill] sm:$0xff] }
 0x540   : > { %7809 = vrsqrt.f32 %v2554_v58  ;;  %v2693_v47 = vadd.f32 %v9361_v51, %v2653_v3  ;;  %v11591_v3 = vld [vmem:[#allocation6_spill] sm:$0xff] }
 0x541   : > { %7811 = vrsqrt.f32 %v2553_v59 }
 0x542   : > { %v7806_v32 = vpop.eup %7805  ;;  %6999 = vmatprep.mubr.f32.mxu0 %v2693_v47 }
 0x543   : > { %v7808_v53 = vpop.eup %7807  ;;  %7000 = vmatmul.mubr.f32.gmra.mrb[74].mxu0 %v2694_v60  ;;  %v2616_v34 = vmul.f32 %v7806_v32, %v2456_v49 }
 0x544   : > { %v2615_v23 = vmul.f32 %v7808_v53, %v2455_v24  ;;  %v11593_v24 = vld [vmem:[#allocation9_spill] sm:$0xff] }
 0x545   : > { %v2656_v11 = vmul.f32 %v9342_v28, %v2616_v34  ;;  %v11595_v34 = vld [vmem:[#allocation8_spill] sm:$0xff] }
 0x546   : > { %v2655_v30 = vmul.f32 %v9342_v28, %v2615_v23 }
 0x547   : > { %v2696_v15 = vadd.f32 %v9361_v51, %v2656_v11 }
 0x548   : > { %v2695_v27 = vadd.f32 %v9361_v51, %v2655_v30 }
 0x54a   : > { %v7810_v16 = vpop.eup %7809  ;;  %7002 = vmatprep.mubr.f32.mxu0 %v2695_v27 }
 0x54b   : > { %v7812_v13 = vpop.eup %7811  ;;  %7003 = vmatmul.mubr.f32.gmra.mrb[76].mxu0 %v2696_v15  ;;  %v2618_v22 = vmul.f32 %v7810_v16, %v2458_v20  ;;  %v11597_v15 = vld [vmem:[#allocation11_spill] sm:$0xff] }
 0x54c   : > { %v2617_v40 = vmul.f32 %v7812_v13, %v2457_v8  ;;  %v11599_v8 = vld [vmem:[#allocation10_spill] sm:$0xff] }
 0x54d   : > { %v2658_v55 = vmul.f32 %v9342_v28, %v2618_v22 }
 0x54e   : > { %v2657_v21 = vmul.f32 %v9342_v28, %v2617_v40 }
 0x54f   : > { %v2698_v0 = vadd.f32 %v9361_v51, %v2658_v55 }
 0x550   : > { %v2697_v6 = vadd.f32 %v9361_v51, %v2657_v21 }
 0x552   : > { %7005 = vmatprep.mubr.f32.mxu0 %v2697_v6  ;;  %v11601_v6 = vld [vmem:[#allocation12_spill] sm:$0xff] }
 0x553   : > { %7006 = vmatmul.mubr.f32.gmra.mrb[78].mxu0 %v2698_v0 }
 0x5ae   : > { %v6962_v36 = vpop.f32.mrb[48].mxu0 }
 0x5af   : > { %v2796_v19 = vadd.f32 %v6962_v36, %v9620_v50  ;;  %v2790_v43 = vpop.f32.mrb[49].mxu0  ;;  %v11603_v36 = vld [vmem:[#allocation13_spill] sm:$0xff] }
 0x5b0   : > { %v2791_v4 = vadd.f32 %v9620_v50, %v2790_v43 }
 0x5b1   : > { %v9628_v28 = vadd.f32 %v2796_v19, %v8924_v61 }
 0x5b2   : > { %v9625_v25 = vadd.f32 %v2791_v4, %v8921_v29 }
 0x5b4   : > { %7040 = vmatprep.mubr.f32.mxu1 %v9625_v25 }
 0x5b5   : > { %7041 = vmatmul.mubr.f32.vlgmr.msra.gmra.mrb[80].mxu1 %v9628_v28 }
 0x5b6   : > { %v6965_v51 = vpop.f32.mrb[50].mxu0 }
 0x5b7   : > { %v2806_v14 = vadd.f32 %v6965_v51, %v9620_v50  ;;  %v2800_v12 = vpop.f32.mrb[51].mxu0 }
 0x5b8   : > { %v2801_v17 = vadd.f32 %v9620_v50, %v2800_v12  ;;  %v11605_v12 = vld [vmem:[#allocation14_spill] sm:$0xff] }
 0x5b9   : > { %v9638_v57 = vadd.f32 %v2806_v14, %v8934_v18 }
 0x5ba   : > { %v9635_v9 = vadd.f32 %v2801_v17, %v8931_v35 }
 0x5bc   : > { %7043 = vmatprep.mubr.f32.mxu1 %v9635_v9 }
 0x5bd   : > { %7044 = vmatmul.mubr.f32.gmra.mrb[82].mxu1 %v9638_v57 }
 0x5be   : > { %v6968_v29 = vpop.f32.mrb[52].mxu0 }
 0x5bf   : > { %v2816_v61 = vadd.f32 %v6968_v29, %v9620_v50  ;;  %v2810_v45 = vpop.f32.mrb[53].mxu0  ;;  %v11607_v29 = vld [vmem:[#allocation15_spill] sm:$0xff] }
 0x5c0   : > { %v2811_v1 = vadd.f32 %v9620_v50, %v2810_v45 }
 0x5c1   : > { %v9648_v37 = vadd.f32 %v2816_v61, %v8944_v39 }
 0x5c2   : > { %v9645_v54 = vadd.f32 %v2811_v1, %v8941_v46 }
 0x5c4   : > { %7046 = vmatprep.mubr.f32.mxu1 %v9645_v54 }
 0x5c5   : > { %7047 = vmatmul.mubr.f32.gmra.mrb[84].mxu1 %v9648_v37 }
 0x5c6   : > { %v6971_v35 = vpop.f32.mrb[54].mxu0 }
 0x5c7   : > { %v2826_v18 = vadd.f32 %v6971_v35, %v9620_v50  ;;  %v2820_v62 = vpop.f32.mrb[55].mxu0 }
 0x5c8   : > { %v2821_v44 = vadd.f32 %v9620_v50, %v2820_v62  ;;  %v11609_v62 = vld [vmem:[#allocation16_spill] sm:$0xff] }
 0x5c9   : > { %v9658_v52 = vadd.f32 %v2826_v18, %v11583_v38  ;;  %v11611_v38 = vld [vmem:[#allocation17_spill] sm:$0xff] }
 0x5ca   : > { %v9655_v7 = vadd.f32 %v2821_v44, %v8951_v63 }
 0x5cb   : > { %11584 = vst [vmem:[#allocation3_spill] sm:$0xff] %v9658_v52 }
 0x5cc   : > { %7049 = vmatprep.mubr.f32.mxu1 %v9655_v7 }
 0x5cd   : > { %7050 = vmatmul.mubr.f32.gmra.mrb[86].mxu1 %v9658_v52 }
 0x5ce   : > { %v6974_v46 = vpop.f32.mrb[56].mxu0 }
 0x5cf   : > { %v2836_v39 = vadd.f32 %v6974_v46, %v9620_v50  ;;  %v2830_v42 = vpop.f32.mrb[57].mxu0 }
 0x5d0   : > { %v2831_v5 = vadd.f32 %v9620_v50, %v2830_v42 }
 0x5d1   : > { %v9668_v31 = vadd.f32 %v2836_v39, %v11587_v2  ;;  %v11613_v2 = vld [vmem:[#allocation18_spill] sm:$0xff] }
 0x5d2   : > { %v9665_v56 = vadd.f32 %v2831_v5, %v11585_v48 }
 0x5d3   : > { %11588 = vst [vmem:[#allocation4_spill] sm:$0xff] %v9668_v31 }
 0x5d4   : > { %11586 = vst [vmem:[#allocation5_spill] sm:$0xff] %v9665_v56  ;;  %7052 = vmatprep.mubr.f32.mxu1 %v9665_v56 }
 0x5d5   : > { %7053 = vmatmul.mubr.f32.gmra.mrb[88].mxu1 %v9668_v31 }
 0x5d6   : > { %v6977_v63 = vpop.f32.mrb[58].mxu0 }
 0x5d7   : > { %v2846_v26 = vadd.f32 %v6977_v63, %v9620_v50  ;;  %v2840_v41 = vpop.f32.mrb[59].mxu0 }
 0x5d8   : > { %v2841_v33 = vadd.f32 %v9620_v50, %v2840_v41 }
 0x5d9   : > { %v9678_v59 = vadd.f32 %v2846_v26, %v11591_v3  ;;  %v11615_v26 = vld [vmem:[#allocation19_spill] sm:$0xff] }
 0x5da   : > { %v9675_v58 = vadd.f32 %v2841_v33, %v11589_v10 }
 0x5db   : > { %11592 = vst [vmem:[#allocation6_spill] sm:$0xff] %v9678_v59 }
 0x5dc   : > { %11590 = vst [vmem:[#allocation7_spill] sm:$0xff] %v9675_v58  ;;  %7055 = vmatprep.mubr.f32.mxu1 %v9675_v58 }
 0x5dd   : > { %7056 = vmatmul.mubr.f32.gmra.mrb[90].mxu1 %v9678_v59 }
 0x5de   : > { %v6980_v47 = vpop.f32.mrb[60].mxu0 }
 0x5df   : > { %v2856_v49 = vadd.f32 %v6980_v47, %v9620_v50  ;;  %v2850_v60 = vpop.f32.mrb[61].mxu0 }
 0x5e0   : > { %v2851_v32 = vadd.f32 %v9620_v50, %v2850_v60 }
 0x5e1   : > { %v9688_v23 = vadd.f32 %v2856_v49, %v11595_v34  ;;  %v11617_v49 = vld [vmem:[#allocation20_spill] sm:$0xff] }
 0x5e2   : > { %v9685_v53 = vadd.f32 %v2851_v32, %v11593_v24  ;;  %v11619_v32 = vld [vmem:[#allocation21_spill] sm:$0xff] }
 0x5e3   : > { %11596 = vst [vmem:[#allocation8_spill] sm:$0xff] %v9688_v23 }
 0x5e4   : > { %11594 = vst [vmem:[#allocation9_spill] sm:$0xff] %v9685_v53  ;;  %7058 = vmatprep.mubr.f32.mxu1 %v9685_v53 }
 0x5e5   : > { %7059 = vmatmul.mubr.f32.gmra.mrb[92].mxu1 %v9688_v23 }
 0x5e6   : > { %v6983_v11 = vpop.f32.mrb[62].mxu0 }
 0x5e7   : > { %v2866_v30 = vadd.f32 %v6983_v11, %v9620_v50  ;;  %v2860_v27 = vpop.f32.mrb[63].mxu0 }
 0x5e8   : > { %v2861_v20 = vadd.f32 %v9620_v50, %v2860_v27 }
 0x5e9   : > { %v9698_v13 = vadd.f32 %v2866_v30, %v11599_v8  ;;  %v11623_v8 = vld [vmem:[#allocation23_spill] sm:$0xff] }
 0x5ea   : > { %v9695_v16 = vadd.f32 %v2861_v20, %v11597_v15  ;;  %v11621_v20 = vld [vmem:[#allocation22_spill] sm:$0xff] }
 0x5eb   : > { %11600 = vst [vmem:[#allocation10_spill] sm:$0xff] %v9698_v13 }
 0x5ec   : > { %11598 = vst [vmem:[#allocation11_spill] sm:$0xff] %v9695_v16  ;;  %7061 = vmatprep.mubr.f32.mxu1 %v9695_v16 }
 0x5ed   : > { %7062 = vmatmul.mubr.f32.gmra.mrb[94].mxu1 %v9698_v13 }
 0x5ee   : > { %v6986_v22 = vpop.f32.mrb[64].mxu0 }
 0x5ef   : > { %v2876_v40 = vadd.f32 %v6986_v22, %v9620_v50  ;;  %v2870_v55 = vpop.f32.mrb[65].mxu0 }
 0x5f0   : > { %v2871_v21 = vadd.f32 %v9620_v50, %v2870_v55 }
 0x5f1   : > { %v9708_v19 = vadd.f32 %v2876_v40, %v11603_v36  ;;  %v11625_v36 = vld [vmem:[#allocation24_spill] sm:$0xff] }
 0x5f2   : > { %v9705_v0 = vadd.f32 %v2871_v21, %v11601_v6 }
 0x5f3   : > { %11604 = vst [vmem:[#allocation13_spill] sm:$0xff] %v9708_v19 }
 0x5f4   : > { %11602 = vst [vmem:[#allocation12_spill] sm:$0xff] %v9705_v0  ;;  %7064 = vmatprep.mubr.f32.mxu1 %v9705_v0 }
 0x5f5   : > { %7065 = vmatmul.mubr.f32.gmra.mrb[96].mxu1 %v9708_v19 }
 0x5f6   : > { %v6989_v43 = vpop.f32.mrb[66].mxu0 }
 0x5f7   : > { %v2886_v4 = vadd.f32 %v6989_v43, %v9620_v50  ;;  %v2880_v51 = vpop.f32.mrb[67].mxu0 }
 0x5f8   : > { %v2881_v14 = vadd.f32 %v9620_v50, %v2880_v51 }
 0x5f9   : > { %v9718_v61 = vadd.f32 %v2886_v4, %v11607_v29  ;;  %v11627_v4 = vld [vmem:[#allocation25_spill] sm:$0xff] }
 0x5fa   : > { %v9715_v17 = vadd.f32 %v2881_v14, %v11605_v12 }
 0x5fb   : > { %11608 = vst [vmem:[#allocation15_spill] sm:$0xff] %v9718_v61 }
 0x5fc   : > { %11606 = vst [vmem:[#allocation14_spill] sm:$0xff] %v9715_v17  ;;  %7067 = vmatprep.mubr.f32.mxu1 %v9715_v17 }
 0x5fd   : > { %7068 = vmatmul.mubr.f32.gmra.mrb[98].mxu1 %v9718_v61 }
 0x5fe   : > { %v6992_v45 = vpop.f32.mrb[68].mxu0 }
 0x5ff   : > { %v2896_v1 = vadd.f32 %v6992_v45, %v9620_v50  ;;  %v2890_v35 = vpop.f32.mrb[69].mxu0 }
 0x600   : > { %v2891_v18 = vadd.f32 %v9620_v50, %v2890_v35 }
 0x601   : > { %v9728_v46 = vadd.f32 %v2896_v1, %v11611_v38  ;;  %v11629_v1 = vld [vmem:[#allocation26_spill] sm:$0xff] }
 0x602   : > { %v9725_v44 = vadd.f32 %v2891_v18, %v11609_v62  ;;  %v11631_v18 = vld [vmem:[#allocation27_spill] sm:$0xff] }
 0x603   : > { %11612 = vst [vmem:[#allocation17_spill] sm:$0xff] %v9728_v46  ;;  %v6076_v38 = vld [vmem:[%s11400_s7 + $0x100] sm:$0xff] }
 0x604   : > { %11610 = vst [vmem:[#allocation16_spill] sm:$0xff] %v9725_v44  ;;  %7070 = vmatprep.mubr.f32.mxu1 %v9725_v44 }
 0x605   : > { %7071 = vmatmul.mubr.f32.gmra.mrb[100].mxu1 %v9728_v46 }
 0x606   : > { %v6995_v39 = vpop.f32.mrb[70].mxu0 }
 0x607   : > { %v2906_v42 = vadd.f32 %v6995_v39, %v9620_v50  ;;  %v2900_v5 = vpop.f32.mrb[71].mxu0  ;;  %v6077_v39 = vld [vmem:[%s11400_s7 + $0x108] sm:$0xff] }
 0x608   : > { %v2901_v48 = vadd.f32 %v9620_v50, %v2900_v5  ;;  %v6079_v5 = vld [vmem:[%s11400_s7 + $0x118] sm:$0xff] }
 0x609   : > { %v9738_v41 = vadd.f32 %v2906_v42, %v11615_v26  ;;  %v7504_v42 = vpack.c.bf16 %v6077_v39, %v6076_v38 }
 0x60a   : > { %v9735_v63 = vadd.f32 %v2901_v48, %v11613_v2  ;;  %v9797_v2 = vld [vmem:[%s11397_s4 + $0x2] ss:$0 sm:$0xff] }
 0x60b   : > { %11616 = vst [vmem:[#allocation19_spill] sm:$0xff] %v9738_v41  ;;  %7505 = vmatprep.subr.bf16.mxu0 %v7504_v42 }
 0x60c   : > { %11614 = vst [vmem:[#allocation18_spill] sm:$0xff] %v9735_v63  ;;  %7073 = vmatprep.mubr.f32.mxu1 %v9735_v63  ;;  %7507 = vmatpush3.bf16.msra.mxu0 %v7504_v42 }
 0x60d   : > { %7074 = vmatmul.mubr.f32.gmra.mrb[102].mxu1 %v9738_v41 }
 0x60e   : > { %v6998_v33 = vpop.f32.mrb[72].mxu0 }
 0x60f   : > { %v2916_v10 = vadd.f32 %v6998_v33, %v9620_v50  ;;  %v2910_v3 = vpop.f32.mrb[73].mxu0 }
 0x610   : > { %v2911_v47 = vadd.f32 %v9620_v50, %v2910_v3 }
 0x611   : > { %v9748_v24 = vadd.f32 %v2916_v10, %v11619_v32  ;;  %v6082_v32 = vld [vmem:[%s11400_s7 + $0x130] sm:$0xff] }
 0x612   : > { %v9745_v60 = vadd.f32 %v2911_v47, %v11617_v49  ;;  %v6080_v47 = vld [vmem:[%s11400_s7 + $0x120] sm:$0xff]  ;;  %v6081_v49 = vld [vmem:[%s11400_s7 + $0x128] sm:$0xff] }
 0x613   : > { %11620 = vst [vmem:[#allocation21_spill] sm:$0xff] %v9748_v24 }
 0x614   : > { %11618 = vst [vmem:[#allocation20_spill] sm:$0xff] %v9745_v60  ;;  %7076 = vmatprep.mubr.f32.mxu1 %v9745_v60 }
 0x615   : > { %7077 = vmatmul.mubr.f32.gmra.mrb[104].mxu1 %v9748_v24 }
 0x616   : > { %v7001_v34 = vpop.f32.mrb[74].mxu0 }
 0x617   : > { %v2926_v11 = vadd.f32 %v7001_v34, %v9620_v50  ;;  %v2920_v30 = vpop.f32.mrb[75].mxu0 }
 0x618   : > { %v2921_v27 = vadd.f32 %v9620_v50, %v2920_v30  ;;  %v6083_v30 = vld [vmem:[%s11400_s7 + $0x138] sm:$0xff] }
 0x619   : > { %v9758_v22 = vadd.f32 %v2926_v11, %v11623_v8  ;;  %v7512_v11 = vpack.c.bf16 %v6081_v49, %v6080_v47 }
 0x61a   : > { %v9755_v15 = vadd.f32 %v2921_v27, %v11621_v20  ;;  %v7516_v20 = vpack.c.bf16 %v6083_v30, %v6082_v32 }
 0x61b   : > { %11624 = vst [vmem:[#allocation23_spill] sm:$0xff] %v9758_v22 }
 0x61c   : > { %11622 = vst [vmem:[#allocation22_spill] sm:$0xff] %v9755_v15  ;;  %7079 = vmatprep.mubr.f32.mxu1 %v9755_v15 }
 0x61d   : > { %7080 = vmatmul.mubr.f32.gmra.mrb[106].mxu1 %v9758_v22 }
 0x61e   : > { %v7004_v40 = vpop.f32.mrb[76].mxu0 }
 0x61f   : > { %v2936_v55 = vadd.f32 %v7004_v40, %v9620_v50  ;;  %v2930_v21 = vpop.f32.mrb[77].mxu0 }
 0x620   : > { %v2931_v6 = vadd.f32 %v9620_v50, %v2930_v21 }
 0x621   : > { %v9768_v51 = vadd.f32 %v2936_v55, %v11627_v4 }
 0x622   : > { %v9765_v43 = vadd.f32 %v2931_v6, %v11625_v36 }
 0x623   : > { %11628 = vst [vmem:[#allocation25_spill] sm:$0xff] %v9768_v51 }
 0x624   : > { %11626 = vst [vmem:[#allocation24_spill] sm:$0xff] %v9765_v43  ;;  %7082 = vmatprep.mubr.f32.mxu1 %v9765_v43 }
 0x625   : > { %7083 = vmatmul.mubr.f32.gmra.mrb[108].mxu1 %v9768_v51 }
 0x626   : > { %v7007_v14 = vpop.f32.mrb[78].mxu0 }
 0x627   : > { %v2946_v12 = vadd.f32 %v7007_v14, %v9620_v50  ;;  %v2940_v29 = vpop.f32.mrb[79].mxu0 }
 0x628   : > { %v2941_v45 = vadd.f32 %v9620_v50, %v2940_v29  ;;  %v6078_v50 = vld [vmem:[%s11400_s7 + $0x110] sm:$0xff] }
 0x629   : > { %v9778_v62 = vadd.f32 %v2946_v12, %v11631_v18  ;;  %v7508_v48 = vpack.c.bf16 %v6079_v5, %v6078_v50  ;;  %v6084_v50 = vld [vmem:[%s11400_s7 + $0x140] sm:$0xff]  ;;  %v6085_v5 = vld [vmem:[%s11400_s7 + $0x148] sm:$0xff] }
 0x62a   : > { %v9775_v35 = vadd.f32 %v2941_v45, %v11629_v1 }
 0x62b   : > { %11632 = vst [vmem:[#allocation27_spill] sm:$0xff] %v9778_v62  ;;  %7509 = vmatprep.subr.bf16.mxu0 %v7508_v48 }
 0x62c   : > { %11630 = vst [vmem:[#allocation26_spill] sm:$0xff] %v9775_v35  ;;  %7085 = vmatprep.mubr.f32.mxu1 %v9775_v35  ;;  %7511 = vmatpush3.bf16.msra.mxu0 %v7508_v48 }
 0x62d   : > { %7086 = vmatmul.mubr.f32.gmra.mrb[110].mxu1 %v9778_v62  ;;  %7513 = vmatprep.subr.bf16.mxu0 %v7512_v11 }
 0x630   : > { %7515 = vmatpush3.bf16.msra.mxu0 %v7512_v11 }
 0x631   : > { %7517 = vmatprep.subr.bf16.mxu0 %v7516_v20 }
 0x634   : > { %7519 = vmatpush3.bf16.msra.mxu0 %v7516_v20 }
 0x688   : > { %v7042_v26 = vpop.f32.mrb[80].mxu1 }
 0x689   : > { %v3078_v33 = vadd.f32 %v7042_v26, %v9797_v2  ;;  %v3072_v10 = vpop.f32.mrb[81].mxu1  ;;  %v7520_v26 = vpack.c.bf16 %v6085_v5, %v6084_v50 }
 0x68a   : > { %v3073_v3 = vadd.f32 %v9797_v2, %v3072_v10 }
 0x68b   : > { %v9810_v34 = vmax.f32 %v3078_v33, 0.0  ;;  %7521 = vmatprep.subr.bf16.mxu0 %v7520_v26 }
 0x68c   : > { %v9815_v27 = vmax.f32 %v3073_v3, 0.0  ;;  %7523 = vmatpush3.bf16.msra.mxu0 %v7520_v26 }
 0x68d   : > { %3265 = vadd.xlane.f32.xlu1 %v9810_v34  ;;  %v3360_v8 = vmul.f32 %v9810_v34, %v9810_v34 }
 0x68e   : > { %3263 = vadd.xlane.f32.xlu0 %v9815_v27  ;;  %v3359_v55 = vmul.f32 %v9815_v27, %v9815_v27 }
 0x690   : > { %v7045_v40 = vpop.f32.mrb[82].mxu1 }
 0x691   : > { %v3088_v21 = vadd.f32 %v7045_v40, %v9797_v2  ;;  %3393 = vadd.xlane.f32.xlu1 %v3360_v8  ;;  %v3082_v6 = vpop.f32.mrb[83].mxu1 }
 0x692   : > { %v3083_v36 = vadd.f32 %v9797_v2, %v3082_v6  ;;  %3391 = vadd.xlane.f32.xlu0 %v3359_v55  ;;  %v6086_v6 = vld [vmem:[%s11400_s7 + $0x150] sm:$0xff] }
 0x693   : > { %v9825_v4 = vmax.f32 %v3088_v21, 0.0 }
 0x694   : > { %v9827_v14 = vmax.f32 %v3083_v36, 0.0  ;;  %v6087_v36 = vld [vmem:[%s11400_s7 + $0x158] sm:$0xff] }
 0x695   : > { %3269 = vadd.xlane.f32.xlu1 %v9825_v4  ;;  %v3362_v12 = vmul.f32 %v9825_v4, %v9825_v4 }
 0x696   : > { %3267 = vadd.xlane.f32.xlu0 %v9827_v14  ;;  %v3361_v45 = vmul.f32 %v9827_v14, %v9827_v14 }
 0x698   : > { %v7048_v29 = vpop.f32.mrb[84].mxu1 }
 0x699   : > { %v3098_v1 = vadd.f32 %v7048_v29, %v9797_v2  ;;  %3397 = vadd.xlane.f32.xlu1 %v3362_v12  ;;  %v3092_v18 = vpop.f32.mrb[85].mxu1  ;;  %v7524_v29 = vpack.c.bf16 %v6087_v36, %v6086_v6 }
 0x69a   : > { %v3093_v38 = vadd.f32 %v9797_v2, %v3092_v18  ;;  %3395 = vadd.xlane.f32.xlu0 %v3361_v45  ;;  %v6089_v18 = vld [vmem:[%s11400_s7 + $0x168] sm:$0xff] }
 0x69b   : > { %v9837_v39 = vmax.f32 %v3098_v1, 0.0  ;;  %7525 = vmatprep.subr.bf16.mxu0 %v7524_v29  ;;  %v6088_v1 = vld [vmem:[%s11400_s7 + $0x160] sm:$0xff] }
 0x69c   : > { %v9839_v42 = vmax.f32 %v3093_v38, 0.0  ;;  %7527 = vmatpush3.bf16.msra.mxu0 %v7524_v29  ;;  %v7528_v50 = vpack.c.bf16 %v6089_v18, %v6088_v1 }
 0x69d   : > { %3273 = vadd.xlane.f32.xlu1 %v9837_v39  ;;  %v3364_v48 = vmul.f32 %v9837_v39, %v9837_v39 }
 0x69e   : > { %3271 = vadd.xlane.f32.xlu0 %v9839_v42  ;;  %v3363_v10 = vmul.f32 %v9839_v42, %v9839_v42  ;;  %7529 = vmatprep.subr.bf16.mxu0 %v7528_v50 }
 0x6a0   : > { %v7051_v33 = vpop.f32.mrb[86].mxu1  ;;  %7531 = vmatpush3.bf16.msra.mxu0 %v7528_v50 }
 0x6a1   : > { %v3108_v3 = vadd.f32 %v7051_v33, %v9797_v2  ;;  %3401 = vadd.xlane.f32.xlu1 %v3364_v48  ;;  %v3102_v47 = vpop.f32.mrb[87].mxu1 }
 0x6a2   : > { %v3103_v49 = vadd.f32 %v9797_v2, %v3102_v47  ;;  %3399 = vadd.xlane.f32.xlu0 %v3363_v10  ;;  %v6091_v47 = vld [vmem:[%s11400_s7 + $0x178] sm:$0xff] }
 0x6a3   : > { %v9855_v32 = vmax.f32 %v3108_v3, 0.0  ;;  %v6090_v3 = vld [vmem:[%s11400_s7 + $0x170] sm:$0xff] }
 0x6a4   : > { %v9857_v11 = vmax.f32 %v3103_v49, 0.0 }
 0x6a5   : > { %3277 = vadd.xlane.f32.xlu1 %v9855_v32  ;;  %v3366_v30 = vmul.f32 %v9855_v32, %v9855_v32 }
 0x6a6   : > { %3275 = vadd.xlane.f32.xlu0 %v9857_v11  ;;  %v3365_v8 = vmul.f32 %v9857_v11, %v9857_v11 }
 0x6a8   : > { %v7054_v20 = vpop.f32.mrb[88].mxu1 }
 0x6a9   : > { %v3118_v40 = vadd.f32 %v7054_v20, %v9797_v2  ;;  %3405 = vadd.xlane.f32.xlu1 %v3366_v30  ;;  %v3112_v55 = vpop.f32.mrb[89].mxu1  ;;  %v7532_v30 = vpack.c.bf16 %v6091_v47, %v6090_v3 }
 0x6aa   : > { %v3113_v21 = vadd.f32 %v9797_v2, %v3112_v55  ;;  %3403 = vadd.xlane.f32.xlu0 %v3365_v8 }
 0x6ab   : > { %v9873_v12 = vmax.f32 %v3118_v40, 0.0  ;;  %7533 = vmatprep.subr.bf16.mxu0 %v7532_v30 }
 0x6ac   : > { %v9875_v45 = vmax.f32 %v3113_v21, 0.0  ;;  %7535 = vmatpush3.bf16.msra.mxu0 %v7532_v30 }
 0x6ad   : > { %3281 = vadd.xlane.f32.xlu1 %v9873_v12  ;;  %v3368_v38 = vmul.f32 %v9873_v12, %v9873_v12 }
 0x6ae   : > { %3279 = vadd.xlane.f32.xlu0 %v9875_v45  ;;  %v3367_v48 = vmul.f32 %v9875_v45, %v9875_v45 }
 0x6b0   : > { %v7057_v5 = vpop.f32.mrb[90].mxu1 }
 0x6b1   : > { %v3128_v26 = vadd.f32 %v7057_v5, %v9797_v2  ;;  %3409 = vadd.xlane.f32.xlu1 %v3368_v38  ;;  %v3122_v33 = vpop.f32.mrb[91].mxu1 }
 0x6b2   : > { %v3123_v10 = vadd.f32 %v9797_v2, %v3122_v33  ;;  %3407 = vadd.xlane.f32.xlu0 %v3367_v48 }
 0x6b3   : > { %v9897_v49 = vmax.f32 %v3128_v26, 0.0 }
 0x6b4   : > { %v9899_v20 = vmax.f32 %v3123_v10, 0.0 }
 0x6b5   : > { %3285 = vadd.xlane.f32.xlu1 %v9897_v49  ;;  %v3370_v8 = vmul.f32 %v9897_v49, %v9897_v49 }
 0x6b6   : > { %3283 = vadd.xlane.f32.xlu0 %v9899_v20  ;;  %v3369_v55 = vmul.f32 %v9899_v20, %v9899_v20 }
 0x6b8   : > { %v7060_v40 = vpop.f32.mrb[92].mxu1 }
 0x6b9   : > { %v3138_v21 = vadd.f32 %v7060_v40, %v9797_v2  ;;  %3413 = vadd.xlane.f32.xlu1 %v3370_v8  ;;  %v3132_v6 = vpop.f32.mrb[93].mxu1 }
 0x6ba   : > { %v3133_v36 = vadd.f32 %v9797_v2, %v3132_v6  ;;  %3411 = vadd.xlane.f32.xlu0 %v3369_v55 }
 0x6bb   : > { %v9909_v29 = vmax.f32 %v3138_v21, 0.0 }
 0x6bc   : > { %v9911_v1 = vmax.f32 %v3133_v36, 0.0 }
 0x6bd   : > { %3289 = vadd.xlane.f32.xlu1 %v9909_v29  ;;  %v3372_v18 = vmul.f32 %v9909_v29, %v9909_v29 }
 0x6be   : > { %3287 = vadd.xlane.f32.xlu0 %v9911_v1  ;;  %v3371_v50 = vmul.f32 %v9911_v1, %v9911_v1 }
 0x6c0   : > { %v7063_v38 = vpop.f32.mrb[94].mxu1 }
 0x6c1   : > { %v3148_v5 = vadd.f32 %v7063_v38, %v9797_v2  ;;  %3417 = vadd.xlane.f32.xlu1 %v3372_v18  ;;  %v3142_v48 = vpop.f32.mrb[95].mxu1 }
 0x6c2   : > { %v3143_v26 = vadd.f32 %v9797_v2, %v3142_v48  ;;  %3415 = vadd.xlane.f32.xlu0 %v3371_v50 }
 0x6c3   : > { %v9921_v33 = vmax.f32 %v3148_v5, 0.0 }
 0x6c4   : > { %v9923_v10 = vmax.f32 %v3143_v26, 0.0 }
 0x6c5   : > { %3293 = vadd.xlane.f32.xlu1 %v9921_v33  ;;  %v3374_v3 = vmul.f32 %v9921_v33, %v9921_v33 }
 0x6c6   : > { %3291 = vadd.xlane.f32.xlu0 %v9923_v10  ;;  %v3373_v30 = vmul.f32 %v9923_v10, %v9923_v10 }
 0x6c8   : > { %v7066_v47 = vpop.f32.mrb[96].mxu1 }
 0x6c9   : > { %v3158_v8 = vadd.f32 %v7066_v47, %v9797_v2  ;;  %3421 = vadd.xlane.f32.xlu1 %v3374_v3  ;;  %v3152_v40 = vpop.f32.mrb[97].mxu1 }
 0x6ca   : > { %v3153_v55 = vadd.f32 %v9797_v2, %v3152_v40  ;;  %3419 = vadd.xlane.f32.xlu0 %v3373_v30 }
 0x6cb   : > { %v9933_v21 = vmax.f32 %v3158_v8, 0.0 }
 0x6cc   : > { %v9935_v6 = vmax.f32 %v3153_v55, 0.0 }
 0x6cd   : > { %3297 = vadd.xlane.f32.xlu1 %v9933_v21  ;;  %v3376_v36 = vmul.f32 %v9933_v21, %v9933_v21 }
 0x6ce   : > { %3295 = vadd.xlane.f32.xlu0 %v9935_v6  ;;  %v3375_v38 = vmul.f32 %v9935_v6, %v9935_v6 }
 0x6d0   : > { %v7069_v18 = vpop.f32.mrb[98].mxu1 }
 0x6d1   : > { %v3168_v50 = vadd.f32 %v7069_v18, %v9797_v2  ;;  %3425 = vadd.xlane.f32.xlu1 %v3376_v36  ;;  %v3162_v5 = vpop.f32.mrb[99].mxu1 }
 0x6d2   : > { %v3163_v48 = vadd.f32 %v9797_v2, %v3162_v5  ;;  %3423 = vadd.xlane.f32.xlu0 %v3375_v38 }
 0x6d3   : > { %v9945_v26 = vmax.f32 %v3168_v50, 0.0 }
 0x6d4   : > { %v9947_v3 = vmax.f32 %v3163_v48, 0.0 }
 0x6d5   : > { %3301 = vadd.xlane.f32.xlu1 %v9945_v26  ;;  %v3378_v47 = vmul.f32 %v9945_v26, %v9945_v26 }
 0x6d6   : > { %3299 = vadd.xlane.f32.xlu0 %v9947_v3  ;;  %v3377_v8 = vmul.f32 %v9947_v3, %v9947_v3 }
 0x6d8   : > { %v7072_v30 = vpop.f32.mrb[100].mxu1 }
 0x6d9   : > { %v3178_v40 = vadd.f32 %v7072_v30, %v9797_v2  ;;  %3429 = vadd.xlane.f32.xlu1 %v3378_v47  ;;  %v3172_v55 = vpop.f32.mrb[101].mxu1 }
 0x6da   : > { %v3173_v36 = vadd.f32 %v9797_v2, %v3172_v55  ;;  %3427 = vadd.xlane.f32.xlu0 %v3377_v8 }
 0x6db   : > { %v9957_v18 = vmax.f32 %v3178_v40, 0.0 }
 0x6dc   : > { %v9959_v38 = vmax.f32 %v3173_v36, 0.0 }
 0x6dd   : > { %3305 = vadd.xlane.f32.xlu1 %v9957_v18  ;;  %v3380_v50 = vmul.f32 %v9957_v18, %v9957_v18 }
 0x6de   : > { %3303 = vadd.xlane.f32.xlu0 %v9959_v38  ;;  %v3379_v48 = vmul.f32 %v9959_v38, %v9959_v38 }
 0x6e0   : > { %v7075_v5 = vpop.f32.mrb[102].mxu1 }
 0x6e1   : > { %v3188_v47 = vadd.f32 %v7075_v5, %v9797_v2  ;;  %3433 = vadd.xlane.f32.xlu1 %v3380_v50  ;;  %v3182_v30 = vpop.f32.mrb[103].mxu1 }
 0x6e2   : > { %v3183_v8 = vadd.f32 %v9797_v2, %v3182_v30  ;;  %3431 = vadd.xlane.f32.xlu0 %v3379_v48 }
 0x6e3   : > { %v9969_v40 = vmax.f32 %v3188_v47, 0.0 }
 0x6e4   : > { %v9971_v55 = vmax.f32 %v3183_v8, 0.0 }
 0x6e5   : > { %3309 = vadd.xlane.f32.xlu1 %v9969_v40  ;;  %v3382_v36 = vmul.f32 %v9969_v40, %v9969_v40 }
 0x6e6   : > { %3307 = vadd.xlane.f32.xlu0 %v9971_v55  ;;  %v3381_v5 = vmul.f32 %v9971_v55, %v9971_v55 }
 0x6e8   : > { %v7078_v62 = vpop.f32.mrb[104].mxu1 }
 0x6e9   : > { %v3198_v50 = vadd.f32 %v7078_v62, %v9797_v2  ;;  %3437 = vadd.xlane.f32.xlu1 %v3382_v36  ;;  %v3192_v30 = vpop.f32.mrb[105].mxu1 }
 0x6ea   : > { %v3193_v48 = vadd.f32 %v9797_v2, %v3192_v30  ;;  %3435 = vadd.xlane.f32.xlu0 %v3381_v5 }
 0x6eb   : > { %v9981_v47 = vmax.f32 %v3198_v50, 0.0 }
 0x6ec   : > { %v9983_v8 = vmax.f32 %v3193_v48, 0.0 }
 0x6ed   : > { %3313 = vadd.xlane.f32.xlu1 %v9981_v47  ;;  %v3384_v35 = vmul.f32 %v9981_v47, %v9981_v47 }
 0x6ee   : > { %3311 = vadd.xlane.f32.xlu0 %v9983_v8  ;;  %v3383_v62 = vmul.f32 %v9983_v8, %v9983_v8 }
 0x6f0   : > { %v7081_v51 = vpop.f32.mrb[106].mxu1 }
 0x6f1   : > { %v3208_v36 = vadd.f32 %v7081_v51, %v9797_v2  ;;  %3441 = vadd.xlane.f32.xlu1 %v3384_v35  ;;  %v3202_v30 = vpop.f32.mrb[107].mxu1 }
 0x6f2   : > { %v3203_v5 = vadd.f32 %v9797_v2, %v3202_v30  ;;  %3439 = vadd.xlane.f32.xlu0 %v3383_v62 }
 0x6f3   : > { %v9993_v50 = vmax.f32 %v3208_v36, 0.0 }
 0x6f4   : > { %v9995_v48 = vmax.f32 %v3203_v5, 0.0 }
 0x6f5   : > { %3317 = vadd.xlane.f32.xlu1 %v9993_v50  ;;  %v3386_v43 = vmul.f32 %v9993_v50, %v9993_v50 }
 0x6f6   : > { %3315 = vadd.xlane.f32.xlu0 %v9995_v48  ;;  %v3385_v51 = vmul.f32 %v9995_v48, %v9995_v48 }
 0x6f8   : > { %v7084_v22 = vpop.f32.mrb[108].mxu1 }
 0x6f9   : > { %v3218_v35 = vadd.f32 %v7084_v22, %v9797_v2  ;;  %3445 = vadd.xlane.f32.xlu1 %v3386_v43  ;;  %v3212_v30 = vpop.f32.mrb[109].mxu1 }
 0x6fa   : > { %v3213_v62 = vadd.f32 %v9797_v2, %v3212_v30  ;;  %3443 = vadd.xlane.f32.xlu0 %v3385_v51 }
 0x6fb   : > { %v10005_v36 = vmax.f32 %v3218_v35, 0.0 }
 0x6fc   : > { %v10007_v5 = vmax.f32 %v3213_v62, 0.0 }
 0x6fd   : > { %3321 = vadd.xlane.f32.xlu1 %v10005_v36  ;;  %v3388_v15 = vmul.f32 %v10005_v36, %v10005_v36 }
 0x6fe   : > { %3319 = vadd.xlane.f32.xlu0 %v10007_v5  ;;  %v3387_v22 = vmul.f32 %v10007_v5, %v10007_v5 }
 0x700   : > { %v7087_v24 = vpop.f32.mrb[110].mxu1 }
 0x701   : > { %v3228_v43 = vadd.f32 %v7087_v24, %v9797_v2  ;;  %3449 = vadd.xlane.f32.xlu1 %v3388_v15  ;;  %v3222_v30 = vpop.f32.mrb[111].mxu1 }
 0x702   : > { %v3223_v51 = vadd.f32 %v9797_v2, %v3222_v30  ;;  %3447 = vadd.xlane.f32.xlu0 %v3387_v22 }
 0x703   : > { %v10017_v35 = vmax.f32 %v3228_v43, 0.0 }
 0x704   : > { %v10019_v62 = vmax.f32 %v3223_v51, 0.0 }
 0x705   : > { %3325 = vadd.xlane.f32.xlu1 %v10017_v35  ;;  %v3390_v60 = vmul.f32 %v10017_v35, %v10017_v35 }
 0x706   : > { %3323 = vadd.xlane.f32.xlu0 %v10019_v62  ;;  %v3389_v41 = vmul.f32 %v10019_v62, %v10019_v62 }
 0x709   : > { %3453 = vadd.xlane.f32.xlu1 %v3390_v60 }
 0x70a   : > { %3451 = vadd.xlane.f32.xlu0 %v3389_v41 }
 0x71a   : > { %v3266_v24 = vpop.xlane.xlu1 %3265 }
 0x71b   : > { %v3328_v15 = vmul.f32 0.0078125, %v3266_v24  ;;  %v3264_v2 = vpop.xlane.xlu0 %3263 }
 0x71c   : > { %v3327_v22 = vmul.f32 0.0078125, %v3264_v2 }
 0x71d   : > { %v3520_v30 = vmul.f32 %v3328_v15, %v3328_v15 }
 0x71e   : > { %v3394_v43 = vpop.xlane.xlu1 %3393  ;;  %v3519_v46 = vmul.f32 %v3327_v22, %v3327_v22  ;;  %v3487_v59 = vsub.f32 %v9815_v27, %v3327_v22  ;;  %v6094_v27 = vld [vmem:[%s11396_s3 + $0x180] sm:$0xff]  ;;  %v6095_v22 = vld [vmem:[%s11396_s3 + $0x188] sm:$0xff] }
 0x71f   : > { %v3456_v51 = vmul.f32 0.0078125, %v3394_v43  ;;  %v3392_v63 = vpop.xlane.xlu0 %3391 }
 0x720   : > { %v3455_v44 = vmul.f32 0.0078125, %v3392_v63 }
 0x721   : > { %v3552_v61 = vsub.f32 %v3456_v51, %v3520_v30 }
 0x722   : > { %v3551_v17 = vsub.f32 %v3455_v44, %v3519_v46  ;;  %v3270_v19 = vpop.xlane.xlu1 %3269 }
 0x723   : > { %v3584_v0 = vadd.f32 1e-05, %v3552_v61  ;;  %v10027_v13 = vmul.f32 0.0078125, %v3270_v19  ;;  %v3268_v16 = vpop.xlane.xlu0 %3267 }
 0x724   : > { %v3583_v23 = vadd.f32 1e-05, %v3551_v17  ;;  %v10029_v60 = vmul.f32 0.0078125, %v3268_v16 }
 0x725   : > { %7813 = vrsqrt.f32 %v3584_v0  ;;  %v3522_v24 = vmul.f32 %v10027_v13, %v10027_v13 }
 0x726   : > { %7815 = vrsqrt.f32 %v3583_v23  ;;  %v3398_v41 = vpop.xlane.xlu1 %3397  ;;  %v3521_v63 = vmul.f32 %v10029_v60, %v10029_v60  ;;  %v3488_v23 = vsub.f32 %v9810_v34, %v3328_v15 }
 0x727   : > { %v3458_v2 = vmul.f32 0.0078125, %v3398_v41  ;;  %v3396_v43 = vpop.xlane.xlu0 %3395 }
 0x728   : > { %v3457_v44 = vmul.f32 0.0078125, %v3396_v43 }
 0x729   : > { %v3554_v46 = vsub.f32 %v3458_v2, %v3522_v24 }
 0x72a   : > { %v3553_v61 = vsub.f32 %v3457_v44, %v3521_v63  ;;  %v3274_v19 = vpop.xlane.xlu1 %3273  ;;  %v10046_v63 = vld [vmem:[%s11398_s5 + $0x2] ss:$0 sm:$0xff] }
 0x72b   : > { %v3586_v30 = vadd.f32 1e-05, %v3554_v46  ;;  %v10035_v51 = vmul.f32 0.0078125, %v3274_v19  ;;  %v3272_v16 = vpop.xlane.xlu0 %3271 }
 0x72c   : > { %v3585_v17 = vadd.f32 1e-05, %v3553_v61  ;;  %v10037_v0 = vmul.f32 0.0078125, %v3272_v16  ;;  %v6096_v61 = vld [vmem:[%s11396_s3 + $0x190] sm:$0xff]  ;;  %v7536_v16 = vpack.c.bf16 %v6095_v22, %v6094_v27 }
 0x72d   : > { %7817 = vrsqrt.f32 %v3586_v30  ;;  %v3524_v24 = vmul.f32 %v10035_v51, %v10035_v51 }
 0x72e   : > { %7819 = vrsqrt.f32 %v3585_v17  ;;  %v3402_v41 = vpop.xlane.xlu1 %3401  ;;  %v3523_v34 = vmul.f32 %v10037_v0, %v10037_v0  ;;  %7537 = vmatprep.subr.bf16.mxu1 %v7536_v16 }
 0x72f   : > { %v7814_v53 = vpop.eup %7813  ;;  %v3460_v2 = vmul.f32 0.0078125, %v3402_v41  ;;  %v3400_v43 = vpop.xlane.xlu0 %3399  ;;  %v10065_v41 = vld [vmem:[%s11399_s6 + $0x2] ss:$0 sm:$0xff]  ;;  %7539 = vmatpush3.bf16.msra.mxu1 %v7536_v16  ;;  %v6101_v16 = vld [vmem:[%s11396_s3 + $0x1b8] sm:$0xff] }
 0x730   : > { %v7816_v44 = vpop.eup %7815  ;;  %v3648_v46 = vmul.f32 %v7814_v53, %v3488_v23  ;;  %v3459_v15 = vmul.f32 0.0078125, %v3400_v43  ;;  %v6097_v53 = vld [vmem:[%s11396_s3 + $0x198] sm:$0xff] }
 0x731   : > { %v3556_v19 = vsub.f32 %v3460_v2, %v3524_v24  ;;  %v3647_v30 = vmul.f32 %v7816_v44, %v3487_v59  ;;  %v7540_v58 = vpack.c.bf16 %v6097_v53, %v6096_v61  ;;  %v6098_v24 = vld [vmem:[%s11396_s3 + $0x1a0] sm:$0xff]  ;;  %v6099_v59 = vld [vmem:[%s11396_s3 + $0x1a8] sm:$0xff]  ;;  %v3490_v53 = vsub.f32 %v9825_v4, %v10027_v13 }
 0x732   : > { %v3555_v17 = vsub.f32 %v3459_v15, %v3523_v34  ;;  %v3278_v23 = vpop.xlane.xlu1 %3277  ;;  %v3688_v43 = vmul.f32 %v10046_v63, %v3648_v46  ;;  %v7544_v61 = vpack.c.bf16 %v6099_v59, %v6098_v24 }
 0x733   : > { %v3588_v2 = vadd.f32 1e-05, %v3556_v19  ;;  %v10074_v44 = vmul.f32 0.0078125, %v3278_v23  ;;  %v3276_v34 = vpop.xlane.xlu0 %3275  ;;  %v3687_v15 = vmul.f32 %v10046_v63, %v3647_v30  ;;  %7541 = vmatprep.subr.bf16.mxu1 %v7540_v58  ;;  %v6100_v30 = vld [vmem:[%s11396_s3 + $0x1b0] sm:$0xff] }
 0x734   : > { %v3587_v27 = vadd.f32 1e-05, %v3555_v17  ;;  %v10077_v22 = vmul.f32 0.0078125, %v3276_v34  ;;  %v3728_v23 = vadd.f32 %v10065_v41, %v3688_v43  ;;  %7543 = vmatpush3.bf16.msra.mxu1 %v7540_v58  ;;  %v7548_v56 = vpack.c.bf16 %v6101_v16, %v6100_v30 }
 0x735   : > { %7821 = vrsqrt.f32 %v3588_v2  ;;  %v3727_v46 = vadd.f32 %v10065_v41, %v3687_v15  ;;  %v3489_v2 = vsub.f32 %v9827_v14, %v10029_v60  ;;  %v3526_v24 = vmul.f32 %v10074_v44, %v10074_v44  ;;  %7545 = vmatprep.subr.bf16.mxu1 %v7544_v61 }
 0x736   : > { %7823 = vrsqrt.f32 %v3587_v27  ;;  %v3406_v19 = vpop.xlane.xlu1 %3405  ;;  %v3525_v43 = vmul.f32 %v10077_v22, %v10077_v22 }
 0x737   : > { %v7818_v17 = vpop.eup %7817  ;;  %v3462_v13 = vmul.f32 0.0078125, %v3406_v19  ;;  %v3404_v4 = vpop.xlane.xlu0 %3403  ;;  %7120 = vmatprep.mubr.f32.mxu0 %v3727_v46  ;;  %v6102_v46 = vld [vmem:[%s11396_s3 + $0x1c0] sm:$0xff]  ;;  %v6103_v19 = vld [vmem:[%s11396_s3 + $0x1c8] sm:$0xff] }
 0x738   : > { %v7820_v59 = vpop.eup %7819  ;;  %v3461_v34 = vmul.f32 0.0078125, %v3404_v4  ;;  %7121 = vmatmul.mubr.f32.vlgmr.msra.gmra.mrb[80].mxu0 %v3728_v23  ;;  %v3650_v15 = vmul.f32 %v7818_v17, %v3490_v53  ;;  %7547 = vmatpush3.bf16.msra.mxu1 %v7544_v61 }
 0x739   : > { %v3558_v27 = vsub.f32 %v3462_v13, %v3526_v24  ;;  %v3649_v31 = vmul.f32 %v7820_v59, %v3489_v2  ;;  %7549 = vmatprep.subr.bf16.mxu1 %v7548_v56  ;;  %v7552_v2 = vpack.c.bf16 %v6103_v19, %v6102_v46  ;;  %v3492_v24 = vsub.f32 %v9837_v39, %v10035_v51 }
 0x73a   : > { %v3557_v52 = vsub.f32 %v3461_v34, %v3525_v43  ;;  %v3282_v14 = vpop.xlane.xlu1 %3281  ;;  %v3690_v60 = vmul.f32 %v10046_v63, %v3650_v15  ;;  %v3491_v43 = vsub.f32 %v9839_v42, %v10037_v0 }
 0x73b   : > { %v3590_v4 = vadd.f32 1e-05, %v3558_v27  ;;  %v10102_v23 = vmul.f32 0.0078125, %v3282_v14  ;;  %v3280_v58 = vpop.xlane.xlu0 %3279  ;;  %v3689_v53 = vmul.f32 %v10046_v63, %v3649_v31  ;;  %v6104_v31 = vld [vmem:[%s11396_s3 + $0x1d0] sm:$0xff] }
 0x73c   : > { %v3589_v17 = vadd.f32 1e-05, %v3557_v52  ;;  %v10105_v30 = vmul.f32 0.0078125, %v3280_v58  ;;  %v3730_v59 = vadd.f32 %v10065_v41, %v3690_v60  ;;  %v6105_v52 = vld [vmem:[%s11396_s3 + $0x1d8] sm:$0xff]  ;;  %7551 = vmatpush3.bf16.msra.mxu1 %v7548_v56 }
 0x73d   : > { %7825 = vrsqrt.f32 %v3590_v4  ;;  %v3729_v16 = vadd.f32 %v10065_v41, %v3689_v53  ;;  %v3528_v34 = vmul.f32 %v10102_v23, %v10102_v23  ;;  %7553 = vmatprep.subr.bf16.mxu1 %v7552_v2  ;;  %v7556_v4 = vpack.c.bf16 %v6105_v52, %v6104_v31  ;;  %v6106_v53 = vld [vmem:[%s11396_s3 + $0x1e0] sm:$0xff] }
 0x73e   : > { %7827 = vrsqrt.f32 %v3589_v17  ;;  %v3410_v13 = vpop.xlane.xlu1 %3409  ;;  %v3527_v27 = vmul.f32 %v10105_v30, %v10105_v30  ;;  %v6107_v17 = vld [vmem:[%s11396_s3 + $0x1e8] sm:$0xff] }
 0x73f   : > { %v7822_v61 = vpop.eup %7821  ;;  %v3464_v39 = vmul.f32 0.0078125, %v3410_v13  ;;  %v3408_v51 = vpop.xlane.xlu0 %3407  ;;  %7123 = vmatprep.mubr.f32.mxu0 %v3729_v16 }
 0x740   : > { %v7824_v15 = vpop.eup %7823  ;;  %v3463_v14 = vmul.f32 0.0078125, %v3408_v51  ;;  %7124 = vmatmul.mubr.f32.gmra.mrb[82].mxu0 %v3730_v59  ;;  %v3652_v60 = vmul.f32 %v7822_v61, %v3492_v24  ;;  %7555 = vmatpush3.bf16.msra.mxu1 %v7552_v2  ;;  %v7560_v61 = vpack.c.bf16 %v6107_v17, %v6106_v53 }
 0x741   : > { %v3560_v46 = vsub.f32 %v3464_v39, %v3528_v34  ;;  %v3651_v19 = vmul.f32 %v7824_v15, %v3491_v43  ;;  %7557 = vmatprep.subr.bf16.mxu1 %v7556_v4  ;;  %v3494_v43 = vsub.f32 %v9855_v32, %v10074_v44  ;;  %v3493_v15 = vsub.f32 %v9857_v11, %v10077_v22 }
 0x742   : > { %v3559_v58 = vsub.f32 %v3463_v14, %v3527_v27  ;;  %v3286_v42 = vpop.xlane.xlu1 %3285  ;;  %v3692_v0 = vmul.f32 %v10046_v63, %v3652_v60 }
 0x743   : > { %v3592_v16 = vadd.f32 1e-05, %v3560_v46  ;;  %v10130_v13 = vmul.f32 0.0078125, %v3286_v42  ;;  %v3284_v56 = vpop.xlane.xlu0 %3283  ;;  %v3691_v24 = vmul.f32 %v10046_v63, %v3651_v19 }
 0x744   : > { %v3591_v59 = vadd.f32 1e-05, %v3559_v58  ;;  %v10133_v31 = vmul.f32 0.0078125, %v3284_v56  ;;  %v3732_v39 = vadd.f32 %v10065_v41, %v3692_v0  ;;  %7559 = vmatpush3.bf16.msra.mxu1 %v7556_v4 }
 0x745   : > { %7829 = vrsqrt.f32 %v3592_v16  ;;  %v3731_v52 = vadd.f32 %v10065_v41, %v3691_v24  ;;  %v3530_v27 = vmul.f32 %v10130_v13, %v10130_v13  ;;  %7561 = vmatprep.subr.bf16.mxu1 %v7560_v61 }
 0x746   : > { %7831 = vrsqrt.f32 %v3591_v59  ;;  %v3414_v34 = vpop.xlane.xlu1 %3413  ;;  %v3529_v46 = vmul.f32 %v10133_v31, %v10133_v31  ;;  %v3496_v59 = vsub.f32 %v9873_v12, %v10102_v23 }
 0x747   : > { %v7826_v51 = vpop.eup %7825  ;;  %v3466_v2 = vmul.f32 0.0078125, %v3414_v34  ;;  %v3412_v14 = vpop.xlane.xlu0 %3411  ;;  %7126 = vmatprep.mubr.f32.mxu0 %v3731_v52 }
 0x748   : > { %v7828_v60 = vpop.eup %7827  ;;  %v3465_v19 = vmul.f32 0.0078125, %v3412_v14  ;;  %7127 = vmatmul.mubr.f32.gmra.mrb[84].mxu0 %v3732_v39  ;;  %v3654_v32 = vmul.f32 %v7826_v51, %v3494_v43  ;;  %7563 = vmatpush3.bf16.msra.mxu1 %v7560_v61  ;;  %v3495_v39 = vsub.f32 %v9875_v45, %v10105_v30 }
 0x749   : > { %v3562_v44 = vsub.f32 %v3466_v2, %v3530_v27  ;;  %v3653_v58 = vmul.f32 %v7828_v60, %v3493_v15 }
 0x74a   : > { %v3561_v42 = vsub.f32 %v3465_v19, %v3529_v46  ;;  %v3290_v0 = vpop.xlane.xlu1 %3289  ;;  %v3694_v11 = vmul.f32 %v10046_v63, %v3654_v32 }
 0x74b   : > { %v3594_v22 = vadd.f32 1e-05, %v3562_v44  ;;  %v10146_v53 = vmul.f32 0.0078125, %v3290_v0  ;;  %v3288_v17 = vpop.xlane.xlu0 %3287  ;;  %v3693_v16 = vmul.f32 %v10046_v63, %v3653_v58 }
 0x74c   : > { %v3593_v56 = vadd.f32 1e-05, %v3561_v42  ;;  %v10149_v24 = vmul.f32 0.0078125, %v3288_v17  ;;  %v3734_v43 = vadd.f32 %v10065_v41, %v3694_v11 }
 0x74d   : > { %7833 = vrsqrt.f32 %v3594_v22  ;;  %v3733_v4 = vadd.f32 %v10065_v41, %v3693_v16  ;;  %v3532_v51 = vmul.f32 %v10146_v53, %v10146_v53  ;;  %v3498_v22 = vsub.f32 %v9897_v49, %v10130_v13 }
 0x74e   : > { %7835 = vrsqrt.f32 %v3593_v56  ;;  %v3418_v52 = vpop.xlane.xlu1 %3417  ;;  %v3531_v2 = vmul.f32 %v10149_v24, %v10149_v24 }
 0x74f   : > { %v7830_v34 = vpop.eup %7829  ;;  %v3468_v15 = vmul.f32 0.0078125, %v3418_v52  ;;  %v3416_v27 = vpop.xlane.xlu0 %3415  ;;  %7129 = vmatprep.mubr.f32.mxu0 %v3733_v4  ;;  %v3497_v4 = vsub.f32 %v9899_v20, %v10133_v31 }
 0x750   : > { %v7832_v61 = vpop.eup %7831  ;;  %v3467_v14 = vmul.f32 0.0078125, %v3416_v27  ;;  %7130 = vmatmul.mubr.f32.gmra.mrb[86].mxu0 %v3734_v43  ;;  %v3656_v12 = vmul.f32 %v7830_v34, %v3496_v59 }
 0x751   : > { %v3564_v23 = vsub.f32 %v3468_v15, %v3532_v51  ;;  %v3655_v60 = vmul.f32 %v7832_v61, %v3495_v39 }
 0x752   : > { %v3563_v46 = vsub.f32 %v3467_v14, %v3531_v2  ;;  %v3294_v19 = vpop.xlane.xlu1 %3293  ;;  %v3696_v32 = vmul.f32 %v10046_v63, %v3656_v12 }
 0x753   : > { %v3596_v45 = vadd.f32 1e-05, %v3564_v23  ;;  %v10162_v30 = vmul.f32 0.0078125, %v3294_v19  ;;  %v3292_v44 = vpop.xlane.xlu0 %3291  ;;  %v3695_v58 = vmul.f32 %v10046_v63, %v3655_v60  ;;  %v3500_v19 = vsub.f32 %v9909_v29, %v10146_v53 }
 0x754   : > { %v3595_v42 = vadd.f32 1e-05, %v3563_v46  ;;  %v10165_v0 = vmul.f32 0.0078125, %v3292_v44  ;;  %v3736_v16 = vadd.f32 %v10065_v41, %v3696_v32 }
 0x755   : > { %7837 = vrsqrt.f32 %v3596_v45  ;;  %v3735_v11 = vadd.f32 %v10065_v41, %v3695_v58  ;;  %v3534_v59 = vmul.f32 %v10162_v30, %v10162_v30  ;;  %v3499_v58 = vsub.f32 %v9911_v1, %v10149_v24 }
 0x756   : > { %7839 = vrsqrt.f32 %v3595_v42  ;;  %v3422_v17 = vpop.xlane.xlu1 %3421  ;;  %v3533_v39 = vmul.f32 %v10165_v0, %v10165_v0 }
 0x757   : > { %v7834_v56 = vpop.eup %7833  ;;  %v3470_v52 = vmul.f32 0.0078125, %v3422_v17  ;;  %v3420_v43 = vpop.xlane.xlu0 %3419  ;;  %7132 = vmatprep.mubr.f32.mxu0 %v3735_v11 }
 0x758   : > { %v7836_v34 = vpop.eup %7835  ;;  %v3469_v51 = vmul.f32 0.0078125, %v3420_v43  ;;  %7133 = vmatmul.mubr.f32.gmra.mrb[88].mxu0 %v3736_v16  ;;  %v3658_v49 = vmul.f32 %v7834_v56, %v3498_v22 }
 0x759   : > { %v3566_v13 = vsub.f32 %v3470_v52, %v3534_v59  ;;  %v3657_v15 = vmul.f32 %v7836_v34, %v3497_v4 }
 0x75a   : > { %v3565_v27 = vsub.f32 %v3469_v51, %v3533_v39  ;;  %v3298_v61 = vpop.xlane.xlu1 %3297  ;;  %v3698_v2 = vmul.f32 %v10046_v63, %v3658_v49 }
 0x75b   : > { %v3598_v20 = vadd.f32 1e-05, %v3566_v13  ;;  %v10178_v31 = vmul.f32 0.0078125, %v3298_v61  ;;  %v3296_v14 = vpop.xlane.xlu0 %3295  ;;  %v3697_v12 = vmul.f32 %v10046_v63, %v3657_v15  ;;  %v3502_v15 = vsub.f32 %v9921_v33, %v10162_v30 }
 0x75c   : > { %v3597_v23 = vadd.f32 1e-05, %v3565_v27  ;;  %v10181_v60 = vmul.f32 0.0078125, %v3296_v14  ;;  %v3738_v45 = vadd.f32 %v10065_v41, %v3698_v2 }
 0x75d   : > { %7841 = vrsqrt.f32 %v3598_v20  ;;  %v3737_v46 = vadd.f32 %v10065_v41, %v3697_v12  ;;  %v3536_v42 = vmul.f32 %v10178_v31, %v10178_v31  ;;  %v3501_v20 = vsub.f32 %v9923_v10, %v10165_v0 }
 0x75e   : > { %7843 = vrsqrt.f32 %v3597_v23  ;;  %v3426_v32 = vpop.xlane.xlu1 %3425  ;;  %v3535_v16 = vmul.f32 %v10181_v60, %v10181_v60 }
 0x75f   : > { %v7838_v44 = vpop.eup %7837  ;;  %v3472_v11 = vmul.f32 0.0078125, %v3426_v32  ;;  %v3424_v22 = vpop.xlane.xlu0 %3423  ;;  %7135 = vmatprep.mubr.f32.mxu0 %v3737_v46 }
 0x760   : > { %v7840_v17 = vpop.eup %7839  ;;  %v3471_v56 = vmul.f32 0.0078125, %v3424_v22  ;;  %7136 = vmatmul.mubr.f32.gmra.mrb[90].mxu0 %v3738_v45  ;;  %v3660_v29 = vmul.f32 %v7838_v44, %v3500_v19 }
 0x761   : > { %v3568_v53 = vsub.f32 %v3472_v11, %v3536_v42  ;;  %v3659_v4 = vmul.f32 %v7840_v17, %v3499_v58 }
 0x762   : > { %v3567_v59 = vsub.f32 %v3471_v56, %v3535_v16  ;;  %v3302_v52 = vpop.xlane.xlu1 %3301  ;;  %v3700_v43 = vmul.f32 %v10046_v63, %v3660_v29  ;;  %v3504_v29 = vsub.f32 %v9933_v21, %v10178_v31 }
 0x763   : > { %v3600_v1 = vadd.f32 1e-05, %v3568_v53  ;;  %v10194_v24 = vmul.f32 0.0078125, %v3302_v52  ;;  %v3300_v34 = vpop.xlane.xlu0 %3299  ;;  %v3699_v39 = vmul.f32 %v10046_v63, %v3659_v4  ;;  %v3503_v52 = vsub.f32 %v9935_v6, %v10181_v60 }
 0x764   : > { %v3599_v51 = vadd.f32 1e-05, %v3567_v59  ;;  %v10197_v49 = vmul.f32 0.0078125, %v3300_v34  ;;  %v3740_v61 = vadd.f32 %v10065_v41, %v3700_v43 }
 0x765   : > { %7845 = vrsqrt.f32 %v3600_v1  ;;  %v3739_v13 = vadd.f32 %v10065_v41, %v3699_v39  ;;  %v3538_v14 = vmul.f32 %v10194_v24, %v10194_v24 }
 0x766   : > { %7847 = vrsqrt.f32 %v3599_v51  ;;  %v3430_v27 = vpop.xlane.xlu1 %3429  ;;  %v3537_v19 = vmul.f32 %v10197_v49, %v10197_v49 }
 0x767   : > { %v7842_v2 = vpop.eup %7841  ;;  %v3474_v12 = vmul.f32 0.0078125, %v3430_v27  ;;  %v3428_v23 = vpop.xlane.xlu0 %3427  ;;  %7138 = vmatprep.mubr.f32.mxu0 %v3739_v13 }
 0x768   : > { %v7844_v46 = vpop.eup %7843  ;;  %v3473_v32 = vmul.f32 0.0078125, %v3428_v23  ;;  %7139 = vmatmul.mubr.f32.gmra.mrb[92].mxu0 %v3740_v61  ;;  %v3662_v33 = vmul.f32 %v7842_v2, %v3502_v15 }
 0x769   : > { %v3570_v30 = vsub.f32 %v3474_v12, %v3538_v14  ;;  %v3661_v45 = vmul.f32 %v7844_v46, %v3501_v20 }
 0x76a   : > { %v3569_v44 = vsub.f32 %v3473_v32, %v3537_v19  ;;  %v3306_v58 = vpop.xlane.xlu1 %3305  ;;  %v3702_v42 = vmul.f32 %v10046_v63, %v3662_v33  ;;  %v3506_v19 = vsub.f32 %v9945_v26, %v10194_v24 }
 0x76b   : > { %v3602_v10 = vadd.f32 1e-05, %v3570_v30  ;;  %v10210_v0 = vmul.f32 0.0078125, %v3306_v58  ;;  %v3304_v11 = vpop.xlane.xlu0 %3303  ;;  %v3701_v22 = vmul.f32 %v10046_v63, %v3661_v45  ;;  %v3505_v45 = vsub.f32 %v9947_v3, %v10197_v49 }
 0x76c   : > { %v3601_v17 = vadd.f32 1e-05, %v3569_v44  ;;  %v10213_v16 = vmul.f32 0.0078125, %v3304_v11  ;;  %v3742_v4 = vadd.f32 %v10065_v41, %v3702_v42 }
 0x76d   : > { %7849 = vrsqrt.f32 %v3602_v10  ;;  %v3741_v56 = vadd.f32 %v10065_v41, %v3701_v22  ;;  %v3540_v43 = vmul.f32 %v10210_v0, %v10210_v0 }
 0x76e   : > { %7851 = vrsqrt.f32 %v3601_v17  ;;  %v3434_v53 = vpop.xlane.xlu1 %3433  ;;  %v3539_v51 = vmul.f32 %v10213_v16, %v10213_v16 }
 0x76f   : > { %v7846_v59 = vpop.eup %7845  ;;  %v3476_v1 = vmul.f32 0.0078125, %v3434_v53  ;;  %v3432_v34 = vpop.xlane.xlu0 %3431  ;;  %7141 = vmatprep.mubr.f32.mxu0 %v3741_v56 }
 0x770   : > { %v7848_v39 = vpop.eup %7847  ;;  %v3475_v13 = vmul.f32 0.0078125, %v3432_v34  ;;  %7142 = vmatmul.mubr.f32.gmra.mrb[94].mxu0 %v3742_v4  ;;  %v3664_v21 = vmul.f32 %v7846_v59, %v3504_v29  ;;  %v3508_v34 = vsub.f32 %v9957_v18, %v10210_v0 }
 0x771   : > { %v3572_v31 = vsub.f32 %v3476_v1, %v3540_v43  ;;  %v3663_v15 = vmul.f32 %v7848_v39, %v3503_v52 }
 0x772   : > { %v3571_v27 = vsub.f32 %v3475_v13, %v3539_v51  ;;  %v3310_v61 = vpop.xlane.xlu1 %3309  ;;  %v3704_v2 = vmul.f32 %v10046_v63, %v3664_v21  ;;  %v3507_v21 = vsub.f32 %v9959_v38, %v10213_v16 }
 0x773   : > { %v3604_v6 = vadd.f32 1e-05, %v3572_v31  ;;  %v10226_v60 = vmul.f32 0.0078125, %v3310_v61  ;;  %v3308_v20 = vpop.xlane.xlu0 %3307  ;;  %v3703_v14 = vmul.f32 %v10046_v63, %v3663_v15 }
 0x774   : > { %v3603_v12 = vadd.f32 1e-05, %v3571_v27  ;;  %v10229_v23 = vmul.f32 0.0078125, %v3308_v20  ;;  %v3744_v33 = vadd.f32 %v10065_v41, %v3704_v2 }
 0x775   : > { %7853 = vrsqrt.f32 %v3604_v6  ;;  %v3743_v46 = vadd.f32 %v10065_v41, %v3703_v14  ;;  %v3542_v44 = vmul.f32 %v10226_v60, %v10226_v60 }
 0x776   : > { %7855 = vrsqrt.f32 %v3603_v12  ;;  %v3438_v32 = vpop.xlane.xlu1 %3437  ;;  %v3541_v11 = vmul.f32 %v10229_v23, %v10229_v23 }
 0x777   : > { %v7850_v30 = vpop.eup %7849  ;;  %v3478_v58 = vmul.f32 0.0078125, %v3438_v32  ;;  %v3436_v42 = vpop.xlane.xlu0 %3435  ;;  %7144 = vmatprep.mubr.f32.mxu0 %v3743_v46 }
 0x778   : > { %v7852_v10 = vpop.eup %7851  ;;  %v3477_v22 = vmul.f32 0.0078125, %v3436_v42  ;;  %7145 = vmatmul.mubr.f32.gmra.mrb[96].mxu0 %v3744_v33  ;;  %v3666_v26 = vmul.f32 %v7850_v30, %v3506_v19 }
 0x779   : > { %v3574_v24 = vsub.f32 %v3478_v58, %v3542_v44  ;;  %v3665_v17 = vmul.f32 %v7852_v10, %v3505_v45  ;;  %v3510_v44 = vsub.f32 %v9969_v40, %v10226_v60 }
 0x77a   : > { %v3573_v56 = vsub.f32 %v3477_v22, %v3541_v11  ;;  %v3314_v29 = vpop.xlane.xlu1 %3313  ;;  %v3706_v53 = vmul.f32 %v10046_v63, %v3666_v26  ;;  %v3509_v11 = vsub.f32 %v9971_v55, %v10229_v23 }
 0x77b   : > { %v3606_v3 = vadd.f32 1e-05, %v3574_v24  ;;  %v10242_v49 = vmul.f32 0.0078125, %v3314_v29  ;;  %v3312_v4 = vpop.xlane.xlu0 %3311  ;;  %v3705_v59 = vmul.f32 %v10046_v63, %v3665_v17 }
 0x77c   : > { %v3605_v52 = vadd.f32 1e-05, %v3573_v56  ;;  %v10245_v43 = vmul.f32 0.0078125, %v3312_v4  ;;  %v3746_v51 = vadd.f32 %v10065_v41, %v3706_v53 }
 0x77d   : > { %7857 = vrsqrt.f32 %v3606_v3  ;;  %v3745_v1 = vadd.f32 %v10065_v41, %v3705_v59  ;;  %v3544_v31 = vmul.f32 %v10242_v49, %v10242_v49 }
 0x77e   : > { %7859 = vrsqrt.f32 %v3605_v52  ;;  %v3442_v39 = vpop.xlane.xlu1 %3441  ;;  %v3543_v2 = vmul.f32 %v10245_v43, %v10245_v43 }
 0x77f   : > { %v7854_v13 = vpop.eup %7853  ;;  %v3480_v15 = vmul.f32 0.0078125, %v3442_v39  ;;  %v3440_v27 = vpop.xlane.xlu0 %3439  ;;  %7147 = vmatprep.mubr.f32.mxu0 %v3745_v1 }
 0x780   : > { %v7856_v61 = vpop.eup %7855  ;;  %v3479_v6 = vmul.f32 0.0078125, %v3440_v27  ;;  %7148 = vmatmul.mubr.f32.gmra.mrb[98].mxu0 %v3746_v51  ;;  %v3668_v18 = vmul.f32 %v7854_v13, %v3508_v34  ;;  %v6108_v51 = vld [vmem:[%s11396_s3 + $0x1f0] sm:$0xff]  ;;  %v6109_v13 = vld [vmem:[%s11396_s3 + $0x1f8] sm:$0xff] }
 0x781   : > { %v3576_v0 = vsub.f32 %v3480_v15, %v3544_v31  ;;  %v3667_v20 = vmul.f32 %v7856_v61, %v3507_v21  ;;  %v3512_v31 = vsub.f32 %v9981_v47, %v10242_v49  ;;  %v7564_v61 = vpack.c.bf16 %v6109_v13, %v6108_v51 }
 0x782   : > { %v3575_v14 = vsub.f32 %v3479_v6, %v3543_v2  ;;  %v3318_v12 = vpop.xlane.xlu1 %3317  ;;  %v3708_v46 = vmul.f32 %v10046_v63, %v3668_v18  ;;  %v3511_v6 = vsub.f32 %v9983_v8, %v10245_v43 }
 0x783   : > { %v3608_v38 = vadd.f32 1e-05, %v3576_v0  ;;  %v10258_v16 = vmul.f32 0.0078125, %v3318_v12  ;;  %v3316_v19 = vpop.xlane.xlu0 %3315  ;;  %v3707_v32 = vmul.f32 %v10046_v63, %v3667_v20  ;;  %7565 = vmatprep.subr.bf16.mxu1 %v7564_v61 }
 0x784   : > { %v3607_v33 = vadd.f32 1e-05, %v3575_v14  ;;  %v10261_v30 = vmul.f32 0.0078125, %v3316_v19  ;;  %v3748_v42 = vadd.f32 %v10065_v41, %v3708_v46  ;;  %7567 = vmatpush3.bf16.msra.mxu1 %v7564_v61 }
 0x785   : > { %7861 = vrsqrt.f32 %v3608_v38  ;;  %v3747_v45 = vadd.f32 %v10065_v41, %v3707_v32  ;;  %v3546_v22 = vmul.f32 %v10258_v16, %v10258_v16 }
 0x786   : > { %7863 = vrsqrt.f32 %v3607_v33  ;;  %v3446_v58 = vpop.xlane.xlu1 %3445  ;;  %v3545_v56 = vmul.f32 %v10261_v30, %v10261_v30 }
 0x787   : > { %v7858_v10 = vpop.eup %7857  ;;  %v3482_v26 = vmul.f32 0.0078125, %v3446_v58  ;;  %v3444_v24 = vpop.xlane.xlu0 %3443  ;;  %7150 = vmatprep.mubr.f32.mxu0 %v3747_v45 }
 0x788   : > { %v7860_v17 = vpop.eup %7859  ;;  %v3481_v29 = vmul.f32 0.0078125, %v3444_v24  ;;  %7151 = vmatmul.mubr.f32.gmra.mrb[100].mxu0 %v3748_v42  ;;  %v3670_v40 = vmul.f32 %v7858_v10, %v3510_v44 }
 0x789   : > { %v3578_v60 = vsub.f32 %v3482_v26, %v3546_v22  ;;  %v3669_v53 = vmul.f32 %v7860_v17, %v3509_v11  ;;  %v3514_v11 = vsub.f32 %v9993_v50, %v10258_v16  ;;  %v3513_v17 = vsub.f32 %v9995_v48, %v10261_v30 }
 0x78a   : > { %v3577_v3 = vsub.f32 %v3481_v29, %v3545_v56  ;;  %v3322_v4 = vpop.xlane.xlu1 %3321  ;;  %v3710_v59 = vmul.f32 %v10046_v63, %v3670_v40 }
 0x78b   : > { %v3610_v55 = vadd.f32 1e-05, %v3578_v60  ;;  %v10274_v23 = vmul.f32 0.0078125, %v3322_v4  ;;  %v3320_v52 = vpop.xlane.xlu0 %3319  ;;  %v3709_v1 = vmul.f32 %v10046_v63, %v3669_v53 }
 0x78c   : > { %v3609_v34 = vadd.f32 1e-05, %v3577_v3  ;;  %v10277_v39 = vmul.f32 0.0078125, %v3320_v52  ;;  %v3750_v27 = vadd.f32 %v10065_v41, %v3710_v59 }
 0x78d   : > { %7865 = vrsqrt.f32 %v3610_v55  ;;  %v3749_v21 = vadd.f32 %v10065_v41, %v3709_v1  ;;  %v3548_v18 = vmul.f32 %v10274_v23, %v10274_v23  ;;  %v3516_v30 = vsub.f32 %v10005_v36, %v10274_v23 }
 0x78e   : > { %7867 = vrsqrt.f32 %v3609_v34  ;;  %v3450_v15 = vpop.xlane.xlu1 %3449  ;;  %v3547_v12 = vmul.f32 %v10277_v39, %v10277_v39 }
 0x78f   : > { %v7862_v2 = vpop.eup %7861  ;;  %v3484_v0 = vmul.f32 0.0078125, %v3450_v15  ;;  %v3448_v20 = vpop.xlane.xlu0 %3447  ;;  %7153 = vmatprep.mubr.f32.mxu0 %v3749_v21  ;;  %v3515_v21 = vsub.f32 %v10007_v5, %v10277_v39 }
 0x790   : > { %v7864_v14 = vpop.eup %7863  ;;  %v3483_v47 = vmul.f32 0.0078125, %v3448_v20  ;;  %7154 = vmatmul.mubr.f32.gmra.mrb[102].mxu0 %v3750_v27  ;;  %v3672_v49 = vmul.f32 %v7862_v2, %v3512_v31 }
 0x791   : > { %v3580_v46 = vsub.f32 %v3484_v0, %v3548_v18  ;;  %v3671_v38 = vmul.f32 %v7864_v14, %v3511_v6 }
 0x792   : > { %v3579_v19 = vsub.f32 %v3483_v47, %v3547_v12  ;;  %v3326_v32 = vpop.xlane.xlu1 %3325  ;;  %v3712_v8 = vmul.f32 %v10046_v63, %v3672_v49 }
 0x793   : > { %v3612_v43 = vadd.f32 1e-05, %v3580_v46  ;;  %v3358_v33 = vmul.f32 0.0078125, %v3326_v32  ;;  %v3324_v45 = vpop.xlane.xlu0 %3323  ;;  %v3711_v44 = vmul.f32 %v10046_v63, %v3671_v38 }
 0x794   : > { %v3611_v58 = vadd.f32 1e-05, %v3579_v19  ;;  %v3357_v42 = vmul.f32 0.0078125, %v3324_v45  ;;  %v3752_v26 = vadd.f32 %v10065_v41, %v3712_v8 }
 0x795   : > { %7869 = vrsqrt.f32 %v3612_v43  ;;  %v3751_v10 = vadd.f32 %v10065_v41, %v3711_v44  ;;  %v3550_v56 = vmul.f32 %v3358_v33, %v3358_v33  ;;  %v3518_v36 = vsub.f32 %v10017_v35, %v3358_v33  ;;  %v10324_v35 = vld [vmem:[%s11401_s8 + $0x2] ss:$0 sm:$0xff] }
 0x796   : > { %7871 = vrsqrt.f32 %v3611_v58  ;;  %v3454_v22 = vpop.xlane.xlu1 %3453  ;;  %v3549_v53 = vmul.f32 %v3357_v42, %v3357_v42  ;;  %v3517_v0 = vsub.f32 %v10019_v62, %v3357_v42 }
 0x797   : > { %v7866_v24 = vpop.eup %7865  ;;  %v3486_v29 = vmul.f32 0.0078125, %v3454_v22  ;;  %v3452_v40 = vpop.xlane.xlu0 %3451  ;;  %7156 = vmatprep.mubr.f32.mxu0 %v3751_v10 }
 0x798   : > { %v7868_v60 = vpop.eup %7867  ;;  %v3485_v3 = vmul.f32 0.0078125, %v3452_v40  ;;  %7157 = vmatmul.mubr.f32.gmra.mrb[104].mxu0 %v3752_v26  ;;  %v3674_v4 = vmul.f32 %v7866_v24, %v3514_v11 }
 0x799   : > { %v3582_v59 = vsub.f32 %v3486_v29, %v3550_v56  ;;  %v3673_v55 = vmul.f32 %v7868_v60, %v3513_v17  ;;  %v11633_v17 = vld [vmem:[#allocation3_spill] sm:$0xff]  ;;  %v11634_v60 = vld [vmem:[#allocation5_spill] sm:$0xff] }
 0x79a   : > { %v3581_v50 = vsub.f32 %v3485_v3, %v3549_v53  ;;  %v3714_v16 = vmul.f32 %v10046_v63, %v3674_v4  ;;  %v11636_v3 = vld [vmem:[#allocation4_spill] sm:$0xff] }
 0x79b   : > { %v3614_v52 = vadd.f32 1e-05, %v3582_v59  ;;  %v3713_v1 = vmul.f32 %v10046_v63, %v3673_v55 }
 0x79c   : > { %v3613_v34 = vadd.f32 1e-05, %v3581_v50  ;;  %v3754_v51 = vadd.f32 %v10065_v41, %v3714_v16  ;;  %v11638_v16 = vld [vmem:[#allocation7_spill] sm:$0xff] }
 0x79d   : > { %7873 = vrsqrt.f32 %v3614_v52  ;;  %v3753_v48 = vadd.f32 %v10065_v41, %v3713_v1  ;;  %v11640_v1 = vld [vmem:[#allocation6_spill] sm:$0xff] }
 0x79e   : > { %7875 = vrsqrt.f32 %v3613_v34 }
 0x79f   : > { %v7870_v13 = vpop.eup %7869  ;;  %7159 = vmatprep.mubr.f32.mxu0 %v3753_v48 }
 0x7a0   : > { %v7872_v31 = vpop.eup %7871  ;;  %7160 = vmatmul.mubr.f32.gmra.mrb[106].mxu0 %v3754_v51  ;;  %v3676_v15 = vmul.f32 %v7870_v13, %v3516_v30 }
 0x7a1   : > { %v3675_v27 = vmul.f32 %v7872_v31, %v3515_v21  ;;  %v11642_v21 = vld [vmem:[#allocation9_spill] sm:$0xff] }
 0x7a2   : > { %v3716_v61 = vmul.f32 %v10046_v63, %v3676_v15  ;;  %v11644_v15 = vld [vmem:[#allocation8_spill] sm:$0xff] }
 0x7a3   : > { %v3715_v2 = vmul.f32 %v10046_v63, %v3675_v27 }
 0x7a4   : > { %v3756_v23 = vadd.f32 %v10065_v41, %v3716_v61 }
 0x7a5   : > { %v3755_v6 = vadd.f32 %v10065_v41, %v3715_v2 }
 0x7a7   : > { %v7874_v18 = vpop.eup %7873  ;;  %7162 = vmatprep.mubr.f32.mxu0 %v3755_v6 }
 0x7a8   : > { %v7876_v5 = vpop.eup %7875  ;;  %7163 = vmatmul.mubr.f32.gmra.mrb[108].mxu0 %v3756_v23  ;;  %v3678_v39 = vmul.f32 %v7874_v18, %v3518_v36  ;;  %v11646_v23 = vld [vmem:[#allocation11_spill] sm:$0xff] }
 0x7a9   : > { %v3677_v20 = vmul.f32 %v7876_v5, %v3517_v0  ;;  %v11648_v0 = vld [vmem:[#allocation10_spill] sm:$0xff] }
 0x7aa   : > { %v3718_v14 = vmul.f32 %v10046_v63, %v3678_v39 }
 0x7ab   : > { %v3717_v12 = vmul.f32 %v10046_v63, %v3677_v20 }
 0x7ac   : > { %v3758_v49 = vadd.f32 %v10065_v41, %v3718_v14 }
 0x7ad   : > { %v3757_v47 = vadd.f32 %v10065_v41, %v3717_v12 }
 0x7af   : > { %7165 = vmatprep.mubr.f32.mxu0 %v3757_v47  ;;  %v11650_v47 = vld [vmem:[#allocation12_spill] sm:$0xff] }
 0x7b0   : > { %7166 = vmatmul.mubr.f32.gmra.mrb[110].mxu0 %v3758_v49 }
 0x80b   : > { %v7122_v62 = vpop.f32.mrb[80].mxu0 }
 0x80c   : > { %v3856_v46 = vadd.f32 %v7122_v62, %v10324_v35  ;;  %v3850_v38 = vpop.f32.mrb[81].mxu0  ;;  %v11652_v62 = vld [vmem:[#allocation13_spill] sm:$0xff] }
 0x80d   : > { %v3851_v19 = vadd.f32 %v10324_v35, %v3850_v38 }
 0x80e   : > { %v10332_v63 = vadd.f32 %v3856_v46, %v9628_v28 }
 0x80f   : > { %v10329_v32 = vadd.f32 %v3851_v19, %v9625_v25 }
 0x811   : > { %7200 = vmatprep.mubr.f32.mxu1 %v10329_v32 }
 0x812   : > { %7201 = vmatmul.mubr.f32.vlgmr.msra.gmra.mrb[112].mxu1 %v10332_v63 }
 0x813   : > { %v7125_v41 = vpop.f32.mrb[82].mxu0 }
 0x814   : > { %v3866_v8 = vadd.f32 %v7125_v41, %v10324_v35  ;;  %v3860_v43 = vpop.f32.mrb[83].mxu0 }
 0x815   : > { %v3861_v33 = vadd.f32 %v10324_v35, %v3860_v43  ;;  %v11654_v43 = vld [vmem:[#allocation14_spill] sm:$0xff] }
 0x816   : > { %v10342_v44 = vadd.f32 %v3866_v8, %v9638_v57 }
 0x817   : > { %v10339_v45 = vadd.f32 %v3861_v33, %v9635_v9 }
 0x819   : > { %7203 = vmatprep.mubr.f32.mxu1 %v10339_v45 }
 0x81a   : > { %7204 = vmatmul.mubr.f32.gmra.mrb[114].mxu1 %v10342_v44 }
 0x81b   : > { %v7128_v25 = vpop.f32.mrb[84].mxu0 }
 0x81c   : > { %v3876_v28 = vadd.f32 %v7128_v25, %v10324_v35  ;;  %v3870_v58 = vpop.f32.mrb[85].mxu0  ;;  %v11656_v25 = vld [vmem:[#allocation15_spill] sm:$0xff] }
 0x81d   : > { %v3871_v42 = vadd.f32 %v10324_v35, %v3870_v58 }
 0x81e   : > { %v10352_v11 = vadd.f32 %v3876_v28, %v9648_v37 }
 0x81f   : > { %v10349_v10 = vadd.f32 %v3871_v42, %v9645_v54 }
 0x821   : > { %7206 = vmatprep.mubr.f32.mxu1 %v10349_v10 }
 0x822   : > { %7207 = vmatmul.mubr.f32.gmra.mrb[116].mxu1 %v10352_v11 }
 0x823   : > { %v7131_v9 = vpop.f32.mrb[86].mxu0 }
 0x824   : > { %v3886_v57 = vadd.f32 %v7131_v9, %v10324_v35  ;;  %v3880_v22 = vpop.f32.mrb[87].mxu0 }
 0x825   : > { %v3881_v26 = vadd.f32 %v10324_v35, %v3880_v22  ;;  %v11658_v22 = vld [vmem:[#allocation16_spill] sm:$0xff] }
 0x826   : > { %v10362_v56 = vadd.f32 %v3886_v57, %v11633_v17  ;;  %v11660_v17 = vld [vmem:[#allocation17_spill] sm:$0xff] }
 0x827   : > { %v10359_v24 = vadd.f32 %v3881_v26, %v9655_v7 }
 0x829   : > { %7209 = vmatprep.mubr.f32.mxu1 %v10359_v24 }
 0x82a   : > { %7210 = vmatmul.mubr.f32.gmra.mrb[118].mxu1 %v10362_v56 }
 0x82b   : > { %v7134_v54 = vpop.f32.mrb[88].mxu0 }
 0x82c   : > { %v3896_v37 = vadd.f32 %v7134_v54, %v10324_v35  ;;  %v3890_v29 = vpop.f32.mrb[89].mxu0 }
 0x82d   : > { %v3891_v40 = vadd.f32 %v10324_v35, %v3890_v29 }
 0x82e   : > { %v10372_v4 = vadd.f32 %v3896_v37, %v11636_v3  ;;  %v11662_v3 = vld [vmem:[#allocation18_spill] sm:$0xff] }
 0x82f   : > { %v10369_v53 = vadd.f32 %v3891_v40, %v11634_v60 }
 0x830   : > { %11637 = vst [vmem:[#allocation5_spill] sm:$0xff] %v10372_v4 }
 0x831   : > { %11635 = vst [vmem:[#allocation3_spill] sm:$0xff] %v10369_v53  ;;  %7212 = vmatprep.mubr.f32.mxu1 %v10369_v53 }
 0x832   : > { %7213 = vmatmul.mubr.f32.gmra.mrb[120].mxu1 %v10372_v4 }
 0x833   : > { %v7137_v7 = vpop.f32.mrb[90].mxu0 }
 0x834   : > { %v3906_v59 = vadd.f32 %v7137_v7, %v10324_v35  ;;  %v3900_v55 = vpop.f32.mrb[91].mxu0 }
 0x835   : > { %v3901_v50 = vadd.f32 %v10324_v35, %v3900_v55 }
 0x836   : > { %v10382_v34 = vadd.f32 %v3906_v59, %v11640_v1  ;;  %v11664_v59 = vld [vmem:[#allocation19_spill] sm:$0xff] }
 0x837   : > { %v10379_v52 = vadd.f32 %v3901_v50, %v11638_v16 }
 0x838   : > { %11641 = vst [vmem:[#allocation7_spill] sm:$0xff] %v10382_v34 }
 0x839   : > { %11639 = vst [vmem:[#allocation4_spill] sm:$0xff] %v10379_v52  ;;  %7215 = vmatprep.mubr.f32.mxu1 %v10379_v52 }
 0x83a   : > { %7216 = vmatmul.mubr.f32.gmra.mrb[122].mxu1 %v10382_v34 }
 0x83b   : > { %v7140_v48 = vpop.f32.mrb[92].mxu0 }
 0x83c   : > { %v3916_v30 = vadd.f32 %v7140_v48, %v10324_v35  ;;  %v3910_v51 = vpop.f32.mrb[93].mxu0 }
 0x83d   : > { %v3911_v13 = vadd.f32 %v10324_v35, %v3910_v51 }
 0x83e   : > { %v10392_v27 = vadd.f32 %v3916_v30, %v11644_v15  ;;  %v11666_v30 = vld [vmem:[#allocation20_spill] sm:$0xff] }
 0x83f   : > { %v10389_v31 = vadd.f32 %v3911_v13, %v11642_v21  ;;  %v11668_v13 = vld [vmem:[#allocation21_spill] sm:$0xff] }
 0x840   : > { %11645 = vst [vmem:[#allocation9_spill] sm:$0xff] %v10392_v27 }
 0x841   : > { %11643 = vst [vmem:[#allocation6_spill] sm:$0xff] %v10389_v31  ;;  %7218 = vmatprep.mubr.f32.mxu1 %v10389_v31 }
 0x842   : > { %7219 = vmatmul.mubr.f32.gmra.mrb[124].mxu1 %v10392_v27 }
 0x843   : > { %v7143_v61 = vpop.f32.mrb[94].mxu0 }
 0x844   : > { %v3926_v2 = vadd.f32 %v7143_v61, %v10324_v35  ;;  %v3920_v6 = vpop.f32.mrb[95].mxu0 }
 0x845   : > { %v3921_v36 = vadd.f32 %v10324_v35, %v3920_v6 }
 0x846   : > { %v10402_v5 = vadd.f32 %v3926_v2, %v11648_v0  ;;  %v11672_v0 = vld [vmem:[#allocation23_spill] sm:$0xff] }
 0x847   : > { %v10399_v18 = vadd.f32 %v3921_v36, %v11646_v23  ;;  %v11670_v36 = vld [vmem:[#allocation22_spill] sm:$0xff] }
 0x848   : > { %11649 = vst [vmem:[#allocation11_spill] sm:$0xff] %v10402_v5 }
 0x849   : > { %11647 = vst [vmem:[#allocation8_spill] sm:$0xff] %v10399_v18  ;;  %7221 = vmatprep.mubr.f32.mxu1 %v10399_v18 }
 0x84a   : > { %7222 = vmatmul.mubr.f32.gmra.mrb[126].mxu1 %v10402_v5 }
 0x84b   : > { %v7146_v39 = vpop.f32.mrb[96].mxu0 }
 0x84c   : > { %v3936_v20 = vadd.f32 %v7146_v39, %v10324_v35  ;;  %v3930_v14 = vpop.f32.mrb[97].mxu0 }
 0x84d   : > { %v3931_v12 = vadd.f32 %v10324_v35, %v3930_v14 }
 0x84e   : > { %v10412_v46 = vadd.f32 %v3936_v20, %v11652_v62  ;;  %v11674_v62 = vld [vmem:[#allocation24_spill] sm:$0xff] }
 0x84f   : > { %v10409_v49 = vadd.f32 %v3931_v12, %v11650_v47 }
 0x850   : > { %11653 = vst [vmem:[#allocation12_spill] sm:$0xff] %v10412_v46 }
 0x851   : > { %11651 = vst [vmem:[#allocation10_spill] sm:$0xff] %v10409_v49  ;;  %7224 = vmatprep.mubr.f32.mxu1 %v10409_v49 }
 0x852   : > { %7225 = vmatmul.mubr.f32.gmra.mrb[128].mxu1 %v10412_v46 }
 0x853   : > { %v7149_v38 = vpop.f32.mrb[98].mxu0 }
 0x854   : > { %v3946_v19 = vadd.f32 %v7149_v38, %v10324_v35  ;;  %v3940_v41 = vpop.f32.mrb[99].mxu0 }
 0x855   : > { %v3941_v8 = vadd.f32 %v10324_v35, %v3940_v41 }
 0x856   : > { %v10422_v28 = vadd.f32 %v3946_v19, %v11656_v25  ;;  %v11676_v19 = vld [vmem:[#allocation25_spill] sm:$0xff] }
 0x857   : > { %v10419_v33 = vadd.f32 %v3941_v8, %v11654_v43 }
 0x858   : > { %11657 = vst [vmem:[#allocation14_spill] sm:$0xff] %v10422_v28 }
 0x859   : > { %11655 = vst [vmem:[#allocation13_spill] sm:$0xff] %v10419_v33  ;;  %7227 = vmatprep.mubr.f32.mxu1 %v10419_v33 }
 0x85a   : > { %7228 = vmatmul.mubr.f32.gmra.mrb[130].mxu1 %v10422_v28 }
 0x85b   : > { %v7152_v58 = vpop.f32.mrb[100].mxu0 }
 0x85c   : > { %v3956_v42 = vadd.f32 %v7152_v58, %v10324_v35  ;;  %v3950_v9 = vpop.f32.mrb[101].mxu0 }
 0x85d   : > { %v3951_v57 = vadd.f32 %v10324_v35, %v3950_v9 }
 0x85e   : > { %v10432_v54 = vadd.f32 %v3956_v42, %v11660_v17  ;;  %v11678_v42 = vld [vmem:[#allocation26_spill] sm:$0xff]  ;;  %v10489_v17 = vld [vmem:[%s11397_s4 + $0x3] ss:$0 sm:$0xff] }
 0x85f   : > { %v10429_v26 = vadd.f32 %v3951_v57, %v11658_v22  ;;  %v11680_v57 = vld [vmem:[#allocation27_spill] sm:$0xff] }
 0x860   : > { %11661 = vst [vmem:[#allocation16_spill] sm:$0xff] %v10432_v54 }
 0x861   : > { %11659 = vst [vmem:[#allocation15_spill] sm:$0xff] %v10429_v26  ;;  %7230 = vmatprep.mubr.f32.mxu1 %v10429_v26 }
 0x862   : > { %7231 = vmatmul.mubr.f32.gmra.mrb[132].mxu1 %v10432_v54 }
 0x863   : > { %v7155_v37 = vpop.f32.mrb[102].mxu0 }
 0x864   : > { %v3966_v29 = vadd.f32 %v7155_v37, %v10324_v35  ;;  %v3960_v40 = vpop.f32.mrb[103].mxu0 }
 0x865   : > { %v3961_v60 = vadd.f32 %v10324_v35, %v3960_v40 }
 0x866   : > { %v10442_v55 = vadd.f32 %v3966_v29, %v11664_v59 }
 0x867   : > { %v10439_v7 = vadd.f32 %v3961_v60, %v11662_v3  ;;  %v6116_v60 = vld [vmem:[%s11400_s7 + $0x180] sm:$0xff]  ;;  %v6117_v3 = vld [vmem:[%s11400_s7 + $0x188] sm:$0xff] }
 0x868   : > { %11665 = vst [vmem:[#allocation18_spill] sm:$0xff] %v10442_v55 }
 0x869   : > { %11663 = vst [vmem:[#allocation17_spill] sm:$0xff] %v10439_v7  ;;  %7233 = vmatprep.mubr.f32.mxu1 %v10439_v7 }
 0x86a   : > { %7234 = vmatmul.mubr.f32.gmra.mrb[134].mxu1 %v10442_v55 }
 0x86b   : > { %v7158_v50 = vpop.f32.mrb[104].mxu0 }
 0x86c   : > { %v3976_v16 = vadd.f32 %v7158_v50, %v10324_v35  ;;  %v3970_v1 = vpop.f32.mrb[105].mxu0  ;;  %v7568_v50 = vpack.c.bf16 %v6117_v3, %v6116_v60 }
 0x86d   : > { %v3971_v48 = vadd.f32 %v10324_v35, %v3970_v1 }
 0x86e   : > { %v10452_v21 = vadd.f32 %v3976_v16, %v11668_v13  ;;  %7569 = vmatprep.subr.bf16.mxu0 %v7568_v50 }
 0x86f   : > { %v10449_v51 = vadd.f32 %v3971_v48, %v11666_v30  ;;  %7571 = vmatpush3.bf16.msra.mxu0 %v7568_v50  ;;  %v6122_v50 = vld [vmem:[%s11400_s7 + $0x1b0] sm:$0xff] }
 0x870   : > { %11669 = vst [vmem:[#allocation20_spill] sm:$0xff] %v10452_v21 }
 0x871   : > { %11667 = vst [vmem:[#allocation19_spill] sm:$0xff] %v10449_v51  ;;  %7236 = vmatprep.mubr.f32.mxu1 %v10449_v51 }
 0x872   : > { %7237 = vmatmul.mubr.f32.gmra.mrb[136].mxu1 %v10452_v21 }
 0x873   : > { %v7161_v15 = vpop.f32.mrb[106].mxu0 }
 0x874   : > { %v3986_v61 = vadd.f32 %v7161_v15, %v10324_v35  ;;  %v3980_v2 = vpop.f32.mrb[107].mxu0 }
 0x875   : > { %v3981_v6 = vadd.f32 %v10324_v35, %v3980_v2 }
 0x876   : > { %v10462_v39 = vadd.f32 %v3986_v61, %v11672_v0 }
 0x877   : > { %v10459_v23 = vadd.f32 %v3981_v6, %v11670_v36 }
 0x878   : > { %11673 = vst [vmem:[#allocation22_spill] sm:$0xff] %v10462_v39 }
 0x879   : > { %11671 = vst [vmem:[#allocation21_spill] sm:$0xff] %v10459_v23  ;;  %7239 = vmatprep.mubr.f32.mxu1 %v10459_v23 }
 0x87a   : > { %7240 = vmatmul.mubr.f32.gmra.mrb[138].mxu1 %v10462_v39 }
 0x87b   : > { %v7164_v20 = vpop.f32.mrb[108].mxu0 }
 0x87c   : > { %v3996_v14 = vadd.f32 %v7164_v20, %v10324_v35  ;;  %v3990_v12 = vpop.f32.mrb[109].mxu0 }
 0x87d   : > { %v3991_v47 = vadd.f32 %v10324_v35, %v3990_v12 }
 0x87e   : > { %v10472_v41 = vadd.f32 %v3996_v14, %v11676_v19  ;;  %v6119_v19 = vld [vmem:[%s11400_s7 + $0x198] sm:$0xff] }
 0x87f   : > { %v10469_v38 = vadd.f32 %v3991_v47, %v11674_v62  ;;  %v6118_v62 = vld [vmem:[%s11400_s7 + $0x190] sm:$0xff] }
 0x880   : > { %11677 = vst [vmem:[#allocation24_spill] sm:$0xff] %v10472_v41 }
 0x881   : > { %11675 = vst [vmem:[#allocation23_spill] sm:$0xff] %v10469_v38  ;;  %7242 = vmatprep.mubr.f32.mxu1 %v10469_v38 }
 0x882   : > { %7243 = vmatmul.mubr.f32.gmra.mrb[140].mxu1 %v10472_v41 }
 0x883   : > { %v7167_v8 = vpop.f32.mrb[110].mxu0 }
 0x884   : > { %v4006_v43 = vadd.f32 %v7167_v8, %v10324_v35  ;;  %v4000_v25 = vpop.f32.mrb[111].mxu0 }
 0x885   : > { %v4001_v58 = vadd.f32 %v10324_v35, %v4000_v25 }
 0x886   : > { %v10482_v22 = vadd.f32 %v4006_v43, %v11680_v57  ;;  %v7572_v43 = vpack.c.bf16 %v6119_v19, %v6118_v62  ;;  %v6126_v19 = vld [vmem:[%s11400_s7 + $0x1d0] sm:$0xff] }
 0x887   : > { %v10479_v9 = vadd.f32 %v4001_v58, %v11678_v42  ;;  %v6120_v58 = vld [vmem:[%s11400_s7 + $0x1a0] sm:$0xff]  ;;  %v6121_v42 = vld [vmem:[%s11400_s7 + $0x1a8] sm:$0xff] }
 0x888   : > { %11681 = vst [vmem:[#allocation26_spill] sm:$0xff] %v10482_v22  ;;  %7573 = vmatprep.subr.bf16.mxu0 %v7572_v43 }
 0x889   : > { %11679 = vst [vmem:[#allocation25_spill] sm:$0xff] %v10479_v9  ;;  %7245 = vmatprep.mubr.f32.mxu1 %v10479_v9  ;;  %7575 = vmatpush3.bf16.msra.mxu0 %v7572_v43  ;;  %v6127_v43 = vld [vmem:[%s11400_s7 + $0x1d8] sm:$0xff] }
 0x88a   : > { %7246 = vmatmul.mubr.f32.gmra.mrb[142].mxu1 %v10482_v22 }
 0x8e5   : > { %v7202_v37 = vpop.f32.mrb[112].mxu1 }
 0x8e6   : > { %v4138_v29 = vadd.f32 %v7202_v37, %v10489_v17  ;;  %v4132_v40 = vpop.f32.mrb[113].mxu1  ;;  %v7576_v37 = vpack.c.bf16 %v6121_v42, %v6120_v58  ;;  %v7588_v42 = vpack.c.bf16 %v6127_v43, %v6126_v19 }
 0x8e7   : > { %v4133_v35 = vadd.f32 %v10489_v17, %v4132_v40 }
 0x8e8   : > { %v10499_v59 = vmax.f32 %v4138_v29, 0.0  ;;  %7577 = vmatprep.subr.bf16.mxu0 %v7576_v37 }
 0x8e9   : > { %v10501_v16 = vmax.f32 %v4133_v35, 0.0  ;;  %7579 = vmatpush3.bf16.msra.mxu0 %v7576_v37  ;;  %v6128_v37 = vld [vmem:[%s11400_s7 + $0x1e0] sm:$0xff] }
 0x8ea   : > { %4325 = vadd.xlane.f32.xlu1 %v10499_v59  ;;  %v4420_v1 = vmul.f32 %v10499_v59, %v10499_v59 }
 0x8eb   : > { %4323 = vadd.xlane.f32.xlu0 %v10501_v16  ;;  %v4419_v30 = vmul.f32 %v10501_v16, %v10501_v16 }
 0x8ed   : > { %v7205_v48 = vpop.f32.mrb[114].mxu1 }
 0x8ee   : > { %v4148_v13 = vadd.f32 %v7205_v48, %v10489_v17  ;;  %4453 = vadd.xlane.f32.xlu1 %v4420_v1  ;;  %v4142_v15 = vpop.f32.mrb[115].mxu1  ;;  %v6123_v1 = vld [vmem:[%s11400_s7 + $0x1b8] sm:$0xff] }
 0x8ef   : > { %v4143_v61 = vadd.f32 %v10489_v17, %v4142_v15  ;;  %4451 = vadd.xlane.f32.xlu0 %v4419_v30  ;;  %v7580_v30 = vpack.c.bf16 %v6123_v1, %v6122_v50  ;;  %v6124_v15 = vld [vmem:[%s11400_s7 + $0x1c0] sm:$0xff] }
 0x8f0   : > { %v10511_v2 = vmax.f32 %v4148_v13, 0.0 }
 0x8f1   : > { %v10513_v6 = vmax.f32 %v4143_v61, 0.0  ;;  %7581 = vmatprep.subr.bf16.mxu0 %v7580_v30  ;;  %v6125_v61 = vld [vmem:[%s11400_s7 + $0x1c8] sm:$0xff] }
 0x8f2   : > { %4329 = vadd.xlane.f32.xlu1 %v10511_v2  ;;  %v4422_v36 = vmul.f32 %v10511_v2, %v10511_v2  ;;  %7583 = vmatpush3.bf16.msra.mxu0 %v7580_v30 }
 0x8f3   : > { %4327 = vadd.xlane.f32.xlu0 %v10513_v6  ;;  %v4421_v20 = vmul.f32 %v10513_v6, %v10513_v6 }
 0x8f5   : > { %v7208_v0 = vpop.f32.mrb[116].mxu1 }
 0x8f6   : > { %v4158_v14 = vadd.f32 %v7208_v0, %v10489_v17  ;;  %4457 = vadd.xlane.f32.xlu1 %v4422_v36  ;;  %v4152_v12 = vpop.f32.mrb[117].mxu1  ;;  %v7584_v0 = vpack.c.bf16 %v6125_v61, %v6124_v15  ;;  %v6130_v15 = vld [vmem:[%s11400_s7 + $0x1f0] sm:$0xff]  ;;  %v6131_v61 = vld [vmem:[%s11400_s7 + $0x1f8] sm:$0xff] }
 0x8f7   : > { %v4153_v47 = vadd.f32 %v10489_v17, %v4152_v12  ;;  %4455 = vadd.xlane.f32.xlu0 %v4421_v20 }
 0x8f8   : > { %v10529_v8 = vmax.f32 %v4158_v14, 0.0  ;;  %7585 = vmatprep.subr.bf16.mxu0 %v7584_v0 }
 0x8f9   : > { %v10531_v25 = vmax.f32 %v4153_v47, 0.0  ;;  %7587 = vmatpush3.bf16.msra.mxu0 %v7584_v0  ;;  %v7596_v0 = vpack.c.bf16 %v6131_v61, %v6130_v15 }
 0x8fa   : > { %4333 = vadd.xlane.f32.xlu1 %v10529_v8  ;;  %v4424_v57 = vmul.f32 %v10529_v8, %v10529_v8  ;;  %7589 = vmatprep.subr.bf16.mxu0 %v7588_v42 }
 0x8fb   : > { %4331 = vadd.xlane.f32.xlu0 %v10531_v25  ;;  %v4423_v40 = vmul.f32 %v10531_v25, %v10531_v25 }
 0x8fd   : > { %v7211_v29 = vpop.f32.mrb[118].mxu1  ;;  %7591 = vmatpush3.bf16.msra.mxu0 %v7588_v42 }
 0x8fe   : > { %v4168_v35 = vadd.f32 %v7211_v29, %v10489_v17  ;;  %4461 = vadd.xlane.f32.xlu1 %v4424_v57  ;;  %v4162_v60 = vpop.f32.mrb[119].mxu1  ;;  %v6129_v29 = vld [vmem:[%s11400_s7 + $0x1e8] sm:$0xff] }
 0x8ff   : > { %v4163_v3 = vadd.f32 %v10489_v17, %v4162_v60  ;;  %4459 = vadd.xlane.f32.xlu0 %v4423_v40 }
 0x900   : > { %v10553_v48 = vmax.f32 %v4168_v35, 0.0  ;;  %v7592_v35 = vpack.c.bf16 %v6129_v29, %v6128_v37 }
 0x901   : > { %v10555_v13 = vmax.f32 %v4163_v3, 0.0 }
 0x902   : > { %4337 = vadd.xlane.f32.xlu1 %v10553_v48  ;;  %v4426_v36 = vmul.f32 %v10553_v48, %v10553_v48  ;;  %7593 = vmatprep.subr.bf16.mxu0 %v7592_v35 }
 0x903   : > { %4335 = vadd.xlane.f32.xlu0 %v10555_v13  ;;  %v4425_v14 = vmul.f32 %v10555_v13, %v10555_v13  ;;  %7595 = vmatpush3.bf16.msra.mxu0 %v7592_v35 }
 0x904   : > { %7597 = vmatprep.subr.bf16.mxu0 %v7596_v0 }
 0x905   : > { %v7214_v20 = vpop.f32.mrb[120].mxu1 }
 0x906   : > { %v4178_v12 = vadd.f32 %v7214_v20, %v10489_v17  ;;  %4465 = vadd.xlane.f32.xlu1 %v4426_v36  ;;  %v4172_v47 = vpop.f32.mrb[121].mxu1 }
 0x907   : > { %v4173_v62 = vadd.f32 %v10489_v17, %v4172_v47  ;;  %4463 = vadd.xlane.f32.xlu0 %v4425_v14  ;;  %7599 = vmatpush3.bf16.msra.mxu0 %v7596_v0 }
 0x908   : > { %v10577_v58 = vmax.f32 %v4178_v12, 0.0 }
 0x909   : > { %v10579_v57 = vmax.f32 %v4173_v62, 0.0 }
 0x90a   : > { %4341 = vadd.xlane.f32.xlu1 %v10577_v58  ;;  %v4428_v40 = vmul.f32 %v10577_v58, %v10577_v58 }
 0x90b   : > { %4339 = vadd.xlane.f32.xlu0 %v10579_v57  ;;  %v4427_v3 = vmul.f32 %v10579_v57, %v10579_v57 }
 0x90d   : > { %v7217_v60 = vpop.f32.mrb[122].mxu1 }
 0x90e   : > { %v4188_v50 = vadd.f32 %v7217_v60, %v10489_v17  ;;  %4469 = vadd.xlane.f32.xlu1 %v4428_v40  ;;  %v4182_v1 = vpop.f32.mrb[123].mxu1 }
 0x90f   : > { %v4183_v30 = vadd.f32 %v10489_v17, %v4182_v1  ;;  %4467 = vadd.xlane.f32.xlu0 %v4427_v3 }
 0x910   : > { %v10601_v36 = vmax.f32 %v4188_v50, 0.0 }
 0x911   : > { %v10603_v20 = vmax.f32 %v4183_v30, 0.0 }
 0x912   : > { %4345 = vadd.xlane.f32.xlu1 %v10601_v36  ;;  %v4430_v14 = vmul.f32 %v10601_v36, %v10601_v36 }
 0x913   : > { %4343 = vadd.xlane.f32.xlu0 %v10603_v20  ;;  %v4429_v47 = vmul.f32 %v10603_v20, %v10603_v20 }
 0x915   : > { %v7220_v12 = vpop.f32.mrb[124].mxu1 }
 0x916   : > { %v4198_v62 = vadd.f32 %v7220_v12, %v10489_v17  ;;  %4473 = vadd.xlane.f32.xlu1 %v4430_v14  ;;  %v4192_v19 = vpop.f32.mrb[125].mxu1 }
 0x917   : > { %v4193_v43 = vadd.f32 %v10489_v17, %v4192_v19  ;;  %4471 = vadd.xlane.f32.xlu0 %v4429_v47 }
 0x918   : > { %v10613_v42 = vmax.f32 %v4198_v62, 0.0 }
 0x919   : > { %v10615_v37 = vmax.f32 %v4193_v43, 0.0 }
 0x91a   : > { %4349 = vadd.xlane.f32.xlu1 %v10613_v42  ;;  %v4432_v29 = vmul.f32 %v10613_v42, %v10613_v42 }
 0x91b   : > { %4347 = vadd.xlane.f32.xlu0 %v10615_v37  ;;  %v4431_v35 = vmul.f32 %v10615_v37, %v10615_v37 }
 0x91d   : > { %v7223_v40 = vpop.f32.mrb[126].mxu1 }
 0x91e   : > { %v4208_v60 = vadd.f32 %v7223_v40, %v10489_v17  ;;  %4477 = vadd.xlane.f32.xlu1 %v4432_v29  ;;  %v4202_v3 = vpop.f32.mrb[127].mxu1 }
 0x91f   : > { %v4203_v50 = vadd.f32 %v10489_v17, %v4202_v3  ;;  %4475 = vadd.xlane.f32.xlu0 %v4431_v35 }
 0x920   : > { %v10625_v1 = vmax.f32 %v4208_v60, 0.0 }
 0x921   : > { %v10627_v30 = vmax.f32 %v4203_v50, 0.0 }
 0x922   : > { %4353 = vadd.xlane.f32.xlu1 %v10625_v1  ;;  %v4434_v15 = vmul.f32 %v10625_v1, %v10625_v1 }
 0x923   : > { %4351 = vadd.xlane.f32.xlu0 %v10627_v30  ;;  %v4433_v0 = vmul.f32 %v10627_v30, %v10627_v30 }
 0x925   : > { %v7226_v61 = vpop.f32.mrb[128].mxu1 }
 0x926   : > { %v4218_v14 = vadd.f32 %v7226_v61, %v10489_v17  ;;  %4481 = vadd.xlane.f32.xlu1 %v4434_v15  ;;  %v4212_v12 = vpop.f32.mrb[129].mxu1 }
 0x927   : > { %v4213_v47 = vadd.f32 %v10489_v17, %v4212_v12  ;;  %4479 = vadd.xlane.f32.xlu0 %v4433_v0 }
 0x928   : > { %v10637_v62 = vmax.f32 %v4218_v14, 0.0 }
 0x929   : > { %v10639_v19 = vmax.f32 %v4213_v47, 0.0 }
 0x92a   : > { %4357 = vadd.xlane.f32.xlu1 %v10637_v62  ;;  %v4436_v43 = vmul.f32 %v10637_v62, %v10637_v62 }
 0x92b   : > { %4355 = vadd.xlane.f32.xlu0 %v10639_v19  ;;  %v4435_v40 = vmul.f32 %v10639_v19, %v10639_v19 }
 0x92d   : > { %v7229_v29 = vpop.f32.mrb[130].mxu1 }
 0x92e   : > { %v4228_v35 = vadd.f32 %v7229_v29, %v10489_v17  ;;  %4485 = vadd.xlane.f32.xlu1 %v4436_v43  ;;  %v4222_v60 = vpop.f32.mrb[131].mxu1 }
 0x92f   : > { %v4223_v3 = vadd.f32 %v10489_v17, %v4222_v60  ;;  %4483 = vadd.xlane.f32.xlu0 %v4435_v40 }
 0x930   : > { %v10649_v50 = vmax.f32 %v4228_v35, 0.0 }
 0x931   : > { %v10651_v15 = vmax.f32 %v4223_v3, 0.0 }
 0x932   : > { %4361 = vadd.xlane.f32.xlu1 %v10649_v50  ;;  %v4438_v61 = vmul.f32 %v10649_v50, %v10649_v50 }
 0x933   : > { %4359 = vadd.xlane.f32.xlu0 %v10651_v15  ;;  %v4437_v14 = vmul.f32 %v10651_v15, %v10651_v15 }
 0x935   : > { %v7232_v0 = vpop.f32.mrb[132].mxu1 }
 0x936   : > { %v4238_v12 = vadd.f32 %v7232_v0, %v10489_v17  ;;  %4489 = vadd.xlane.f32.xlu1 %v4438_v61  ;;  %v4232_v47 = vpop.f32.mrb[133].mxu1 }
 0x937   : > { %v4233_v43 = vadd.f32 %v10489_v17, %v4232_v47  ;;  %4487 = vadd.xlane.f32.xlu0 %v4437_v14 }
 0x938   : > { %v10661_v29 = vmax.f32 %v4238_v12, 0.0 }
 0x939   : > { %v10663_v40 = vmax.f32 %v4233_v43, 0.0 }
 0x93a   : > { %4365 = vadd.xlane.f32.xlu1 %v10661_v29  ;;  %v4440_v35 = vmul.f32 %v10661_v29, %v10661_v29 }
 0x93b   : > { %4363 = vadd.xlane.f32.xlu0 %v10663_v40  ;;  %v4439_v3 = vmul.f32 %v10663_v40, %v10663_v40 }
 0x93d   : > { %v7235_v60 = vpop.f32.mrb[134].mxu1 }
 0x93e   : > { %v4248_v61 = vadd.f32 %v7235_v60, %v10489_v17  ;;  %4493 = vadd.xlane.f32.xlu1 %v4440_v35  ;;  %v4242_v0 = vpop.f32.mrb[135].mxu1 }
 0x93f   : > { %v4243_v14 = vadd.f32 %v10489_v17, %v4242_v0  ;;  %4491 = vadd.xlane.f32.xlu0 %v4439_v3 }
 0x940   : > { %v10673_v12 = vmax.f32 %v4248_v61, 0.0 }
 0x941   : > { %v10675_v47 = vmax.f32 %v4243_v14, 0.0 }
 0x942   : > { %4369 = vadd.xlane.f32.xlu1 %v10673_v12  ;;  %v4442_v43 = vmul.f32 %v10673_v12, %v10673_v12 }
 0x943   : > { %4367 = vadd.xlane.f32.xlu0 %v10675_v47  ;;  %v4441_v60 = vmul.f32 %v10675_v47, %v10675_v47 }
 0x945   : > { %v7238_v9 = vpop.f32.mrb[136].mxu1 }
 0x946   : > { %v4258_v35 = vadd.f32 %v7238_v9, %v10489_v17  ;;  %4497 = vadd.xlane.f32.xlu1 %v4442_v43  ;;  %v4252_v0 = vpop.f32.mrb[137].mxu1 }
 0x947   : > { %v4253_v3 = vadd.f32 %v10489_v17, %v4252_v0  ;;  %4495 = vadd.xlane.f32.xlu0 %v4441_v60 }
 0x948   : > { %v10685_v61 = vmax.f32 %v4258_v35, 0.0 }
 0x949   : > { %v10687_v14 = vmax.f32 %v4253_v3, 0.0 }
 0x94a   : > { %4373 = vadd.xlane.f32.xlu1 %v10685_v61  ;;  %v4444_v22 = vmul.f32 %v10685_v61, %v10685_v61 }
 0x94b   : > { %4371 = vadd.xlane.f32.xlu0 %v10687_v14  ;;  %v4443_v9 = vmul.f32 %v10687_v14, %v10687_v14 }
 0x94d   : > { %v7241_v38 = vpop.f32.mrb[138].mxu1 }
 0x94e   : > { %v4268_v43 = vadd.f32 %v7241_v38, %v10489_v17  ;;  %4501 = vadd.xlane.f32.xlu1 %v4444_v22  ;;  %v4262_v0 = vpop.f32.mrb[139].mxu1 }
 0x94f   : > { %v4263_v60 = vadd.f32 %v10489_v17, %v4262_v0  ;;  %4499 = vadd.xlane.f32.xlu0 %v4443_v9 }
 0x950   : > { %v10697_v35 = vmax.f32 %v4268_v43, 0.0 }
 0x951   : > { %v10699_v3 = vmax.f32 %v4263_v60, 0.0 }
 0x952   : > { %4377 = vadd.xlane.f32.xlu1 %v10697_v35  ;;  %v4446_v41 = vmul.f32 %v10697_v35, %v10697_v35 }
 0x953   : > { %4375 = vadd.xlane.f32.xlu0 %v10699_v3  ;;  %v4445_v38 = vmul.f32 %v10699_v3, %v10699_v3 }
 0x955   : > { %v7244_v23 = vpop.f32.mrb[140].mxu1 }
 0x956   : > { %v4278_v22 = vadd.f32 %v7244_v23, %v10489_v17  ;;  %4505 = vadd.xlane.f32.xlu1 %v4446_v41  ;;  %v4272_v0 = vpop.f32.mrb[141].mxu1 }
 0x957   : > { %v4273_v9 = vadd.f32 %v10489_v17, %v4272_v0  ;;  %4503 = vadd.xlane.f32.xlu0 %v4445_v38 }
 0x958   : > { %v10709_v43 = vmax.f32 %v4278_v22, 0.0 }
 0x959   : > { %v10711_v60 = vmax.f32 %v4273_v9, 0.0 }
 0x95a   : > { %4381 = vadd.xlane.f32.xlu1 %v10709_v43  ;;  %v4448_v39 = vmul.f32 %v10709_v43, %v10709_v43 }
 0x95b   : > { %4379 = vadd.xlane.f32.xlu0 %v10711_v60  ;;  %v4447_v23 = vmul.f32 %v10711_v60, %v10711_v60 }
 0x95d   : > { %v7247_v51 = vpop.f32.mrb[142].mxu1 }
 0x95e   : > { %v4288_v41 = vadd.f32 %v7247_v51, %v10489_v17  ;;  %4509 = vadd.xlane.f32.xlu1 %v4448_v39  ;;  %v4282_v0 = vpop.f32.mrb[143].mxu1 }
 0x95f   : > { %v4283_v38 = vadd.f32 %v10489_v17, %v4282_v0  ;;  %4507 = vadd.xlane.f32.xlu0 %v4447_v23 }
 0x960   : > { %v10721_v22 = vmax.f32 %v4288_v41, 0.0 }
 0x961   : > { %v10723_v9 = vmax.f32 %v4283_v38, 0.0 }
 0x962   : > { %4385 = vadd.xlane.f32.xlu1 %v10721_v22  ;;  %v4450_v21 = vmul.f32 %v10721_v22, %v10721_v22 }
 0x963   : > { %4383 = vadd.xlane.f32.xlu0 %v10723_v9  ;;  %v4449_v7 = vmul.f32 %v10723_v9, %v10723_v9 }
 0x966   : > { %4513 = vadd.xlane.f32.xlu1 %v4450_v21 }
 0x967   : > { %4511 = vadd.xlane.f32.xlu0 %v4449_v7 }
 0x977   : > { %v4326_v51 = vpop.xlane.xlu1 %4325 }
 0x978   : > { %v4388_v39 = vmul.f32 0.0078125, %v4326_v51  ;;  %v4324_v17 = vpop.xlane.xlu0 %4323 }
 0x979   : > { %v4387_v23 = vmul.f32 0.0078125, %v4324_v17 }
 0x97a   : > { %v4580_v0 = vmul.f32 %v4388_v39, %v4388_v39 }
 0x97b   : > { %v4454_v41 = vpop.xlane.xlu1 %4453  ;;  %v4579_v26 = vmul.f32 %v4387_v23, %v4387_v23 }
 0x97c   : > { %v4516_v38 = vmul.f32 0.0078125, %v4454_v41  ;;  %v4452_v55 = vpop.xlane.xlu0 %4451 }
 0x97d   : > { %v4515_v54 = vmul.f32 0.0078125, %v4452_v55 }
 0x97e   : > { %v4612_v33 = vsub.f32 %v4516_v38, %v4580_v0 }
 0x97f   : > { %v4611_v28 = vsub.f32 %v4515_v54, %v4579_v26  ;;  %v4330_v49 = vpop.xlane.xlu1 %4329 }
 0x980   : > { %v4644_v46 = vadd.f32 1e-05, %v4612_v33  ;;  %v10731_v18 = vmul.f32 0.0078125, %v4330_v49  ;;  %v4328_v5 = vpop.xlane.xlu0 %4327 }
 0x981   : > { %v4643_v31 = vadd.f32 1e-05, %v4611_v28  ;;  %v4389_v21 = vmul.f32 0.0078125, %v4328_v5 }
 0x982   : > { %7877 = vrsqrt.f32 %v4644_v46  ;;  %v4582_v51 = vmul.f32 %v10731_v18, %v10731_v18 }
 0x983   : > { %7879 = vrsqrt.f32 %v4643_v31  ;;  %v4458_v7 = vpop.xlane.xlu1 %4457  ;;  %v4581_v27 = vmul.f32 %v4389_v21, %v4389_v21  ;;  %v4548_v31 = vsub.f32 %v10499_v59, %v4388_v39 }
 0x984   : > { %v4518_v17 = vmul.f32 0.0078125, %v4458_v7  ;;  %v4456_v41 = vpop.xlane.xlu0 %4455  ;;  %v4547_v7 = vsub.f32 %v10501_v16, %v4387_v23  ;;  %v10753_v23 = vld [vmem:[%s11399_s6 + $0x3] ss:$0 sm:$0xff] }
 0x985   : > { %v4517_v52 = vmul.f32 0.0078125, %v4456_v41 }
 0x986   : > { %v4614_v55 = vsub.f32 %v4518_v17, %v4582_v51  ;;  %v10746_v17 = vld [vmem:[%s11398_s5 + $0x3] ss:$0 sm:$0xff] }
 0x987   : > { %v4613_v0 = vsub.f32 %v4517_v52, %v4581_v27  ;;  %v4334_v26 = vpop.xlane.xlu1 %4333 }
 0x988   : > { %v4646_v54 = vadd.f32 1e-05, %v4614_v55  ;;  %v10735_v33 = vmul.f32 0.0078125, %v4334_v26  ;;  %v4332_v49 = vpop.xlane.xlu0 %4331 }
 0x989   : > { %v4645_v38 = vadd.f32 1e-05, %v4613_v0  ;;  %v10737_v28 = vmul.f32 0.0078125, %v4332_v49 }
 0x98a   : > { %7881 = vrsqrt.f32 %v4646_v54  ;;  %v4584_v51 = vmul.f32 %v10735_v33, %v10735_v33 }
 0x98b   : > { %7883 = vrsqrt.f32 %v4645_v38  ;;  %v4462_v5 = vpop.xlane.xlu1 %4461  ;;  %v4583_v59 = vmul.f32 %v10737_v28, %v10737_v28 }
 0x98c   : > { %v7878_v46 = vpop.eup %7877  ;;  %v4520_v52 = vmul.f32 0.0078125, %v4462_v5  ;;  %v4460_v27 = vpop.xlane.xlu0 %4459 }
 0x98d   : > { %v7880_v41 = vpop.eup %7879  ;;  %v4708_v55 = vmul.f32 %v7878_v46, %v4548_v31  ;;  %v4519_v39 = vmul.f32 0.0078125, %v4460_v27 }
 0x98e   : > { %v4616_v0 = vsub.f32 %v4520_v52, %v4584_v51  ;;  %v4707_v26 = vmul.f32 %v7880_v41, %v4547_v7  ;;  %v4550_v51 = vsub.f32 %v10511_v2, %v10731_v18 }
 0x98f   : > { %v4615_v54 = vsub.f32 %v4519_v39, %v4583_v59  ;;  %v4338_v16 = vpop.xlane.xlu1 %4337  ;;  %v4748_v49 = vmul.f32 %v10746_v17, %v4708_v55  ;;  %v4549_v55 = vsub.f32 %v10513_v6, %v4389_v21 }
 0x990   : > { %v4648_v38 = vadd.f32 1e-05, %v4616_v0  ;;  %v10756_v5 = vmul.f32 0.0078125, %v4338_v16  ;;  %v4336_v34 = vpop.xlane.xlu0 %4335  ;;  %v4747_v31 = vmul.f32 %v10746_v17, %v4707_v26 }
 0x991   : > { %v4647_v46 = vadd.f32 1e-05, %v4615_v54  ;;  %v10759_v53 = vmul.f32 0.0078125, %v4336_v34  ;;  %v4788_v27 = vadd.f32 %v10753_v23, %v4748_v49 }
 0x992   : > { %7885 = vrsqrt.f32 %v4648_v38  ;;  %v4787_v7 = vadd.f32 %v10753_v23, %v4747_v31  ;;  %v4586_v59 = vmul.f32 %v10756_v5, %v10756_v5 }
 0x993   : > { %7887 = vrsqrt.f32 %v4647_v46  ;;  %v4466_v52 = vpop.xlane.xlu1 %4465  ;;  %v4585_v26 = vmul.f32 %v10759_v53, %v10759_v53 }
 0x994   : > { %v7882_v41 = vpop.eup %7881  ;;  %v4522_v39 = vmul.f32 0.0078125, %v4466_v52  ;;  %v4464_v0 = vpop.xlane.xlu0 %4463  ;;  %7280 = vmatprep.mubr.f32.mxu0 %v4787_v7 }
 0x995   : > { %v7884_v34 = vpop.eup %7883  ;;  %v4521_v54 = vmul.f32 0.0078125, %v4464_v0  ;;  %7281 = vmatmul.mubr.f32.vlgmr.msra.gmra.mrb[112].mxu0 %v4788_v27  ;;  %v4710_v18 = vmul.f32 %v7882_v41, %v4550_v51  ;;  %v4552_v51 = vsub.f32 %v10529_v8, %v10735_v33 }
 0x996   : > { %v4618_v2 = vsub.f32 %v4522_v39, %v4586_v59  ;;  %v4709_v16 = vmul.f32 %v7884_v34, %v4549_v55  ;;  %v4551_v59 = vsub.f32 %v10531_v25, %v10737_v28 }
 0x997   : > { %v4617_v38 = vsub.f32 %v4521_v54, %v4585_v26  ;;  %v4342_v49 = vpop.xlane.xlu1 %4341  ;;  %v4750_v31 = vmul.f32 %v10746_v17, %v4710_v18 }
 0x998   : > { %v4650_v6 = vadd.f32 1e-05, %v4618_v2  ;;  %v10771_v21 = vmul.f32 0.0078125, %v4342_v49  ;;  %v4340_v46 = vpop.xlane.xlu0 %4339  ;;  %v4749_v52 = vmul.f32 %v10746_v17, %v4709_v16 }
 0x999   : > { %v4649_v7 = vadd.f32 1e-05, %v4617_v38  ;;  %v10774_v4 = vmul.f32 0.0078125, %v4340_v46  ;;  %v4790_v41 = vadd.f32 %v10753_v23, %v4750_v31 }
 0x99a   : > { %7889 = vrsqrt.f32 %v4650_v6  ;;  %v4789_v0 = vadd.f32 %v10753_v23, %v4749_v52  ;;  %v4588_v39 = vmul.f32 %v10771_v21, %v10771_v21 }
 0x99b   : > { %7891 = vrsqrt.f32 %v4649_v7  ;;  %v4470_v27 = vpop.xlane.xlu1 %4469  ;;  %v4587_v18 = vmul.f32 %v10774_v4, %v10774_v4 }
 0x99c   : > { %v7886_v55 = vpop.eup %7885  ;;  %v4524_v34 = vmul.f32 0.0078125, %v4470_v27  ;;  %v4468_v26 = vpop.xlane.xlu0 %4467  ;;  %7283 = vmatprep.mubr.f32.mxu0 %v4789_v0 }
 0x99d   : > { %v7888_v54 = vpop.eup %7887  ;;  %v4523_v2 = vmul.f32 0.0078125, %v4468_v26  ;;  %7284 = vmatmul.mubr.f32.gmra.mrb[114].mxu0 %v4790_v41  ;;  %v4712_v8 = vmul.f32 %v7886_v55, %v4552_v51  ;;  %v4554_v51 = vsub.f32 %v10553_v48, %v10756_v5 }
 0x99e   : > { %v4620_v33 = vsub.f32 %v4524_v34, %v4588_v39  ;;  %v4711_v16 = vmul.f32 %v7888_v54, %v4551_v59  ;;  %v4553_v59 = vsub.f32 %v10555_v13, %v10759_v53 }
 0x99f   : > { %v4619_v38 = vsub.f32 %v4523_v2, %v4587_v18  ;;  %v4346_v49 = vpop.xlane.xlu1 %4345  ;;  %v4752_v31 = vmul.f32 %v10746_v17, %v4712_v8 }
 0x9a0   : > { %v4652_v25 = vadd.f32 1e-05, %v4620_v33  ;;  %v10787_v28 = vmul.f32 0.0078125, %v4346_v49  ;;  %v4344_v6 = vpop.xlane.xlu0 %4343  ;;  %v4751_v46 = vmul.f32 %v10746_v17, %v4711_v16 }
 0x9a1   : > { %v4651_v52 = vadd.f32 1e-05, %v4619_v38  ;;  %v10790_v7 = vmul.f32 0.0078125, %v4344_v6  ;;  %v4792_v41 = vadd.f32 %v10753_v23, %v4752_v31 }
 0x9a2   : > { %7893 = vrsqrt.f32 %v4652_v25  ;;  %v4791_v0 = vadd.f32 %v10753_v23, %v4751_v46  ;;  %v4590_v39 = vmul.f32 %v10787_v28, %v10787_v28 }
 0x9a3   : > { %7895 = vrsqrt.f32 %v4651_v52  ;;  %v4474_v27 = vpop.xlane.xlu1 %4473  ;;  %v4589_v18 = vmul.f32 %v10790_v7, %v10790_v7  ;;  %v4556_v52 = vsub.f32 %v10577_v58, %v10771_v21 }
 0x9a4   : > { %v7890_v55 = vpop.eup %7889  ;;  %v4526_v34 = vmul.f32 0.0078125, %v4474_v27  ;;  %v4472_v26 = vpop.xlane.xlu0 %4471  ;;  %7286 = vmatprep.mubr.f32.mxu0 %v4791_v0 }
 0x9a5   : > { %v7892_v54 = vpop.eup %7891  ;;  %v4525_v2 = vmul.f32 0.0078125, %v4472_v26  ;;  %7287 = vmatmul.mubr.f32.gmra.mrb[116].mxu0 %v4792_v41  ;;  %v4714_v48 = vmul.f32 %v7890_v55, %v4554_v51  ;;  %v4555_v41 = vsub.f32 %v10579_v57, %v10774_v4 }
 0x9a6   : > { %v4622_v5 = vsub.f32 %v4526_v34, %v4590_v39  ;;  %v4713_v8 = vmul.f32 %v7892_v54, %v4553_v59 }
 0x9a7   : > { %v4621_v33 = vsub.f32 %v4525_v2, %v4589_v18  ;;  %v4350_v16 = vpop.xlane.xlu1 %4349  ;;  %v4754_v38 = vmul.f32 %v10746_v17, %v4714_v48 }
 0x9a8   : > { %v4654_v53 = vadd.f32 1e-05, %v4622_v5  ;;  %v10803_v13 = vmul.f32 0.0078125, %v4350_v16  ;;  %v4348_v49 = vpop.xlane.xlu0 %4347  ;;  %v4753_v31 = vmul.f32 %v10746_v17, %v4713_v8 }
 0x9a9   : > { %v4653_v25 = vadd.f32 1e-05, %v4621_v33  ;;  %v10806_v6 = vmul.f32 0.0078125, %v4348_v49  ;;  %v4794_v51 = vadd.f32 %v10753_v23, %v4754_v38  ;;  %v4558_v49 = vsub.f32 %v10601_v36, %v10787_v28 }
 0x9aa   : > { %7897 = vrsqrt.f32 %v4654_v53  ;;  %v4793_v46 = vadd.f32 %v10753_v23, %v4753_v31  ;;  %v4592_v55 = vmul.f32 %v10803_v13, %v10803_v13 }
 0x9ab   : > { %7899 = vrsqrt.f32 %v4653_v25  ;;  %v4478_v0 = vpop.xlane.xlu1 %4477  ;;  %v4591_v26 = vmul.f32 %v10806_v6, %v10806_v6 }
 0x9ac   : > { %v7894_v27 = vpop.eup %7893  ;;  %v4528_v59 = vmul.f32 0.0078125, %v4478_v0  ;;  %v4476_v39 = vpop.xlane.xlu0 %4475  ;;  %7289 = vmatprep.mubr.f32.mxu0 %v4793_v46 }
 0x9ad   : > { %v7896_v34 = vpop.eup %7895  ;;  %v4527_v54 = vmul.f32 0.0078125, %v4476_v39  ;;  %7290 = vmatmul.mubr.f32.gmra.mrb[118].mxu0 %v4794_v51  ;;  %v4716_v58 = vmul.f32 %v7894_v27, %v4556_v52  ;;  %v4557_v52 = vsub.f32 %v10603_v20, %v10790_v7 }
 0x9ae   : > { %v4624_v21 = vsub.f32 %v4528_v59, %v4592_v55  ;;  %v4715_v18 = vmul.f32 %v7896_v34, %v4555_v41 }
 0x9af   : > { %v4623_v2 = vsub.f32 %v4527_v54, %v4591_v26  ;;  %v4354_v48 = vpop.xlane.xlu1 %4353  ;;  %v4756_v5 = vmul.f32 %v10746_v17, %v4716_v58 }
 0x9b0   : > { %v4656_v4 = vadd.f32 1e-05, %v4624_v21  ;;  %v10819_v57 = vmul.f32 0.0078125, %v4354_v48  ;;  %v4352_v8 = vpop.xlane.xlu0 %4351  ;;  %v4755_v33 = vmul.f32 %v10746_v17, %v4715_v18 }
 0x9b1   : > { %v4655_v16 = vadd.f32 1e-05, %v4623_v2  ;;  %v10822_v38 = vmul.f32 0.0078125, %v4352_v8  ;;  %v4796_v25 = vadd.f32 %v10753_v23, %v4756_v5  ;;  %v4560_v5 = vsub.f32 %v10613_v42, %v10803_v13 }
 0x9b2   : > { %7901 = vrsqrt.f32 %v4656_v4  ;;  %v4795_v53 = vadd.f32 %v10753_v23, %v4755_v33  ;;  %v4594_v0 = vmul.f32 %v10819_v57, %v10819_v57 }
 0x9b3   : > { %7903 = vrsqrt.f32 %v4655_v16  ;;  %v4482_v31 = vpop.xlane.xlu1 %4481  ;;  %v4593_v55 = vmul.f32 %v10822_v38, %v10822_v38  ;;  %v4559_v16 = vsub.f32 %v10615_v37, %v10806_v6 }
 0x9b4   : > { %v7898_v46 = vpop.eup %7897  ;;  %v4530_v51 = vmul.f32 0.0078125, %v4482_v31  ;;  %v4480_v27 = vpop.xlane.xlu0 %4479  ;;  %7292 = vmatprep.mubr.f32.mxu0 %v4795_v53 }
 0x9b5   : > { %v7900_v41 = vpop.eup %7899  ;;  %v4529_v59 = vmul.f32 0.0078125, %v4480_v27  ;;  %7293 = vmatmul.mubr.f32.gmra.mrb[120].mxu0 %v4796_v25  ;;  %v4718_v36 = vmul.f32 %v7898_v46, %v4558_v49 }
 0x9b6   : > { %v4626_v28 = vsub.f32 %v4530_v51, %v4594_v0  ;;  %v4717_v39 = vmul.f32 %v7900_v41, %v4557_v52 }
 0x9b7   : > { %v4625_v34 = vsub.f32 %v4529_v59, %v4593_v55  ;;  %v4358_v26 = vpop.xlane.xlu1 %4357  ;;  %v4758_v54 = vmul.f32 %v10746_v17, %v4718_v36 }
 0x9b8   : > { %v4658_v20 = vadd.f32 1e-05, %v4626_v28  ;;  %v10835_v7 = vmul.f32 0.0078125, %v4358_v26  ;;  %v4356_v58 = vpop.xlane.xlu0 %4355  ;;  %v4757_v21 = vmul.f32 %v10746_v17, %v4717_v39 }
 0x9b9   : > { %v4657_v18 = vadd.f32 1e-05, %v4625_v34  ;;  %v10838_v2 = vmul.f32 0.0078125, %v4356_v58  ;;  %v4798_v8 = vadd.f32 %v10753_v23, %v4758_v54  ;;  %v4562_v34 = vsub.f32 %v10625_v1, %v10819_v57 }
 0x9ba   : > { %7905 = vrsqrt.f32 %v4658_v20  ;;  %v4797_v48 = vadd.f32 %v10753_v23, %v4757_v21  ;;  %v4596_v53 = vmul.f32 %v10835_v7, %v10835_v7  ;;  %v4561_v58 = vsub.f32 %v10627_v30, %v10822_v38 }
 0x9bb   : > { %7907 = vrsqrt.f32 %v4657_v18  ;;  %v4486_v4 = vpop.xlane.xlu1 %4485  ;;  %v4595_v46 = vmul.f32 %v10838_v2, %v10838_v2 }
 0x9bc   : > { %v7902_v33 = vpop.eup %7901  ;;  %v4532_v49 = vmul.f32 0.0078125, %v4486_v4  ;;  %v4484_v31 = vpop.xlane.xlu0 %4483  ;;  %7295 = vmatprep.mubr.f32.mxu0 %v4797_v48 }
 0x9bd   : > { %v7904_v25 = vpop.eup %7903  ;;  %v4531_v52 = vmul.f32 0.0078125, %v4484_v31  ;;  %7296 = vmatmul.mubr.f32.gmra.mrb[122].mxu0 %v4798_v8  ;;  %v4720_v42 = vmul.f32 %v7902_v33, %v4560_v5 }
 0x9be   : > { %v4628_v13 = vsub.f32 %v4532_v49, %v4596_v53  ;;  %v4719_v0 = vmul.f32 %v7904_v25, %v4559_v16 }
 0x9bf   : > { %v4627_v51 = vsub.f32 %v4531_v52, %v4595_v46  ;;  %v4362_v27 = vpop.xlane.xlu1 %4361  ;;  %v4760_v41 = vmul.f32 %v10746_v17, %v4720_v42 }
 0x9c0   : > { %v4660_v37 = vadd.f32 1e-05, %v4628_v13  ;;  %v10851_v6 = vmul.f32 0.0078125, %v4362_v27  ;;  %v4360_v55 = vpop.xlane.xlu0 %4359  ;;  %v4759_v59 = vmul.f32 %v10746_v17, %v4719_v0  ;;  %v4564_v13 = vsub.f32 %v10637_v62, %v10835_v7 }
 0x9c1   : > { %v4659_v36 = vadd.f32 1e-05, %v4627_v51  ;;  %v10854_v28 = vmul.f32 0.0078125, %v4360_v55  ;;  %v4800_v54 = vadd.f32 %v10753_v23, %v4760_v41  ;;  %v4563_v41 = vsub.f32 %v10639_v19, %v10838_v2 }
 0x9c2   : > { %7909 = vrsqrt.f32 %v4660_v37  ;;  %v4799_v39 = vadd.f32 %v10753_v23, %v4759_v59  ;;  %v4598_v21 = vmul.f32 %v10851_v6, %v10851_v6 }
 0x9c3   : > { %7911 = vrsqrt.f32 %v4659_v36  ;;  %v4490_v26 = vpop.xlane.xlu1 %4489  ;;  %v4597_v4 = vmul.f32 %v10854_v28, %v10854_v28 }
 0x9c4   : > { %v7906_v20 = vpop.eup %7905  ;;  %v4534_v18 = vmul.f32 0.0078125, %v4490_v26  ;;  %v4488_v48 = vpop.xlane.xlu0 %4487  ;;  %7298 = vmatprep.mubr.f32.mxu0 %v4799_v39 }
 0x9c5   : > { %v7908_v5 = vpop.eup %7907  ;;  %v4533_v8 = vmul.f32 0.0078125, %v4488_v48  ;;  %7299 = vmatmul.mubr.f32.gmra.mrb[124].mxu0 %v4800_v54  ;;  %v4722_v1 = vmul.f32 %v7906_v20, %v4562_v34 }
 0x9c6   : > { %v4630_v57 = vsub.f32 %v4534_v18, %v4598_v21  ;;  %v4721_v33 = vmul.f32 %v7908_v5, %v4561_v58 }
 0x9c7   : > { %v4629_v16 = vsub.f32 %v4533_v8, %v4597_v4  ;;  %v4366_v53 = vpop.xlane.xlu1 %4365  ;;  %v4762_v49 = vmul.f32 %v10746_v17, %v4722_v1  ;;  %v4566_v8 = vsub.f32 %v10649_v50, %v10851_v6 }
 0x9c8   : > { %v4662_v30 = vadd.f32 1e-05, %v4630_v57  ;;  %v10867_v38 = vmul.f32 0.0078125, %v4366_v53  ;;  %v4364_v31 = vpop.xlane.xlu0 %4363  ;;  %v4761_v25 = vmul.f32 %v10746_v17, %v4721_v33 }
 0x9c9   : > { %v4661_v46 = vadd.f32 1e-05, %v4629_v16  ;;  %v10870_v52 = vmul.f32 0.0078125, %v4364_v31  ;;  %v4802_v51 = vadd.f32 %v10753_v23, %v4762_v49  ;;  %v4565_v16 = vsub.f32 %v10651_v15, %v10854_v28 }
 0x9ca   : > { %7913 = vrsqrt.f32 %v4662_v30  ;;  %v4801_v42 = vadd.f32 %v10753_v23, %v4761_v25  ;;  %v4600_v37 = vmul.f32 %v10867_v38, %v10867_v38 }
 0x9cb   : > { %7915 = vrsqrt.f32 %v4661_v46  ;;  %v4494_v0 = vpop.xlane.xlu1 %4493  ;;  %v4599_v39 = vmul.f32 %v10870_v52, %v10870_v52 }
 0x9cc   : > { %v7910_v27 = vpop.eup %7909  ;;  %v4536_v55 = vmul.f32 0.0078125, %v4494_v0  ;;  %v4492_v59 = vpop.xlane.xlu0 %4491  ;;  %7301 = vmatprep.mubr.f32.mxu0 %v4801_v42 }
 0x9cd   : > { %v7912_v36 = vpop.eup %7911  ;;  %v4535_v34 = vmul.f32 0.0078125, %v4492_v59  ;;  %7302 = vmatmul.mubr.f32.gmra.mrb[126].mxu0 %v4802_v51  ;;  %v4724_v62 = vmul.f32 %v7910_v27, %v4564_v13 }
 0x9ce   : > { %v4632_v7 = vsub.f32 %v4536_v55, %v4600_v37  ;;  %v4723_v26 = vmul.f32 %v7912_v36, %v4563_v41  ;;  %v4568_v36 = vsub.f32 %v10661_v29, %v10867_v38 }
 0x9cf   : > { %v4631_v54 = vsub.f32 %v4535_v34, %v4599_v39  ;;  %v4370_v20 = vpop.xlane.xlu1 %4369  ;;  %v4764_v58 = vmul.f32 %v10746_v17, %v4724_v62 }
 0x9d0   : > { %v4664_v19 = vadd.f32 1e-05, %v4632_v7  ;;  %v10883_v2 = vmul.f32 0.0078125, %v4370_v20  ;;  %v4368_v21 = vpop.xlane.xlu0 %4367  ;;  %v4763_v18 = vmul.f32 %v10746_v17, %v4723_v26  ;;  %v4567_v7 = vsub.f32 %v10663_v40, %v10870_v52 }
 0x9d1   : > { %v4663_v48 = vadd.f32 1e-05, %v4631_v54  ;;  %v10886_v5 = vmul.f32 0.0078125, %v4368_v21  ;;  %v4804_v57 = vadd.f32 %v10753_v23, %v4764_v58 }
 0x9d2   : > { %7917 = vrsqrt.f32 %v4664_v19  ;;  %v4803_v4 = vadd.f32 %v10753_v23, %v4763_v18  ;;  %v4602_v53 = vmul.f32 %v10883_v2, %v10883_v2 }
 0x9d3   : > { %7919 = vrsqrt.f32 %v4663_v48  ;;  %v4498_v1 = vpop.xlane.xlu1 %4497  ;;  %v4601_v25 = vmul.f32 %v10886_v5, %v10886_v5 }
 0x9d4   : > { %v7914_v33 = vpop.eup %7913  ;;  %v4538_v49 = vmul.f32 0.0078125, %v4498_v1  ;;  %v4496_v30 = vpop.xlane.xlu0 %4495  ;;  %7304 = vmatprep.mubr.f32.mxu0 %v4803_v4 }
 0x9d5   : > { %v7916_v31 = vpop.eup %7915  ;;  %v4537_v46 = vmul.f32 0.0078125, %v4496_v30  ;;  %7305 = vmatmul.mubr.f32.gmra.mrb[128].mxu0 %v4804_v57  ;;  %v4726_v50 = vmul.f32 %v7914_v33, %v4566_v8 }
 0x9d6   : > { %v4634_v6 = vsub.f32 %v4538_v49, %v4602_v53  ;;  %v4725_v42 = vmul.f32 %v7916_v31, %v4565_v16  ;;  %v4570_v49 = vsub.f32 %v10673_v12, %v10883_v2 }
 0x9d7   : > { %v4633_v13 = vsub.f32 %v4537_v46, %v4601_v25  ;;  %v4374_v0 = vpop.xlane.xlu1 %4373  ;;  %v4766_v51 = vmul.f32 %v10746_v17, %v4726_v50  ;;  %v4569_v46 = vsub.f32 %v10675_v47, %v10886_v5 }
 0x9d8   : > { %v4666_v15 = vadd.f32 1e-05, %v4634_v6  ;;  %v10899_v28 = vmul.f32 0.0078125, %v4374_v0  ;;  %v4372_v27 = vpop.xlane.xlu0 %4371  ;;  %v4765_v41 = vmul.f32 %v10746_v17, %v4725_v42 }
 0x9d9   : > { %v4665_v37 = vadd.f32 1e-05, %v4633_v13  ;;  %v10902_v55 = vmul.f32 0.0078125, %v4372_v27  ;;  %v4806_v34 = vadd.f32 %v10753_v23, %v4766_v51 }
 0x9da   : > { %7921 = vrsqrt.f32 %v4666_v15  ;;  %v4805_v59 = vadd.f32 %v10753_v23, %v4765_v41  ;;  %v4604_v26 = vmul.f32 %v10899_v28, %v10899_v28 }
 0x9db   : > { %7923 = vrsqrt.f32 %v4665_v37  ;;  %v4502_v39 = vpop.xlane.xlu1 %4501  ;;  %v4603_v19 = vmul.f32 %v10902_v55, %v10902_v55 }
 0x9dc   : > { %v7918_v62 = vpop.eup %7917  ;;  %v4540_v54 = vmul.f32 0.0078125, %v4502_v39  ;;  %v4500_v20 = vpop.xlane.xlu0 %4499  ;;  %7307 = vmatprep.mubr.f32.mxu0 %v4805_v59 }
 0x9dd   : > { %v7920_v58 = vpop.eup %7919  ;;  %v4539_v21 = vmul.f32 0.0078125, %v4500_v20  ;;  %7308 = vmatmul.mubr.f32.gmra.mrb[130].mxu0 %v4806_v34  ;;  %v4728_v29 = vmul.f32 %v7918_v62, %v4568_v36 }
 0x9de   : > { %v4636_v38 = vsub.f32 %v4540_v54, %v4604_v26  ;;  %v4727_v18 = vmul.f32 %v7920_v58, %v4567_v7  ;;  %v4572_v7 = vsub.f32 %v10685_v61, %v10899_v28  ;;  %v4571_v58 = vsub.f32 %v10687_v14, %v10902_v55 }
 0x9df   : > { %v4635_v48 = vsub.f32 %v4539_v21, %v4603_v19  ;;  %v4378_v4 = vpop.xlane.xlu1 %4377  ;;  %v4768_v8 = vmul.f32 %v10746_v17, %v4728_v29 }
 0x9e0   : > { %v4668_v40 = vadd.f32 1e-05, %v4636_v38  ;;  %v10915_v52 = vmul.f32 0.0078125, %v4378_v4  ;;  %v4376_v1 = vpop.xlane.xlu0 %4375  ;;  %v4767_v57 = vmul.f32 %v10746_v17, %v4727_v18 }
 0x9e1   : > { %v4667_v33 = vadd.f32 1e-05, %v4635_v48  ;;  %v10918_v16 = vmul.f32 0.0078125, %v4376_v1  ;;  %v4808_v31 = vadd.f32 %v10753_v23, %v4768_v8 }
 0x9e2   : > { %7925 = vrsqrt.f32 %v4668_v40  ;;  %v4807_v53 = vadd.f32 %v10753_v23, %v4767_v57  ;;  %v4606_v50 = vmul.f32 %v10915_v52, %v10915_v52 }
 0x9e3   : > { %7927 = vrsqrt.f32 %v4667_v33  ;;  %v4506_v30 = vpop.xlane.xlu1 %4505  ;;  %v4605_v0 = vmul.f32 %v10918_v16, %v10918_v16 }
 0x9e4   : > { %v7922_v25 = vpop.eup %7921  ;;  %v4542_v6 = vmul.f32 0.0078125, %v4506_v30  ;;  %v4504_v42 = vpop.xlane.xlu0 %4503  ;;  %7310 = vmatprep.mubr.f32.mxu0 %v4807_v53 }
 0x9e5   : > { %v7924_v13 = vpop.eup %7923  ;;  %v4541_v51 = vmul.f32 0.0078125, %v4504_v42  ;;  %7311 = vmatmul.mubr.f32.gmra.mrb[132].mxu0 %v4808_v31  ;;  %v4730_v12 = vmul.f32 %v7922_v25, %v4570_v49  ;;  %v4574_v31 = vsub.f32 %v10697_v35, %v10915_v52 }
 0x9e6   : > { %v4638_v2 = vsub.f32 %v4542_v6, %v4606_v50  ;;  %v4729_v15 = vmul.f32 %v7924_v13, %v4569_v46  ;;  %v4573_v6 = vsub.f32 %v10699_v3, %v10918_v16 }
 0x9e7   : > { %v4637_v27 = vsub.f32 %v4541_v51, %v4605_v0  ;;  %v4382_v41 = vpop.xlane.xlu1 %4381  ;;  %v4770_v37 = vmul.f32 %v10746_v17, %v4730_v12 }
 0x9e8   : > { %v4670_v47 = vadd.f32 1e-05, %v4638_v2  ;;  %v10931_v5 = vmul.f32 0.0078125, %v4382_v41  ;;  %v4380_v59 = vpop.xlane.xlu0 %4379  ;;  %v4769_v36 = vmul.f32 %v10746_v17, %v4729_v15 }
 0x9e9   : > { %v4669_v39 = vadd.f32 1e-05, %v4637_v27  ;;  %v10934_v34 = vmul.f32 0.0078125, %v4380_v59  ;;  %v4810_v54 = vadd.f32 %v10753_v23, %v4770_v37 }
 0x9ea   : > { %7929 = vrsqrt.f32 %v4670_v47  ;;  %v4809_v62 = vadd.f32 %v10753_v23, %v4769_v36  ;;  %v4608_v19 = vmul.f32 %v10931_v5, %v10931_v5  ;;  %v4576_v16 = vsub.f32 %v10709_v43, %v10931_v5 }
 0x9eb   : > { %7931 = vrsqrt.f32 %v4669_v39  ;;  %v4510_v26 = vpop.xlane.xlu1 %4509  ;;  %v4607_v18 = vmul.f32 %v10934_v34, %v10934_v34 }
 0x9ec   : > { %v7926_v20 = vpop.eup %7925  ;;  %v4544_v21 = vmul.f32 0.0078125, %v4510_v26  ;;  %v4508_v29 = vpop.xlane.xlu0 %4507  ;;  %7313 = vmatprep.mubr.f32.mxu0 %v4809_v62  ;;  %v4575_v62 = vsub.f32 %v10711_v60, %v10934_v34 }
 0x9ed   : > { %v7928_v38 = vpop.eup %7927  ;;  %v4543_v48 = vmul.f32 0.0078125, %v4508_v29  ;;  %7314 = vmatmul.mubr.f32.gmra.mrb[134].mxu0 %v4810_v54  ;;  %v4732_v61 = vmul.f32 %v7926_v20, %v4572_v7 }
 0x9ee   : > { %v4640_v28 = vsub.f32 %v4544_v21, %v4608_v19  ;;  %v4731_v4 = vmul.f32 %v7928_v38, %v4571_v58 }
 0x9ef   : > { %v4639_v8 = vsub.f32 %v4543_v48, %v4607_v18  ;;  %v4386_v40 = vpop.xlane.xlu1 %4385  ;;  %v4772_v1 = vmul.f32 %v10746_v17, %v4732_v61 }
 0x9f0   : > { %v4672_v14 = vadd.f32 1e-05, %v4640_v28  ;;  %v4418_v55 = vmul.f32 0.0078125, %v4386_v40  ;;  %v4384_v57 = vpop.xlane.xlu0 %4383  ;;  %v4771_v33 = vmul.f32 %v10746_v17, %v4731_v4  ;;  %v5119_v4 = vld [vmem:[%s11403_s10 + $0x10] sm:$0xff] }
 0x9f1   : > { %v4671_v53 = vadd.f32 1e-05, %v4639_v8  ;;  %v4417_v49 = vmul.f32 0.0078125, %v4384_v57  ;;  %v4812_v46 = vadd.f32 %v10753_v23, %v4772_v1 }
 0x9f2   : > { %7933 = vrsqrt.f32 %v4672_v14  ;;  %v4811_v30 = vadd.f32 %v10753_v23, %v4771_v33  ;;  %v4610_v42 = vmul.f32 %v4418_v55, %v4418_v55  ;;  %v4578_v43 = vsub.f32 %v10721_v22, %v4418_v55  ;;  %v5118_v22 = vld [vmem:[%s11403_s10 + $0x8] sm:$0xff]  ;;  %v5121_v14 = vld [vmem:[%s11403_s10 + $0x20] sm:$0xff] }
 0x9f3   : > { %7935 = vrsqrt.f32 %v4671_v53  ;;  %v4514_v25 = vpop.xlane.xlu1 %4513  ;;  %v4609_v12 = vmul.f32 %v4417_v49, %v4417_v49  ;;  %v4577_v29 = vsub.f32 %v10723_v9, %v4417_v49  ;;  %v7949_v9 = vmov 0   ;;  %v10993_v55 = vld [vmem:[%s11402_s9] sm:$0xff]  ;;  %v5122_v49 = vld [vmem:[%s11403_s10 + $0x28] sm:$0xff] }
 0x9f4   : > { %v7930_v50 = vpop.eup %7929  ;;  %v4546_v13 = vmul.f32 0.0078125, %v4514_v25  ;;  %v4512_v0 = vpop.xlane.xlu0 %4511  ;;  %7316 = vmatprep.mubr.f32.mxu0 %v4811_v30  ;;  %7684 = vset.pattern.permute.xlu1 %v7949_v9 }
 0x9f5   : > { %v7932_v51 = vpop.eup %7931  ;;  %v4545_v2 = vmul.f32 0.0078125, %v4512_v0  ;;  %7317 = vmatmul.mubr.f32.gmra.mrb[136].mxu0 %v4812_v46  ;;  %v4734_v15 = vmul.f32 %v7930_v50, %v4574_v31  ;;  %7683 = vset.pattern.permute.xlu0 %v7949_v9  ;;  %v11684_v9 = vld [vmem:[#allocation7_spill] sm:$0xff] }
 0x9f6   : > { %v4642_v27 = vsub.f32 %v4546_v13, %v4610_v42  ;;  %v4733_v41 = vmul.f32 %v7932_v51, %v4573_v6  ;;  %5140 = vperm.xlu1 %7684, %v5118_v22   ;;  %6592 = vmatprep.mubr.f32.mxu1 %v10993_v55  ;;  %v5124_v42 = vld [vmem:[%s11403_s10 + $0x38] sm:$0xff]  ;;  %v5117_v51 = vld [vmem:[%s11403_s10] sm:$0xff] }
 0x9f7   : > { %v4641_v35 = vsub.f32 %v4545_v2, %v4609_v12  ;;  %v4774_v52 = vmul.f32 %v10746_v17, %v4734_v15  ;;  %5135 = vperm.xlu0 %7683, %v5117_v51  }
 0x9f8   : > { %v4674_v37 = vadd.f32 1e-05, %v4642_v27  ;;  %v4773_v47 = vmul.f32 %v10746_v17, %v4733_v41  ;;  %v5126_v41 = vld [vmem:[%s11403_s10 + $0x48] sm:$0xff] }
 0x9f9   : > { %v4673_v59 = vadd.f32 1e-05, %v4641_v35  ;;  %v4814_v36 = vadd.f32 %v10753_v23, %v4774_v52  ;;  %v5127_v35 = vld [vmem:[%s11403_s10 + $0x50] sm:$0xff] }
 0x9fa   : > { %7937 = vrsqrt.f32 %v4674_v37  ;;  %v4813_v3 = vadd.f32 %v10753_v23, %v4773_v47  ;;  %5145 = vperm.xlu1 %7684, %v5119_v4  }
 0x9fb   : > { %7939 = vrsqrt.f32 %v4673_v59  ;;  %5180 = vperm.xlu0 %7683, %v5126_v41   ;;  %v5129_v59 = vld [vmem:[%s11403_s10 + $0x60] sm:$0xff] }
 0x9fc   : > { %v7934_v39 = vpop.eup %7933  ;;  %7319 = vmatprep.mubr.f32.mxu0 %v4813_v3  ;;  %v5715_v41 = vld [vmem:[%s11406_s13 + $0x20] sm:$0xff] }
 0x9fd   : > { %v7936_v7 = vpop.eup %7935  ;;  %7320 = vmatmul.mubr.f32.gmra.mrb[138].mxu0 %v4814_v36  ;;  %v4736_v26 = vmul.f32 %v7934_v39, %v4576_v16  ;;  %v5130_v39 = vld [vmem:[%s11403_s10 + $0x68] sm:$0xff] }
 0x9fe   : > { %v4735_v54 = vmul.f32 %v7936_v7, %v4575_v62  ;;  %v5131_v62 = vld [vmem:[%s11403_s10 + $0x70] sm:$0xff] }
 0x9ff   : > { %v4776_v20 = vmul.f32 %v10746_v17, %v4736_v26 }
 0xa00   : > { %v4775_v58 = vmul.f32 %v10746_v17, %v4735_v54 }
 0xa01   : > { %v4816_v5 = vadd.f32 %v10753_v23, %v4776_v20  ;;  %v5422_v20 = vld [vmem:[%s11405_s12] sm:$0xff] }
 0xa02   : > { %v4815_v19 = vadd.f32 %v10753_v23, %v4775_v58 }
 0xa04   : > { %v7938_v21 = vpop.eup %7937  ;;  %7322 = vmatprep.mubr.f32.mxu0 %v4815_v19  ;;  %v11682_v19 = vld [vmem:[#allocation5_spill] sm:$0xff] }
 0xa05   : > { %v7940_v60 = vpop.eup %7939  ;;  %7323 = vmatmul.mubr.f32.gmra.mrb[140].mxu0 %v4816_v5  ;;  %v4738_v34 = vmul.f32 %v7938_v21, %v4578_v43  ;;  %v11683_v5 = vld [vmem:[#allocation3_spill] sm:$0xff] }
 0xa06   : > { %v4737_v38 = vmul.f32 %v7940_v60, %v4577_v29  ;;  %v5423_v29 = vld [vmem:[%s11405_s12 + $0x8] sm:$0xff]  ;;  %v5424_v60 = vld [vmem:[%s11405_s12 + $0x10] sm:$0xff] }
 0xa07   : > { %v4778_v18 = vmul.f32 %v10746_v17, %v4738_v34 }
 0xa08   : > { %v4777_v48 = vmul.f32 %v10746_v17, %v4737_v38  ;;  %v5120_v17 = vld [vmem:[%s11403_s10 + $0x18] sm:$0xff] }
 0xa09   : > { %v4818_v28 = vadd.f32 %v10753_v23, %v4778_v18  ;;  %5150 = vperm.xlu1 %7684, %v5120_v17   ;;  %v5425_v18 = vld [vmem:[%s11405_s12 + $0x18] sm:$0xff]  ;;  %v11685_v17 = vld [vmem:[#allocation4_spill] sm:$0xff] }
 0xa0a   : > { %v4817_v61 = vadd.f32 %v10753_v23, %v4777_v48  ;;  %v10984_v23 = vld [vmem:[%s11401_s8 + $0x3] ss:$0 sm:$0xff] }
 0xa0c   : > { %7325 = vmatprep.mubr.f32.mxu0 %v4817_v61 }
 0xa0d   : > { %7326 = vmatmul.mubr.f32.gmra.mrb[142].mxu0 %v4818_v28  ;;  %5155 = vperm.xlu1 %7684, %v5121_v14   ;;  %v5711_v28 = vld [vmem:[%s11406_s13] sm:$0xff] }
 0xa11   : > { %5160 = vperm.xlu1 %7684, %v5122_v49   ;;  %v5713_v49 = vld [vmem:[%s11406_s13 + $0x10] sm:$0xff] }
 0xa68   : > { %v7282_v8 = vpop.f32.mrb[112].mxu0 }
 0xa69   : > { %v4916_v40 = vadd.f32 %v7282_v8, %v10984_v23  ;;  %v4910_v1 = vpop.f32.mrb[113].mxu0 }
 0xa6a   : > { %v4911_v57 = vadd.f32 %v10984_v23, %v4910_v1  ;;  %v5426_v1 = vld [vmem:[%s11405_s12 + $0x20] sm:$0xff] }
 0xa6b   : > { %v10998_v33 = vadd.f32 %v4916_v40, %v10332_v63  ;;  %v5123_v63 = vld [vmem:[%s11403_s10 + $0x30] sm:$0xff]  ;;  %v5712_v40 = vld [vmem:[%s11406_s13 + $0x8] sm:$0xff] }
 0xa6c   : > { %v11001_v53 = vadd.f32 %v4911_v57, %v10329_v32  ;;  %5165 = vperm.xlu1 %7684, %v5123_v63  }
 0xa6e   : > { %v7602_v30 = vpack.c.bf16 %v10998_v33, %v11001_v53  ;;  %v5434_v33 = vld [vmem:[%s11405_s12 + $0x60] sm:$0xff] }
 0xa70   : > { %v7285_v31 = vpop.f32.mrb[114].mxu0  ;;  %5170 = vperm.xlu1 %7684, %v5124_v42  }
 0xa71   : > { %v4926_v25 = vadd.f32 %v7285_v31, %v10984_v23  ;;  %v4920_v46 = vpop.f32.mrb[115].mxu0 }
 0xa72   : > { %v4921_v32 = vadd.f32 %v10984_v23, %v4920_v46  ;;  %v5427_v46 = vld [vmem:[%s11405_s12 + $0x28] sm:$0xff] }
 0xa73   : > { %v11014_v50 = vadd.f32 %v4926_v25, %v10342_v44 }
 0xa74   : > { %v11017_v6 = vadd.f32 %v4921_v32, %v10339_v45  ;;  %v5125_v45 = vld [vmem:[%s11403_s10 + $0x40] sm:$0xff]  ;;  %v11686_v32 = vld [vmem:[#allocation9_spill] sm:$0xff] }
 0xa75   : > { %5175 = vperm.xlu1 %7684, %v5125_v45  }
 0xa76   : > { %v7606_v13 = vpack.c.bf16 %v11014_v50, %v11017_v6  ;;  %v5436_v50 = vld [vmem:[%s11405_s12 + $0x70] sm:$0xff] }
 0xa78   : > { %v7288_v0 = vpop.f32.mrb[116].mxu0 }
 0xa79   : > { %v4936_v44 = vadd.f32 %v7288_v0, %v10984_v23  ;;  %v4930_v12 = vpop.f32.mrb[117].mxu0  ;;  %5185 = vperm.xlu1 %7684, %v5127_v35   ;;  %v11687_v0 = vld [vmem:[#allocation6_spill] sm:$0xff] }
 0xa7a   : > { %v4931_v2 = vadd.f32 %v10984_v23, %v4930_v12  ;;  %v5428_v12 = vld [vmem:[%s11405_s12 + $0x30] sm:$0xff] }
 0xa7b   : > { %v11033_v15 = vadd.f32 %v4936_v44, %v10352_v11  ;;  %v5714_v44 = vld [vmem:[%s11406_s13 + $0x18] sm:$0xff] }
 0xa7c   : > { %v11036_v27 = vadd.f32 %v4931_v2, %v10349_v10  ;;  %v5128_v10 = vld [vmem:[%s11403_s10 + $0x58] sm:$0xff] }
 0xa7d   : > { %5190 = vperm.xlu0 %7683, %v5128_v10   ;;  %5195 = vperm.xlu1 %7684, %v5129_v59   ;;  %v5429_v10 = vld [vmem:[%s11405_s12 + $0x38] sm:$0xff] }
 0xa7e   : > { %v7610_v52 = vpack.c.bf16 %v11033_v15, %v11036_v27  ;;  %v5725_v15 = vld [vmem:[%s11406_s13 + $0x70] sm:$0xff] }
 0xa80   : > { %v7291_v37 = vpop.f32.mrb[118].mxu0 }
 0xa81   : > { %v4946_v11 = vadd.f32 %v7291_v37, %v10984_v23  ;;  %v4940_v47 = vpop.f32.mrb[119].mxu0  ;;  %5200 = vperm.xlu0 %7683, %v5130_v39   ;;  %5205 = vperm.xlu1 %7684, %v5131_v62   ;;  %v5716_v62 = vld [vmem:[%s11406_s13 + $0x28] sm:$0xff] }
 0xa82   : > { %v4941_v3 = vadd.f32 %v10984_v23, %v4940_v47  ;;  %v11688_v47 = vld [vmem:[#allocation11_spill] sm:$0xff] }
 0xa83   : > { %v11055_v16 = vadd.f32 %v4946_v11, %v10362_v56 }
 0xa84   : > { %v11058_v36 = vadd.f32 %v4941_v3, %v10359_v24  ;;  %v5132_v24 = vld [vmem:[%s11403_s10 + $0x78] sm:$0xff]  ;;  %v11689_v3 = vld [vmem:[#allocation8_spill] sm:$0xff] }
 0xa85   : > { %5210 = vperm.xlu0 %7683, %v5132_v24   ;;  %5440 = vperm.xlu1 %7684, %v5422_v20  }
 0xa86   : > { %v7614_v7 = vpack.c.bf16 %v11055_v16, %v11058_v36  ;;  %v11700_v36 = vld [vmem:[#allocation22_spill] sm:$0xff] }
 0xa88   : > { %v7294_v26 = vpop.f32.mrb[120].mxu0 }
 0xa89   : > { %v4956_v56 = vadd.f32 %v7294_v26, %v10984_v23  ;;  %v4950_v54 = vpop.f32.mrb[121].mxu0  ;;  %5445 = vperm.xlu0 %7683, %v5423_v29   ;;  %5450 = vperm.xlu1 %7684, %v5424_v60   ;;  %v5430_v26 = vld [vmem:[%s11405_s12 + $0x40] sm:$0xff]  ;;  %v11690_v29 = vld [vmem:[#allocation12_spill] sm:$0xff] }
 0xa8a   : > { %v4951_v58 = vadd.f32 %v10984_v23, %v4950_v54  ;;  %v5717_v54 = vld [vmem:[%s11406_s13 + $0x30] sm:$0xff] }
 0xa8b   : > { %v11077_v43 = vadd.f32 %v4956_v56, %v11682_v19  ;;  %v5431_v19 = vld [vmem:[%s11405_s12 + $0x48] sm:$0xff] }
 0xa8c   : > { %v11080_v21 = vadd.f32 %v4951_v58, %v11683_v5 }
 0xa8d   : > { %5455 = vperm.xlu0 %7683, %v5425_v18   ;;  %5729 = vperm.xlu1 %7684, %v5711_v28  }
 0xa8e   : > { %v7618_v34 = vpack.c.bf16 %v11077_v43, %v11080_v21  ;;  %v11702_v43 = vld [vmem:[#allocation24_spill] sm:$0xff] }
 0xa90   : > { %v7297_v38 = vpop.f32.mrb[122].mxu0 }
 0xa91   : > { %v4966_v48 = vadd.f32 %v7297_v38, %v10984_v23  ;;  %v4960_v61 = vpop.f32.mrb[123].mxu0  ;;  %5734 = vperm.xlu0 %7683, %v5712_v40   ;;  %5460 = vperm.xlu1 %7684, %v5426_v1   ;;  %v11691_v38 = vld [vmem:[#allocation10_spill] sm:$0xff] }
 0xa92   : > { %v4961_v22 = vadd.f32 %v10984_v23, %v4960_v61  ;;  %v5432_v61 = vld [vmem:[%s11405_s12 + $0x50] sm:$0xff]  ;;  %v5433_v1 = vld [vmem:[%s11405_s12 + $0x58] sm:$0xff] }
 0xa93   : > { %v11099_v4 = vadd.f32 %v4966_v48, %v11684_v9  ;;  %v5718_v48 = vld [vmem:[%s11406_s13 + $0x38] sm:$0xff] }
 0xa94   : > { %v11102_v8 = vadd.f32 %v4961_v22, %v11685_v17  ;;  %v5719_v22 = vld [vmem:[%s11406_s13 + $0x40] sm:$0xff] }
 0xa95   : > { %5739 = vperm.xlu0 %7683, %v5713_v49   ;;  %5465 = vperm.xlu1 %7684, %v5427_v46   ;;  %v5720_v49 = vld [vmem:[%s11406_s13 + $0x48] sm:$0xff]  ;;  %v11693_v46 = vld [vmem:[#allocation13_spill] sm:$0xff] }
 0xa96   : > { %v7622_v14 = vpack.c.bf16 %v11099_v4, %v11102_v8  ;;  %v11704_v4 = vld [vmem:[#allocation26_spill] sm:$0xff] }
 0xa98   : > { %v7300_v57 = vpop.f32.mrb[124].mxu0 }
 0xa99   : > { %v4976_v31 = vadd.f32 %v7300_v57, %v10984_v23  ;;  %v4970_v25 = vpop.f32.mrb[125].mxu0  ;;  %5744 = vperm.xlu0 %7683, %v5714_v44   ;;  %5470 = vperm.xlu1 %7684, %v5428_v12   ;;  %v5435_v12 = vld [vmem:[%s11405_s12 + $0x68] sm:$0xff] }
 0xa9a   : > { %v4971_v63 = vadd.f32 %v10984_v23, %v4970_v25 }
 0xa9b   : > { %v11121_v42 = vadd.f32 %v4976_v31, %v11686_v32  ;;  %v11692_v31 = vld [vmem:[#allocation14_spill] sm:$0xff] }
 0xa9c   : > { %v11124_v51 = vadd.f32 %v4971_v63, %v11687_v0 }
 0xa9d   : > { %5749 = vperm.xlu0 %7683, %v5715_v41   ;;  %5475 = vperm.xlu1 %7684, %v5429_v10   ;;  %v5722_v41 = vld [vmem:[%s11406_s13 + $0x58] sm:$0xff]  ;;  %v11695_v10 = vld [vmem:[#allocation15_spill] sm:$0xff] }
 0xa9e   : > { %v7626_v45 = vpack.c.bf16 %v11121_v42, %v11124_v51  ;;  %v5104_v42 = vld [vmem:[%s11402_s9 + $0x18] sm:$0xff]  ;;  %v5105_v51 = vld [vmem:[%s11402_s9 + $0x20] sm:$0xff] }
 0xaa0   : > { %v7303_v2 = vpop.f32.mrb[126].mxu0 }
 0xaa1   : > { %v4986_v35 = vadd.f32 %v7303_v2, %v10984_v23  ;;  %v4980_v37 = vpop.f32.mrb[127].mxu0  ;;  %5754 = vperm.xlu0 %7683, %v5716_v62   ;;  %5480 = vperm.xlu1 %7684, %v5430_v26   ;;  %v5437_v26 = vld [vmem:[%s11405_s12 + $0x78] sm:$0xff] }
 0xaa2   : > { %v4981_v11 = vadd.f32 %v10984_v23, %v4980_v37 }
 0xaa3   : > { %v11143_v59 = vadd.f32 %v4986_v35, %v11688_v47  ;;  %v11694_v35 = vld [vmem:[#allocation16_spill] sm:$0xff] }
 0xaa4   : > { %v11146_v39 = vadd.f32 %v4981_v11, %v11689_v3 }
 0xaa5   : > { %5759 = vperm.xlu0 %7683, %v5717_v54   ;;  %5485 = vperm.xlu1 %7684, %v5431_v19   ;;  %v5724_v54 = vld [vmem:[%s11406_s13 + $0x68] sm:$0xff]  ;;  %v11697_v19 = vld [vmem:[#allocation17_spill] sm:$0xff] }
 0xaa6   : > { %v7630_v24 = vpack.c.bf16 %v11143_v59, %v11146_v39  ;;  %v5108_v59 = vld [vmem:[%s11402_s9 + $0x38] sm:$0xff]  ;;  %v5109_v39 = vld [vmem:[%s11402_s9 + $0x40] sm:$0xff] }
 0xaa8   : > { %v7306_v56 = vpop.f32.mrb[128].mxu0 }
 0xaa9   : > { %v4996_v20 = vadd.f32 %v7306_v56, %v10984_v23  ;;  %v4990_v58 = vpop.f32.mrb[129].mxu0  ;;  %5764 = vperm.xlu0 %7683, %v5718_v48   ;;  %5490 = vperm.xlu1 %7684, %v5432_v61   ;;  %v11698_v61 = vld [vmem:[#allocation20_spill] sm:$0xff] }
 0xaaa   : > { %v4991_v5 = vadd.f32 %v10984_v23, %v4990_v58 }
 0xaab   : > { %v5086_v60 = vadd.f32 %v4996_v20, %v11690_v29  ;;  %v11696_v20 = vld [vmem:[#allocation18_spill] sm:$0xff] }
 0xaac   : > { %v5085_v18 = vadd.f32 %v4991_v5, %v11691_v38 }
 0xaad   : > { %5769 = vperm.xlu0 %7683, %v5719_v22   ;;  %5495 = vperm.xlu1 %7684, %v5433_v1   ;;  %v11699_v22 = vld [vmem:[#allocation19_spill] sm:$0xff] }
 0xaae   : > { %v7600_v28 = vpack.c.bf16 %v5086_v60, %v5085_v18  ;;  %v5881_v18 = vld [vmem:[#allocation2] sm:$0x1] }
 0xab0   : > { %v7309_v9 = vpop.f32.mrb[130].mxu0  ;;  %7601 = vmatprep.subr.bf16.mxu1 %v7600_v28 }
 0xab1   : > { %v5006_v17 = vadd.f32 %v7309_v9, %v10984_v23  ;;  %v5000_v40 = vpop.f32.mrb[131].mxu0  ;;  %7603 = vmatpush3.bf16.xpose.msra.mxu1 %v7602_v30  ;;  %5774 = vperm.xlu0 %7683, %v5720_v49   ;;  %v5721_v30 = vld [vmem:[%s11406_s13 + $0x50] sm:$0xff] }
 0xab2   : > { %v5001_v57 = vadd.f32 %v10984_v23, %v5000_v40  ;;  %5500 = vperm.xlu1 %7684, %v5434_v33   ;;  %v11701_v49 = vld [vmem:[#allocation21_spill] sm:$0xff] }
 0xab3   : > { %v5088_v25 = vadd.f32 %v5006_v17, %v11692_v31 }
 0xab4   : > { %v5087_v63 = vadd.f32 %v5001_v57, %v11693_v46 }
 0xab5   : > { %5779 = vperm.xlu0 %7683, %v5721_v30  }
 0xab6   : > { %v7604_v53 = vpack.c.bf16 %v5088_v25, %v5087_v63  ;;  %5505 = vperm.xlu1 %7684, %v5435_v12  }
 0xab8   : > { %v7312_v32 = vpop.f32.mrb[132].mxu0  ;;  %7605 = vmatprep.subr.bf16.mxu1 %v7604_v53 }
 0xab9   : > { %v5016_v0 = vadd.f32 %v7312_v32, %v10984_v23  ;;  %v5010_v44 = vpop.f32.mrb[133].mxu0  ;;  %7607 = vmatpush3.bf16.xpose.msra.mxu1 %v7606_v13  ;;  %5784 = vperm.xlu0 %7683, %v5722_v41   ;;  %v5723_v13 = vld [vmem:[%s11406_s13 + $0x60] sm:$0xff] }
 0xaba   : > { %v5011_v2 = vadd.f32 %v10984_v23, %v5010_v44  ;;  %5510 = vperm.xlu1 %7684, %v5436_v50   ;;  %v5113_v50 = vld [vmem:[%s11402_s9 + $0x60] sm:$0xff] }
 0xabb   : > { %v5090_v37 = vadd.f32 %v5016_v0, %v11694_v35 }
 0xabc   : > { %v5089_v11 = vadd.f32 %v5011_v2, %v11695_v10  ;;  %v5111_v10 = vld [vmem:[%s11402_s9 + $0x50] sm:$0xff] }
 0xabd   : > { %5789 = vperm.xlu0 %7683, %v5723_v13   ;;  %v5115_v13 = vld [vmem:[%s11402_s9 + $0x70] sm:$0xff] }
 0xabe   : > { %v7608_v6 = vpack.c.bf16 %v5090_v37, %v5089_v11  ;;  %5515 = vperm.xlu1 %7684, %v5437_v26   ;;  %v5102_v37 = vld [vmem:[%s11402_s9 + $0x8] sm:$0xff]  ;;  %v5112_v11 = vld [vmem:[%s11402_s9 + $0x58] sm:$0xff] }
 0xac0   : > { %v7315_v47 = vpop.f32.mrb[134].mxu0  ;;  %7609 = vmatprep.subr.bf16.mxu1 %v7608_v6  ;;  %v5114_v6 = vld [vmem:[%s11402_s9 + $0x68] sm:$0xff] }
 0xac1   : > { %v5026_v3 = vadd.f32 %v7315_v47, %v10984_v23  ;;  %v5020_v62 = vpop.f32.mrb[135].mxu0  ;;  %7611 = vmatpush3.bf16.xpose.msra.mxu1 %v7610_v52  ;;  %5794 = vperm.xlu0 %7683, %v5724_v54   ;;  %v5726_v52 = vld [vmem:[%s11406_s13 + $0x78] sm:$0xff] }
 0xac2   : > { %v5021_v56 = vadd.f32 %v10984_v23, %v5020_v62  ;;  %5799 = vperm.xlu1 %7684, %v5725_v15   ;;  %v5116_v47 = vld [vmem:[%s11402_s9 + $0x78] sm:$0xff]  ;;  %v5141_v62 = vpop.permute.xlu1 %5140 }
 0xac3   : > { %v5092_v58 = vadd.f32 %v5026_v3, %v11696_v20  ;;  %v7950_v3 = vmov 0.0   ;;  %v5136_v20 = vpop.permute.xlu0 %5135 }
 0xac4   : > { %v5091_v5 = vadd.f32 %v5021_v56, %v11697_v19  ;;  %5582 = vmatprep.mubr.f32.mxu0 %v7950_v3 }
 0xac5   : > { %5804 = vperm.xlu0 %7683, %v5726_v52  }
 0xac6   : > { %v7612_v27 = vpack.c.bf16 %v5092_v58, %v5091_v5  ;;  %5884 = vperm.xlu1 %7684, %v5881_v18   ;;  %v5146_v26 = vpop.permute.xlu1 %5145 }
 0xac8   : > { %v7318_v29 = vpop.f32.mrb[136].mxu0  ;;  %7613 = vmatprep.subr.bf16.mxu1 %v7612_v27 }
 0xac9   : > { %v5036_v60 = vadd.f32 %v7318_v29, %v10984_v23  ;;  %v5030_v38 = vpop.f32.mrb[137].mxu0  ;;  %7615 = vmatpush3.bf16.xpose.msra.mxu1 %v7614_v7 }
 0xaca   : > { %v5031_v48 = vadd.f32 %v10984_v23, %v5030_v38  ;;  %v5151_v19 = vpop.permute.xlu1 %5150 }
 0xacb   : > { %v5094_v28 = vadd.f32 %v5036_v60, %v11698_v61 }
 0xacc   : > { %v5093_v9 = vadd.f32 %v5031_v48, %v11699_v22 }
 0xace   : > { %v7616_v17 = vpack.c.bf16 %v5094_v28, %v5093_v9  ;;  %v5156_v9 = vpop.permute.xlu1 %5155 }
 0xad0   : > { %v7321_v40 = vpop.f32.mrb[138].mxu0  ;;  %7617 = vmatprep.subr.bf16.mxu1 %v7616_v17 }
 0xad1   : > { %v5046_v1 = vadd.f32 %v7321_v40, %v10984_v23  ;;  %v5040_v57 = vpop.f32.mrb[139].mxu0  ;;  %7619 = vmatpush3.bf16.xpose.msra.mxu1 %v7618_v34  ;;  %v11703_v34 = vld [vmem:[#allocation23_spill] sm:$0xff] }
 0xad2   : > { %v5041_v16 = vadd.f32 %v10984_v23, %v5040_v57 }
 0xad3   : > { %v5096_v7 = vadd.f32 %v5046_v1, %v11700_v36 }
 0xad4   : > { %v5095_v31 = vadd.f32 %v5041_v16, %v11701_v49 }
 0xad6   : > { %v7620_v25 = vpack.c.bf16 %v5096_v7, %v5095_v31 }
 0xad8   : > { %v7324_v46 = vpop.f32.mrb[140].mxu0  ;;  %7621 = vmatprep.subr.bf16.mxu1 %v7620_v25  ;;  %v5161_v25 = vpop.permute.xlu1 %5160 }
 0xad9   : > { %v5056_v63 = vadd.f32 %v7324_v46, %v10984_v23  ;;  %v5050_v33 = vpop.f32.mrb[141].mxu0  ;;  %7623 = vmatpush3.bf16.xpose.msra.mxu1 %v7622_v14  ;;  %v11705_v14 = vld [vmem:[#allocation25_spill] sm:$0xff] }
 0xada   : > { %v5051_v53 = vadd.f32 %v10984_v23, %v5050_v33 }
 0xadb   : > { %v5098_v21 = vadd.f32 %v5056_v63, %v11702_v43 }
 0xadc   : > { %v5097_v30 = vadd.f32 %v5051_v53, %v11703_v34 }
 0xade   : > { %v7624_v32 = vpack.c.bf16 %v5098_v21, %v5097_v30 }
 0xae0   : > { %v7327_v0 = vpop.f32.mrb[142].mxu0  ;;  %7625 = vmatprep.subr.bf16.mxu1 %v7624_v32 }
 0xae1   : > { %v5066_v44 = vadd.f32 %v7327_v0, %v10984_v23  ;;  %v5060_v12 = vpop.f32.mrb[143].mxu0  ;;  %7627 = vmatpush3.bf16.xpose.msra.mxu1 %v7626_v45  ;;  %v5107_v45 = vld [vmem:[%s11402_s9 + $0x30] sm:$0xff] }
 0xae2   : > { %v5061_v2 = vadd.f32 %v10984_v23, %v5060_v12  ;;  %v5103_v23 = vld [vmem:[%s11402_s9 + $0x10] sm:$0xff] }
 0xae3   : > { %v5100_v8 = vadd.f32 %v5066_v44, %v11704_v4 }
 0xae4   : > { %v5099_v41 = vadd.f32 %v5061_v2, %v11705_v14 }
 0xae6   : > { %v7628_v35 = vpack.c.bf16 %v5100_v8, %v5099_v41 }
 0xae8   : > { %7629 = vmatprep.subr.bf16.mxu1 %v7628_v35 }
 0xae9   : > { %7631 = vmatpush3.bf16.xpose.msra.mxu1 %v7630_v24  ;;  %v5110_v24 = vld [vmem:[%s11402_s9 + $0x48] sm:$0xff] }
 0xaeb   : > { %v5166_v12 = vpop.permute.xlu1 %5165 }
 0xaf0   : > { %6593 = vmatmul.mubr.f32.vlgmr.msra.gmra.mrb[144].mxu1 %v10993_v55  ;;  %v5106_v55 = vld [vmem:[%s11402_s9 + $0x28] sm:$0xff] }
 0xaf1   : > { %6594 = vmatprep.mubr.f32.mxu1 %v5102_v37 }
 0xaf4   : > { %6595 = vmatmul.mubr.f32.gmra.mrb[146].mxu1 %v5102_v37 }
 0xaf5   : > { %6596 = vmatprep.mubr.f32.mxu1 %v5103_v23 }
 0xaf8   : > { %6597 = vmatmul.mubr.f32.gmra.mrb[148].mxu1 %v5103_v23 }
 0xaf9   : > { %6598 = vmatprep.mubr.f32.mxu1 %v5104_v42 }
 0xafc   : > { %6599 = vmatmul.mubr.f32.gmra.mrb[150].mxu1 %v5104_v42 }
 0xafd   : > { %6600 = vmatprep.mubr.f32.mxu1 %v5105_v51 }
 0xb00   : > { %6601 = vmatmul.mubr.f32.gmra.mrb[152].mxu1 %v5105_v51 }
 0xb01   : > { %6602 = vmatprep.mubr.f32.mxu1 %v5106_v55 }
 0xb04   : > { %6603 = vmatmul.mubr.f32.gmra.mrb[154].mxu1 %v5106_v55  ;;  %v5171_v55 = vpop.permute.xlu1 %5170 }
 0xb05   : > { %6604 = vmatprep.mubr.f32.mxu1 %v5107_v45 }
 0xb08   : > { %6605 = vmatmul.mubr.f32.gmra.mrb[156].mxu1 %v5107_v45 }
 0xb09   : > { %6606 = vmatprep.mubr.f32.mxu1 %v5108_v59 }
 0xb0c   : > { %6607 = vmatmul.mubr.f32.gmra.mrb[158].mxu1 %v5108_v59 }
 0xb0d   : > { %6608 = vmatprep.mubr.f32.mxu1 %v5109_v39 }
 0xb10   : > { %6609 = vmatmul.mubr.f32.gmra.mrb[160].mxu1 %v5109_v39 }
 0xb11   : > { %6610 = vmatprep.mubr.f32.mxu1 %v5110_v24 }
 0xb14   : > { %6611 = vmatmul.mubr.f32.gmra.mrb[162].mxu1 %v5110_v24 }
 0xb15   : > { %6612 = vmatprep.mubr.f32.mxu1 %v5111_v10 }
 0xb18   : > { %6613 = vmatmul.mubr.f32.gmra.mrb[164].mxu1 %v5111_v10 }
 0xb19   : > { %6614 = vmatprep.mubr.f32.mxu1 %v5112_v11 }
 0xb1c   : > { %6615 = vmatmul.mubr.f32.gmra.mrb[166].mxu1 %v5112_v11 }
 0xb1d   : > { %6616 = vmatprep.mubr.f32.mxu1 %v5113_v50 }
 0xb20   : > { %6617 = vmatmul.mubr.f32.gmra.mrb[168].mxu1 %v5113_v50 }
 0xb21   : > { %6618 = vmatprep.mubr.f32.mxu1 %v5114_v6 }
 0xb24   : > { %6619 = vmatmul.mubr.f32.gmra.mrb[170].mxu1 %v5114_v6 }
 0xb25   : > { %6620 = vmatprep.mubr.f32.mxu1 %v5115_v13 }
 0xb28   : > { %6621 = vmatmul.mubr.f32.gmra.mrb[172].mxu1 %v5115_v13 }
 0xb29   : > { %6622 = vmatprep.mubr.f32.mxu1 %v5116_v47 }
 0xb2c   : > { %6623 = vmatmul.mubr.f32.gmra.mrb[174].mxu1 %v5116_v47 }
 0xbc3   : > { %v5279_v56 = vpop.f32.mrb[144].mxu1 }
 0xbc4   : > { %v5281_v54 = vpop.f32.mrb[145].mxu1  ;;  %v5280_v58 = vadd.f32 %v5279_v56, %v5136_v20  ;;  %v5176_v56 = vpop.permute.xlu1 %5175 }
 0xbc5   : > { %v5282_v5 = vadd.f32 %v5281_v54, %v5136_v20 }
 0xbc6   : > { %v5374_v60 = vmax.f32 %v5280_v58, 0.0  ;;  %v5181_v58 = vpop.permute.xlu0 %5180 }
 0xbc7   : > { %v5285_v15 = vpop.f32.mrb[146].mxu1  ;;  %v5375_v18 = vmax.f32 %v5282_v5, 0.0 }
 0xbc8   : > { %v5286_v27 = vadd.f32 %v5285_v15, %v5141_v62  ;;  %v5287_v52 = vpop.f32.mrb[147].mxu1 }
 0xbc9   : > { %v5288_v29 = vadd.f32 %v5287_v52, %v5141_v62 }
 0xbca   : > { %v5376_v38 = vmax.f32 %v5286_v27, 0.0 }
 0xbcb   : > { %v5377_v48 = vmax.f32 %v5288_v29, 0.0  ;;  %v5291_v61 = vpop.f32.mrb[148].mxu1 }
 0xbcc   : > { %v7634_v28 = vpack.c.bf16 %v5376_v38, %v5374_v60  ;;  %v5293_v22 = vpop.f32.mrb[149].mxu1  ;;  %v5292_v40 = vadd.f32 %v5291_v61, %v5146_v26 }
 0xbcd   : > { %v7632_v17 = vpack.c.bf16 %v5377_v48, %v5375_v18  ;;  %v5294_v1 = vadd.f32 %v5293_v22, %v5146_v26  ;;  %v5186_v22 = vpop.permute.xlu1 %5185 }
 0xbce   : > { %v5378_v49 = vmax.f32 %v5292_v40, 0.0  ;;  %v5191_v40 = vpop.permute.xlu0 %5190 }
 0xbcf   : > { %v5297_v57 = vpop.f32.mrb[150].mxu1  ;;  %7633 = vmatprep.subr.bf16.mxu0 %v7632_v17  ;;  %v5379_v46 = vmax.f32 %v5294_v1, 0.0 }
 0xbd0   : > { %v5298_v16 = vadd.f32 %v5297_v57, %v5151_v19  ;;  %v5299_v36 = vpop.f32.mrb[151].mxu1  ;;  %7635 = vmatpush1.bf16.msra.mxu0 %v7634_v28 }
 0xbd1   : > { %v5300_v7 = vadd.f32 %v5299_v36, %v5151_v19 }
 0xbd2   : > { %v5380_v31 = vmax.f32 %v5298_v16, 0.0 }
 0xbd3   : > { %v5381_v63 = vmax.f32 %v5300_v7, 0.0  ;;  %v5303_v33 = vpop.f32.mrb[152].mxu1 }
 0xbd4   : > { %v7638_v53 = vpack.c.bf16 %v5380_v31, %v5378_v49  ;;  %v5305_v43 = vpop.f32.mrb[153].mxu1  ;;  %v5304_v34 = vadd.f32 %v5303_v33, %v5156_v9 }
 0xbd5   : > { %v7636_v21 = vpack.c.bf16 %v5381_v63, %v5379_v46  ;;  %v5306_v30 = vadd.f32 %v5305_v43, %v5156_v9  ;;  %v5196_v43 = vpop.permute.xlu1 %5195 }
 0xbd6   : > { %v5382_v4 = vmax.f32 %v5304_v34, 0.0 }
 0xbd7   : > { %v5309_v32 = vpop.f32.mrb[154].mxu1  ;;  %7637 = vmatprep.subr.bf16.mxu0 %v7636_v21  ;;  %v5383_v14 = vmax.f32 %v5306_v30, 0.0  ;;  %v5201_v30 = vpop.permute.xlu0 %5200 }
 0xbd8   : > { %v5310_v0 = vadd.f32 %v5309_v32, %v5161_v25  ;;  %v5311_v44 = vpop.f32.mrb[155].mxu1  ;;  %7639 = vmatpush1.bf16.msra.mxu0 %v7638_v53 }
 0xbd9   : > { %v5312_v2 = vadd.f32 %v5311_v44, %v5161_v25 }
 0xbda   : > { %v5384_v8 = vmax.f32 %v5310_v0, 0.0 }
 0xbdb   : > { %v5385_v41 = vmax.f32 %v5312_v2, 0.0  ;;  %v5315_v35 = vpop.f32.mrb[156].mxu1 }
 0xbdc   : > { %v7642_v37 = vpack.c.bf16 %v5384_v8, %v5382_v4  ;;  %v5317_v23 = vpop.f32.mrb[157].mxu1  ;;  %v5316_v51 = vadd.f32 %v5315_v35, %v5166_v12 }
 0xbdd   : > { %v7640_v42 = vpack.c.bf16 %v5385_v41, %v5383_v14  ;;  %v5318_v45 = vadd.f32 %v5317_v23, %v5166_v12 }
 0xbde   : > { %v5386_v11 = vmax.f32 %v5316_v51, 0.0 }
 0xbdf   : > { %v5321_v59 = vpop.f32.mrb[158].mxu1  ;;  %7641 = vmatprep.subr.bf16.mxu0 %v7640_v42  ;;  %v5387_v6 = vmax.f32 %v5318_v45, 0.0  ;;  %v5206_v42 = vpop.permute.xlu1 %5205 }
 0xbe0   : > { %v5322_v39 = vadd.f32 %v5321_v59, %v5171_v55  ;;  %v5323_v24 = vpop.f32.mrb[159].mxu1  ;;  %7643 = vmatpush1.bf16.msra.mxu0 %v7642_v37  ;;  %v5211_v45 = vpop.permute.xlu0 %5210 }
 0xbe1   : > { %v5324_v10 = vadd.f32 %v5323_v24, %v5171_v55 }
 0xbe2   : > { %v5388_v50 = vmax.f32 %v5322_v39, 0.0 }
 0xbe3   : > { %v5389_v13 = vmax.f32 %v5324_v10, 0.0  ;;  %v5327_v47 = vpop.f32.mrb[160].mxu1 }
 0xbe4   : > { %v7646_v62 = vpack.c.bf16 %v5388_v50, %v5386_v11  ;;  %v5329_v26 = vpop.f32.mrb[161].mxu1  ;;  %v5328_v20 = vadd.f32 %v5327_v47, %v5176_v56 }
 0xbe5   : > { %v7644_v54 = vpack.c.bf16 %v5389_v13, %v5387_v6  ;;  %v5330_v19 = vadd.f32 %v5329_v26, %v5176_v56  ;;  %v5406_v56 = vld [vmem:[%s11404_s11] sm:$0xff] }
 0xbe6   : > { %v5390_v29 = vmax.f32 %v5328_v20, 0.0  ;;  %v5408_v20 = vld [vmem:[%s11404_s11 + $0x10] sm:$0xff] }
 0xbe7   : > { %v5333_v5 = vpop.f32.mrb[162].mxu1  ;;  %7645 = vmatprep.subr.bf16.mxu0 %v7644_v54  ;;  %v5391_v38 = vmax.f32 %v5330_v19, 0.0  ;;  %v5407_v54 = vld [vmem:[%s11404_s11 + $0x8] sm:$0xff]  ;;  %v5410_v19 = vld [vmem:[%s11404_s11 + $0x20] sm:$0xff] }
 0xbe8   : > { %v5334_v15 = vadd.f32 %v5333_v5, %v5181_v58  ;;  %v5335_v27 = vpop.f32.mrb[163].mxu1  ;;  %7647 = vmatpush1.bf16.msra.mxu0 %v7646_v62  ;;  %v5411_v5 = vld [vmem:[%s11404_s11 + $0x28] sm:$0xff] }
 0xbe9   : > { %v5336_v52 = vadd.f32 %v5335_v27, %v5181_v58  ;;  %v5409_v58 = vld [vmem:[%s11404_s11 + $0x18] sm:$0xff] }
 0xbea   : > { %v5392_v60 = vmax.f32 %v5334_v15, 0.0  ;;  %v5412_v15 = vld [vmem:[%s11404_s11 + $0x30] sm:$0xff]  ;;  %v5413_v27 = vld [vmem:[%s11404_s11 + $0x38] sm:$0xff] }
 0xbeb   : > { %v5393_v18 = vmax.f32 %v5336_v52, 0.0  ;;  %v5339_v48 = vpop.f32.mrb[164].mxu1  ;;  %v5414_v52 = vld [vmem:[%s11404_s11 + $0x40] sm:$0xff] }
 0xbec   : > { %v7650_v61 = vpack.c.bf16 %v5392_v60, %v5390_v29  ;;  %v5341_v28 = vpop.f32.mrb[165].mxu1  ;;  %v5340_v17 = vadd.f32 %v5339_v48, %v5186_v22  ;;  %v5415_v29 = vld [vmem:[%s11404_s11 + $0x48] sm:$0xff]  ;;  %v5416_v60 = vld [vmem:[%s11404_s11 + $0x50] sm:$0xff] }
 0xbed   : > { %v7648_v9 = vpack.c.bf16 %v5393_v18, %v5391_v38  ;;  %v5342_v1 = vadd.f32 %v5341_v28, %v5186_v22  ;;  %v5417_v38 = vld [vmem:[%s11404_s11 + $0x58] sm:$0xff]  ;;  %v5418_v18 = vld [vmem:[%s11404_s11 + $0x60] sm:$0xff]  ;;  %v5419_v48 = vld [vmem:[%s11404_s11 + $0x68] sm:$0xff]  ;;  %v5441_v22 = vpop.permute.xlu1 %5440 }
 0xbee   : > { %v5394_v49 = vmax.f32 %v5340_v17, 0.0  ;;  %v5421_v28 = vld [vmem:[%s11404_s11 + $0x78] sm:$0xff] }
 0xbef   : > { %v5345_v57 = vpop.f32.mrb[166].mxu1  ;;  %7649 = vmatprep.subr.bf16.mxu0 %v7648_v9  ;;  %v5395_v25 = vmax.f32 %v5342_v1, 0.0  ;;  %v5446_v9 = vpop.permute.xlu0 %5445 }
 0xbf0   : > { %v5346_v16 = vadd.f32 %v5345_v57, %v5191_v40  ;;  %v5347_v36 = vpop.f32.mrb[167].mxu1  ;;  %7651 = vmatpush1.bf16.msra.mxu0 %v7650_v61  ;;  %v5420_v61 = vld [vmem:[%s11404_s11 + $0x70] sm:$0xff] }
 0xbf1   : > { %v5348_v7 = vadd.f32 %v5347_v36, %v5191_v40  ;;  %v5451_v17 = vpop.permute.xlu1 %5450 }
 0xbf2   : > { %v5396_v31 = vmax.f32 %v5346_v16, 0.0 }
 0xbf3   : > { %v5397_v46 = vmax.f32 %v5348_v7, 0.0  ;;  %v5351_v63 = vpop.f32.mrb[168].mxu1  ;;  %v5456_v40 = vpop.permute.xlu0 %5455 }
 0xbf4   : > { %v7654_v33 = vpack.c.bf16 %v5396_v31, %v5394_v49  ;;  %v5353_v53 = vpop.f32.mrb[169].mxu1  ;;  %v5352_v34 = vadd.f32 %v5351_v63, %v5196_v43 }
 0xbf5   : > { %v7652_v21 = vpack.c.bf16 %v5397_v46, %v5395_v25  ;;  %v5354_v32 = vadd.f32 %v5353_v53, %v5196_v43  ;;  %v5730_v1 = vpop.permute.xlu1 %5729 }
 0xbf6   : > { %v5398_v4 = vmax.f32 %v5352_v34, 0.0 }
 0xbf7   : > { %v5357_v0 = vpop.f32.mrb[170].mxu1  ;;  %7653 = vmatprep.subr.bf16.mxu0 %v7652_v21  ;;  %v5399_v14 = vmax.f32 %v5354_v32, 0.0  ;;  %v5735_v57 = vpop.permute.xlu0 %5734 }
 0xbf8   : > { %v5358_v44 = vadd.f32 %v5357_v0, %v5201_v30  ;;  %v5359_v12 = vpop.f32.mrb[171].mxu1  ;;  %7655 = vmatpush1.bf16.msra.mxu0 %v7654_v33 }
 0xbf9   : > { %v5360_v2 = vadd.f32 %v5359_v12, %v5201_v30  ;;  %v5461_v16 = vpop.permute.xlu1 %5460 }
 0xbfa   : > { %v5400_v8 = vmax.f32 %v5358_v44, 0.0 }
 0xbfb   : > { %v5401_v41 = vmax.f32 %v5360_v2, 0.0  ;;  %v5363_v35 = vpop.f32.mrb[172].mxu1  ;;  %v5740_v36 = vpop.permute.xlu0 %5739 }
 0xbfc   : > { %v7658_v37 = vpack.c.bf16 %v5400_v8, %v5398_v4  ;;  %v5365_v23 = vpop.f32.mrb[173].mxu1  ;;  %v5364_v55 = vadd.f32 %v5363_v35, %v5206_v42 }
 0xbfd   : > { %v7656_v51 = vpack.c.bf16 %v5401_v41, %v5399_v14  ;;  %v5366_v59 = vadd.f32 %v5365_v23, %v5206_v42  ;;  %v5466_v7 = vpop.permute.xlu1 %5465 }
 0xbfe   : > { %v5402_v50 = vmax.f32 %v5364_v55, 0.0 }
 0xbff   : > { %v5369_v39 = vpop.f32.mrb[174].mxu1  ;;  %7657 = vmatprep.subr.bf16.mxu0 %v7656_v51  ;;  %v5403_v13 = vmax.f32 %v5366_v59, 0.0  ;;  %v5745_v49 = vpop.permute.xlu0 %5744 }
 0xc00   : > { %v5370_v24 = vadd.f32 %v5369_v39, %v5211_v45  ;;  %v5371_v10 = vpop.f32.mrb[175].mxu1  ;;  %7659 = vmatpush1.bf16.msra.mxu0 %v7658_v37 }
 0xc01   : > { %v5372_v11 = vadd.f32 %v5371_v10, %v5211_v45  ;;  %v11373_v31 = vpop.permute.xlu1 %5470 }
 0xc02   : > { %v5404_v6 = vmax.f32 %v5370_v24, 0.0 }
 0xc03   : > { %v5405_v47 = vmax.f32 %v5372_v11, 0.0  ;;  %v5750_v63 = vpop.permute.xlu0 %5749 }
 0xc04   : > { %v7662_v62 = vpack.c.bf16 %v5404_v6, %v5402_v50 }
 0xc05   : > { %v7660_v26 = vpack.c.bf16 %v5405_v47, %v5403_v13  ;;  %v11375_v30 = vpop.permute.xlu1 %5475 }
 0xc07   : > { %7661 = vmatprep.subr.bf16.mxu0 %v7660_v26  ;;  %v5755_v12 = vpop.permute.xlu0 %5754 }
 0xc08   : > { %7663 = vmatpush1.bf16.msra.mxu0 %v7662_v62 }
 0xc09   : > { %v11377_v45 = vpop.permute.xlu1 %5480 }
 0xc0b   : > { %5583 = vmatmul.mubr.f32.vlgmr.msra.gmra.mrb[144].mxu0 %v5406_v56  ;;  %v5760_v6 = vpop.permute.xlu0 %5759 }
 0xc0c   : > { %5588 = vmatprep.mubr.f32.mxu0 %v7950_v3 }
 0xc0f   : > { %5589 = vmatmul.mubr.f32.gmra.mrb[146].mxu0 %v5407_v54 }
 0xc10   : > { %5594 = vmatprep.mubr.f32.mxu0 %v7950_v3 }
 0xc13   : > { %5595 = vmatmul.mubr.f32.gmra.mrb[148].mxu0 %v5408_v20 }
 0xc14   : > { %5600 = vmatprep.mubr.f32.mxu0 %v7950_v3 }
 0xc17   : > { %5601 = vmatmul.mubr.f32.gmra.mrb[150].mxu0 %v5409_v58 }
 0xc18   : > { %5606 = vmatprep.mubr.f32.mxu0 %v7950_v3 }
 0xc1b   : > { %5607 = vmatmul.mubr.f32.gmra.mrb[152].mxu0 %v5410_v19 }
 0xc1c   : > { %5612 = vmatprep.mubr.f32.mxu0 %v7950_v3 }
 0xc1f   : > { %5613 = vmatmul.mubr.f32.gmra.mrb[154].mxu0 %v5411_v5 }
 0xc20   : > { %5618 = vmatprep.mubr.f32.mxu0 %v7950_v3 }
 0xc23   : > { %5619 = vmatmul.mubr.f32.gmra.mrb[156].mxu0 %v5412_v15  ;;  %v5486_v15 = vpop.permute.xlu1 %5485 }
 0xc24   : > { %5624 = vmatprep.mubr.f32.mxu0 %v7950_v3 }
 0xc27   : > { %5625 = vmatmul.mubr.f32.gmra.mrb[158].mxu0 %v5413_v27 }
 0xc28   : > { %5630 = vmatprep.mubr.f32.mxu0 %v7950_v3 }
 0xc2b   : > { %5631 = vmatmul.mubr.f32.gmra.mrb[160].mxu0 %v5414_v52 }
 0xc2c   : > { %5636 = vmatprep.mubr.f32.mxu0 %v7950_v3 }
 0xc2f   : > { %5637 = vmatmul.mubr.f32.gmra.mrb[162].mxu0 %v5415_v29 }
 0xc30   : > { %5642 = vmatprep.mubr.f32.mxu0 %v7950_v3 }
 0xc33   : > { %5643 = vmatmul.mubr.f32.gmra.mrb[164].mxu0 %v5416_v60 }
 0xc34   : > { %5648 = vmatprep.mubr.f32.mxu0 %v7950_v3 }
 0xc37   : > { %5649 = vmatmul.mubr.f32.gmra.mrb[166].mxu0 %v5417_v38  ;;  %v5765_v38 = vpop.permute.xlu0 %5764 }
 0xc38   : > { %5654 = vmatprep.mubr.f32.mxu0 %v7950_v3 }
 0xc3b   : > { %5655 = vmatmul.mubr.f32.gmra.mrb[168].mxu0 %v5418_v18 }
 0xc3c   : > { %5660 = vmatprep.mubr.f32.mxu0 %v7950_v3 }
 0xc3f   : > { %5661 = vmatmul.mubr.f32.gmra.mrb[170].mxu0 %v5419_v48 }
 0xc40   : > { %5666 = vmatprep.mubr.f32.mxu0 %v7950_v3 }
 0xc43   : > { %5667 = vmatmul.mubr.f32.gmra.mrb[172].mxu0 %v5420_v61 }
 0xc44   : > { %5672 = vmatprep.mubr.f32.mxu0 %v7950_v3 }
 0xc47   : > { %5673 = vmatmul.mubr.f32.gmra.mrb[174].mxu0 %v5421_v28 }
 0xcde   : > { %v5584_v25 = vpop.f32.mrb[144].mxu0 }
 0xcdf   : > { %v5585_v46 = vadd.f32 %v5584_v25, %v5441_v22  ;;  %v5586_v3 = vpop.f32.mrb[145].mxu0 }
 0xce0   : > { %v5587_v33 = vadd.f32 %v5586_v3, %v5441_v22 }
 0xce1   : > { %v5679_v43 = vmax.f32 %v5585_v46, 0.0 }
 0xce2   : > { %v5590_v53 = vpop.f32.mrb[146].mxu0  ;;  %v5680_v32 = vmax.f32 %v5587_v33, 0.0 }
 0xce3   : > { %v5591_v21 = vadd.f32 %v5590_v53, %v5446_v9  ;;  %v5592_v34 = vpop.f32.mrb[147].mxu0  ;;  %v5807_v8 = vmul.f32 %v5730_v1, %v5679_v43  ;;  %v5770_v53 = vpop.permute.xlu0 %5769 }
 0xce4   : > { %v5593_v0 = vadd.f32 %v5592_v34, %v5446_v9  ;;  %v5808_v37 = vmul.f32 %v5730_v1, %v5680_v32 }
 0xce5   : > { %v5681_v44 = vmax.f32 %v5591_v21, 0.0 }
 0xce6   : > { %v5682_v2 = vmax.f32 %v5593_v0, 0.0  ;;  %v5596_v4 = vpop.f32.mrb[148].mxu0 }
 0xce7   : > { %v5809_v14 = vmul.f32 %v5735_v57, %v5681_v44  ;;  %v5597_v41 = vadd.f32 %v5596_v4, %v5451_v17  ;;  %v5598_v35 = vpop.f32.mrb[149].mxu0 }
 0xce8   : > { %v5810_v23 = vmul.f32 %v5735_v57, %v5682_v2  ;;  %v5599_v42 = vadd.f32 %v5598_v35, %v5451_v17 }
 0xce9   : > { %v5839_v51 = vadd.f32 %v5809_v14, %v5807_v8  ;;  %v5683_v55 = vmax.f32 %v5597_v41, 0.0 }
 0xcea   : > { %v5860_v59 = vadd.f32 %v5810_v23, %v5808_v37  ;;  %v5684_v39 = vmax.f32 %v5599_v42, 0.0  ;;  %v5602_v24 = vpop.f32.mrb[150].mxu0  ;;  %v5775_v23 = vpop.permute.xlu0 %5774 }
 0xceb   : > { %v5811_v10 = vmul.f32 %v5740_v36, %v5683_v55  ;;  %v5603_v11 = vadd.f32 %v5602_v24, %v5456_v40  ;;  %v5604_v50 = vpop.f32.mrb[151].mxu0 }
 0xcec   : > { %v5812_v13 = vmul.f32 %v5740_v36, %v5684_v39  ;;  %v5605_v47 = vadd.f32 %v5604_v50, %v5456_v40  ;;  %v5491_v36 = vpop.permute.xlu1 %5490 }
 0xced   : > { %v5840_v62 = vadd.f32 %v5839_v51, %v5811_v10  ;;  %v5685_v26 = vmax.f32 %v5603_v11, 0.0 }
 0xcee   : > { %v5861_v56 = vadd.f32 %v5860_v59, %v5812_v13  ;;  %v5686_v54 = vmax.f32 %v5605_v47, 0.0  ;;  %v5608_v20 = vpop.f32.mrb[152].mxu0 }
 0xcef   : > { %v5813_v58 = vmul.f32 %v5745_v49, %v5685_v26  ;;  %v5609_v19 = vadd.f32 %v5608_v20, %v5461_v16  ;;  %v5610_v5 = vpop.f32.mrb[153].mxu0 }
 0xcf0   : > { %v5814_v27 = vmul.f32 %v5745_v49, %v5686_v54  ;;  %v5611_v52 = vadd.f32 %v5610_v5, %v5461_v16  ;;  %v5496_v8 = vpop.permute.xlu1 %5495 }
 0xcf1   : > { %v5841_v29 = vadd.f32 %v5840_v62, %v5813_v58  ;;  %v5687_v60 = vmax.f32 %v5609_v19, 0.0 }
 0xcf2   : > { %v5862_v18 = vadd.f32 %v5861_v56, %v5814_v27  ;;  %v5688_v48 = vmax.f32 %v5611_v52, 0.0  ;;  %v5614_v61 = vpop.f32.mrb[154].mxu0  ;;  %v5780_v56 = vpop.permute.xlu0 %5779 }
 0xcf3   : > { %v5815_v28 = vmul.f32 %v5750_v63, %v5687_v60  ;;  %v5615_v22 = vadd.f32 %v5614_v61, %v5466_v7  ;;  %v5616_v9 = vpop.f32.mrb[155].mxu0 }
 0xcf4   : > { %v5816_v17 = vmul.f32 %v5750_v63, %v5688_v48  ;;  %v5617_v40 = vadd.f32 %v5616_v9, %v5466_v7  ;;  %v5501_v50 = vpop.permute.xlu1 %5500 }
 0xcf5   : > { %v5842_v1 = vadd.f32 %v5841_v29, %v5815_v28  ;;  %v5689_v57 = vmax.f32 %v5615_v22, 0.0 }
 0xcf6   : > { %v5863_v25 = vadd.f32 %v5862_v18, %v5816_v17  ;;  %v5690_v46 = vmax.f32 %v5617_v40, 0.0  ;;  %v5620_v3 = vpop.f32.mrb[156].mxu0  ;;  %v5785_v22 = vpop.permute.xlu0 %5784 }
 0xcf7   : > { %v5817_v33 = vmul.f32 %v5755_v12, %v5689_v57  ;;  %v5621_v16 = vadd.f32 %v5620_v3, %v11373_v31  ;;  %v5622_v49 = vpop.f32.mrb[157].mxu0 }
 0xcf8   : > { %v5818_v43 = vmul.f32 %v5755_v12, %v5690_v46  ;;  %v5623_v21 = vadd.f32 %v5622_v49, %v11373_v31 }
 0xcf9   : > { %v5843_v34 = vadd.f32 %v5842_v1, %v5817_v33  ;;  %v5691_v32 = vmax.f32 %v5621_v16, 0.0 }
 0xcfa   : > { %v5864_v0 = vadd.f32 %v5863_v25, %v5818_v43  ;;  %v5692_v44 = vmax.f32 %v5623_v21, 0.0  ;;  %v5626_v63 = vpop.f32.mrb[158].mxu0 }
 0xcfb   : > { %v5819_v7 = vmul.f32 %v5760_v6, %v5691_v32  ;;  %v5627_v2 = vadd.f32 %v5626_v63, %v11375_v30  ;;  %v5628_v4 = vpop.f32.mrb[159].mxu0  ;;  %v5790_v32 = vpop.permute.xlu0 %5789 }
 0xcfc   : > { %v5820_v14 = vmul.f32 %v5760_v6, %v5692_v44  ;;  %v5629_v41 = vadd.f32 %v5628_v4, %v11375_v30 }
 0xcfd   : > { %v5844_v35 = vadd.f32 %v5843_v34, %v5819_v7  ;;  %v5693_v37 = vmax.f32 %v5627_v2, 0.0 }
 0xcfe   : > { %v5865_v42 = vadd.f32 %v5864_v0, %v5820_v14  ;;  %v5694_v12 = vmax.f32 %v5629_v41, 0.0  ;;  %v5632_v51 = vpop.f32.mrb[160].mxu0 }
 0xcff   : > { %v5821_v31 = vmul.f32 %v5765_v38, %v5693_v37  ;;  %v5633_v55 = vadd.f32 %v5632_v51, %v11377_v45  ;;  %v5634_v59 = vpop.f32.mrb[161].mxu0 }
 0xd00   : > { %v5822_v39 = vmul.f32 %v5765_v38, %v5694_v12  ;;  %v5635_v24 = vadd.f32 %v5634_v59, %v11377_v45  ;;  %v5506_v38 = vpop.permute.xlu1 %5505 }
 0xd01   : > { %v5845_v10 = vadd.f32 %v5844_v35, %v5821_v31  ;;  %v5695_v11 = vmax.f32 %v5633_v55, 0.0  ;;  %v5795_v31 = vpop.permute.xlu0 %5794 }
 0xd02   : > { %v5866_v13 = vadd.f32 %v5865_v42, %v5822_v39  ;;  %v5696_v6 = vmax.f32 %v5635_v24, 0.0  ;;  %v5638_v47 = vpop.f32.mrb[162].mxu0 }
 0xd03   : > { %v5823_v30 = vmul.f32 %v5770_v53, %v5695_v11  ;;  %v5639_v62 = vadd.f32 %v5638_v47, %v5486_v15  ;;  %v5640_v26 = vpop.f32.mrb[163].mxu0 }
 0xd04   : > { %v5824_v54 = vmul.f32 %v5770_v53, %v5696_v6  ;;  %v5641_v20 = vadd.f32 %v5640_v26, %v5486_v15  ;;  %v5511_v16 = vpop.permute.xlu1 %5510 }
 0xd05   : > { %v5846_v58 = vadd.f32 %v5845_v10, %v5823_v30  ;;  %v5697_v19 = vmax.f32 %v5639_v62, 0.0 }
 0xd06   : > { %v5867_v5 = vadd.f32 %v5866_v13, %v5824_v54  ;;  %v5698_v27 = vmax.f32 %v5641_v20, 0.0  ;;  %v5644_v52 = vpop.f32.mrb[164].mxu0 }
 0xd07   : > { %v5825_v29 = vmul.f32 %v5775_v23, %v5697_v19  ;;  %v5645_v60 = vadd.f32 %v5644_v52, %v5491_v36  ;;  %v5646_v45 = vpop.f32.mrb[165].mxu0 }
 0xd08   : > { %v5826_v18 = vmul.f32 %v5775_v23, %v5698_v27  ;;  %v5647_v48 = vadd.f32 %v5646_v45, %v5491_v36  ;;  %v5516_v37 = vpop.permute.xlu1 %5515 }
 0xd09   : > { %v5847_v61 = vadd.f32 %v5846_v58, %v5825_v29  ;;  %v5699_v28 = vmax.f32 %v5645_v60, 0.0  ;;  %v5805_v29 = vpop.permute.xlu0 %5804 }
 0xd0a   : > { %v5868_v9 = vadd.f32 %v5867_v5, %v5826_v18  ;;  %v5700_v17 = vmax.f32 %v5647_v48, 0.0  ;;  %v5650_v40 = vpop.f32.mrb[166].mxu0  ;;  %v5887_v48 = vlaneseq }
 0xd0b   : > { %v5827_v1 = vmul.f32 %v5780_v56, %v5699_v28  ;;  %v5651_v57 = vadd.f32 %v5650_v40, %v5496_v8  ;;  %v5652_v15 = vpop.f32.mrb[167].mxu0 }
 0xd0c   : > { %v5828_v25 = vmul.f32 %v5780_v56, %v5700_v17  ;;  %v5653_v46 = vadd.f32 %v5652_v15, %v5496_v8  ;;  %v5800_v30 = vpop.permute.xlu1 %5799  ;;  %v5888_v17 = vshrl.u32 %v5887_v48, 7  ;;  %v7951_v15 = vmov 1966171168  }
 0xd0d   : > { %v5848_v3 = vadd.f32 %v5847_v61, %v5827_v1  ;;  %v5701_v33 = vmax.f32 %v5651_v57, 0.0  ;;  %vm5913_vm1 = vcmp.lt.s32.totalorder %v5887_v48, 256 }
 0xd0e   : > { %v5869_v49 = vadd.f32 %v5868_v9, %v5828_v25  ;;  %v5702_v53 = vmax.f32 %v5653_v46, 0.0  ;;  %v5656_v43 = vpop.f32.mrb[168].mxu0  ;;  %v5897_v25 = vunpack.c.l.s4 %v7951_v15 }
 0xd0f   : > { %v5829_v21 = vmul.f32 %v5785_v22, %v5701_v33  ;;  %v5657_v34 = vadd.f32 %v5656_v43, %v5501_v50  ;;  %v5658_v36 = vpop.f32.mrb[169].mxu0 }
 0xd10   : > { %v5830_v0 = vmul.f32 %v5785_v22, %v5702_v53  ;;  %v5659_v44 = vadd.f32 %v5658_v36, %v5501_v50  ;;  %v5898_v43 = vunpack.c.0.s8 %v5897_v25 }
 0xd11   : > { %v5849_v63 = vadd.f32 %v5848_v3, %v5829_v21  ;;  %v5703_v7 = vmax.f32 %v5657_v34, 0.0  ;;  %v5889_v3 = vsub.s32 0, %v5888_v17 }
 0xd12   : > { %v5870_v2 = vadd.f32 %v5869_v49, %v5830_v0  ;;  %v5704_v4 = vmax.f32 %v5659_v44, 0.0  ;;  %v5662_v14 = vpop.f32.mrb[170].mxu0  ;;  %v5901_v44 = vsub.s32 %v5898_v43, %v5888_v17 }
 0xd13   : > { %v5831_v41 = vmul.f32 %v5790_v32, %v5703_v7  ;;  %v5663_v35 = vadd.f32 %v5662_v14, %v5506_v38  ;;  %v5664_v8 = vpop.f32.mrb[171].mxu0 }
 0xd14   : > { %v5832_v23 = vmul.f32 %v5790_v32, %v5704_v4  ;;  %v5665_v42 = vadd.f32 %v5664_v8, %v5506_v38 }
 0xd15   : > { %v5850_v12 = vadd.f32 %v5849_v63, %v5831_v41  ;;  %v5705_v51 = vmax.f32 %v5663_v35, 0.0 }
 0xd16   : > { %v5871_v55 = vadd.f32 %v5870_v2, %v5832_v23  ;;  %v5706_v59 = vmax.f32 %v5665_v42, 0.0  ;;  %v5668_v39 = vpop.f32.mrb[172].mxu0 }
 0xd17   : > { %v5833_v24 = vmul.f32 %v5795_v31, %v5705_v51  ;;  %v5669_v10 = vadd.f32 %v5668_v39, %v5511_v16  ;;  %v5670_v11 = vpop.f32.mrb[173].mxu0 }
 0xd18   : > { %v5834_v50 = vmul.f32 %v5795_v31, %v5706_v59  ;;  %v5671_v13 = vadd.f32 %v5670_v11, %v5511_v16  ;;  %v5885_v16 = vpop.permute.xlu1 %5884 }
 0xd19   : > { %v5851_v6 = vadd.f32 %v5850_v12, %v5833_v24  ;;  %v5707_v47 = vmax.f32 %v5669_v10, 0.0  ;;  %v5890_v34 = vrot.slane %v5885_v16, %v5889_v3 }
 0xd1a   : > { %v5872_v62 = vadd.f32 %v5871_v55, %v5834_v50  ;;  %v5708_v26 = vmax.f32 %v5671_v13, 0.0  ;;  %v5674_v56 = vpop.f32.mrb[174].mxu0 }
 0xd1b   : > { %v5835_v54 = vmul.f32 %v5800_v30, %v5707_v47  ;;  %v5675_v20 = vadd.f32 %v5674_v56, %v5516_v37  ;;  %v5676_v58 = vpop.f32.mrb[175].mxu0 }
 0xd1c   : > { %v5836_v19 = vmul.f32 %v5800_v30, %v5708_v26  ;;  %v5677_v5 = vadd.f32 %v5676_v58, %v5516_v37 }
 0xd1d   : > { %v5852_v27 = vadd.f32 %v5851_v6, %v5835_v54  ;;  %v5709_v52 = vmax.f32 %v5675_v20, 0.0 }
 0xd1e   : > { %v5873_v60 = vadd.f32 %v5872_v62, %v5836_v19  ;;  %v5710_v45 = vmax.f32 %v5677_v5, 0.0 }
 0xd1f   : > { %v5837_v38 = vmul.f32 %v5805_v29, %v5709_v52 }
 0xd20   : > { %v5838_v18 = vmul.f32 %v5805_v29, %v5710_v45 }
 0xd21   : > { %v5853_v61 = vadd.f32 %v5852_v27, %v5837_v38 }
 0xd22   : > { %v5874_v28 = vadd.f32 %v5873_v60, %v5838_v18 }
 0xd23   : > { %v5854_v22 = vrot.slane %v5853_v61, 4 }
 0xd24   : > { %v5875_v9 = vrot.slane %v5874_v28, 4 }
 0xd25   : > { %v5855_v40 = vadd.f32 %v5854_v22, %v5853_v61 }
 0xd26   : > { %v5876_v1 = vadd.f32 %v5875_v9, %v5874_v28 }
 0xd27   : > { %v5856_v57 = vrot.slane %v5855_v40, 2 }
 0xd28   : > { %v5877_v46 = vrot.slane %v5876_v1, 2 }
 0xd29   : > { %v5857_v33 = vadd.f32 %v5856_v57, %v5855_v40 }
 0xd2a   : > { %v5878_v49 = vadd.f32 %v5877_v46, %v5876_v1 }
 0xd2b   : > { %v5858_v53 = vrot.slane %v5857_v33, 1 }
 0xd2c   : > { %v5879_v21 = vrot.slane %v5878_v49, 1 }
 0xd2d   : > { %v5859_v36 = vadd.f32 %v5858_v53, %v5857_v33 }
 0xd2e   : > { %v5880_v32 = vadd.f32 %v5879_v21, %v5878_v49 }
 0xd2f   : > { %v5891_v0 = vadd.f32 %v5890_v34, %v5859_v36 }
 0xd30   : > { %v5892_v63 = vadd.f32 %v5890_v34, %v5880_v32 }
 0xd32   : > { %v5895_v7 = vcombine.low %v5891_v0, %v5892_v63 }
 0xd34   : > { %v5902_v2 = vrot.slane %v5895_v7, %v5901_v44 }
 0xd36   : > { %v5909_v4 = vrot.slane %v5902_v2, %v5901_v44 }
 0xd38   : > { %5915 = vst.msk [vmem:[%s496_s22] sm:$0x3] %vm5913_vm1, %v5909_v4 }
 0xd39 PF: > { %s27_s20 = sadd.s32 1, %s7947_s20  }
 0xd3a   : > { %p24_p5 = scmp.ge.s32.totalorder %s27_s20, 4  }
 0xd3c   :  { %26 = sbr.rel (!%p24_p5) target bundleno = 3 (0x3), region = 128 }

</bundles_post_ra>
